<compile_context>
chip_gen: v7x
topology: tpu7x:2x2x1
jax: 0.10.0
libtpu: 0.0.40
codegen_flags: <defaults>
</compile_context>

<pallas_src>
import math
import jax
import jax.numpy as jnp
from jax.experimental import pallas as pl
from jax.experimental.pallas import tpu as pltpu

K = 4  # kernel size of both convs (fixed by CNNBlock2), padding = 1


# ----------------------------- pass 1: conv3 + partial BN1 stats -------------
def conv3_kernel(xp_ref, w1_ref, a1_ref, s1_ref):
    # xp_ref: (H+2, W+2, Cin) bf16  zero-padded image (one batch element)
    # w1_ref: (K*K*Cin, C1)   bf16  conv3 weights, (dy, dx, cin)-major rows
    # a1_ref: (H1, W1, C1)    f32   raw (pre-BN) conv3 output
    # s1_ref: (2, C1)         f32   per-image partial [sum, sumsq]
    HP, WP, Cin = xp_ref.shape
    KKCin, C1 = w1_ref.shape
    H1, W1 = HP - K + 1, WP - K + 1

    xp = xp_ref[...]
    # dx-group along lanes (4 sublane-shifted copies, done once, in-kernel).
    xg = jnp.concatenate([xp[:, dx:dx + W1, :] for dx in range(K)], axis=-1)
    # dy-group along lanes: leading-axis slices are free; piece width 4*Cin is
    # a multiple of 128, so the concat writes are lane-aligned.
    big = jnp.concatenate([xg[dy:dy + H1] for dy in range(K)], axis=-1)
    # Single MXU issue with K = 4*4*Cin (amortizes fill/drain vs 4 per-dy
    # matmuls); the reshape below is the one unavoidable relayout when W1%8!=0.
    patch = big.reshape(H1 * W1, KKCin)
    acc = jnp.dot(patch, w1_ref[...], preferred_element_type=jnp.float32)

    a1_ref[...] = acc.reshape(H1, W1, C1)
    # One-pass stats (sum + sumsq) in f32; combined across the batch in XLA.
    s1_ref[0:1, :] = jnp.sum(acc, axis=0, keepdims=True)
    s1_ref[1:2, :] = jnp.sum(acc * acc, axis=0, keepdims=True)


# ------------- pass 2: BN1+ReLU -> conv4 -> partial BN2 stats + maxpool ------
def conv4_pool_kernel(a1_ref, sc1_ref, sh1_ref, w2_ref, p2_ref, s2_ref,
                      h1p_ref, acc_ref):
    # a1_ref : (H1, W1, C1) f32   raw conv3 output for this image
    # sc1_ref: (1, C1)      f32   BN1 scale = rsqrt(var + eps)  (batch stats)
    # sh1_ref: (1, C1)      f32   BN1 shift = -mean * scale
    # w2_ref : (K, K*C1, C2) bf16 conv4 weights, dy-major / (dx, cin)-grouped
    # p2_ref : (Hp*Wp, C2)  f32   pooled, pre-BN2 conv4 output (2-D slab)
    # s2_ref : (2, C2)      f32   per-image partial BN2 [sum, sumsq] (pre-pool)
    # h1p_ref: (H1+2, W1+2, C1) bf16 scratch  zero-padded conv3 activation
    # acc_ref: (H2, W2, C2) f32 scratch       raw conv4 accumulator
    H1, W1, C1 = a1_ref.shape
    _, KC1, C2 = w2_ref.shape
    HP1, WP1 = H1 + 2, W1 + 2
    H2, W2 = HP1 - K + 1, WP1 - K + 1
    Hp, Wp = H2 // 2, W2 // 2

    # BN1 (batch stats, gamma=1/beta=0) + ReLU; bf16 operand for the MXU.
    h1 = jnp.maximum(a1_ref[...] * sc1_ref[...] + sh1_ref[...], 0.0
                     ).astype(h1p_ref.dtype)

    # Stage into the padded scratch; only the 1-wide halo is zeroed.
    zrow = jnp.zeros((1, WP1, C1), h1p_ref.dtype)
    zcol = jnp.zeros((HP1, 1, C1), h1p_ref.dtype)
    h1p_ref[0:1, :, :] = zrow
    h1p_ref[HP1 - 1:HP1, :, :] = zrow
    h1p_ref[:, 0:1, :] = zcol
    h1p_ref[:, WP1 - 1:WP1, :] = zcol
    h1p_ref[1:1 + H1, 1:1 + W1, :] = h1

    # dx-group ONCE (hoisted out of the dy loop): 4 W-shifted slices
    # lane-concatenated -> (HP1, W2, 4*C1).  Reused by all 4 dy matmuls.
    hg = jnp.concatenate([h1p_ref[:, dx:dx + W2, :] for dx in range(K)],
                         axis=-1)

    # conv4: 4 dy-grouped MXU matmuls (K = 4*C1).  Per-dy patch is a free
    # leading-axis slice of hg; its reshape is layout-preserving (W2 % 8 == 0).
    # Accumulate into a VMEM scratch ref (no big live accumulator value).
    for dy in range(K):
        patch = hg[dy:dy + H2].reshape(H2 * W2, KC1)
        contrib = jnp.dot(patch, w2_ref[dy],
                          preferred_element_type=jnp.float32)
        if dy == 0:
            acc_ref[...] = contrib.reshape(H2, W2, C2)
        else:
            acc_ref[...] += contrib.reshape(H2, W2, C2)

    # BN2 partial stats over the FULL-resolution conv4 output (pre-pool).
    a2 = acc_ref[...]
    a2f = a2.reshape(H2 * W2, C2)                      # layout-preserving
    s2_ref[0:1, :] = jnp.sum(a2f, axis=0, keepdims=True)
    s2_ref[1:2, :] = jnp.sum(a2f * a2f, axis=0, keepdims=True)

    # 2x2 maxpool on the RAW accumulator (commutes with the positive-scale BN2
    # affine applied in pass 3).  H-pool first: its reshape only regroups the
    # untiled leading axis (free); the W-pool relayout then touches a
    # half-size tensor.
    # TODO(synk): a sublane-strided (pl.ds stride=2) W-pool would avoid this
    # last small relayout entirely.
    if (H2 % 2) or (W2 % 2):
        a2 = a2[0:2 * Hp, 0:2 * Wp, :]                 # floor pooling
    hpool = jnp.max(a2.reshape(Hp, 2, 2 * Wp, C2), axis=1)    # (Hp, 2*Wp, C2)
    pooled = jnp.max(hpool.reshape(Hp, Wp, 2, C2), axis=2)    # (Hp, Wp, C2)
    p2_ref[...] = pooled.reshape(Hp * Wp, C2)


# ------------------------- pass 3: BN2 affine + ReLU -------------------------
def bn2_relu_kernel(p2_ref, sc2_ref, sh2_ref, y_ref):
    # p2_ref: (Hp*Wp, C2) f32 pooled raw conv4;  sc2/sh2: (1, C2) f32
    y_ref[...] = jnp.maximum(p2_ref[...] * sc2_ref[...] + sh2_ref[...], 0.0)


def cnn_block2(x_nchw, w1_oihw, w2_oihw):
    """Forward pass of CNNBlock2.  x: (N,96,H,W) f32 -> (N,384,(H-2)//2,(W-2)//2)."""
    N, Cin, H, W = x_nchw.shape
    C1 = w1_oihw.shape[0]                        # 192
    C2 = w2_oihw.shape[0]                        # 384
    H1, W1 = H + 2 - K + 1, W + 2 - K + 1        # after conv3 (pad=1)
    H2, W2 = H1 + 2 - K + 1, W1 + 2 - K + 1      # after conv4 (pad=1)
    Hp, Wp = H2 // 2, W2 // 2                    # after maxpool2 (floor)
    eps = 1e-5

    # Glue: NCHW -> NHWC, zero-pad by 1, bf16.  Only the padded NHWC input goes
    # through HBM; the im2col grouping is built in-kernel (saves ~4x input-side
    # HBM traffic vs a wrapper-built im2col).
    xp = jnp.pad(jnp.transpose(x_nchw, (0, 2, 3, 1)),
                 ((0, 0), (1, 1), (1, 1), (0, 0))).astype(jnp.bfloat16)

    # Conv weights, bf16 for the MXU (f32 accumulation in-kernel).
    # conv3: OIHW -> rows ordered (dy, dx, cin), single K = 4*4*Cin matmul.
    w1g = jnp.transpose(w1_oihw, (2, 3, 1, 0)).reshape(K * K * Cin, C1
                                                       ).astype(jnp.bfloat16)
    # conv4: dy-major, (dx, cin)-grouped -> (K, K*C1, C2).
    w2g = jnp.transpose(w2_oihw, (2, 3, 1, 0)).reshape(K, K * C1, C2
                                                       ).astype(jnp.bfloat16)

    par = pltpu.CompilerParams(dimension_semantics=("parallel",))
    M1, M2 = N * H1 * W1, N * H2 * W2

    # ---------------- pass 1: conv3 + per-image partial BN1 stats ------------
    cost1 = pl.CostEstimate(
        flops=2 * M1 * (K * K * Cin) * C1, transcendentals=0,
        bytes_accessed=int(xp.size * 2 + w1g.size * 2
                           + M1 * C1 * 4 + N * 2 * C1 * 4))
    a1, s1 = pl.pallas_call(
        conv3_kernel,
        grid=(N,),
        in_specs=[pl.BlockSpec((None, H + 2, W + 2, Cin),
                               lambda b: (b, 0, 0, 0)),
                  pl.BlockSpec((K * K * Cin, C1), lambda b: (0, 0))],
        out_specs=(pl.BlockSpec((None, H1, W1, C1), lambda b: (b, 0, 0, 0)),
                   pl.BlockSpec((None, 2, C1), lambda b: (b, 0, 0))),
        out_shape=(jax.ShapeDtypeStruct((N, H1, W1, C1), jnp.float32),
                   jax.ShapeDtypeStruct((N, 2, C1), jnp.float32)),
        compiler_params=par,
        cost_estimate=cost1,
    )(xp, w1g)

    # BN1 batch statistics: tiny XLA reduction over the per-image partials
    # (the cross-batch sync point of BatchNorm).  Conv bias omitted: a
    # per-channel constant is exactly cancelled by this batch-stats BN.
    tot1 = jnp.sum(s1, axis=0)                         # (2, C1)
    mean1 = tot1[0] / M1
    var1 = jnp.maximum(tot1[1] / M1 - mean1 * mean1, 0.0)
    sc1 = jax.lax.rsqrt(var1 + eps).reshape(1, C1)
    sh1 = (-mean1).reshape(1, C1) * sc1

    # ------ pass 2: BN1+ReLU, conv4, maxpool(raw), partial BN2 stats ---------
    cost2 = pl.CostEstimate(
        flops=2 * M2 * (K * K * C1) * C2, transcendentals=0,
        bytes_accessed=int(M1 * C1 * 4 + w2g.size * 2
                           + N * Hp * Wp * C2 * 4 + N * 2 * C2 * 4))
    p2, s2 = pl.pallas_call(
        conv4_pool_kernel,
        grid=(N,),
        in_specs=[pl.BlockSpec((None, H1, W1, C1), lambda b: (b, 0, 0, 0)),
                  pl.BlockSpec((1, C1), lambda b: (0, 0)),
                  pl.BlockSpec((1, C1), lambda b: (0, 0)),
                  pl.BlockSpec((K, K * C1, C2), lambda b: (0, 0, 0))],
        out_specs=(pl.BlockSpec((None, Hp * Wp, C2), lambda b: (b, 0, 0)),
                   pl.BlockSpec((None, 2, C2), lambda b: (b, 0, 0))),
        out_shape=(jax.ShapeDtypeStruct((N, Hp * Wp, C2), jnp.float32),
                   jax.ShapeDtypeStruct((N, 2, C2), jnp.float32)),
        scratch_shapes=[pltpu.VMEM((H1 + 2, W1 + 2, C1), jnp.bfloat16),
                        pltpu.VMEM((H2, W2, C2), jnp.float32)],
        compiler_params=par,
        cost_estimate=cost2,
    )(a1, sc1, sh1, w2g)

    tot2 = jnp.sum(s2, axis=0)                         # (2, C2)
    mean2 = tot2[0] / M2
    var2 = jnp.maximum(tot2[1] / M2 - mean2 * mean2, 0.0)
    sc2 = jax.lax.rsqrt(var2 + eps).reshape(1, C2)
    sh2 = (-mean2).reshape(1, C2) * sc2

    # ---------------- pass 3: BN2 affine + ReLU on the pooled slab -----------
    y2d = pl.pallas_call(
        bn2_relu_kernel,
        grid=(N,),
        in_specs=[pl.BlockSpec((None, Hp * Wp, C2), lambda b: (b, 0, 0)),
                  pl.BlockSpec((1, C2), lambda b: (0, 0)),
                  pl.BlockSpec((1, C2), lambda b: (0, 0))],
        out_specs=pl.BlockSpec((None, Hp * Wp, C2), lambda b: (b, 0, 0)),
        out_shape=jax.ShapeDtypeStruct((N, Hp * Wp, C2), jnp.float32),
        compiler_params=par,
    )(p2, sc2, sh2)

    y = y2d.reshape(N, Hp, Wp, C2)
    return jnp.transpose(y, (0, 3, 1, 2))              # back to NCHW


def init_params(key):
    """Conv weights with xavier_normal_ init, matching CNNBlock2's shapes.
    Conv biases are omitted: they are exactly cancelled by the batch-stats BN
    that immediately follows each conv (per-channel constant -> mean shift)."""
    k1, k2 = jax.random.split(key, 2)
    fan_in1, fan_out1 = 96 * 16, 192 * 16
    std1 = math.sqrt(2.0 / (fan_in1 + fan_out1))
    w1 = std1 * jax.random.normal(k1, (192, 96, 4, 4), jnp.float32)
    fan_in2, fan_out2 = 192 * 16, 384 * 16
    std2 = math.sqrt(2.0 / (fan_in2 + fan_out2))
    w2 = std2 * jax.random.normal(k2, (384, 192, 4, 4), jnp.float32)
    # TODO(synk): nn.Dropout(0.3) is declared in __init__ but never applied in
    # forward, and BN running-stat buffer updates are a training side effect
    # with no effect on the forward output -> both omitted.
    return w1, w2


if __name__ == "__main__":
    key = jax.random.PRNGKey(0)
    kx, kp = jax.random.split(key)
    # NCHW like PyTorch; 96 input channels are required by conv3.
    x = jax.random.normal(kx, (2, 96, 10, 10), jnp.float32)
    w1, w2 = init_params(kp)

    y = jax.jit(cnn_block2)(x, w1, w2)
    y = jax.block_until_ready(y)

    # conv3: 10 -> 9, conv4: 9 -> 8, maxpool2: 8 -> 4
    assert y.shape == (2, 384, 4, 4), y.shape
    assert bool(jnp.all(jnp.isfinite(y)))
    assert bool(jnp.all(y >= 0.0))
    print("KERNEL_OK")
</pallas_src>

<mosaic_0001>
module attributes {stable_mosaic.version = 11 : i64} {
  func.func @conv3_kernel(%arg0: i32, %arg1: memref<1x12x12x96xbf16, #tpu.memory_space<vmem>>, %arg2: memref<1536x192xbf16, #tpu.memory_space<vmem>>, %arg3: memref<1x9x9x192xf32, #tpu.memory_space<vmem>>, %arg4: memref<1x2x192xf32, #tpu.memory_space<vmem>>) attributes {dimension_semantics = [#tpu.dimension_semantics<parallel>], iteration_bounds = array<i64: 2>, scalar_prefetch = 0 : i64, scratch_operands = 0 : i64, tpu.core_type = #tpu.core_type<tc>, window_params = [{transform_indices = @transform_0, window_bounds = array<i64: 1, 12, 12, 96>}, {pipeline_mode = #tpu.pipeline_mode<synchronous>, transform_indices = @transform_1, window_bounds = array<i64: 1536, 192>}, {transform_indices = @transform_2, window_bounds = array<i64: 1, 9, 9, 192>}, {transform_indices = @transform_3, window_bounds = array<i64: 1, 2, 192>}]} {
    %c0 = arith.constant 0 : index
    %c0_0 = arith.constant 0 : index
    %c0_1 = arith.constant 0 : index
    %c0_2 = arith.constant 0 : index
    %0 = vector.load %arg1[%c0, %c0_0, %c0_1, %c0_2] : memref<1x12x12x96xbf16, #tpu.memory_space<vmem>>, vector<1x12x12x96xbf16>
    %1 = vector.shape_cast %0 : vector<1x12x12x96xbf16> to vector<12x12x96xbf16>
    %2 = vector.extract_strided_slice %1 {offsets = [0, 0, 0], sizes = [12, 9, 96], strides = [1, 1, 1]} : vector<12x12x96xbf16> to vector<12x9x96xbf16>
    %3 = vector.extract_strided_slice %1 {offsets = [0, 1, 0], sizes = [12, 9, 96], strides = [1, 1, 1]} : vector<12x12x96xbf16> to vector<12x9x96xbf16>
    %4 = vector.extract_strided_slice %1 {offsets = [0, 2, 0], sizes = [12, 9, 96], strides = [1, 1, 1]} : vector<12x12x96xbf16> to vector<12x9x96xbf16>
    %5 = vector.extract_strided_slice %1 {offsets = [0, 3, 0], sizes = [12, 9, 96], strides = [1, 1, 1]} : vector<12x12x96xbf16> to vector<12x9x96xbf16>
    %6 = tpu.concatenate %2, %3, %4, %5 in 2 : vector<12x9x96xbf16>, vector<12x9x96xbf16>, vector<12x9x96xbf16>, vector<12x9x96xbf16> -> vector<12x9x384xbf16>
    %7 = vector.extract_strided_slice %6 {offsets = [0, 0, 0], sizes = [9, 9, 384], strides = [1, 1, 1]} : vector<12x9x384xbf16> to vector<9x9x384xbf16>
    %8 = vector.extract_strided_slice %6 {offsets = [1, 0, 0], sizes = [9, 9, 384], strides = [1, 1, 1]} : vector<12x9x384xbf16> to vector<9x9x384xbf16>
    %9 = vector.extract_strided_slice %6 {offsets = [2, 0, 0], sizes = [9, 9, 384], strides = [1, 1, 1]} : vector<12x9x384xbf16> to vector<9x9x384xbf16>
    %10 = vector.extract_strided_slice %6 {offsets = [3, 0, 0], sizes = [9, 9, 384], strides = [1, 1, 1]} : vector<12x9x384xbf16> to vector<9x9x384xbf16>
    %11 = tpu.concatenate %7, %8, %9, %10 in 2 : vector<9x9x384xbf16>, vector<9x9x384xbf16>, vector<9x9x384xbf16>, vector<9x9x384xbf16> -> vector<9x9x1536xbf16>
    %12 = vector.shape_cast %11 : vector<9x9x1536xbf16> to vector<81x1536xbf16>
    %c0_3 = arith.constant 0 : index
    %c0_4 = arith.constant 0 : index
    %13 = vector.load %arg2[%c0_3, %c0_4] : memref<1536x192xbf16, #tpu.memory_space<vmem>>, vector<1536x192xbf16>
    %cst = arith.constant dense<0.000000e+00> : vector<81x192xf32>
    %14 = tpu.matmul %12, %13, %cst {dimension_numbers = #tpu.dot_dimension_numbers<[1], [0], [0], [1], [0, 0, 1, 1], [], []>} : vector<81x1536xbf16>, vector<1536x192xbf16>, vector<81x192xf32> -> vector<81x192xf32>
    %15 = vector.shape_cast %14 : vector<81x192xf32> to vector<9x9x192xf32>
    %c0_5 = arith.constant 0 : index
    %c0_6 = arith.constant 0 : index
    %c0_7 = arith.constant 0 : index
    %c0_8 = arith.constant 0 : index
    %16 = vector.load %arg3[%c0_5, %c0_6, %c0_7, %c0_8] : memref<1x9x9x192xf32, #tpu.memory_space<vmem>>, vector<1x9x9x192xf32>
    %17 = vector.shape_cast %16 : vector<1x9x9x192xf32> to vector<9x9x192xf32>
    %18 = vector.shape_cast %15 : vector<9x9x192xf32> to vector<1x9x9x192xf32>
    tpu.vector_store %arg3[%c0_5, %c0_6, %c0_7, %c0_8], %18 {strides = array<i32>} : memref<1x9x9x192xf32, #tpu.memory_space<vmem>>, vector<1x9x9x192xf32>,
    %cst_9 = arith.constant dense<0.000000e+00> : vector<192xf32>
    %19 = vector.multi_reduction <add>, %14, %cst_9 [0] : vector<81x192xf32> to vector<192xf32>
    %20 = vector.shape_cast %19 : vector<192xf32> to vector<1x192xf32>
    %c0_10 = arith.constant 0 : index
    %c0_11 = arith.constant 0 : index
    %c0_12 = arith.constant 0 : index
    %21 = vector.load %arg4[%c0_10, %c0_11, %c0_12] : memref<1x2x192xf32, #tpu.memory_space<vmem>>, vector<1x1x192xf32>
    %22 = vector.shape_cast %21 : vector<1x1x192xf32> to vector<1x192xf32>
    %23 = vector.shape_cast %20 : vector<1x192xf32> to vector<1x1x192xf32>
    tpu.vector_store %arg4[%c0_10, %c0_11, %c0_12], %23 {strides = array<i32>} : memref<1x2x192xf32, #tpu.memory_space<vmem>>, vector<1x1x192xf32>,
    %24 = arith.mulf %14, %14 : vector<81x192xf32>
    %cst_13 = arith.constant dense<0.000000e+00> : vector<192xf32>
    %25 = vector.multi_reduction <add>, %24, %cst_13 [0] : vector<81x192xf32> to vector<192xf32>
    %26 = vector.shape_cast %25 : vector<192xf32> to vector<1x192xf32>
    %c0_14 = arith.constant 0 : index
    %c1 = arith.constant 1 : index
    %c0_15 = arith.constant 0 : index
    %27 = vector.load %arg4[%c0_14, %c1, %c0_15] : memref<1x2x192xf32, #tpu.memory_space<vmem>>, vector<1x1x192xf32>
    %28 = vector.shape_cast %27 : vector<1x1x192xf32> to vector<1x192xf32>
    %29 = vector.shape_cast %26 : vector<1x192xf32> to vector<1x1x192xf32>
    tpu.vector_store %arg4[%c0_14, %c1, %c0_15], %29 {strides = array<i32>} : memref<1x2x192xf32, #tpu.memory_space<vmem>>, vector<1x1x192xf32>,
    return
  }
  func.func @transform_0(%arg0: i32) -> (i32, i32, i32, i32) {
    %c0_i32 = arith.constant 0 : i32
    %c0_i32_0 = arith.constant 0 : i32
    %c0_i32_1 = arith.constant 0 : i32
    %c0_i32_2 = arith.constant 0 : i32
    return %arg0, %c0_i32, %c0_i32_0, %c0_i32_1 : i32, i32, i32, i32
  }
  func.func @transform_1(%arg0: i32) -> (i32, i32) {
    %c0_i32 = arith.constant 0 : i32
    %c0_i32_0 = arith.constant 0 : i32
    %c0_i32_1 = arith.constant 0 : i32
    return %c0_i32, %c0_i32_0 : i32, i32
  }
  func.func @transform_2(%arg0: i32) -> (i32, i32, i32, i32) {
    %c0_i32 = arith.constant 0 : i32
    %c0_i32_0 = arith.constant 0 : i32
    %c0_i32_1 = arith.constant 0 : i32
    %c0_i32_2 = arith.constant 0 : i32
    return %arg0, %c0_i32, %c0_i32_0, %c0_i32_1 : i32, i32, i32, i32
  }
  func.func @transform_3(%arg0: i32) -> (i32, i32, i32) {
    %c0_i32 = arith.constant 0 : i32
    %c0_i32_0 = arith.constant 0 : i32
    %c0_i32_1 = arith.constant 0 : i32
    return %arg0, %c0_i32, %c0_i32_0 : i32, i32, i32
  }
}

module attributes {stable_mosaic.version = 11 : i64} {
  func.func @conv4_pool_kernel(%arg0: i32, %arg1: memref<1x9x9x192xf32, #tpu.memory_space<vmem>>, %arg2: memref<1x192xf32, #tpu.memory_space<vmem>>, %arg3: memref<1x192xf32, #tpu.memory_space<vmem>>, %arg4: memref<4x768x384xbf16, #tpu.memory_space<vmem>>, %arg5: memref<1x16x384xf32, #tpu.memory_space<vmem>>, %arg6: memref<1x2x384xf32, #tpu.memory_space<vmem>>, %arg7: memref<11x11x192xbf16, #tpu.memory_space<vmem>>, %arg8: memref<8x8x384xf32, #tpu.memory_space<vmem>>) attributes {dimension_semantics = [#tpu.dimension_semantics<parallel>], iteration_bounds = array<i64: 2>, scalar_prefetch = 0 : i64, scratch_operands = 2 : i64, tpu.core_type = #tpu.core_type<tc>, window_params = [{transform_indices = @transform_0, window_bounds = array<i64: 1, 9, 9, 192>}, {pipeline_mode = #tpu.pipeline_mode<synchronous>, transform_indices = @transform_1, window_bounds = array<i64: 1, 192>}, {pipeline_mode = #tpu.pipeline_mode<synchronous>, transform_indices = @transform_2, window_bounds = array<i64: 1, 192>}, {pipeline_mode = #tpu.pipeline_mode<synchronous>, transform_indices = @transform_3, window_bounds = array<i64: 4, 768, 384>}, {transform_indices = @transform_4, window_bounds = array<i64: 1, 16, 384>}, {transform_indices = @transform_5, window_bounds = array<i64: 1, 2, 384>}]} {
    %c0 = arith.constant 0 : index
    %c0_0 = arith.constant 0 : index
    %c0_1 = arith.constant 0 : index
    %c0_2 = arith.constant 0 : index
    %0 = vector.load %arg1[%c0, %c0_0, %c0_1, %c0_2] : memref<1x9x9x192xf32, #tpu.memory_space<vmem>>, vector<1x9x9x192xf32>
    %1 = vector.shape_cast %0 : vector<1x9x9x192xf32> to vector<9x9x192xf32>
    %c0_3 = arith.constant 0 : index
    %c0_4 = arith.constant 0 : index
    %2 = vector.load %arg2[%c0_3, %c0_4] : memref<1x192xf32, #tpu.memory_space<vmem>>, vector<1x192xf32>
    %3 = vector.shape_cast %2 : vector<1x192xf32> to vector<1x1x192xf32>
    %4 = vector.broadcast %3 : vector<1x1x192xf32> to vector<9x9x192xf32>
    %5 = arith.mulf %1, %4 : vector<9x9x192xf32>
    %c0_5 = arith.constant 0 : index
    %c0_6 = arith.constant 0 : index
    %6 = vector.load %arg3[%c0_5, %c0_6] : memref<1x192xf32, #tpu.memory_space<vmem>>, vector<1x192xf32>
    %7 = vector.shape_cast %6 : vector<1x192xf32> to vector<1x1x192xf32>
    %8 = vector.broadcast %7 : vector<1x1x192xf32> to vector<9x9x192xf32>
    %9 = arith.addf %5, %8 : vector<9x9x192xf32>
    %cst = arith.constant 0.000000e+00 : f32
    %10 = vector.broadcast %cst : f32 to vector<9x9x192xf32>
    %11 = arith.maximumf %9, %10 : vector<9x9x192xf32>
    %12 = arith.truncf %11 : vector<9x9x192xf32> to vector<9x9x192xbf16>
    %cst_7 = arith.constant 0.000000e+00 : bf16
    %13 = vector.broadcast %cst_7 : bf16 to vector<1x11x192xbf16>
    %cst_8 = arith.constant 0.000000e+00 : bf16
    %14 = vector.broadcast %cst_8 : bf16 to vector<11x1x192xbf16>
    %c0_9 = arith.constant 0 : index
    %c0_10 = arith.constant 0 : index
    %c0_11 = arith.constant 0 : index
    %15 = vector.load %arg7[%c0_9, %c0_10, %c0_11] : memref<11x11x192xbf16, #tpu.memory_space<vmem>>, vector<1x11x192xbf16>
    tpu.vector_store %arg7[%c0_9, %c0_10, %c0_11], %13 {strides = array<i32>} : memref<11x11x192xbf16, #tpu.memory_space<vmem>>, vector<1x11x192xbf16>,
    %c10 = arith.constant 10 : index
    %c0_12 = arith.constant 0 : index
    %c0_13 = arith.constant 0 : index
    %16 = vector.load %arg7[%c10, %c0_12, %c0_13] : memref<11x11x192xbf16, #tpu.memory_space<vmem>>, vector<1x11x192xbf16>
    tpu.vector_store %arg7[%c10, %c0_12, %c0_13], %13 {strides = array<i32>} : memref<11x11x192xbf16, #tpu.memory_space<vmem>>, vector<1x11x192xbf16>,
    %c0_14 = arith.constant 0 : index
    %c0_15 = arith.constant 0 : index
    %c0_16 = arith.constant 0 : index
    %17 = vector.load %arg7[%c0_14, %c0_15, %c0_16] : memref<11x11x192xbf16, #tpu.memory_space<vmem>>, vector<11x1x192xbf16>
    tpu.vector_store %arg7[%c0_14, %c0_15, %c0_16], %14 {strides = array<i32>} : memref<11x11x192xbf16, #tpu.memory_space<vmem>>, vector<11x1x192xbf16>,
    %c0_17 = arith.constant 0 : index
    %c10_18 = arith.constant 10 : index
    %c0_19 = arith.constant 0 : index
    %18 = vector.load %arg7[%c0_17, %c10_18, %c0_19] : memref<11x11x192xbf16, #tpu.memory_space<vmem>>, vector<11x1x192xbf16>
    tpu.vector_store %arg7[%c0_17, %c10_18, %c0_19], %14 {strides = array<i32>} : memref<11x11x192xbf16, #tpu.memory_space<vmem>>, vector<11x1x192xbf16>,
    %c1 = arith.constant 1 : index
    %c1_20 = arith.constant 1 : index
    %c0_21 = arith.constant 0 : index
    %19 = vector.load %arg7[%c1, %c1_20, %c0_21] : memref<11x11x192xbf16, #tpu.memory_space<vmem>>, vector<9x9x192xbf16>
    tpu.vector_store %arg7[%c1, %c1_20, %c0_21], %12 {strides = array<i32>} : memref<11x11x192xbf16, #tpu.memory_space<vmem>>, vector<9x9x192xbf16>,
    %c0_22 = arith.constant 0 : index
    %c0_23 = arith.constant 0 : index
    %c0_24 = arith.constant 0 : index
    %20 = vector.load %arg7[%c0_22, %c0_23, %c0_24] : memref<11x11x192xbf16, #tpu.memory_space<vmem>>, vector<11x8x192xbf16>
    %c0_25 = arith.constant 0 : index
    %c1_26 = arith.constant 1 : index
    %c0_27 = arith.constant 0 : index
    %21 = vector.load %arg7[%c0_25, %c1_26, %c0_27] : memref<11x11x192xbf16, #tpu.memory_space<vmem>>, vector<11x8x192xbf16>
    %c0_28 = arith.constant 0 : index
    %c2 = arith.constant 2 : index
    %c0_29 = arith.constant 0 : index
    %22 = vector.load %arg7[%c0_28, %c2, %c0_29] : memref<11x11x192xbf16, #tpu.memory_space<vmem>>, vector<11x8x192xbf16>
    %c0_30 = arith.constant 0 : index
    %c3 = arith.constant 3 : index
    %c0_31 = arith.constant 0 : index
    %23 = vector.load %arg7[%c0_30, %c3, %c0_31] : memref<11x11x192xbf16, #tpu.memory_space<vmem>>, vector<11x8x192xbf16>
    %24 = tpu.concatenate %20, %21, %22, %23 in 2 : vector<11x8x192xbf16>, vector<11x8x192xbf16>, vector<11x8x192xbf16>, vector<11x8x192xbf16> -> vector<11x8x768xbf16>
    %25 = vector.extract_strided_slice %24 {offsets = [0, 0, 0], sizes = [8, 8, 768], strides = [1, 1, 1]} : vector<11x8x768xbf16> to vector<8x8x768xbf16>
    %26 = vector.shape_cast %25 : vector<8x8x768xbf16> to vector<64x768xbf16>
    %c0_32 = arith.constant 0 : index
    %c0_33 = arith.constant 0 : index
    %c0_34 = arith.constant 0 : index
    %27 = vector.load %arg4[%c0_32, %c0_33, %c0_34] : memref<4x768x384xbf16, #tpu.memory_space<vmem>>, vector<1x768x384xbf16>
    %28 = vector.shape_cast %27 : vector<1x768x384xbf16> to vector<768x384xbf16>
    %cst_35 = arith.constant dense<0.000000e+00> : vector<64x384xf32>
    %29 = tpu.matmul %26, %28, %cst_35 {dimension_numbers = #tpu.dot_dimension_numbers<[1], [0], [0], [1], [0, 0, 1, 1], [], []>} : vector<64x768xbf16>, vector<768x384xbf16>, vector<64x384xf32> -> vector<64x384xf32>
    %30 = vector.shape_cast %29 : vector<64x384xf32> to vector<8x8x384xf32>
    %c0_36 = arith.constant 0 : index
    %c0_37 = arith.constant 0 : index
    %c0_38 = arith.constant 0 : index
    %31 = vector.load %arg8[%c0_36, %c0_37, %c0_38] : memref<8x8x384xf32, #tpu.memory_space<vmem>>, vector<8x8x384xf32>
    tpu.vector_store %arg8[%c0_36, %c0_37, %c0_38], %30 {strides = array<i32>} : memref<8x8x384xf32, #tpu.memory_space<vmem>>, vector<8x8x384xf32>,
    %32 = vector.extract_strided_slice %24 {offsets = [1, 0, 0], sizes = [8, 8, 768], strides = [1, 1, 1]} : vector<11x8x768xbf16> to vector<8x8x768xbf16>
    %33 = vector.shape_cast %32 : vector<8x8x768xbf16> to vector<64x768xbf16>
    %c1_39 = arith.constant 1 : index
    %c0_40 = arith.constant 0 : index
    %c0_41 = arith.constant 0 : index
    %34 = vector.load %arg4[%c1_39, %c0_40, %c0_41] : memref<4x768x384xbf16, #tpu.memory_space<vmem>>, vector<1x768x384xbf16>
    %35 = vector.shape_cast %34 : vector<1x768x384xbf16> to vector<768x384xbf16>
    %cst_42 = arith.constant dense<0.000000e+00> : vector<64x384xf32>
    %36 = tpu.matmul %33, %35, %cst_42 {dimension_numbers = #tpu.dot_dimension_numbers<[1], [0], [0], [1], [0, 0, 1, 1], [], []>} : vector<64x768xbf16>, vector<768x384xbf16>, vector<64x384xf32> -> vector<64x384xf32>
    %c0_43 = arith.constant 0 : index
    %c0_44 = arith.constant 0 : index
    %c0_45 = arith.constant 0 : index
    %37 = vector.load %arg8[%c0_43, %c0_44, %c0_45] : memref<8x8x384xf32, #tpu.memory_space<vmem>>, vector<8x8x384xf32>
    %38 = vector.shape_cast %36 : vector<64x384xf32> to vector<8x8x384xf32>
    %39 = arith.addf %37, %38 : vector<8x8x384xf32>
    %c0_46 = arith.constant 0 : index
    %c0_47 = arith.constant 0 : index
    %c0_48 = arith.constant 0 : index
    %40 = vector.load %arg8[%c0_46, %c0_47, %c0_48] : memref<8x8x384xf32, #tpu.memory_space<vmem>>, vector<8x8x384xf32>
    tpu.vector_store %arg8[%c0_46, %c0_47, %c0_48], %39 {strides = array<i32>} : memref<8x8x384xf32, #tpu.memory_space<vmem>>, vector<8x8x384xf32>,
    %41 = vector.extract_strided_slice %24 {offsets = [2, 0, 0], sizes = [8, 8, 768], strides = [1, 1, 1]} : vector<11x8x768xbf16> to vector<8x8x768xbf16>
    %42 = vector.shape_cast %41 : vector<8x8x768xbf16> to vector<64x768xbf16>
    %c2_49 = arith.constant 2 : index
    %c0_50 = arith.constant 0 : index
    %c0_51 = arith.constant 0 : index
    %43 = vector.load %arg4[%c2_49, %c0_50, %c0_51] : memref<4x768x384xbf16, #tpu.memory_space<vmem>>, vector<1x768x384xbf16>
    %44 = vector.shape_cast %43 : vector<1x768x384xbf16> to vector<768x384xbf16>
    %cst_52 = arith.constant dense<0.000000e+00> : vector<64x384xf32>
    %45 = tpu.matmul %42, %44, %cst_52 {dimension_numbers = #tpu.dot_dimension_numbers<[1], [0], [0], [1], [0, 0, 1, 1], [], []>} : vector<64x768xbf16>, vector<768x384xbf16>, vector<64x384xf32> -> vector<64x384xf32>
    %c0_53 = arith.constant 0 : index
    %c0_54 = arith.constant 0 : index
    %c0_55 = arith.constant 0 : index
    %46 = vector.load %arg8[%c0_53, %c0_54, %c0_55] : memref<8x8x384xf32, #tpu.memory_space<vmem>>, vector<8x8x384xf32>
    %47 = vector.shape_cast %45 : vector<64x384xf32> to vector<8x8x384xf32>
    %48 = arith.addf %46, %47 : vector<8x8x384xf32>
    %c0_56 = arith.constant 0 : index
    %c0_57 = arith.constant 0 : index
    %c0_58 = arith.constant 0 : index
    %49 = vector.load %arg8[%c0_56, %c0_57, %c0_58] : memref<8x8x384xf32, #tpu.memory_space<vmem>>, vector<8x8x384xf32>
    tpu.vector_store %arg8[%c0_56, %c0_57, %c0_58], %48 {strides = array<i32>} : memref<8x8x384xf32, #tpu.memory_space<vmem>>, vector<8x8x384xf32>,
    %50 = vector.extract_strided_slice %24 {offsets = [3, 0, 0], sizes = [8, 8, 768], strides = [1, 1, 1]} : vector<11x8x768xbf16> to vector<8x8x768xbf16>
    %51 = vector.shape_cast %50 : vector<8x8x768xbf16> to vector<64x768xbf16>
    %c3_59 = arith.constant 3 : index
    %c0_60 = arith.constant 0 : index
    %c0_61 = arith.constant 0 : index
    %52 = vector.load %arg4[%c3_59, %c0_60, %c0_61] : memref<4x768x384xbf16, #tpu.memory_space<vmem>>, vector<1x768x384xbf16>
    %53 = vector.shape_cast %52 : vector<1x768x384xbf16> to vector<768x384xbf16>
    %cst_62 = arith.constant dense<0.000000e+00> : vector<64x384xf32>
    %54 = tpu.matmul %51, %53, %cst_62 {dimension_numbers = #tpu.dot_dimension_numbers<[1], [0], [0], [1], [0, 0, 1, 1], [], []>} : vector<64x768xbf16>, vector<768x384xbf16>, vector<64x384xf32> -> vector<64x384xf32>
    %c0_63 = arith.constant 0 : index
    %c0_64 = arith.constant 0 : index
    %c0_65 = arith.constant 0 : index
    %55 = vector.load %arg8[%c0_63, %c0_64, %c0_65] : memref<8x8x384xf32, #tpu.memory_space<vmem>>, vector<8x8x384xf32>
    %56 = vector.shape_cast %54 : vector<64x384xf32> to vector<8x8x384xf32>
    %57 = arith.addf %55, %56 : vector<8x8x384xf32>
    %c0_66 = arith.constant 0 : index
    %c0_67 = arith.constant 0 : index
    %c0_68 = arith.constant 0 : index
    %58 = vector.load %arg8[%c0_66, %c0_67, %c0_68] : memref<8x8x384xf32, #tpu.memory_space<vmem>>, vector<8x8x384xf32>
    tpu.vector_store %arg8[%c0_66, %c0_67, %c0_68], %57 {strides = array<i32>} : memref<8x8x384xf32, #tpu.memory_space<vmem>>, vector<8x8x384xf32>,
    %c0_69 = arith.constant 0 : index
    %c0_70 = arith.constant 0 : index
    %c0_71 = arith.constant 0 : index
    %59 = vector.load %arg8[%c0_69, %c0_70, %c0_71] : memref<8x8x384xf32, #tpu.memory_space<vmem>>, vector<8x8x384xf32>
    %60 = vector.shape_cast %59 : vector<8x8x384xf32> to vector<64x384xf32>
    %cst_72 = arith.constant dense<0.000000e+00> : vector<384xf32>
    %61 = vector.multi_reduction <add>, %60, %cst_72 [0] : vector<64x384xf32> to vector<384xf32>
    %62 = vector.shape_cast %61 : vector<384xf32> to vector<1x384xf32>
    %c0_73 = arith.constant 0 : index
    %c0_74 = arith.constant 0 : index
    %c0_75 = arith.constant 0 : index
    %63 = vector.load %arg6[%c0_73, %c0_74, %c0_75] : memref<1x2x384xf32, #tpu.memory_space<vmem>>, vector<1x1x384xf32>
    %64 = vector.shape_cast %63 : vector<1x1x384xf32> to vector<1x384xf32>
    %65 = vector.shape_cast %62 : vector<1x384xf32> to vector<1x1x384xf32>
    tpu.vector_store %arg6[%c0_73, %c0_74, %c0_75], %65 {strides = array<i32>} : memref<1x2x384xf32, #tpu.memory_space<vmem>>, vector<1x1x384xf32>,
    %66 = arith.mulf %60, %60 : vector<64x384xf32>
    %cst_76 = arith.constant dense<0.000000e+00> : vector<384xf32>
    %67 = vector.multi_reduction <add>, %66, %cst_76 [0] : vector<64x384xf32> to vector<384xf32>
    %68 = vector.shape_cast %67 : vector<384xf32> to vector<1x384xf32>
    %c0_77 = arith.constant 0 : index
    %c1_78 = arith.constant 1 : index
    %c0_79 = arith.constant 0 : index
    %69 = vector.load %arg6[%c0_77, %c1_78, %c0_79] : memref<1x2x384xf32, #tpu.memory_space<vmem>>, vector<1x1x384xf32>
    %70 = vector.shape_cast %69 : vector<1x1x384xf32> to vector<1x384xf32>
    %71 = vector.shape_cast %68 : vector<1x384xf32> to vector<1x1x384xf32>
    tpu.vector_store %arg6[%c0_77, %c1_78, %c0_79], %71 {strides = array<i32>} : memref<1x2x384xf32, #tpu.memory_space<vmem>>, vector<1x1x384xf32>,
    %72 = vector.shape_cast %59 : vector<8x8x384xf32> to vector<4x2x8x384xf32>
    %cst_80 = arith.constant dense<0xFF800000> : vector<4x8x384xf32>
    %73 = vector.multi_reduction <maximumf>, %72, %cst_80 [1] : vector<4x2x8x384xf32> to vector<4x8x384xf32>
    %74 = vector.shape_cast %73 : vector<4x8x384xf32> to vector<4x4x2x384xf32>
    %cst_81 = arith.constant dense<0xFF800000> : vector<4x4x384xf32>
    %75 = vector.multi_reduction <maximumf>, %74, %cst_81 [2] : vector<4x4x2x384xf32> to vector<4x4x384xf32>
    %76 = vector.shape_cast %75 : vector<4x4x384xf32> to vector<16x384xf32>
    %c0_82 = arith.constant 0 : index
    %c0_83 = arith.constant 0 : index
    %c0_84 = arith.constant 0 : index
    %77 = vector.load %arg5[%c0_82, %c0_83, %c0_84] : memref<1x16x384xf32, #tpu.memory_space<vmem>>, vector<1x16x384xf32>
    %78 = vector.shape_cast %77 : vector<1x16x384xf32> to vector<16x384xf32>
    %79 = vector.shape_cast %76 : vector<16x384xf32> to vector<1x16x384xf32>
    tpu.vector_store %arg5[%c0_82, %c0_83, %c0_84], %79 {strides = array<i32>} : memref<1x16x384xf32, #tpu.memory_space<vmem>>, vector<1x16x384xf32>,
    return
  }
  func.func @transform_0(%arg0: i32) -> (i32, i32, i32, i32) {
    %c0_i32 = arith.constant 0 : i32
    %c0_i32_0 = arith.constant 0 : i32
    %c0_i32_1 = arith.constant 0 : i32
    %c0_i32_2 = arith.constant 0 : i32
    return %arg0, %c0_i32, %c0_i32_0, %c0_i32_1 : i32, i32, i32, i32
  }
  func.func @transform_1(%arg0: i32) -> (i32, i32) {
    %c0_i32 = arith.constant 0 : i32
    %c0_i32_0 = arith.constant 0 : i32
    %c0_i32_1 = arith.constant 0 : i32
    return %c0_i32, %c0_i32_0 : i32, i32
  }
  func.func @transform_2(%arg0: i32) -> (i32, i32) {
    %c0_i32 = arith.constant 0 : i32
    %c0_i32_0 = arith.constant 0 : i32
    %c0_i32_1 = arith.constant 0 : i32
    return %c0_i32, %c0_i32_0 : i32, i32
  }
  func.func @transform_3(%arg0: i32) -> (i32, i32, i32) {
    %c0_i32 = arith.constant 0 : i32
    %c0_i32_0 = arith.constant 0 : i32
    %c0_i32_1 = arith.constant 0 : i32
    %c0_i32_2 = arith.constant 0 : i32
    return %c0_i32, %c0_i32_0, %c0_i32_1 : i32, i32, i32
  }
  func.func @transform_4(%arg0: i32) -> (i32, i32, i32) {
    %c0_i32 = arith.constant 0 : i32
    %c0_i32_0 = arith.constant 0 : i32
    %c0_i32_1 = arith.constant 0 : i32
    return %arg0, %c0_i32, %c0_i32_0 : i32, i32, i32
  }
  func.func @transform_5(%arg0: i32) -> (i32, i32, i32) {
    %c0_i32 = arith.constant 0 : i32
    %c0_i32_0 = arith.constant 0 : i32
    %c0_i32_1 = arith.constant 0 : i32
    return %arg0, %c0_i32, %c0_i32_0 : i32, i32, i32
  }
}

module attributes {stable_mosaic.version = 11 : i64} {
  func.func @bn2_relu_kernel(%arg0: i32, %arg1: memref<1x16x384xf32, #tpu.memory_space<vmem>>, %arg2: memref<1x384xf32, #tpu.memory_space<vmem>>, %arg3: memref<1x384xf32, #tpu.memory_space<vmem>>, %arg4: memref<1x16x384xf32, #tpu.memory_space<vmem>>) attributes {dimension_semantics = [#tpu.dimension_semantics<parallel>], iteration_bounds = array<i64: 2>, scalar_prefetch = 0 : i64, scratch_operands = 0 : i64, tpu.core_type = #tpu.core_type<tc>, window_params = [{transform_indices = @transform_0, window_bounds = array<i64: 1, 16, 384>}, {pipeline_mode = #tpu.pipeline_mode<synchronous>, transform_indices = @transform_1, window_bounds = array<i64: 1, 384>}, {pipeline_mode = #tpu.pipeline_mode<synchronous>, transform_indices = @transform_2, window_bounds = array<i64: 1, 384>}, {transform_indices = @transform_3, window_bounds = array<i64: 1, 16, 384>}]} {
    %c0 = arith.constant 0 : index
    %c0_0 = arith.constant 0 : index
    %c0_1 = arith.constant 0 : index
    %0 = vector.load %arg1[%c0, %c0_0, %c0_1] : memref<1x16x384xf32, #tpu.memory_space<vmem>>, vector<1x16x384xf32>
    %1 = vector.shape_cast %0 : vector<1x16x384xf32> to vector<16x384xf32>
    %c0_2 = arith.constant 0 : index
    %c0_3 = arith.constant 0 : index
    %2 = vector.load %arg2[%c0_2, %c0_3] : memref<1x384xf32, #tpu.memory_space<vmem>>, vector<1x384xf32>
    %3 = vector.broadcast %2 : vector<1x384xf32> to vector<16x384xf32>
    %4 = arith.mulf %1, %3 : vector<16x384xf32>
    %c0_4 = arith.constant 0 : index
    %c0_5 = arith.constant 0 : index
    %5 = vector.load %arg3[%c0_4, %c0_5] : memref<1x384xf32, #tpu.memory_space<vmem>>, vector<1x384xf32>
    %6 = vector.broadcast %5 : vector<1x384xf32> to vector<16x384xf32>
    %7 = arith.addf %4, %6 : vector<16x384xf32>
    %cst = arith.constant 0.000000e+00 : f32
    %8 = vector.broadcast %cst : f32 to vector<16x384xf32>
    %9 = arith.maximumf %7, %8 : vector<16x384xf32>
    %c0_6 = arith.constant 0 : index
    %c0_7 = arith.constant 0 : index
    %c0_8 = arith.constant 0 : index
    %10 = vector.load %arg4[%c0_6, %c0_7, %c0_8] : memref<1x16x384xf32, #tpu.memory_space<vmem>>, vector<1x16x384xf32>
    %11 = vector.shape_cast %10 : vector<1x16x384xf32> to vector<16x384xf32>
    %12 = vector.shape_cast %9 : vector<16x384xf32> to vector<1x16x384xf32>
    tpu.vector_store %arg4[%c0_6, %c0_7, %c0_8], %12 {strides = array<i32>} : memref<1x16x384xf32, #tpu.memory_space<vmem>>, vector<1x16x384xf32>,
    return
  }
  func.func @transform_0(%arg0: i32) -> (i32, i32, i32) {
    %c0_i32 = arith.constant 0 : i32
    %c0_i32_0 = arith.constant 0 : i32
    %c0_i32_1 = arith.constant 0 : i32
    return %arg0, %c0_i32, %c0_i32_0 : i32, i32, i32
  }
  func.func @transform_1(%arg0: i32) -> (i32, i32) {
    %c0_i32 = arith.constant 0 : i32
    %c0_i32_0 = arith.constant 0 : i32
    %c0_i32_1 = arith.constant 0 : i32
    return %c0_i32, %c0_i32_0 : i32, i32
  }
  func.func @transform_2(%arg0: i32) -> (i32, i32) {
    %c0_i32 = arith.constant 0 : i32
    %c0_i32_0 = arith.constant 0 : i32
    %c0_i32_1 = arith.constant 0 : i32
    return %c0_i32, %c0_i32_0 : i32, i32
  }
  func.func @transform_3(%arg0: i32) -> (i32, i32, i32) {
    %c0_i32 = arith.constant 0 : i32
    %c0_i32_0 = arith.constant 0 : i32
    %c0_i32_1 = arith.constant 0 : i32
    return %arg0, %c0_i32, %c0_i32_0 : i32, i32, i32
  }
}

</mosaic_0001>

<bundles_post_ra>
// kernel: cnn_block2.3
= control target key start
LH: loop header
LB: loop body
LE: loop exit
PB: predicated region body
PF: predicated region fallthrough
CT: control target
= control target key end

     0   :  { %s7343_s12 = smov 0   ;;  %s9903_s0 = inlined_call_operand.vmem [shape: bf16[2,12,12,96], index: 0, kind: input, shape index: {}]   ;;  %s9904_s1 = inlined_call_operand.vmem [shape: bf16[1536,192], index: 1, kind: input, shape index: {}]   ;;  %s9905_s2 = inlined_call_operand.vmem [shape: f32[2,9,9,192], index: 2, kind: output, shape index: {0}]   ;;  %s9906_s3 = inlined_call_operand.vmem [shape: f32[2,2,192], index: 3, kind: output, shape index: {1}]  }
   0x1 LB: > { %s6573_s13 = sadd.s32 4294967295, %s7317_s12   ;;  %p6577_p0 = scmp.ge.s32.totalorder %s7317_s12, 1  ;;  %s7317_s12 = sphi %s7343_s12, %s14_s12  }
   0x2   : > { %p140_p1 = scmp.lt.s32.totalorder %s7317_s12, 3 }
   0x4   : > { %p141_p2 = pnand %p6577_p0, %p140_p1 }
   0x6   : > { %144 = sbr.rel (%p141_p2) target bundleno = 724 (0x2d4), region = 28 }
   0xd   : > { %p169_p3 = scmp.lt.s32.totalorder %s6573_s13, 1  ;;  %v7016_v0 = vld [vmem:[%s9904_s1 + $0x4] ss:$8 sps:$4 sm:$0xff]   ;;  %v7020_v2 = vld [vmem:[%s9904_s1] ss:$8 sps:$4 sm:$0xff]   ;;  %s7319_s9 = smov 64  }
   0xe   : > { %v7018_v1 = vld [vmem:[%s9904_s1 + $0x304] ss:$8 sps:$4 sm:$0xff]   ;;  %4383 = vmatprep.subr.bf16.mxu1 %v7016_v0  ;;  %v7021_v3 = vld [vmem:[%s9904_s1 + $0x300] ss:$8 sps:$4 sm:$0xff]   ;;  %v7022_v4 = vld [vmem:[%s9904_s1 + $0x14] ss:$8 sps:$4 sm:$0xff]  }
   0xf   : > { %s10082_s13 = smov (!%p169_p3, %s6573_s13), 1  ;;  %4656 = vmatprep.subr.bf16.mxu0 %v7018_v1  ;;  %4384 = vmatpush1.bf16.msra.mxu1 %v7020_v2  ;;  %v7024_v5 = vld [vmem:[%s9904_s1 + $0x314] ss:$8 sps:$4 sm:$0xff]   ;;  %v7026_v6 = vld [vmem:[%s9904_s1 + $0x10] ss:$8 sps:$4 sm:$0xff]   ;;  %s7320_s10 = smov 96  }
  0x10   : > { %s6990_s24 = smul.u32 96, %s10082_s13  ;;  %4657 = vmatpush1.bf16.msra.mxu0 %v7021_v3  ;;  %4385 = vmatprep.subr.bf16.mxu1 %v7022_v4  ;;  %v7027_v7 = vld [vmem:[%s9904_s1 + $0x310] ss:$8 sps:$4 sm:$0xff]   ;;  %v7028_v8 = vld [vmem:[%s9904_s1 + $0x24] ss:$8 sps:$4 sm:$0xff]   ;;  %s7321_s11 = smov 32  }
  0x11   : > { %4658 = vmatprep.subr.bf16.mxu0 %v7024_v5  ;;  %v7030_v55 = vld [vmem:[%s9904_s1 + $0x324] ss:$8 sps:$4 sm:$0xff]   ;;  %v7032_v56 = vld [vmem:[%s9904_s1 + $0x20] ss:$8 sps:$4 sm:$0xff]   ;;  %v7034_v61 = vld [vmem:[%s9904_s1 + $0x34] ss:$8 sps:$4 sm:$0xff]  }
  0x12   : > { %s7381_s6 = scalar_lea.vmem %s9903_s0, %s6990_s24  ;;  %v7033_v60 = vld [vmem:[%s9904_s1 + $0x320] ss:$8 sps:$4 sm:$0xff]   ;;  %v7036_v62 = vld [vmem:[%s9904_s1 + $0x334] ss:$8 sps:$4 sm:$0xff]   ;;  %v7038_v63 = vld [vmem:[%s9904_s1 + $0x30] ss:$8 sps:$4 sm:$0xff]  }
  0x13   : > { %v7387_v9 = vld [vmem:[%s7381_s6 + $0x10] sm:$0x3f]   ;;  %v7390_v10 = vld [vmem:[%s7381_s6 + $0x8] sm:$0x3f]   ;;  %4386 = vmatpush1.bf16.msra.mxu1 %v7026_v6  ;;  %v7395_v13 = vld [vmem:[%s7381_s6 + $0x18] sm:$0x3f]  }
  0x14   : > { %4659 = vmatpush1.bf16.msra.mxu0 %v7027_v7  ;;  %v378_v11 = vrot.slane %v7387_v9, 1  ;;  %4387 = vmatprep.subr.bf16.mxu1 %v7028_v8  ;;  %v377_v12 = vrot.slane %v7390_v10, 1  ;;  %v276_v14 = vshrl.u32 %v7390_v10, 16  ;;  %v278_v15 = vshll.u32 %v7390_v10, 16  ;;  %v7407_v22 = vld [vmem:[%s7381_s6] sm:$0x3f]  }
  0x15   : > { %v285_v16 = vshll.u32 %v7387_v9, 16  ;;  %v283_v17 = vshrl.u32 %v7387_v9, 16  ;;  %v379_v18 = vrot.slane %v7395_v13, 1  ;;  %v290_v20 = vshrl.u32 %v7395_v13, 16  ;;  %v7413_v33 = vld [vmem:[%s7381_s6 + $0x20] sm:$0x3f]   ;;  %4660 = vmatprep.subr.bf16.mxu0 %v7030_v55 }
  0x16   : > { %392 = vrot.lane.b32.xlu0 %v378_v11, %s7319_s9  ;;  %390 = vrot.lane.b32.xlu1 %v377_v12, %s7319_s9  ;;  %v280_v19 = vrot.slane %v278_v15, 1  ;;  %v292_v21 = vshll.u32 %v7395_v13, 16  ;;  %v415_v28 = vrot.slane %v276_v14, 1  ;;  %v416_v31 = vrot.slane %v278_v15, 2  ;;  %v7417_v35 = vld [vmem:[%s7381_s6 + $0x28] sm:$0x3f]  }
  0x17   : > { %v287_v23 = vrot.slane %v285_v16, 1  ;;  %v418_v26 = vrot.slane %v283_v17, 1  ;;  %v419_v27 = vrot.slane %v285_v16, 2  ;;  %v271_v32 = vshll.u32 %v7407_v22, 16  ;;  %v7431_v51 = vld [vmem:[%s7381_s6 + $0x30] sm:$0x3f]   ;;  %4388 = vmatpush1.bf16.msra.mxu1 %v7032_v56 }
  0x18   : > { %v281_v24 = vor.u32 %v280_v19, %v276_v14  ;;  %v294_v25 = vrot.slane %v292_v21, 1  ;;  %v269_v34 = vshrl.u32 %v7407_v22, 16  ;;  %v417_v37 = vor.u32 %v416_v31, %v415_v28  ;;  %v7434_v54 = vld [vmem:[%s7381_s6 + $0x38] sm:$0x3f]   ;;  %4661 = vmatpush1.bf16.msra.mxu0 %v7033_v60  ;;  %4389 = vmatprep.subr.bf16.mxu1 %v7034_v61  ;;  %v7040_v4 = vld [vmem:[%s9904_s1 + $0x44] ss:$8 sps:$4 sm:$0xff]  }
  0x19   : > { %v288_v30 = vor.u32 %v287_v23, %v283_v17  ;;  %v420_v36 = vor.u32 %v419_v27, %v418_v26  ;;  %v273_v38 = vrot.slane %v271_v32, 1  ;;  %v299_v39 = vshll.u32 %v7413_v33, 16  ;;  %v7039_v0 = vld [vmem:[%s9904_s1 + $0x330] ss:$8 sps:$4 sm:$0xff]   ;;  %v7042_v11 = vld [vmem:[%s9904_s1 + $0x344] ss:$8 sps:$4 sm:$0xff]   ;;  %4662 = vmatprep.subr.bf16.mxu0 %v7036_v62 }
  0x1a   : > { %394 = vrot.lane.b32.xlu1 %v379_v18, %s7319_s9  ;;  %354 = vrot.lane.b32.xlu0 %v281_v24, %s7320_s10  ;;  %v295_v29 = vor.u32 %v294_v25, %v290_v20  ;;  %v376_v40 = vrot.slane %v7407_v22, 1  ;;  %v297_v41 = vshrl.u32 %v7413_v33, 16  ;;  %v412_v42 = vrot.slane %v269_v34, 1  ;;  %v7044_v12 = vld [vmem:[%s9904_s1 + $0x40] ss:$8 sps:$4 sm:$0xff]   ;;  %s6991_s24 = smul.u32 288, %s10082_s13 }
  0x1b   : > { %v413_v43 = vrot.slane %v271_v32, 2  ;;  %v274_v44 = vor.u32 %v273_v38, %v269_v34  ;;  %v301_v45 = vrot.slane %v299_v39, 1  ;;  %v306_v46 = vshll.u32 %v7417_v35, 16  ;;  %4390 = vmatpush1.bf16.msra.mxu1 %v7038_v63  ;;  %v7045_v14 = vld [vmem:[%s9904_s1 + $0x340] ss:$8 sps:$4 sm:$0xff]   ;;  %s6871_s28 = sshll.u32 %s10082_s13, 2 }
  0x1c   : > { %v304_v49 = vshrl.u32 %v7417_v35, 16  ;;  %v421_v52 = vrot.slane %v290_v20, 1  ;;  %v422_v53 = vrot.slane %v292_v21, 2  ;;  %v380_v57 = vrot.slane %v7413_v33, 1  ;;  %4663 = vmatpush1.bf16.msra.mxu0 %v7039_v0  ;;  %4391 = vmatprep.subr.bf16.mxu1 %v7040_v4  ;;  %v7046_v15 = vld [vmem:[%s9904_s1 + $0x54] ss:$8 sps:$4 sm:$0xff]   ;;  %s9488_s27 = scalar_lea.vmem %s9905_s2, %s6991_s24  ;;  %s183_s4 = scalar_lea.vmem %s9906_s3, %s6871_s28 }
  0x1d   : > { %v302_v47 = vor.u32 %v301_v45, %v297_v41  ;;  %v414_v48 = vor.u32 %v413_v43, %v412_v42  ;;  %v308_v50 = vrot.slane %v306_v46, 1  ;;  %v313_v59 = vshll.u32 %v7431_v51, 16  ;;  %4664 = vmatprep.subr.bf16.mxu0 %v7042_v11  ;;  %v7048_v16 = vld [vmem:[%s9904_s1 + $0x354] ss:$8 sps:$4 sm:$0xff]   ;;  %v7492_v21 = vld [vmem:[%s7381_s6 + $0x40] sm:$0x3f]  }
  0x1e   : > { %358 = vrot.lane.b32.xlu1 %v295_v29, %s7320_s10  ;;  %356 = vrot.lane.b32.xlu0 %v288_v30, %s7320_s10  ;;  %v423_v1 = vor.u32 %v422_v53, %v421_v52  ;;  %v381_v2 = vrot.slane %v7417_v35, 1  ;;  %v424_v3 = vrot.slane %v297_v41, 1  ;;  %v311_v5 = vshrl.u32 %v7431_v51, 16  ;;  %v7050_v23 = vld [vmem:[%s9904_s1 + $0x50] ss:$8 sps:$4 sm:$0xff]  }
  0x1f   : > { %v309_v58 = vor.u32 %v308_v50, %v304_v49  ;;  %v315_v6 = vrot.slane %v313_v59, 1  ;;  %v425_v7 = vrot.slane %v299_v39, 2  ;;  %v320_v8 = vshll.u32 %v7434_v54, 16  ;;  %4392 = vmatpush1.bf16.msra.mxu1 %v7044_v12  ;;  %v7051_v24 = vld [vmem:[%s9904_s1 + $0x350] ss:$8 sps:$4 sm:$0xff]  }
  0x20   : > { %v318_v19 = vshrl.u32 %v7434_v54, 16  ;;  %4665 = vmatpush1.bf16.msra.mxu0 %v7045_v14  ;;  %4393 = vmatprep.subr.bf16.mxu1 %v7046_v15  ;;  %v7052_v25 = vld [vmem:[%s9904_s1 + $0x64] ss:$8 sps:$4 sm:$0xff]   ;;  %v427_v26 = vrot.slane %v304_v49, 1  ;;  %v428_v27 = vrot.slane %v306_v46, 2  ;;  %v382_v29 = vrot.slane %v7431_v51, 1 }
  0x21   : > { %v316_v17 = vor.u32 %v315_v6, %v311_v5  ;;  %v426_v18 = vor.u32 %v425_v7, %v424_v3  ;;  %v322_v20 = vrot.slane %v320_v8, 1  ;;  %4666 = vmatprep.subr.bf16.mxu0 %v7048_v16  ;;  %v7054_v28 = vld [vmem:[%s9904_s1 + $0x364] ss:$8 sps:$4 sm:$0xff]   ;;  %v327_v31 = vshll.u32 %v7492_v21, 16  ;;  %v7056_v34 = vld [vmem:[%s9904_s1 + $0x60] ss:$8 sps:$4 sm:$0xff]  }
  0x22   : > { %452 = vrot.lane.b32.xlu1 %v420_v36, %s7321_s11  ;;  %450 = vrot.lane.b32.xlu0 %v417_v37, %s7321_s11  ;;  %v7513_v32 = vld [vmem:[%s7381_s6 + $0x48] sm:$0x3f]   ;;  %v7058_v36 = vld [vmem:[%s9904_s1 + $0x74] ss:$8 sps:$4 sm:$0xff]   ;;  %v429_v37 = vor.u32 %v428_v27, %v427_v26  ;;  %v383_v38 = vrot.slane %v7434_v54, 1  ;;  %v430_v39 = vrot.slane %v311_v5, 1 }
  0x23   : > { %v323_v30 = vor.u32 %v322_v20, %v318_v19  ;;  %4394 = vmatpush1.bf16.msra.mxu1 %v7050_v23  ;;  %v7057_v35 = vld [vmem:[%s9904_s1 + $0x360] ss:$8 sps:$4 sm:$0xff]   ;;  %v325_v41 = vshrl.u32 %v7492_v21, 16  ;;  %v329_v42 = vrot.slane %v327_v31, 1  ;;  %v431_v43 = vrot.slane %v313_v59, 2 }
  0x24   : > { %4667 = vmatpush1.bf16.msra.mxu0 %v7051_v24  ;;  %4395 = vmatprep.subr.bf16.mxu1 %v7052_v25  ;;  %v7062_v45 = vld [vmem:[%s9904_s1 + $0x70] ss:$8 sps:$4 sm:$0xff]   ;;  %v332_v51 = vshrl.u32 %v7513_v32, 16  ;;  %v7068_v55 = vld [vmem:[%s9904_s1 + $0x80] ss:$8 sps:$4 sm:$0xff]   ;;  %v433_v61 = vrot.slane %v318_v19, 1 }
  0x25   : > { %4668 = vmatprep.subr.bf16.mxu0 %v7054_v28  ;;  %v7063_v46 = vld [vmem:[%s9904_s1 + $0x370] ss:$8 sps:$4 sm:$0xff]   ;;  %v330_v49 = vor.u32 %v329_v42, %v325_v41  ;;  %v432_v50 = vor.u32 %v431_v43, %v430_v39  ;;  %v7069_v56 = vld [vmem:[%s9904_s1 + $0x380] ss:$8 sps:$4 sm:$0xff]   ;;  %v7072_v59 = vld [vmem:[%s9904_s1 + $0x394] ss:$8 sps:$4 sm:$0xff]  }
  0x26   : > { %388 = vrot.lane.b32.xlu1 %v376_v40, %s7319_s9  ;;  %352 = vrot.lane.b32.xlu0 %v274_v44, %s7320_s10  ;;  %v7060_v40 = vld [vmem:[%s9904_s1 + $0x374] ss:$8 sps:$4 sm:$0xff]   ;;  %v334_v44 = vshll.u32 %v7513_v32, 16  ;;  %v434_v62 = vrot.slane %v320_v8, 2  ;;  %v7074_v0 = vld [vmem:[%s9904_s1 + $0x90] ss:$8 sps:$4 sm:$0xff]  }
  0x27   : > { %4396 = vmatpush1.bf16.msra.mxu1 %v7056_v34  ;;  %v7550_v53 = vld [vmem:[%s7381_s6 + $0x50] sm:$0x3f]   ;;  %v7076_v54 = vld [vmem:[%s9904_s1 + $0xa4] ss:$8 sps:$4 sm:$0xff]   ;;  %v436_v3 = vrot.slane %v325_v41, 1  ;;  %v437_v4 = vrot.slane %v327_v31, 2 }
  0x28   : > { %4669 = vmatpush1.bf16.msra.mxu0 %v7057_v35  ;;  %4397 = vmatprep.subr.bf16.mxu1 %v7058_v36  ;;  %v336_v52 = vrot.slane %v334_v44, 1  ;;  %v341_v63 = vshll.u32 %v7550_v53, 16  ;;  %v7078_v5 = vld [vmem:[%s9904_s1 + $0x3a4] ss:$8 sps:$4 sm:$0xff]   ;;  %v435_v6 = vor.u32 %v434_v62, %v433_v61  ;;  %v339_v7 = vshrl.u32 %v7550_v53, 16 }
  0x29   : > { %4670 = vmatprep.subr.bf16.mxu0 %v7060_v40  ;;  %v7589_v11 = vld [vmem:[%s7381_s6 + $0x58] sm:$0x3f]   ;;  %v7080_v12 = vld [vmem:[%s9904_s1 + $0xa0] ss:$8 sps:$4 sm:$0xff]   ;;  %v439_v16 = vrot.slane %v332_v51, 1  ;;  %v438_v19 = vor.u32 %v437_v4, %v436_v3  ;;  %v440_v20 = vrot.slane %v334_v44, 2  ;;  %v9907_v61 = vlaneseq }
  0x2a   : > { %360 = vrot.lane.b32.xlu1 %v302_v47, %s7320_s10  ;;  %448 = vrot.lane.b32.xlu0 %v414_v48, %s7321_s11  ;;  %v7064_v47 = vld [vmem:[%s9904_s1 + $0x84] ss:$8 sps:$4 sm:$0xff]   ;;  %v337_v60 = vor.u32 %v336_v52, %v332_v51  ;;  %v343_v8 = vrot.slane %v341_v63, 1  ;;  %v7081_v14 = vld [vmem:[%s9904_s1 + $0x3a0] ss:$8 sps:$4 sm:$0xff]   ;;  %v386_v27 = vrot.slane %v7550_v53, 1 }
  0x2b   : > { %v7066_v48 = vld [vmem:[%s9904_s1 + $0x384] ss:$8 sps:$4 sm:$0xff]   ;;  %4398 = vmatpush1.bf16.msra.mxu1 %v7062_v45  ;;  %v7082_v15 = vld [vmem:[%s9904_s1 + $0xb4] ss:$8 sps:$4 sm:$0xff]   ;;  %v7086_v23 = vld [vmem:[%s9904_s1 + $0xb0] ss:$8 sps:$4 sm:$0xff]  }
  0x2c   : > { %4671 = vmatpush1.bf16.msra.mxu0 %v7063_v46  ;;  %4399 = vmatprep.subr.bf16.mxu1 %v7064_v47  ;;  %v7087_v24 = vld [vmem:[%s9904_s1 + $0x3b0] ss:$8 sps:$4 sm:$0xff]   ;;  %v7088_v25 = vld [vmem:[%s9904_s1 + $0xc4] ss:$8 sps:$4 sm:$0xff]   ;;  %v442_v28 = vrot.slane %v339_v7, 1  ;;  %v443_v31 = vrot.slane %v341_v63, 2 }
  0x2d   : > { %4672 = vmatprep.subr.bf16.mxu0 %v7066_v48  ;;  %v7090_v26 = vld [vmem:[%s9904_s1 + $0x3c4] ss:$8 sps:$4 sm:$0xff]   ;;  %v7093_v35 = vld [vmem:[%s9904_s1 + $0x3c0] ss:$8 sps:$4 sm:$0xff]   ;;  %v7094_v36 = vld [vmem:[%s9904_s1 + $0xd4] ss:$8 sps:$4 sm:$0xff]  }
  0x2e   : > { %396 = vrot.lane.b32.xlu1 %v380_v57, %s7319_s9  ;;  %362 = vrot.lane.b32.xlu0 %v309_v58, %s7320_s10  ;;  %v7070_v57 = vld [vmem:[%s9904_s1 + $0x94] ss:$8 sps:$4 sm:$0xff]   ;;  %v384_v58 = vrot.slane %v7492_v21, 1  ;;  %v348_v21 = vshll.u32 %v7589_v11, 16  ;;  %v444_v39 = vor.u32 %v443_v31, %v442_v28  ;;  %v7099_v43 = vld [vmem:[%s9904_s1 + $0x3d0] ss:$8 sps:$4 sm:$0xff]  }
  0x2f   : > { %4400 = vmatpush1.bf16.msra.mxu1 %v7068_v55  ;;  %v7100_v44 = vld [vmem:[%s9904_s1 + $0xe4] ss:$8 sps:$4 sm:$0xff]   ;;  %v387_v47 = vrot.slane %v7589_v11, 1  ;;  %v7104_v48 = vld [vmem:[%s9904_s1 + $0xe0] ss:$8 sps:$4 sm:$0xff]   ;;  %vm472_vm0 = vcmask 785408  }
  0x30   : > { %4673 = vmatpush1.bf16.msra.mxu0 %v7069_v56  ;;  %4401 = vmatprep.subr.bf16.mxu1 %v7070_v57  ;;  %v350_v34 = vrot.slane %v348_v21, 1  ;;  %v446_v42 = vrot.slane %v348_v21, 2  ;;  %v7102_v45 = vld [vmem:[%s9904_s1 + $0x3e4] ss:$8 sps:$4 sm:$0xff]   ;;  %v7108_v51 = vld [vmem:[%s9904_s1 + $0x3f4] ss:$8 sps:$4 sm:$0xff]  }
  0x31   : > { %4674 = vmatprep.subr.bf16.mxu0 %v7072_v59  ;;  %v7110_v52 = vld [vmem:[%s9904_s1 + $0xf0] ss:$8 sps:$4 sm:$0xff]   ;;  %v7114_v55 = vld [vmem:[%s9904_s1 + $0x104] ss:$8 sps:$4 sm:$0xff]   ;;  %v7322_v59 = vmov 1966171168  }
  0x32   : > { %454 = vrot.lane.b32.xlu1 %v423_v1, %s7321_s11  ;;  %398 = vrot.lane.b32.xlu0 %v381_v2, %s7319_s9  ;;  %v7075_v1 = vld [vmem:[%s9904_s1 + $0x390] ss:$8 sps:$4 sm:$0xff]   ;;  %v385_v2 = vrot.slane %v7513_v32, 1  ;;  %v346_v32 = vshrl.u32 %v7589_v11, 16  ;;  %v7117_v56 = vld [vmem:[%s9904_s1 + $0x404] ss:$8 sps:$4 sm:$0xff]  }
  0x33   : > { %4402 = vmatpush1.bf16.msra.mxu1 %v7074_v0  ;;  %v7111_v53 = vld [vmem:[%s9904_s1 + $0x3f0] ss:$8 sps:$4 sm:$0xff]   ;;  %vm497_vm1 = vcmask 523264   ;;  %vm522_vm2 = vcmask 261120   ;;  %vm6297_vm3 = vcmask 516096   ;;  %vm6340_vm4 = vcmask 1040384  }
  0x34   : > { %4675 = vmatpush1.bf16.msra.mxu0 %v7075_v1  ;;  %4403 = vmatprep.subr.bf16.mxu1 %v7076_v54  ;;  %v351_v40 = vor.u32 %v350_v34, %v346_v32  ;;  %v445_v41 = vrot.slane %v346_v32, 1  ;;  %v595_v1 = vshrl.u32 %v9907_v61, 7 }
  0x35   : > { %4676 = vmatprep.subr.bf16.mxu0 %v7078_v5 }
  0x36   : > { %364 = vrot.lane.b32.xlu1 %v316_v17, %s7320_s10  ;;  %456 = vrot.lane.b32.xlu0 %v426_v18, %s7321_s11  ;;  %v7084_v17 = vld [vmem:[%s9904_s1 + $0x3b4] ss:$8 sps:$4 sm:$0xff]   ;;  %v344_v18 = vor.u32 %v343_v8, %v339_v7  ;;  %v447_v46 = vor.u32 %v446_v42, %v445_v41 }
  0x37   : > { %4404 = vmatpush1.bf16.msra.mxu1 %v7080_v12 }
  0x38   : > { %4677 = vmatpush1.bf16.msra.mxu0 %v7081_v14  ;;  %4405 = vmatprep.subr.bf16.mxu1 %v7082_v15 }
  0x39   : > { %4678 = vmatprep.subr.bf16.mxu0 %v7084_v17 }
  0x3a   : > { %400 = vrot.lane.b32.xlu1 %v382_v29, %s7319_s9  ;;  %366 = vrot.lane.b32.xlu0 %v323_v30, %s7320_s10  ;;  %v7092_v29 = vld [vmem:[%s9904_s1 + $0xc0] ss:$8 sps:$4 sm:$0xff]   ;;  %v441_v30 = vor.u32 %v440_v20, %v439_v16 }
  0x3b   : > { %4406 = vmatpush1.bf16.msra.mxu1 %v7086_v23 }
  0x3c   : > { %4679 = vmatpush1.bf16.msra.mxu0 %v7087_v24  ;;  %4407 = vmatprep.subr.bf16.mxu1 %v7088_v25 }
  0x3d   : > { %4680 = vmatprep.subr.bf16.mxu0 %v7090_v26 }
  0x3e   : > { %458 = vrot.lane.b32.xlu1 %v429_v37, %s7321_s11  ;;  %402 = vrot.lane.b32.xlu0 %v383_v38, %s7319_s9  ;;  %v7096_v37 = vld [vmem:[%s9904_s1 + $0x3d4] ss:$8 sps:$4 sm:$0xff]   ;;  %v7098_v38 = vld [vmem:[%s9904_s1 + $0xd0] ss:$8 sps:$4 sm:$0xff]  }
  0x3f   : > { %4408 = vmatpush1.bf16.msra.mxu1 %v7092_v29 }
  0x40   : > { %4681 = vmatpush1.bf16.msra.mxu0 %v7093_v35  ;;  %4409 = vmatprep.subr.bf16.mxu1 %v7094_v36 }
  0x41   : > { %4682 = vmatprep.subr.bf16.mxu0 %v7096_v37 }
  0x42   : > { %368 = vrot.lane.b32.xlu1 %v330_v49, %s7320_s10  ;;  %460 = vrot.lane.b32.xlu0 %v432_v50, %s7321_s11  ;;  %v7105_v49 = vld [vmem:[%s9904_s1 + $0x3e0] ss:$8 sps:$4 sm:$0xff]   ;;  %v7106_v50 = vld [vmem:[%s9904_s1 + $0xf4] ss:$8 sps:$4 sm:$0xff]  }
  0x43   : > { %4410 = vmatpush1.bf16.msra.mxu1 %v7098_v38 }
  0x44   : > { %4683 = vmatpush1.bf16.msra.mxu0 %v7099_v43  ;;  %4411 = vmatprep.subr.bf16.mxu1 %v7100_v44 }
  0x45   : > { %4684 = vmatprep.subr.bf16.mxu0 %v7102_v45 }
  0x46   : > { %404 = vrot.lane.b32.xlu1 %v384_v58, %s7319_s9  ;;  %370 = vrot.lane.b32.xlu0 %v337_v60, %s7320_s10  ;;  %v592_v60 = vunpack.c.l.s4 %v7322_v59 }
  0x47   : > { %4412 = vmatpush1.bf16.msra.mxu1 %v7104_v48 }
  0x48   : > { %4685 = vmatpush1.bf16.msra.mxu0 %v7105_v49  ;;  %4413 = vmatprep.subr.bf16.mxu1 %v7106_v50  ;;  %v593_v0 = vunpack.c.0.s8 %v592_v60 }
  0x49   : > { %4686 = vmatprep.subr.bf16.mxu0 %v7108_v51 }
  0x4a   : > { %462 = vrot.lane.b32.xlu1 %v435_v6, %s7321_s11  ;;  %406 = vrot.lane.b32.xlu0 %v385_v2, %s7319_s9 }
  0x4b   : > { %4414 = vmatpush1.bf16.msra.mxu1 %v7110_v52 }
  0x4c   : > { %4687 = vmatpush1.bf16.msra.mxu0 %v7111_v53  ;;  %4474 = vmatprep.subr.bf16.mxu1 %v7114_v55 }
  0x4d   : > { %4747 = vmatprep.subr.bf16.mxu0 %v7117_v56 }
  0x4e   : > { %372 = vrot.lane.b32.xlu1 %v344_v18, %s7320_s10  ;;  %464 = vrot.lane.b32.xlu0 %v438_v19, %s7321_s11 }
  0x52   : > { %466 = vrot.lane.b32.xlu1 %v441_v30, %s7321_s11  ;;  %408 = vrot.lane.b32.xlu0 %v386_v27, %s7319_s9 }
  0x56   : > { %468 = vrot.lane.b32.xlu0 %v444_v39, %s7321_s11  ;;  %374 = vrot.lane.b32.xlu1 %v351_v40, %s7320_s10 }
  0x5a   : > { %470 = vrot.lane.b32.xlu1 %v447_v46, %s7321_s11  ;;  %410 = vrot.lane.b32.xlu0 %v387_v47, %s7319_s9 }
  0x88   : > { %v393_v57 = vpop.permute.xlu0 %392  ;;  %v391_v58 = vpop.permute.xlu1 %390 }
  0x8c   : > { %v7677_v62 = vpop.permute.xlu1 %394  ;;  %v355_v63 = vpop.permute.xlu0 %354 }
  0x8d   : > { %v7682_v2 = vsel %vm472_vm0, %v7390_v10, %v355_v63  ;;  %v501_v54 = vsel %vm497_vm1, %v355_v63, %v391_v58  ;;  %v7695_v10 = vsub.s32 %v593_v0, %v595_v1 }
  0x8e   : > { %v758_v12 = vcombine.low %v7682_v2, %v501_v54  ;;  %v759_v14 = vcombine.high %v7682_v2, %v501_v54 }
  0x90   : > { %v359_v3 = vpop.permute.xlu1 %358  ;;  %v357_v4 = vpop.permute.xlu0 %356  ;;  %v772_v41 = vrot.slane %v758_v12, %v7695_v10  ;;  %v779_v44 = vrot.slane %v759_v14, %v7695_v10 }
  0x91   : > { %v480_v5 = vsel %vm472_vm0, %v7395_v13, %v359_v3  ;;  %v7689_v6 = vsel %vm497_vm1, %v359_v3, %v7677_v62  ;;  %v478_v7 = vsel %vm472_vm0, %v7387_v9, %v357_v4  ;;  %v503_v8 = vsel %vm497_vm1, %v357_v4, %v393_v57 }
  0x92   : > { %v764_v11 = vcombine.low %v480_v5, %v7689_v6  ;;  %v765_v13 = vcombine.high %v480_v5, %v7689_v6  ;;  %v589_v15 = vcombine.low %v478_v7, %v503_v8  ;;  %v590_v9 = vcombine.high %v478_v7, %v503_v8 }
  0x94   : > { %v453_v16 = vpop.permute.xlu1 %452  ;;  %v451_v17 = vpop.permute.xlu0 %450  ;;  %v7701_v18 = vrot.slane %v764_v11, %v7695_v10  ;;  %v7706_v30 = vrot.slane %v765_v13, %v7695_v10  ;;  %v7721_v42 = vrot.slane %v589_v15, %v7695_v10  ;;  %v646_v45 = vrot.slane %v590_v9, %v7695_v10 }
  0x95   : > { %v528_v19 = vsel %vm522_vm2, %v393_v57, %v453_v16  ;;  %v526_v20 = vsel %vm522_vm2, %v391_v58, %v451_v17 }
  0x96   : > { %v700_v21 = vcombine.low %v528_v19, %v480_v5  ;;  %v701_v23 = vcombine.high %v528_v19, %v480_v5  ;;  %v762_v24 = vcombine.low %v503_v8, %v528_v19  ;;  %v763_v25 = vcombine.high %v503_v8, %v528_v19 }
  0x97   : > { %v587_v26 = vcombine.low %v501_v54, %v526_v20  ;;  %v588_v27 = vcombine.high %v501_v54, %v526_v20  ;;  %v760_v28 = vcombine.low %v526_v20, %v478_v7  ;;  %v761_v29 = vcombine.high %v526_v20, %v478_v7 }
  0x98   : > { %v7709_v31 = vrot.slane %v700_v21, %v7695_v10  ;;  %v800_v32 = vrot.slane %v762_v24, %v7695_v10  ;;  %v807_v34 = vrot.slane %v763_v25, %v7695_v10  ;;  %v389_v35 = vpop.permute.xlu1 %388  ;;  %v353_v36 = vpop.permute.xlu0 %352  ;;  %v7714_v37 = vrot.slane %v701_v23, %v7695_v10 }
  0x99   : > { %v625_v38 = vrot.slane %v587_v26, %v7695_v10  ;;  %v786_v39 = vrot.slane %v760_v28, %v7695_v10  ;;  %v793_v40 = vrot.slane %v761_v29, %v7695_v10  ;;  %v632_v43 = vrot.slane %v588_v27, %v7695_v10 }
  0x9a   : > { %9952 = vst [vmem:[#allocation2_spill] sm:$0xff] %v7709_v31  ;;  %v825_v46 = vcombine.low %v800_v32, %v7701_v18  ;;  %v827_v47 = vcombine.low %v807_v34, %v7706_v30  ;;  %v826_v48 = vcombine.high %v800_v32, %v7701_v18  ;;  %v951_v53 = vcombine.low %v646_v45, %v7714_v37 }
  0x9b   : > { %v650_v55 = vcombine.low %v625_v38, %v7721_v42  ;;  %v822_v56 = vcombine.low %v772_v41, %v786_v39  ;;  %v824_v57 = vcombine.low %v779_v44, %v793_v40  ;;  %v652_v58 = vcombine.low %v632_v43, %v646_v45 }
  0x9c   : > { %v361_v51 = vpop.permute.xlu1 %360  ;;  %v449_v52 = vpop.permute.xlu0 %448  ;;  %v823_v59 = vcombine.high %v772_v41, %v786_v39  ;;  %v474_v60 = vsel %vm472_vm0, %v7407_v22, %v353_v36  ;;  %v499_v63 = vsel %vm497_vm1, %v353_v36, %v389_v35  ;;  %v855_v0 = vrot.slane %v825_v46, %v7695_v10 }
  0x9d   : > { %v7740_v1 = vrot.slane %v827_v47, %v7695_v10  ;;  %v651_v54 = vcombine.high %v625_v38, %v7721_v42  ;;  %v834_v3 = vrot.slane %v822_v56, %v7695_v10  ;;  %v7745_v4 = vrot.slane %v824_v57, %v7695_v10 }
  0x9e   : > { %v584_v5 = vcombine.high %v474_v60, %v499_v63  ;;  %v482_v7 = vsel %vm472_vm0, %v7413_v33, %v361_v51  ;;  %v524_v22 = vsel %vm522_vm2, %v389_v35, %v449_v52  ;;  %v869_v12 = vrot.slane %v826_v48, %v7695_v10  ;;  %v7304_v35 = vld [vmem:[%s7381_s6 + $0x28] sm:$0x3f]  }
  0x9f   : > { %v583_v14 = vcombine.low %v474_v60, %v499_v63  ;;  %v585_v13 = vcombine.low %v524_v22, %v7682_v2  ;;  %v586_v15 = vcombine.high %v524_v22, %v7682_v2  ;;  %v7756_v16 = vrot.slane %v951_v53, %v7695_v10 }
  0xa0   : > { %v7750_v8 = vpop.permute.xlu1 %396  ;;  %v363_v11 = vpop.permute.xlu0 %362  ;;  %v7759_v17 = vrot.slane %v652_v58, %v7695_v10  ;;  %v848_v33 = vrot.slane %v823_v59, %v7695_v10  ;;  %v604_v19 = vrot.slane %v584_v5, %v7695_v10  ;;  %v7769_v2 = vcombine.low %v834_v3, %v855_v0 }
  0xa1   : > { %v7764_v9 = vsel %vm497_vm1, %v361_v51, %v7750_v8  ;;  %v618_v20 = vrot.slane %v586_v15, %v7695_v10  ;;  %v611_v24 = vrot.slane %v585_v13, %v7695_v10  ;;  %v7775_v27 = vrot.slane %v650_v55, %v7695_v10 }
  0xa2   : > { %v933_v21 = vcombine.low %v482_v7, %v7764_v9  ;;  %v7778_v28 = vrot.slane %v651_v54, %v7695_v10  ;;  %v597_v29 = vrot.slane %v583_v14, %v7695_v10  ;;  %v934_v34 = vcombine.high %v482_v7, %v7764_v9 }
  0xa3   : > { %v649_v32 = vcombine.low %v604_v19, %v618_v20  ;;  %v7784_v36 = vsel %vm472_vm0, %v7304_v35, %v363_v11  ;;  %v7788_v39 = vcombine.high %v834_v3, %v855_v0  ;;  %v7790_v40 = vcombine.low %v848_v33, %v869_v12  ;;  %v7305_v19 = vld [vmem:[%s7381_s6 + $0x30] sm:$0x3f]  }
  0xa4   : > { %v455_v25 = vpop.permute.xlu1 %454  ;;  %v399_v26 = vpop.permute.xlu0 %398  ;;  %v7792_v41 = vcombine.high %v848_v33, %v869_v12  ;;  %v7795_v43 = vrot.slane %v933_v21, %v7695_v10  ;;  %v1842_v46 = vunpack.i.h.s16 %v7769_v2  ;;  %v647_v47 = vcombine.low %v597_v29, %v611_v24 }
  0xa5   : > { %v530_v38 = vsel %vm522_vm2, %v7677_v62, %v455_v25  ;;  %v7799_v45 = vsel %vm497_vm1, %v363_v11, %v399_v26  ;;  %v648_v53 = vcombine.high %v597_v29, %v611_v24  ;;  %v7804_v55 = vrot.slane %v649_v32, %v7695_v10 }
  0xa6   : > { %v702_v44 = vcombine.low %v7689_v6, %v530_v38  ;;  %v703_v48 = vcombine.high %v7689_v6, %v530_v38  ;;  %v875_v62 = vcombine.low %v530_v38, %v482_v7  ;;  %v876_v51 = vcombine.high %v530_v38, %v482_v7 }
  0xa7   : > { %v7807_v56 = vrot.slane %v934_v34, %v7695_v10  ;;  %v1060_v60 = vcombine.low %v7784_v36, %v7799_v45  ;;  %v7830_v5 = vrot.slane %v647_v47, %v7695_v10  ;;  %v1061_v22 = vcombine.high %v7784_v36, %v7799_v45 }
  0xa8   : > { %v365_v52 = vpop.permute.xlu1 %364  ;;  %v7810_v57 = vrot.slane %v702_v44, %v7695_v10  ;;  %v731_v58 = vrot.slane %v703_v48, %v7695_v10  ;;  %v7814_v59 = vrot.slane %v875_v62, %v7695_v10  ;;  %v7817_v6 = vrot.slane %v876_v51, %v7695_v10  ;;  %v457_v11 = vpop.permute.xlu0 %456 }
  0xa9   : > { %v1846_v14 = vunpack.i.h.s16 %v7790_v40  ;;  %v7839_v13 = vrot.slane %v648_v53, %v7695_v10  ;;  %v697_v15 = vcombine.low %v7804_v55, %v7759_v17  ;;  %v486_v20 = vsel %vm472_vm0, %v7305_v19, %v365_v52 }
  0xaa   : > { %9953 = vst [vmem:[#allocation3_spill] sm:$0xff] %v7810_v57  ;;  %v952_v54 = vcombine.low %v7810_v57, %v7795_v43  ;;  %v953_v3 = vcombine.high %v7810_v57, %v7795_v43  ;;  %v734_v7 = vcombine.low %v7714_v37, %v731_v58  ;;  %v954_v33 = vcombine.low %v731_v58, %v7807_v56 }
  0xab   : > { %v1076_v21 = vcombine.low %v7701_v18, %v7814_v59  ;;  %v1077_v24 = vcombine.high %v7701_v18, %v7814_v59  ;;  %v7854_v25 = vrot.slane %v1060_v60, %v7695_v10  ;;  %v1078_v32 = vcombine.low %v7706_v30, %v7817_v6 }
  0xac   : > { %v7835_v12 = vpop.permute.xlu1 %400  ;;  %v7847_v37 = vrot.slane %v952_v54, %v7695_v10  ;;  %v7857_v29 = vrot.slane %v953_v3, %v7695_v10  ;;  %v532_v34 = vsel %vm522_vm2, %v7750_v8, %v457_v11  ;;  %v7868_v38 = vrot.slane %v734_v7, %v7695_v10  ;;  %v7306_v11 = vld [vmem:[%s7381_s6 + $0x38] sm:$0x3f]  }
  0xad   : > { %v7865_v35 = vsel %vm497_vm1, %v365_v52, %v7835_v12  ;;  %v7871_v18 = vrot.slane %v1061_v22, %v7695_v10  ;;  %v877_v44 = vcombine.low %v7764_v9, %v532_v34  ;;  %v878_v47 = vcombine.high %v7764_v9, %v532_v34 }
  0xae   : > { %9954 = vst [vmem:[#allocation4_spill] sm:$0xff] %v7868_v38  ;;  %v7876_v30 = vrot.slane %v954_v33, %v7695_v10  ;;  %v1002_v8 = vcombine.low %v532_v34, %v7784_v36  ;;  %v1003_v62 = vcombine.high %v532_v34, %v7784_v36  ;;  %v1187_v58 = vcombine.low %v486_v20, %v7865_v35 }
  0xaf   : > { %v899_v52 = vrot.slane %v877_v44, %v7695_v10  ;;  %v906_v53 = vrot.slane %v878_v47, %v7695_v10  ;;  %v1188_v60 = vcombine.high %v486_v20, %v7865_v35  ;;  %v7886_v9 = vrot.slane %v1076_v21, %v7695_v10 }
  0xb0   : > { %v459_v48 = vpop.permute.xlu1 %458  ;;  %v7889_v54 = vrot.slane %v1078_v32, %v7695_v10  ;;  %v7892_v3 = vrot.slane %v1077_v24, %v7695_v10  ;;  %v1019_v36 = vrot.slane %v1003_v62, %v7695_v10  ;;  %v7905_v32 = vrot.slane %v1002_v8, %v7695_v10 }
  0xb1   : > { %v534_v51 = vsel %vm522_vm2, %v399_v26, %v459_v48  ;;  %v367_v26 = vpop.permute.xlu0 %366  ;;  %v907_v7 = vcombine.low %v7814_v59, %v899_v52  ;;  %v908_v22 = vcombine.high %v7814_v59, %v899_v52  ;;  %v1081_v24 = vcombine.low %v906_v53, %v7871_v18 }
  0xb2   : > { %v7899_v33 = vsel %vm472_vm0, %v7306_v11, %v367_v26  ;;  %v1005_v19 = vcombine.high %v7799_v45, %v534_v51  ;;  %v1004_v34 = vcombine.low %v7799_v45, %v534_v51  ;;  %v909_v44 = vcombine.low %v7817_v6, %v906_v53 }
  0xb3   : > { %v7911_v59 = vrot.slane %v908_v22, %v7695_v10  ;;  %v7914_v47 = vrot.slane %v1187_v58, %v7695_v10  ;;  %v7917_v48 = vrot.slane %v1188_v60, %v7695_v10  ;;  %v1079_v62 = vcombine.low %v899_v52, %v7854_v25 }
  0xb4   : > { %v1080_v8 = vcombine.high %v899_v52, %v7854_v25  ;;  %v7922_v11 = vrot.slane %v1081_v24, %v7695_v10  ;;  %v1205_v45 = vcombine.low %v7807_v56, %v1019_v36  ;;  %v1033_v53 = vrot.slane %v1005_v19, %v7695_v10  ;;  %v369_v50 = vpop.permute.xlu1 %368 }
  0xb5   : > { %v7927_v6 = vcombine.high %v7911_v59, %v7911_v59  ;;  %v1129_v58 = vcombine.low %v534_v51, %v486_v20  ;;  %v1130_v22 = vcombine.high %v534_v51, %v486_v20  ;;  %v7931_v60 = vrot.slane %v907_v7, %v7695_v10  ;;  %v7940_v56 = vpop.permute.xlu0 %402 }
  0xb6   : > { %v7938_v24 = vrot.slane %v1004_v34, %v7695_v10  ;;  %v923_v0 = vrot.slane %v909_v44, %v7695_v10  ;;  %v1036_v63 = vcombine.low %v1019_v36, %v1033_v53  ;;  %v7948_v51 = vrot.slane %v1079_v62, %v7695_v10 }
  0xb7   : > { %9955 = vst [vmem:[#allocation5_spill] sm:$0xff] %v7927_v6  ;;  %9956 = vst [vmem:[#allocation6_spill] sm:$0xff] %v7931_v60  ;;  %v1855_v19 = vunpack.i.h.s16 %v7927_v6  ;;  %v7945_v20 = vrot.slane %v1129_v58, %v7695_v10  ;;  %v7951_v7 = vrot.slane %v1080_v8, %v7695_v10  ;;  %v7954_v52 = vrot.slane %v1130_v22, %v7695_v10  ;;  %v7307_v6 = vld [vmem:[%s7381_s6 + $0x40] sm:$0x3f]  }
  0xb8   : > { %v1208_v34 = vcombine.low %v1033_v53, %v7917_v48  ;;  %v7960_v61 = vrot.slane %v1205_v45, %v7695_v10  ;;  %v7966_v62 = vsel %vm497_vm1, %v367_v26, %v7940_v56  ;;  %v7979_v44 = vrot.slane %v1036_v63, %v7695_v10 }
  0xb9   : > { %v1330_v36 = vcombine.low %v7854_v25, %v7945_v20  ;;  %v7976_v22 = vpack.i.b16 %v923_v0, %v1855_v19  ;;  %v1331_v26 = vcombine.high %v7854_v25, %v7945_v20  ;;  %v1850_v21 = vunpack.i.h.s16 %v7788_v39  ;;  %v461_v19 = vpop.permute.xlu0 %460 }
  0xba   : > { %9958 = vst [vmem:[#allocation8_spill] sm:$0xff] %v7979_v44  ;;  %v7985_v8 = vrot.slane %v1208_v34, %v7695_v10  ;;  %v1332_v58 = vcombine.low %v7871_v18, %v7954_v52  ;;  %v1314_v53 = vcombine.low %v7899_v33, %v7966_v62  ;;  %v1315_v0 = vcombine.high %v7899_v33, %v7966_v62 }
  0xbb   : > { %9957 = vst [vmem:[#allocation7_spill] sm:$0xff] %v7976_v22  ;;  %v7994_v63 = vrot.slane %v1330_v36, %v7695_v10  ;;  %v6594_v25 = vpack.i.b16 %v7769_v2, %v697_v15  ;;  %v6596_v34 = vpack.i.b16 %v7790_v40, %v1842_v46  ;;  %v6598_v18 = vpack.i.b16 %v7788_v39, %v1846_v14 }
  0xbc   : > { %v6600_v45 = vpack.i.b16 %v7792_v41, %v1850_v21  ;;  %v6634_v23 = vcombine.low %v7830_v5, %v7839_v13  ;;  %v6636_v36 = vcombine.high %v7830_v5, %v7839_v13  ;;  %v6635_v17 = vcombine.low %v7775_v27, %v7778_v28 }
  0xbd   : > { %v2262_v55 = vcombine.low %v6594_v25, %v6596_v34  ;;  %v6637_v2 = vcombine.high %v7775_v27, %v7778_v28  ;;  %v2263_v46 = vcombine.high %v6594_v25, %v6596_v34  ;;  %v536_v40 = vsel %vm522_vm2, %v7835_v12, %v461_v19 }
  0xbe   : > { %v2264_v39 = vcombine.low %v6598_v18, %v6600_v45  ;;  %v2272_v14 = vrot.slane %v6634_v23, %v7695_v10  ;;  %v2286_v15 = vrot.slane %v6636_v36, %v7695_v10  ;;  %v2265_v21 = vcombine.high %v6598_v18, %v6600_v45 }
  0xbf   : > { %v2300_v5 = vrot.slane %v2262_v55, %v7695_v10  ;;  %v2279_v13 = vrot.slane %v6635_v17, %v7695_v10  ;;  %v2293_v49 = vrot.slane %v6637_v2, %v7695_v10  ;;  %v2307_v22 = vrot.slane %v2263_v46, %v7695_v10  ;;  %v8035_v2 = vpop.permute.xlu0 %370 }
  0xc0   : > { %v2314_v27 = vrot.slane %v2264_v39, %v7695_v10  ;;  %v2323_v28 = vcombine.high %v2272_v14, %v2286_v15  ;;  %v2321_v12 = vrot.slane %v2265_v21, %v7695_v10  ;;  %v1131_v19 = vcombine.low %v7865_v35, %v536_v40 }
  0xc1   : > { %v8027_v23 = vrot.slane %v1314_v53, %v7695_v10  ;;  %v8030_v45 = vrot.slane %v1315_v0, %v7695_v10  ;;  %v2325_v25 = vcombine.high %v2279_v13, %v2293_v49  ;;  %v1132_v34 = vcombine.high %v7865_v35, %v536_v40 }
  0xc2   : > { %v2327_v18 = vcombine.high %v2300_v5, %v2314_v27  ;;  %v2329_v36 = vcombine.high %v2307_v22, %v2321_v12  ;;  %v1153_v17 = vrot.slane %v1131_v19, %v7695_v10  ;;  %v1256_v55 = vcombine.low %v536_v40, %v7899_v33 }
  0xc3   : > { %v8038_v46 = vrot.slane %v2323_v28, %v7695_v10  ;;  %v8041_v53 = vrot.slane %v2325_v25, %v7695_v10  ;;  %v1160_v0 = vrot.slane %v1132_v34, %v7695_v10  ;;  %v1257_v39 = vcombine.high %v536_v40, %v7899_v33  ;;  %v8062_v40 = vpop.permute.xlu1 %404 }
  0xc4   : > { %v8046_v35 = vrot.slane %v2327_v18, %v7695_v10  ;;  %v8049_v21 = vrot.slane %v2329_v36, %v7695_v10  ;;  %v1161_v19 = vcombine.low %v7945_v20, %v1153_v17  ;;  %v1162_v44 = vcombine.high %v7945_v20, %v1153_v17 }
  0xc5   : > { %9959 = vst [vmem:[#allocation9_spill] sm:$0xff] %v8038_v46  ;;  %9960 = vst [vmem:[#allocation10_spill] sm:$0xff] %v8041_v53  ;;  %v8054_v28 = vrot.slane %v1331_v26, %v7695_v10  ;;  %v8058_v25 = vsel %vm472_vm0, %v7307_v6, %v369_v50  ;;  %v1163_v34 = vcombine.low %v7954_v52, %v1160_v0 }
  0xc6   : > { %9961 = vst [vmem:[#allocation11_spill] sm:$0xff] %v8046_v35  ;;  %9962 = vst [vmem:[#allocation12_spill] sm:$0xff] %v8049_v21  ;;  %v1333_v33 = vcombine.low %v1153_v17, %v8027_v23  ;;  %v2390_v18 = vcombine.low %v8038_v46, %v8046_v35  ;;  %v2393_v36 = vcombine.high %v8041_v53, %v8049_v21  ;;  %v8088_v21 = vpop.permute.xlu0 %406 }
  0xc7   : > { %v8069_v20 = vrot.slane %v1162_v44, %v7695_v10  ;;  %v1335_v26 = vcombine.low %v1160_v0, %v8030_v45  ;;  %v8075_v52 = vrot.slane %v1332_v58, %v7695_v10  ;;  %v8078_v38 = vrot.slane %v1256_v55, %v7695_v10 }
  0xc8   : > { %v1334_v57 = vcombine.high %v1153_v17, %v8027_v23  ;;  %4415 = vmatprep.mubr.bf16.mxu1 %v2390_v18  ;;  %4688 = vmatprep.mubr.bf16.mxu0 %v2393_v36  ;;  %v8082_v53 = vrot.slane %v1161_v19, %v7695_v10  ;;  %v1177_v44 = vrot.slane %v1163_v34, %v7695_v10 }
  0xc9   : > { %9963 = vst [vmem:[#allocation13_spill] sm:$0xff] %v8069_v20  ;;  %9964 = vst [vmem:[#allocation14_spill] sm:$0xff] %v8075_v52  ;;  %v8086_v0 = vrot.slane %v1257_v39, %v7695_v10  ;;  %v8092_v58 = vcombine.high %v8069_v20, %v8069_v20  ;;  %v8095_v55 = vrot.slane %v1333_v33, %v7695_v10 }
  0xca   : > { %v2322_v17 = vcombine.low %v2272_v14, %v2286_v15  ;;  %v2326_v18 = vcombine.low %v2300_v5, %v2314_v27  ;;  %v8098_v36 = vrot.slane %v1335_v26, %v7695_v10  ;;  %v2324_v19 = vcombine.low %v2279_v13, %v2293_v49  ;;  %v463_v15 = vpop.permute.xlu1 %462  ;;  %v7112_v49 = vld [vmem:[%s9904_s1 + $0x100] ss:$8 sps:$4 sm:$0xff]  }
  0xcb   : > { %9965 = vst [vmem:[#allocation15_spill] sm:$0xff] %v8092_v58  ;;  %v2328_v6 = vcombine.low %v2307_v22, %v2321_v12  ;;  %v8102_v39 = vsel %vm497_vm1, %v369_v50, %v8062_v40  ;;  %v8105_v34 = vrot.slane %v1334_v57, %v7695_v10  ;;  %v7115_v13 = vld [vmem:[%s9904_s1 + $0x400] ss:$8 sps:$4 sm:$0xff]   ;;  %v1459_v27 = vcombine.low %v7917_v48, %v8086_v0  ;;  %v7123_v50 = vld [vmem:[%s9904_s1 + $0x414] ss:$8 sps:$4 sm:$0xff]  }
  0xcc   : > { %9966 = vst [vmem:[#allocation16_spill] sm:$0xff] %v8098_v36  ;;  %v8108_v46 = vrot.slane %v2322_v17, %v7695_v10  ;;  %v8111_v33 = vrot.slane %v2326_v18, %v7695_v10  ;;  %v1441_v14 = vcombine.low %v8058_v25, %v8102_v39  ;;  %v8121_v57 = vrot.slane %v2324_v19, %v7695_v10 }
  0xcd   : > { %v8124_v22 = vrot.slane %v2328_v6, %v7695_v10  ;;  %v1442_v5 = vcombine.high %v8058_v25, %v8102_v39  ;;  %v1891_v12 = vunpack.i.h.s16 %v8092_v58  ;;  %v7120_v6 = vld [vmem:[%s9904_s1 + $0x114] ss:$8 sps:$4 sm:$0xff]   ;;  %v538_v17 = vsel %vm522_vm2, %v7940_v56, %v463_v15  ;;  %v7308_v56 = vld [vmem:[%s7381_s6 + $0x48] sm:$0x3f]  }
  0xce   : > { %9967 = vst [vmem:[#allocation17_spill] sm:$0xff] %v8108_v46  ;;  %9968 = vst [vmem:[#allocation18_spill] sm:$0xff] %v8111_v33  ;;  %v2386_v26 = vcombine.low %v8108_v46, %v8111_v33  ;;  %v8146_v48 = vrot.slane %v1441_v14, %v7695_v10  ;;  %v465_v33 = vpop.permute.xlu0 %464  ;;  %v1258_v46 = vcombine.low %v7966_v62, %v538_v17 }
  0xcf   : > { %9969 = vst [vmem:[#allocation19_spill] sm:$0xff] %v8121_v57  ;;  %9970 = vst [vmem:[#allocation20_spill] sm:$0xff] %v8124_v22  ;;  %v2389_v19 = vcombine.high %v8121_v57, %v8124_v22  ;;  %v1259_v58 = vcombine.high %v7966_v62, %v538_v17  ;;  %v1383_v18 = vcombine.low %v538_v17, %v8058_v25  ;;  %v7118_v57 = vld [vmem:[%s9904_s1 + $0x110] ss:$8 sps:$4 sm:$0xff]  }
  0xd0   : > { %9971 = vst [vmem:[#allocation21_spill] sm:$0xff] %v8146_v48  ;;  %4416 = vmatmul.mubr.bf16.vlgmr.msra.gmra.mrb[0].mxu1 %v2386_v26  ;;  %v1384_v22 = vcombine.high %v538_v17, %v8058_v25  ;;  %v8158_v14 = vrot.slane %v1442_v5, %v7695_v10  ;;  %v8166_v15 = vsel %vm472_vm0, %v7308_v56, %v8035_v2  ;;  %v7121_v25 = vld [vmem:[%s9904_s1 + $0x410] ss:$8 sps:$4 sm:$0xff]   ;;  %v7126_v26 = vld [vmem:[%s9904_s1 + $0x124] ss:$8 sps:$4 sm:$0xff]  }
  0xd1   : > { %4475 = vmatpush1.bf16.msra.mxu1 %v7112_v49  ;;  %4689 = vmatmul.mubr.bf16.vlgmr.msra.gmra.mrb[0].mxu0 %v2389_v19  ;;  %v8171_v62 = vsel %vm497_vm1, %v8035_v2, %v8088_v21  ;;  %v8177_v49 = vrot.slane %v1258_v46, %v7695_v10  ;;  %v1287_v5 = vrot.slane %v1259_v58, %v7695_v10  ;;  %v7129_v58 = vld [vmem:[%s9904_s1 + $0x424] ss:$8 sps:$4 sm:$0xff]  }
  0xd2   : > { %4748 = vmatpush1.bf16.msra.mxu0 %v7115_v13  ;;  %4476 = vmatprep.subr.bf16.mxu1 %v7120_v6  ;;  %v8185_v17 = vsel %vm522_vm2, %v8062_v40, %v465_v33  ;;  %v8192_v6 = vrot.slane %v1459_v27, %v7695_v10  ;;  %v8195_v46 = vrot.slane %v1383_v18, %v7695_v10  ;;  %v7309_v13 = vld [vmem:[%s7381_s6 + $0x50] sm:$0x3f]  }
  0xd3   : > { %9972 = vst [vmem:[#allocation22_spill] sm:$0xff] %v8177_v49  ;;  %4749 = vmatprep.subr.bf16.mxu0 %v7123_v50  ;;  %v8200_v19 = vpack.i.b16 %v1177_v44, %v1891_v12  ;;  %v1290_v40 = vcombine.low %v8086_v0, %v1287_v5  ;;  %v8204_v33 = vrot.slane %v1384_v22, %v7695_v10  ;;  %v7124_v44 = vld [vmem:[%s9904_s1 + $0x120] ss:$8 sps:$4 sm:$0xff]   ;;  %v8216_v12 = vpop.permute.xlu1 %372 }
  0xd4   : > { %9973 = vst [vmem:[#allocation23_spill] sm:$0xff] %v8192_v6  ;;  %v1460_v27 = vcombine.low %v8177_v49, %v8146_v48  ;;  %v1461_v50 = vcombine.high %v8177_v49, %v8146_v48  ;;  %v1462_v18 = vcombine.low %v1287_v5, %v8158_v14  ;;  %v1568_v0 = vcombine.low %v8166_v15, %v8171_v62  ;;  %v7127_v5 = vld [vmem:[%s9904_s1 + $0x420] ss:$8 sps:$4 sm:$0xff]  }
  0xd5   : > { %9974 = vst [vmem:[#allocation24_spill] sm:$0xff] %v8200_v19  ;;  %4477 = vmatpush1.bf16.msra.mxu1 %v7118_v57  ;;  %v1385_v22 = vcombine.low %v8102_v39, %v8185_v17  ;;  %v1569_v2 = vcombine.high %v8166_v15, %v8171_v62  ;;  %v8231_v19 = vsel %vm472_vm0, %v7309_v13, %v8216_v12  ;;  %v7135_v13 = vld [vmem:[%s9904_s1 + $0x434] ss:$8 sps:$4 sm:$0xff]   ;;  %v7136_v49 = vld [vmem:[%s9904_s1 + $0x140] ss:$8 sps:$4 sm:$0xff]  }
  0xd6   : > { %4750 = vmatpush1.bf16.msra.mxu0 %v7121_v25  ;;  %4478 = vmatprep.subr.bf16.mxu1 %v7126_v26  ;;  %v7132_v25 = vld [vmem:[%s9904_s1 + $0x134] ss:$8 sps:$4 sm:$0xff]   ;;  %v8239_v26 = vrot.slane %v1290_v40, %v7695_v10  ;;  %v1584_v56 = vcombine.low %v8027_v23, %v8195_v46  ;;  %v1585_v35 = vcombine.high %v8027_v23, %v8195_v46 }
  0xd7   : > { %4751 = vmatprep.subr.bf16.mxu0 %v7129_v58  ;;  %v8249_v20 = vrot.slane %v1460_v27, %v7695_v10  ;;  %v8252_v36 = vrot.slane %v1462_v18, %v7695_v10  ;;  %v1586_v40 = vcombine.low %v8030_v45, %v8204_v33  ;;  %v1386_v57 = vcombine.high %v8102_v39, %v8185_v17  ;;  %v7130_v58 = vld [vmem:[%s9904_s1 + $0x130] ss:$8 sps:$4 sm:$0xff]  }
  0xd8   : > { %9975 = vst [vmem:[#allocation25_spill] sm:$0xff] %v8239_v26  ;;  %v8259_v26 = vrot.slane %v1461_v50, %v7695_v10  ;;  %v8262_v23 = vrot.slane %v1568_v0, %v7695_v10  ;;  %v8268_v27 = vrot.slane %v1385_v22, %v7695_v10  ;;  %v1510_v45 = vcombine.low %v8185_v17, %v8166_v15  ;;  %v7133_v39 = vld [vmem:[%s9904_s1 + $0x430] ss:$8 sps:$4 sm:$0xff]  }
  0xd9   : > { %9976 = vst [vmem:[#allocation26_spill] sm:$0xff] %v8252_v36  ;;  %4479 = vmatpush1.bf16.msra.mxu1 %v7124_v44  ;;  %v1583_v18 = vrot.slane %v1569_v2, %v7695_v10  ;;  %v1414_v50 = vrot.slane %v1386_v57, %v7695_v10  ;;  %v1511_v44 = vcombine.high %v8185_v17, %v8166_v15  ;;  %v7138_v57 = vld [vmem:[%s9904_s1 + $0x144] ss:$8 sps:$4 sm:$0xff]  }
  0xda   : > { %4752 = vmatpush1.bf16.msra.mxu0 %v7127_v5  ;;  %4480 = vmatprep.subr.bf16.mxu1 %v7132_v25  ;;  %v8281_v22 = vrot.slane %v1584_v56, %v7695_v10  ;;  %v1415_v2 = vcombine.low %v8195_v46, %v8268_v27  ;;  %v1416_v5 = vcombine.high %v8195_v46, %v8268_v27  ;;  %v7141_v46 = vld [vmem:[%s9904_s1 + $0x444] ss:$8 sps:$4 sm:$0xff]  }
  0xdb   : > { %4753 = vmatprep.subr.bf16.mxu0 %v7135_v13  ;;  %v8288_v25 = vrot.slane %v1510_v45, %v7695_v10  ;;  %v8294_v15 = vrot.slane %v1585_v35, %v7695_v10  ;;  %v1417_v17 = vcombine.low %v8204_v33, %v1414_v50  ;;  %v1587_v56 = vcombine.low %v8268_v27, %v8262_v23 }
  0xdc   : > { %v1589_v13 = vcombine.low %v1414_v50, %v1583_v18  ;;  %v8305_v0 = vrot.slane %v1586_v40, %v7695_v10  ;;  %v9978_v35 = vcombine.low %v7721_v42, %v7709_v31  ;;  %v9979_v18 = vcombine.high %v7721_v42, %v7709_v31  ;;  %v7139_v42 = vld [vmem:[%s9904_s1 + $0x440] ss:$8 sps:$4 sm:$0xff]  }
  0xdd   : > { %9977 = vst [vmem:[#allocation27_spill] sm:$0xff] %v8294_v15  ;;  %4481 = vmatpush1.bf16.msra.mxu1 %v7130_v58  ;;  %v8319_v45 = vrot.slane %v1415_v2, %v7695_v10  ;;  %v8322_v40 = vrot.slane %v1416_v5, %v7695_v10  ;;  %v8325_v58 = vrot.slane %v1511_v44, %v7695_v10  ;;  %v7142_v15 = vld [vmem:[%s9904_s1 + $0x150] ss:$8 sps:$4 sm:$0xff]  }
  0xde   : > { %v961_v33 = vrot.slane %v9978_v35, %v7695_v10  ;;  %v975_v50 = vrot.slane %v9979_v18, %v7695_v10  ;;  %4754 = vmatpush1.bf16.msra.mxu0 %v7133_v39  ;;  %v7144_v18 = vld [vmem:[%s9904_s1 + $0x154] ss:$8 sps:$4 sm:$0xff]   ;;  %v8336_v2 = vrot.slane %v1417_v17, %v7695_v10  ;;  %4482 = vmatprep.subr.bf16.mxu1 %v7138_v57 }
  0xdf   : > { %9980 = vst [vmem:[#allocation28_spill] sm:$0xff] %v8319_v45  ;;  %v7147_v39 = vld [vmem:[%s9904_s1 + $0x454] ss:$8 sps:$4 sm:$0xff]   ;;  %v8347_v60 = vrot.slane %v1587_v56, %v7695_v10  ;;  %v8350_v31 = vrot.slane %v1589_v13, %v7695_v10  ;;  %v1124_v17 = vcombine.low %v7886_v9, %v7948_v51  ;;  %v1127_v5 = vcombine.low %v7892_v3, %v7951_v7 }
  0xe0   : > { %v998_v35 = vcombine.high %v961_v33, %v7847_v37  ;;  %4755 = vmatprep.subr.bf16.mxu0 %v7141_v46  ;;  %v1001_v44 = vcombine.high %v975_v50, %v7857_v29  ;;  %v8359_v57 = vcombine.high %v7886_v9, %v7948_v51  ;;  %v9981_v45 = vunpack.i.h.s16 %v7792_v41 }
  0xe1   : > { %v9982_v56 = vcombine.low %v7745_v4, %v7740_v1  ;;  %4483 = vmatpush1.bf16.msra.mxu1 %v7136_v49  ;;  %v1878_v52 = vunpack.i.h.s16 %v1124_v17  ;;  %v1882_v46 = vunpack.i.h.s16 %v1127_v5  ;;  %v9983_v36 = vcombine.low %v7756_v16, %v7876_v30  ;;  %v7145_v1 = vld [vmem:[%s9904_s1 + $0x450] ss:$8 sps:$4 sm:$0xff]   ;;  %v7150_v16 = vld [vmem:[%s9904_s1 + $0x164] ss:$8 sps:$4 sm:$0xff]  }
  0xe2   : > { %v6640_v48 = vcombine.low %v975_v50, %v998_v35  ;;  %v997_v9 = vcombine.low %v961_v33, %v7847_v37  ;;  %4756 = vmatpush1.bf16.msra.mxu0 %v7139_v42  ;;  %4484 = vmatprep.subr.bf16.mxu1 %v7144_v18  ;;  %v8378_v4 = vcombine.high %v8322_v40, %v8322_v40  ;;  %v7153_v18 = vld [vmem:[%s9904_s1 + $0x464] ss:$8 sps:$4 sm:$0xff]  }
  0xe3   : > { %v6602_v13 = vpack.i.b16 %v9982_v56, %v9981_v45  ;;  %v6604_v6 = vpack.i.b16 %v1124_v17, %v9983_v36  ;;  %v1000_v49 = vcombine.low %v975_v50, %v7857_v29  ;;  %v467_v45 = vpop.permute.xlu1 %466  ;;  %4757 = vmatprep.subr.bf16.mxu0 %v7147_v39  ;;  %v6606_v30 = vpack.i.b16 %v1127_v5, %v1878_v52  ;;  %v7148_v52 = vld [vmem:[%s9904_s1 + $0x160] ss:$8 sps:$4 sm:$0xff]  }
  0xe4   : > { %9984 = vst [vmem:[#allocation29_spill] sm:$0xff] %v8378_v4  ;;  %v2490_v51 = vrot.slane %v6640_v48, %v7695_v10  ;;  %v6608_v36 = vpack.i.b16 %v8359_v57, %v1882_v46  ;;  %v1713_v48 = vcombine.low %v8158_v14, %v8325_v58  ;;  %v8400_v56 = vsel %vm522_vm2, %v8088_v21, %v467_v45  ;;  %v7156_v46 = vld [vmem:[%s9904_s1 + $0x174] ss:$8 sps:$4 sm:$0xff]  }
  0xe5   : > { %v6639_v41 = vcombine.low %v6602_v13, %v961_v33  ;;  %v2466_v35 = vcombine.low %v1001_v44, %v6604_v6  ;;  %v2463_v42 = vcombine.high %v6602_v13, %v997_v9  ;;  %v6641_v50 = vcombine.high %v1000_v49, %v7847_v37  ;;  %4485 = vmatpush1.bf16.msra.mxu1 %v7142_v15  ;;  %v7151_v37 = vld [vmem:[%s9904_s1 + $0x460] ss:$8 sps:$4 sm:$0xff]   ;;  %v409_v13 = vpop.permute.xlu0 %408  ;;  %v7159_v49 = vld [vmem:[%s9904_s1 + $0x474] ss:$8 sps:$4 sm:$0xff]  }
  0xe6   : > { %v6642_v39 = vcombine.high %v7857_v29, %v6604_v6  ;;  %v2468_v5 = vcombine.low %v6606_v30, %v6608_v36  ;;  %v2469_v44 = vcombine.high %v6606_v30, %v6608_v36  ;;  %4758 = vmatpush1.bf16.msra.mxu0 %v7145_v1  ;;  %v1927_v29 = vunpack.i.h.s16 %v8378_v4  ;;  %4486 = vmatprep.subr.bf16.mxu1 %v7150_v16  ;;  %v7154_v36 = vld [vmem:[%s9904_s1 + $0x170] ss:$8 sps:$4 sm:$0xff]  }
  0xe7   : > { %v2476_v33 = vrot.slane %v6639_v41, %v7695_v10  ;;  %v2483_v17 = vrot.slane %v2463_v42, %v7695_v10  ;;  %v2497_v6 = vrot.slane %v6641_v50, %v7695_v10  ;;  %v2504_v21 = vrot.slane %v2466_v35, %v7695_v10  ;;  %4759 = vmatprep.subr.bf16.mxu0 %v7153_v18  ;;  %v7157_v50 = vld [vmem:[%s9904_s1 + $0x470] ss:$8 sps:$4 sm:$0xff]  }
  0xe8   : > { %v2518_v9 = vrot.slane %v2468_v5, %v7695_v10  ;;  %v2511_v1 = vrot.slane %v6642_v39, %v7695_v10  ;;  %v2525_v41 = vrot.slane %v2469_v44, %v7695_v10  ;;  %v1512_v16 = vcombine.low %v8171_v62, %v8400_v56  ;;  %v7162_v44 = vld [vmem:[%s9904_s1 + $0x184] ss:$8 sps:$4 sm:$0xff]  }
  0xe9   : > { %v2527_v14 = vcombine.high %v2476_v33, %v2490_v51  ;;  %v2526_v15 = vcombine.low %v2476_v33, %v2490_v51  ;;  %v2529_v51 = vcombine.high %v2483_v17, %v2497_v6  ;;  %v2528_v45 = vcombine.low %v2483_v17, %v2497_v6  ;;  %4487 = vmatpush1.bf16.msra.mxu1 %v7148_v52 }
  0xea   : > { %v1513_v30 = vcombine.high %v8171_v62, %v8400_v56  ;;  %v2531_v35 = vcombine.high %v2504_v21, %v2518_v9  ;;  %v2533_v42 = vcombine.high %v2511_v1, %v2525_v41  ;;  %v2530_v18 = vcombine.low %v2504_v21, %v2518_v9  ;;  %4760 = vmatpush1.bf16.msra.mxu0 %v7151_v37 }
  0xeb   : > { %v2532_v33 = vcombine.low %v2511_v1, %v2525_v41  ;;  %v8428_v39 = vrot.slane %v2527_v14, %v7695_v10  ;;  %v8431_v5 = vrot.slane %v2529_v51, %v7695_v10  ;;  %v8434_v62 = vrot.slane %v2526_v15, %v7695_v10  ;;  %4488 = vmatprep.subr.bf16.mxu1 %v7156_v46  ;;  %v469_v41 = vpop.permute.xlu0 %468 }
  0xec   : > { %v8437_v52 = vrot.slane %v2528_v45, %v7695_v10  ;;  %v8443_v17 = vrot.slane %v2531_v35, %v7695_v10  ;;  %v8446_v37 = vrot.slane %v2533_v42, %v7695_v10  ;;  %v8449_v14 = vrot.slane %v2530_v18, %v7695_v10  ;;  %4761 = vmatprep.subr.bf16.mxu0 %v7159_v49  ;;  %v7160_v42 = vld [vmem:[%s9904_s1 + $0x180] ss:$8 sps:$4 sm:$0xff]  }
  0xed   : > { %9985 = vst [vmem:[#allocation30_spill] sm:$0xff] %v8431_v5  ;;  %v8452_v6 = vrot.slane %v2532_v33, %v7695_v10  ;;  %v9989_v15 = vcombine.high %v8268_v27, %v8262_v23  ;;  %v8463_v9 = vrot.slane %v1713_v48, %v7695_v10  ;;  %v8466_v1 = vrot.slane %v1513_v30, %v7695_v10  ;;  %v7165_v48 = vld [vmem:[%s9904_s1 + $0x484] ss:$8 sps:$4 sm:$0xff]  }
  0xee   : > { %9986 = vst [vmem:[#allocation31_spill] sm:$0xff] %v8437_v52  ;;  %9987 = vst [vmem:[#allocation32_spill] sm:$0xff] %v8446_v37  ;;  %4489 = vmatpush1.bf16.msra.mxu1 %v7154_v36  ;;  %v2594_v49 = vcombine.low %v8428_v39, %v8443_v17  ;;  %v2597_v51 = vcombine.high %v8431_v5, %v8446_v37  ;;  %v2590_v23 = vcombine.low %v8434_v62, %v8449_v14 }
  0xef   : > { %9988 = vst [vmem:[#allocation33_spill] sm:$0xff] %v8452_v6  ;;  %v8458_v46 = vrot.slane %v9989_v15, %v7695_v10  ;;  %v2593_v27 = vcombine.high %v8437_v52, %v8452_v6  ;;  %4762 = vmatpush1.bf16.msra.mxu0 %v7157_v50  ;;  %v8480_v45 = vpack.i.b16 %v8336_v2, %v1927_v29  ;;  %v8505_v15 = vpop.permute.xlu1 %374 }
  0xf0   : > { %v8483_v30 = vrot.slane %v1512_v16, %v7695_v10  ;;  %v1637_v36 = vcombine.low %v8400_v56, %v8231_v19  ;;  %v519_v35 = vsel %vm497_vm1, %v8216_v12, %v409_v13  ;;  %4490 = vmatprep.subr.bf16.mxu1 %v7162_v44  ;;  %4425 = vmatprep.mubr.bf16.mxu1 %v2594_v49  ;;  %v7163_v16 = vld [vmem:[%s9904_s1 + $0x480] ss:$8 sps:$4 sm:$0xff]  }
  0xf1   : > { %9990 = vst [vmem:[#allocation34_spill] sm:$0xff] %v8480_v45  ;;  %4698 = vmatprep.mubr.bf16.mxu0 %v2597_v51  ;;  %v1695_v18 = vcombine.low %v8231_v19, %v519_v35  ;;  %v1696_v2 = vcombine.high %v8231_v19, %v519_v35  ;;  %v8495_v29 = vsel %vm522_vm2, %v409_v13, %v469_v41  ;;  %v7168_v13 = vld [vmem:[%s9904_s1 + $0x194] ss:$8 sps:$4 sm:$0xff]  }
  0xf2   : > { %4426 = vmatmul.mubr.bf16.gmra.mrb[4].mxu1 %v2590_v23  ;;  %4699 = vmatmul.mubr.bf16.gmra.mrb[4].mxu0 %v2593_v27  ;;  %v1638_v33 = vcombine.high %v8400_v56, %v8231_v19  ;;  %v1639_v50 = vcombine.low %v519_v35, %v8495_v29  ;;  %v1640_v44 = vcombine.high %v519_v35, %v8495_v29  ;;  %v7310_v19 = vld [vmem:[%s7381_s6 + $0x58] sm:$0x3f]  }
  0xf3   : > { %v1544_v49 = vcombine.low %v8325_v58, %v8466_v1  ;;  %v1703_v51 = vrot.slane %v1695_v18, %v7695_v10  ;;  %v1710_v23 = vrot.slane %v1696_v2, %v7695_v10  ;;  %v8518_v56 = vsel %vm472_vm0, %v7310_v19, %v8505_v15  ;;  %4763 = vmatprep.subr.bf16.mxu0 %v7165_v48  ;;  %v7171_v27 = vld [vmem:[%s9904_s1 + $0x494] ss:$8 sps:$4 sm:$0xff]   ;;  %v7166_v48 = vld [vmem:[%s9904_s1 + $0x190] ss:$8 sps:$4 sm:$0xff]  }
  0xf4   : > { %v8524_v35 = vrot.slane %v1637_v36, %v7695_v10  ;;  %v8527_v41 = vrot.slane %v1639_v50, %v7695_v10  ;;  %v8530_v58 = vrot.slane %v1640_v44, %v7695_v10  ;;  %v1764_v18 = vcombine.low %v8495_v29, %v8518_v56  ;;  %4491 = vmatpush1.bf16.msra.mxu1 %v7160_v42  ;;  %v7169_v44 = vld [vmem:[%s9904_s1 + $0x490] ss:$8 sps:$4 sm:$0xff]   ;;  %v7174_v42 = vld [vmem:[%s9904_s1 + $0x1a4] ss:$8 sps:$4 sm:$0xff]  }
  0xf5   : > { %v1714_v36 = vcombine.low %v8483_v30, %v1703_v51  ;;  %v1128_v50 = vcombine.high %v7892_v3, %v7951_v7  ;;  %v1886_v19 = vunpack.i.h.s16 %v8359_v57  ;;  %4764 = vmatpush1.bf16.msra.mxu0 %v7163_v16  ;;  %v8552_v2 = vrot.slane %v1638_v33, %v7695_v10  ;;  %4492 = vmatprep.subr.bf16.mxu1 %v7168_v13  ;;  %v7177_v16 = vld [vmem:[%s9904_s1 + $0x4a4] ss:$8 sps:$4 sm:$0xff]  }
  0xf6   : > { %v1670_v3 = vcombine.high %v8524_v35, %v8527_v41  ;;  %v9991_v7 = vcombine.low %v7795_v43, %v7905_v32  ;;  %v8564_v21 = vrot.slane %v1544_v49, %v7695_v10  ;;  %v1715_v12 = vcombine.high %v8483_v30, %v1703_v51  ;;  %4765 = vmatprep.subr.bf16.mxu0 %v7171_v27 }
  0xf7   : > { %v1716_v33 = vcombine.low %v8466_v1, %v1710_v23  ;;  %v1671_v13 = vcombine.low %v8552_v2, %v8530_v58  ;;  %v9992_v49 = vcombine.high %v7795_v43, %v7905_v32  ;;  %v7172_v1 = vld [vmem:[%s9904_s1 + $0x1a0] ss:$8 sps:$4 sm:$0xff]   ;;  %v8585_v23 = vrot.slane %v1714_v36, %v7695_v10 }
  0xf8   : > { %v1215_v57 = vrot.slane %v9991_v7, %v7695_v10  ;;  %v8575_v7 = vrot.slane %v1764_v18, %v7695_v10  ;;  %4493 = vmatpush1.bf16.msra.mxu1 %v7166_v48  ;;  %v1378_v27 = vcombine.low %v7994_v63, %v8095_v55  ;;  %v1890_v58 = vunpack.i.h.s16 %v1128_v50  ;;  %v411_v18 = vpop.permute.xlu0 %410  ;;  %v7175_v43 = vld [vmem:[%s9904_s1 + $0x4a0] ss:$8 sps:$4 sm:$0xff]  }
  0xf9   : > { %v1229_v51 = vrot.slane %v9992_v49, %v7695_v10  ;;  %v6610_v2 = vpack.i.b16 %v1128_v50, %v1886_v19  ;;  %4766 = vmatpush1.bf16.msra.mxu0 %v7169_v44  ;;  %4494 = vmatprep.subr.bf16.mxu1 %v7174_v42  ;;  %v8593_v48 = vrot.slane %v1670_v3, %v7695_v10  ;;  %v7180_v19 = vld [vmem:[%s9904_s1 + $0x1b4] ss:$8 sps:$4 sm:$0xff]   ;;  %v471_v44 = vpop.permute.xlu1 %470 }
  0xfa   : > { %v8597_v49 = vcombine.low %v8054_v28, %v8105_v34  ;;  %v9993_v6 = vcombine.low %v7938_v24, %v7914_v47  ;;  %4767 = vmatprep.subr.bf16.mxu0 %v7177_v16  ;;  %v1914_v42 = vunpack.i.h.s16 %v1378_v27  ;;  %v9994_v3 = vcombine.low %v7889_v54, %v7922_v11 }
  0xfb   : > { %v6643_v36 = vcombine.low %v1215_v57, %v1229_v51  ;;  %v6645_v5 = vcombine.high %v1215_v57, %v1229_v51  ;;  %v9995_v37 = vcombine.high %v7938_v24, %v7914_v47  ;;  %v8617_v16 = vrot.slane %v1716_v33, %v7695_v10 }
  0xfc   : > { %v1236_v50 = vrot.slane %v9993_v6, %v7695_v10  ;;  %v6612_v52 = vpack.i.b16 %v9994_v3, %v1890_v58  ;;  %v7183_v6 = vld [vmem:[%s9904_s1 + $0x4b4] ss:$8 sps:$4 sm:$0xff]   ;;  %v8620_v4 = vrot.slane %v1715_v12, %v7695_v10  ;;  %v9996_v54 = vcombine.low %v7960_v61, %v7985_v8  ;;  %4495 = vmatpush1.bf16.msra.mxu1 %v7172_v1  ;;  %v7181_v61 = vld [vmem:[%s9904_s1 + $0x4b0] ss:$8 sps:$4 sm:$0xff]  }
  0xfd   : > { %v1250_v45 = vrot.slane %v9995_v37, %v7695_v10  ;;  %v8627_v57 = vsel %vm497_vm1, %v8505_v15, %v411_v18  ;;  %v7178_v37 = vld [vmem:[%s9904_s1 + $0x1b0] ss:$8 sps:$4 sm:$0xff]   ;;  %v6616_v51 = vpack.i.b16 %v8597_v49, %v1914_v42  ;;  %4768 = vmatpush1.bf16.msra.mxu0 %v7175_v43  ;;  %v8638_v8 = vcombine.high %v8593_v48, %v8593_v48 }
  0xfe   : > { %v6614_v11 = vpack.i.b16 %v1378_v27, %v9996_v54  ;;  %v2666_v33 = vcombine.low %v6610_v2, %v6612_v52  ;;  %v2667_v58 = vcombine.high %v6610_v2, %v6612_v52  ;;  %v2694_v12 = vrot.slane %v6643_v36, %v7695_v10  ;;  %4496 = vmatprep.subr.bf16.mxu1 %v7180_v19  ;;  %v7186_v52 = vld [vmem:[%s9904_s1 + $0x1c4] ss:$8 sps:$4 sm:$0xff]   ;;  %v7184_v19 = vld [vmem:[%s9904_s1 + $0x1c0] ss:$8 sps:$4 sm:$0xff]  }
  0xff   : > { %v6644_v3 = vcombine.low %v1236_v50, %v1250_v45  ;;  %v6646_v15 = vcombine.high %v1236_v50, %v1250_v45  ;;  %v546_v1 = vsel %vm522_vm2, %v411_v18, %v471_v44  ;;  %v2708_v43 = vrot.slane %v6645_v5, %v7695_v10  ;;  %4769 = vmatprep.subr.bf16.mxu0 %v7183_v6  ;;  %v7189_v54 = vld [vmem:[%s9904_s1 + $0x4c4] ss:$8 sps:$4 sm:$0xff]  }
 0x100   : > { %v2672_v27 = vcombine.low %v6614_v11, %v6616_v51  ;;  %v2680_v2 = vrot.slane %v2666_v33, %v7695_v10  ;;  %v2673_v42 = vcombine.high %v6614_v11, %v6616_v51  ;;  %v2687_v45 = vrot.slane %v2667_v58, %v7695_v10  ;;  %4497 = vmatpush1.bf16.msra.mxu1 %v7178_v37  ;;  %v7187_v51 = vld [vmem:[%s9904_s1 + $0x4c0] ss:$8 sps:$4 sm:$0xff]  }
 0x101   : > { %v2701_v18 = vrot.slane %v6644_v3, %v7695_v10  ;;  %v2715_v36 = vrot.slane %v6646_v15, %v7695_v10  ;;  %v1766_v50 = vcombine.low %v8627_v57, %v546_v1  ;;  %4770 = vmatpush1.bf16.msra.mxu0 %v7181_v61  ;;  %v1685_v33 = vrot.slane %v1671_v13, %v7695_v10  ;;  %v7192_v61 = vld [vmem:[%s9904_s1 + $0x1d4] ss:$8 sps:$4 sm:$0xff]  }
 0x102   : > { %v2722_v5 = vrot.slane %v2672_v27, %v7695_v10  ;;  %v2731_v44 = vcombine.high %v2680_v2, %v2694_v12  ;;  %v2729_v6 = vrot.slane %v2673_v42, %v7695_v10  ;;  %v2730_v11 = vcombine.low %v2680_v2, %v2694_v12  ;;  %4498 = vmatprep.subr.bf16.mxu1 %v7186_v52  ;;  %v7195_v13 = vld [vmem:[%s9904_s1 + $0x4d4] ss:$8 sps:$4 sm:$0xff]  }
 0x103   : > { %v1963_v58 = vunpack.i.h.s16 %v8638_v8  ;;  %v9997_v37 = vcombine.high %v8495_v29, %v8518_v56  ;;  %v2733_v15 = vcombine.high %v2687_v45, %v2701_v18  ;;  %v1767_v2 = vcombine.high %v8627_v57, %v546_v1  ;;  %4771 = vmatprep.subr.bf16.mxu0 %v7189_v54  ;;  %v7190_v57 = vld [vmem:[%s9904_s1 + $0x1d0] ss:$8 sps:$4 sm:$0xff]  }
 0x104   : > { %v2735_v12 = vcombine.high %v2708_v43, %v2722_v5  ;;  %v2737_v27 = vcombine.high %v2715_v36, %v2729_v6  ;;  %v2734_v42 = vcombine.low %v2708_v43, %v2722_v5  ;;  %v8678_v29 = vrot.slane %v2731_v44, %v7695_v10  ;;  %4499 = vmatpush1.bf16.msra.mxu1 %v7184_v19 }
 0x105   : > { %v8668_v3 = vrot.slane %v9997_v37, %v7695_v10  ;;  %v8681_v56 = vrot.slane %v2733_v15, %v7695_v10  ;;  %v8684_v52 = vrot.slane %v1766_v50, %v7695_v10  ;;  %v2732_v37 = vcombine.low %v2687_v45, %v2701_v18  ;;  %4772 = vmatpush1.bf16.msra.mxu0 %v7187_v51 }
 0x106   : > { %v8690_v1 = vrot.slane %v2735_v12, %v7695_v10  ;;  %v8693_v43 = vrot.slane %v2737_v27, %v7695_v10  ;;  %v8696_v54 = vrot.slane %v2730_v11, %v7695_v10  ;;  %v8699_v5 = vrot.slane %v2734_v42, %v7695_v10  ;;  %4500 = vmatprep.subr.bf16.mxu1 %v7192_v61  ;;  %v7193_v11 = vld [vmem:[%s9904_s1 + $0x4d0] ss:$8 sps:$4 sm:$0xff]  }
 0x107   : > { %9998 = vst [vmem:[#allocation35_spill] sm:$0xff] %v8681_v56  ;;  %v10000_v45 = vcombine.low %v8524_v35, %v8527_v41  ;;  %v8707_v50 = vpack.i.b16 %v1685_v33, %v1963_v58  ;;  %v2736_v19 = vcombine.low %v2715_v36, %v2729_v6  ;;  %v1379_v44 = vcombine.high %v7994_v63, %v8095_v55  ;;  %v7198_v63 = vld [vmem:[%s9904_s1 + $0x1e4] ss:$8 sps:$4 sm:$0xff]  }
 0x108   : > { %9999 = vst [vmem:[#allocation36_spill] sm:$0xff] %v8693_v43  ;;  %v2798_v51 = vcombine.low %v8678_v29, %v8690_v1  ;;  %v2801_v15 = vcombine.high %v8681_v56, %v8693_v43  ;;  %v8719_v41 = vrot.slane %v1767_v2, %v7695_v10  ;;  %v2794_v35 = vcombine.low %v8696_v54, %v8699_v5  ;;  %v7201_v55 = vld [vmem:[%s9904_s1 + $0x4e4] ss:$8 sps:$4 sm:$0xff]  }
 0x109   : > { %v8705_v18 = vrot.slane %v10000_v45, %v7695_v10  ;;  %4773 = vmatprep.subr.bf16.mxu0 %v7195_v13  ;;  %v8734_v33 = vrot.slane %v2732_v37, %v7695_v10  ;;  %v8737_v58 = vrot.slane %v2736_v19, %v7695_v10  ;;  %4501 = vmatpush1.bf16.msra.mxu1 %v7190_v57  ;;  %v1918_v13 = vunpack.i.h.s16 %v8597_v49  ;;  %v7196_v37 = vld [vmem:[%s9904_s1 + $0x1e0] ss:$8 sps:$4 sm:$0xff]  }
 0x10a   : > { %4435 = vmatprep.mubr.bf16.mxu1 %v2798_v51  ;;  %4708 = vmatprep.mubr.bf16.mxu0 %v2801_v15  ;;  %v1382_v61 = vcombine.high %v8054_v28, %v8105_v34  ;;  %v10003_v12 = vcombine.low %v7914_v47, %v8078_v38  ;;  %v10004_v2 = vcombine.high %v7914_v47, %v8078_v38  ;;  %v1922_v57 = vunpack.i.h.s16 %v1379_v44  ;;  %v7199_v47 = vld [vmem:[%s9904_s1 + $0x4e0] ss:$8 sps:$4 sm:$0xff]  }
 0x10b   : > { %10001 = vst [vmem:[#allocation37_spill] sm:$0xff] %v8734_v33  ;;  %10002 = vst [vmem:[#allocation38_spill] sm:$0xff] %v8737_v58  ;;  %4436 = vmatmul.mubr.bf16.gmra.mrb[8].mxu1 %v2794_v35  ;;  %v2797_v28 = vcombine.high %v8734_v33, %v8737_v58  ;;  %v8757_v34 = vcombine.low %v8281_v22, %v8347_v60  ;;  %v8761_v45 = vcombine.high %v8281_v22, %v8347_v60  ;;  %v7204_v35 = vld [vmem:[%s9904_s1 + $0x1f4] ss:$8 sps:$4 sm:$0xff]   ;;  %v10005_v22 = vld [vmem:[#allocation23_spill] sm:$0xff] }
 0x10c   : > { %v1469_v27 = vrot.slane %v10003_v12, %v7695_v10  ;;  %v1483_v42 = vrot.slane %v10004_v2, %v7695_v10  ;;  %4774 = vmatpush1.bf16.msra.mxu0 %v7193_v11  ;;  %v1926_v51 = vunpack.i.h.s16 %v1382_v61  ;;  %v6618_v15 = vpack.i.b16 %v1379_v44, %v1918_v13  ;;  %4502 = vmatprep.subr.bf16.mxu1 %v7198_v63  ;;  %v10006_v11 = vld [vmem:[#allocation26_spill] sm:$0xff]  ;;  %v7207_v44 = vld [vmem:[%s9904_s1 + $0x4f4] ss:$8 sps:$4 sm:$0xff]  }
 0x10d   : > { %4775 = vmatprep.subr.bf16.mxu0 %v7201_v55  ;;  %4709 = vmatmul.mubr.bf16.gmra.mrb[8].mxu0 %v2797_v28  ;;  %v6620_v60 = vpack.i.b16 %v1382_v61, %v1922_v57  ;;  %v10007_v12 = vcombine.low %v10005_v22, %v10006_v11  ;;  %v10008_v63 = vld [vmem:[#allocation14_spill] sm:$0xff]  ;;  %v10009_v55 = vld [vmem:[#allocation16_spill] sm:$0xff]  ;;  %v10011_v61 = vld [vmem:[#allocation27_spill] sm:$0xff] }
 0x10e   : > { %v1506_v49 = vcombine.high %v1469_v27, %v8249_v20  ;;  %v1509_v19 = vcombine.high %v1483_v42, %v8259_v26  ;;  %v1505_v6 = vcombine.low %v1469_v27, %v8249_v20  ;;  %v1508_v36 = vcombine.low %v1483_v42, %v8259_v26  ;;  %4503 = vmatpush1.bf16.msra.mxu1 %v7196_v37  ;;  %v7202_v22 = vld [vmem:[%s9904_s1 + $0x1f0] ss:$8 sps:$4 sm:$0xff]  }
 0x10f   : > { %v6624_v2 = vpack.i.b16 %v8757_v34, %v10007_v12  ;;  %v10010_v13 = vcombine.low %v10008_v63, %v10009_v55  ;;  %v1635_v28 = vcombine.low %v10011_v61, %v8458_v46  ;;  %v1636_v57 = vcombine.high %v10011_v61, %v8458_v46  ;;  %4504 = vmatprep.subr.bf16.mxu1 %v7204_v35 }
 0x110   : > { %v6649_v58 = vcombine.low %v1483_v42, %v1506_v49  ;;  %v2870_v11 = vcombine.low %v6618_v15, %v6620_v60  ;;  %v2871_v56 = vcombine.high %v6618_v15, %v6620_v60  ;;  %v6650_v43 = vcombine.high %v1508_v36, %v8249_v20  ;;  %4776 = vmatpush1.bf16.msra.mxu0 %v7199_v47  ;;  %v7205_v42 = vld [vmem:[%s9904_s1 + $0x4f0] ss:$8 sps:$4 sm:$0xff]   ;;  %v7210_v49 = vld [vmem:[%s9904_s1 + $0x204] ss:$8 sps:$4 sm:$0xff]  }
 0x111   : > { %v6622_v33 = vpack.i.b16 %v10010_v13, %v1926_v51  ;;  %v2876_v12 = vcombine.low %v1509_v19, %v6624_v2  ;;  %v6651_v63 = vcombine.high %v8259_v26, %v6624_v2  ;;  %v7213_v20 = vld [vmem:[%s9904_s1 + $0x504] ss:$8 sps:$4 sm:$0xff]   ;;  %4777 = vmatprep.subr.bf16.mxu0 %v7207_v44  ;;  %v1950_v44 = vunpack.i.h.s16 %v8757_v34 }
 0x112   : > { %v2912_v37 = vrot.slane %v6649_v58, %v7695_v10  ;;  %v2884_v36 = vrot.slane %v2870_v11, %v7695_v10  ;;  %v2891_v19 = vrot.slane %v2871_v56, %v7695_v10  ;;  %v2919_v15 = vrot.slane %v6650_v43, %v7695_v10  ;;  %4505 = vmatpush1.bf16.msra.mxu1 %v7202_v22 }
 0x113   : > { %v6648_v46 = vcombine.low %v6622_v33, %v1469_v27  ;;  %v2873_v51 = vcombine.high %v6622_v33, %v1505_v6  ;;  %v2926_v47 = vrot.slane %v2876_v12, %v7695_v10  ;;  %v2933_v26 = vrot.slane %v6651_v63, %v7695_v10  ;;  %v10012_v33 = vld [vmem:[#allocation21_spill] sm:$0xff]  ;;  %4565 = vmatprep.subr.bf16.mxu1 %v7210_v49 }
 0x114   : > { %v10013_v58 = vcombine.low %v10012_v33, %v8288_v25  ;;  %v10014_v56 = vcombine.high %v10012_v33, %v8288_v25  ;;  %4778 = vmatpush1.bf16.msra.mxu0 %v7205_v42  ;;  %v6626_v33 = vpack.i.b16 %v1635_v28, %v1950_v44  ;;  %v10017_v44 = vld [vmem:[#allocation28_spill] sm:$0xff] }
 0x115   : > { %v2898_v27 = vrot.slane %v6648_v46, %v7695_v10  ;;  %v2905_v6 = vrot.slane %v2873_v51, %v7695_v10  ;;  %v2939_v60 = vcombine.high %v2912_v37, %v2926_v47  ;;  %v2938_v2 = vcombine.low %v2912_v37, %v2926_v47  ;;  %4838 = vmatprep.subr.bf16.mxu0 %v7213_v20 }
 0x116   : > { %v1723_v35 = vrot.slane %v10013_v58, %v7695_v10  ;;  %v1737_v43 = vrot.slane %v10014_v56, %v7695_v10  ;;  %v2941_v61 = vcombine.high %v2919_v15, %v2933_v26  ;;  %v2940_v37 = vcombine.low %v2919_v15, %v2933_v26 }
 0x117   : > { %v2935_v55 = vcombine.high %v2884_v36, %v2898_v27  ;;  %v2937_v13 = vcombine.high %v2891_v19, %v2905_v6  ;;  %v2934_v11 = vcombine.low %v2884_v36, %v2898_v27  ;;  %v8819_v12 = vrot.slane %v2939_v60, %v7695_v10 }
 0x118   : > { %v8822_v22 = vrot.slane %v2938_v2, %v7695_v10  ;;  %v2936_v46 = vcombine.low %v2891_v19, %v2905_v6  ;;  %v8831_v42 = vrot.slane %v2941_v61, %v7695_v10  ;;  %v8840_v20 = vrot.slane %v2940_v37, %v7695_v10  ;;  %v10016_v61 = vld [vmem:[#allocation13_spill] sm:$0xff] }
 0x119   : > { %v8825_v51 = vrot.slane %v2935_v55, %v7695_v10  ;;  %v8828_v34 = vrot.slane %v2937_v13, %v7695_v10  ;;  %v8834_v49 = vrot.slane %v2934_v11, %v7695_v10  ;;  %v1954_v36 = vunpack.i.h.s16 %v1635_v28 }
 0x11a   : > { %v8837_v63 = vrot.slane %v2936_v46, %v7695_v10  ;;  %v1958_v47 = vunpack.i.h.s16 %v8761_v45  ;;  %v1962_v6 = vunpack.i.h.s16 %v1636_v57  ;;  %v10015_v2 = vcombine.low %v8305_v0, %v8350_v31 }
 0x11b   : > { %v3002_v19 = vcombine.low %v8825_v51, %v8819_v12  ;;  %v3005_v15 = vcombine.high %v8828_v34, %v8831_v42  ;;  %v2998_v27 = vcombine.low %v8834_v49, %v8822_v22  ;;  %v6628_v58 = vpack.i.b16 %v8761_v45, %v1954_v36 }
 0x11c   : > { %v3001_v26 = vcombine.high %v8837_v63, %v8840_v20  ;;  %v6630_v60 = vpack.i.b16 %v1636_v57, %v1958_v47  ;;  %v6632_v56 = vpack.i.b16 %v10015_v2, %v1962_v6  ;;  %v6652_v55 = vcombine.low %v1723_v35, %v1737_v43 }
 0x11d   : > { %4445 = vmatprep.mubr.bf16.mxu1 %v3002_v19  ;;  %4718 = vmatprep.mubr.bf16.mxu0 %v3005_v15  ;;  %v6654_v13 = vcombine.high %v1723_v35, %v1737_v43  ;;  %v3074_v46 = vcombine.low %v6626_v33, %v6628_v58  ;;  %v3075_v37 = vcombine.high %v6626_v33, %v6628_v58 }
 0x11e   : > { %4446 = vmatmul.mubr.bf16.gmra.mrb[12].mxu1 %v2998_v27  ;;  %4719 = vmatmul.mubr.bf16.gmra.mrb[12].mxu0 %v3001_v26  ;;  %v6653_v28 = vcombine.low %v8585_v23, %v8620_v4  ;;  %v3076_v57 = vcombine.low %v6630_v60, %v6632_v56  ;;  %v3116_v36 = vrot.slane %v6652_v55, %v7695_v10 }
 0x11f   : > { %v3130_v47 = vrot.slane %v6654_v13, %v7695_v10  ;;  %v3077_v31 = vcombine.high %v6630_v60, %v6632_v56  ;;  %v3088_v0 = vrot.slane %v3074_v46, %v7695_v10  ;;  %v6655_v35 = vcombine.high %v8585_v23, %v8620_v4  ;;  %v10020_v46 = vld [vmem:[#allocation2_spill] sm:$0xff] }
 0x120   : > { %v3095_v43 = vrot.slane %v3075_v37, %v7695_v10  ;;  %v3123_v19 = vrot.slane %v6653_v28, %v7695_v10  ;;  %v10018_v15 = vcombine.low %v8575_v7, %v8684_v52  ;;  %v3102_v6 = vrot.slane %v3076_v57, %v7695_v10  ;;  %v10021_v37 = vld [vmem:[#allocation3_spill] sm:$0xff] }
 0x121   : > { %v3143_v26 = vcombine.high %v3116_v36, %v3130_v47  ;;  %v3109_v33 = vrot.slane %v3077_v31, %v7695_v10  ;;  %v10019_v58 = vcombine.high %v8575_v7, %v8684_v52  ;;  %v3137_v23 = vrot.slane %v6655_v35, %v7695_v10 }
 0x122   : > { %v8870_v27 = vrot.slane %v10018_v15, %v7695_v10  ;;  %v3142_v60 = vcombine.low %v3116_v36, %v3130_v47  ;;  %v1761_v2 = vcombine.low %v8463_v9, %v8617_v16  ;;  %v3139_v56 = vcombine.high %v3088_v0, %v3102_v6 }
 0x123   : > { %v8878_v4 = vrot.slane %v10019_v58, %v7695_v10  ;;  %v3141_v55 = vcombine.high %v3095_v43, %v3109_v33  ;;  %v3138_v13 = vcombine.low %v3088_v0, %v3102_v6  ;;  %v10022_v28 = vcombine.low %v10020_v46, %v10021_v37 }
 0x124   : > { %v8888_v31 = vrot.slane %v3143_v26, %v7695_v10  ;;  %v3145_v7 = vcombine.high %v3123_v19, %v3137_v23  ;;  %v3140_v52 = vcombine.low %v3095_v43, %v3109_v33  ;;  %v3144_v15 = vcombine.low %v3123_v19, %v3137_v23 }
 0x125   : > { %v741_v57 = vrot.slane %v10022_v28, %v7695_v10  ;;  %v8891_v35 = vrot.slane %v3139_v56, %v7695_v10  ;;  %v8894_v36 = vrot.slane %v3141_v55, %v7695_v10  ;;  %v8897_v9 = vrot.slane %v3138_v13, %v7695_v10  ;;  %v10027_v56 = vld [vmem:[#allocation6_spill] sm:$0xff]  ;;  %v10028_v13 = vld [vmem:[#allocation4_spill] sm:$0xff] }
 0x126   : > { %v1982_v16 = vunpack.i.l.s16 %v1761_v2  ;;  %v8900_v47 = vrot.slane %v3145_v7, %v7695_v10  ;;  %v8903_v0 = vrot.slane %v3142_v60, %v7695_v10  ;;  %v8906_v6 = vrot.slane %v3140_v52, %v7695_v10 }
 0x127   : > { %10023 = vst [vmem:[#allocation23_spill] sm:$0xff] %v8897_v9  ;;  %v10026_v43 = vcombine.high %v10020_v46, %v10021_v37  ;;  %v3206_v26 = vcombine.low %v8891_v35, %v8888_v31  ;;  %v8915_v33 = vrot.slane %v3144_v15, %v7695_v10  ;;  %v931_v55 = vcombine.high %v10027_v56, %v10027_v56 }
 0x128   : > { %10024 = vst [vmem:[#allocation26_spill] sm:$0xff] %v8903_v0  ;;  %10025 = vst [vmem:[#allocation14_spill] sm:$0xff] %v8906_v6  ;;  %v3285_v58 = vrot.slane %v1982_v16, %v7695_v10  ;;  %v3278_v23 = vcombine.high %v1982_v16, %v1982_v16  ;;  %v3209_v60 = vcombine.high %v8894_v36, %v8900_v47  ;;  %v10029_v52 = vunpack.i.h.s16 %v10027_v56 }
 0x129   : > { %v755_v19 = vrot.slane %v10026_v43, %v7695_v10  ;;  %v3202_v2 = vcombine.low %v8897_v9, %v8903_v0  ;;  %v6595_v46 = vpack.i.b16 %v10027_v56, %v10028_v13  ;;  %4455 = vmatprep.mubr.bf16.mxu1 %v3206_v26  ;;  %v3205_v37 = vcombine.high %v8906_v6, %v8915_v33  ;;  %v10033_v56 = vld [vmem:[#allocation5_spill] sm:$0xff] }
 0x12a   : > { %v3293_v28 = vcombine.high %v3285_v58, %v3285_v58  ;;  %v3292_v7 = vrot.slane %v3278_v23, %v7695_v10  ;;  %v6597_v15 = vpack.i.b16 %v7911_v59, %v10029_v52  ;;  %4728 = vmatprep.mubr.bf16.mxu0 %v3209_v60  ;;  %v1851_v16 = vunpack.i.h.s16 %v931_v55 }
 0x12b   : > { %4456 = vmatmul.mubr.bf16.gmra.mrb[16].mxu1 %v3202_v2  ;;  %v10030_v43 = vunpack.i.h.s16 %v7911_v59  ;;  %v2394_v11 = vcombine.low %v741_v57, %v755_v19  ;;  %v6638_v9 = vcombine.high %v741_v57, %v755_v19  ;;  %4729 = vmatmul.mubr.bf16.gmra.mrb[16].mxu0 %v3205_v37  ;;  %v8950_v19 = vrot.slane %v3285_v58, %v7695_v10  ;;  %v10036_v37 = vld [vmem:[#allocation9_spill] sm:$0xff] }
 0x12c   : > { %v8935_v26 = vrot.slane %v3293_v28, %v7695_v10  ;;  %v3294_v13 = vcombine.high %v3292_v7, %v3292_v7  ;;  %v8938_v0 = vrot.slane %v3292_v7, %v7695_v10  ;;  %v2396_v23 = vcombine.low %v6595_v46, %v6597_v15 }
 0x12d   : > { %v6599_v45 = vpack.i.b16 %v931_v55, %v10030_v43  ;;  %v6601_v6 = vpack.i.b16 %v10033_v56, %v1851_v16  ;;  %v2404_v60 = vrot.slane %v2394_v11, %v7695_v10  ;;  %v2411_v2 = vrot.slane %v6638_v9, %v7695_v10  ;;  %v10035_v55 = vld [vmem:[#allocation11_spill] sm:$0xff]  ;;  %v10039_v56 = vld [vmem:[#allocation8_spill] sm:$0xff] }
 0x12e   : > { %10031 = vst [vmem:[#allocation16_spill] sm:$0xff] %v8935_v26  ;;  %10032 = vst [vmem:[#allocation27_spill] sm:$0xff] %v8938_v0  ;;  %4465 = vmatprep.mubr.bf16.mxu1 %v8935_v26  ;;  %v8947_v57 = vrot.slane %v3294_v13, %v7695_v10  ;;  %v2391_v46 = vcombine.high %v10036_v37, %v10035_v55  ;;  %v10037_v11 = vcombine.low %v7905_v32, %v7938_v24 }
 0x12f   : > { %v2397_v9 = vcombine.low %v6599_v45, %v6601_v6  ;;  %v2426_v7 = vcombine.low %v2404_v60, %v2411_v2  ;;  %v2427_v52 = vcombine.high %v2404_v60, %v2411_v2  ;;  %v10038_v15 = vcombine.high %v7905_v32, %v7938_v24 }
 0x130   : > { %10034 = vst [vmem:[#allocation21_spill] sm:$0xff] %v8947_v57  ;;  %v1043_v28 = vrot.slane %v10037_v11, %v7695_v10  ;;  %v3326_v58 = vcombine.high %v8947_v57, %v8947_v57  ;;  %v1185_v13 = vcombine.high %v8082_v53, %v8082_v53  ;;  %v6605_v55 = vpack.i.b16 %v8082_v53, %v10039_v56 }
 0x131   : > { %v1057_v16 = vrot.slane %v10038_v15, %v7695_v10  ;;  %v3324_v45 = vcombine.high %v8938_v0, %v8938_v0  ;;  %v2418_v6 = vrot.slane %v2396_v23, %v7695_v10  ;;  %v2425_v60 = vrot.slane %v2397_v9, %v7695_v10  ;;  %v10042_v15 = vld [vmem:[#allocation7_spill] sm:$0xff] }
 0x132   : > { %v1058_v43 = vcombine.high %v1043_v28, %v1043_v28  ;;  %4738 = vmatprep.mubr.bf16.mxu0 %v3326_v58  ;;  %v10040_v32 = vunpack.i.h.s16 %v8082_v53  ;;  %v10041_v37 = vunpack.i.h.s16 %v10016_v61  ;;  %v2598_v59 = vcombine.low %v10042_v15, %v1043_v28  ;;  %v7208_v15 = vld [vmem:[%s9904_s1 + $0x200] ss:$8 sps:$4 sm:$0xff]  }
 0x133   : > { %v1059_v2 = vcombine.high %v1057_v16, %v1057_v16  ;;  %4466 = vmatmul.mubr.bf16.gmra.mrb[20].mxu1 %v8950_v19  ;;  %v2428_v56 = vcombine.low %v2418_v6, %v2425_v60  ;;  %v2429_v0 = vcombine.high %v2418_v6, %v2425_v60  ;;  %v2591_v23 = vcombine.high %v8434_v62, %v8449_v14 }
 0x134   : > { %v6607_v24 = vpack.i.b16 %v10016_v61, %v10040_v32  ;;  %v6609_v11 = vpack.i.b16 %v1185_v13, %v10041_v37  ;;  %v2599_v57 = vcombine.low %v1057_v16, %v1058_v43  ;;  %4739 = vmatmul.mubr.bf16.gmra.mrb[20].mxu0 %v3324_v45  ;;  %4506 = vmatprep.mubr.bf16.mxu1 %v2391_v46  ;;  %v1887_v61 = vunpack.i.h.s16 %v1185_v13 }
 0x135   : > { %v2600_v26 = vcombine.low %v1059_v2, %v6605_v55  ;;  %v2608_v53 = vrot.slane %v2598_v59, %v7695_v10  ;;  %v8984_v32 = vrot.slane %v2427_v52, %v7695_v10  ;;  %v8987_v28 = vrot.slane %v2429_v0, %v7695_v10  ;;  %v10051_v2 = vld [vmem:[#allocation18_spill] sm:$0xff] }
 0x136   : > { %v2601_v9 = vcombine.low %v6607_v24, %v6609_v11  ;;  %v2615_v58 = vrot.slane %v2599_v57, %v7695_v10  ;;  %v8990_v16 = vrot.slane %v2426_v7, %v7695_v10  ;;  %v8993_v43 = vrot.slane %v2428_v56, %v7695_v10  ;;  %v10043_v57 = vld [vmem:[#allocation22_spill] sm:$0xff] }
 0x137   : > { %v2622_v46 = vrot.slane %v2600_v26, %v7695_v10  ;;  %v10044_v13 = vcombine.low %v8078_v38, %v10043_v57  ;;  %v2460_v0 = vcombine.low %v8984_v32, %v8987_v28  ;;  %v10045_v45 = vcombine.high %v8078_v38, %v10043_v57  ;;  %v10046_v26 = vld [vmem:[#allocation15_spill] sm:$0xff] }
 0x138   : > { %v2629_v55 = vrot.slane %v2601_v9, %v7695_v10  ;;  %v2631_v59 = vcombine.high %v2608_v53, %v2615_v58  ;;  %v2458_v7 = vcombine.low %v8990_v16, %v8993_v43  ;;  %v6611_v60 = vpack.i.b16 %v10046_v26, %v1887_v61  ;;  %v7211_v56 = vld [vmem:[%s9904_s1 + $0x500] ss:$8 sps:$4 sm:$0xff]   ;;  %v10047_v9 = vld [vmem:[#allocation25_spill] sm:$0xff] }
 0x139   : > { %v1297_v52 = vrot.slane %v10044_v13, %v7695_v10  ;;  %v1311_v6 = vrot.slane %v10045_v45, %v7695_v10  ;;  %v2630_v37 = vcombine.low %v2608_v53, %v2615_v58  ;;  %4779 = vmatprep.mubr.bf16.mxu0 %v2460_v0  ;;  %v6615_v38 = vpack.i.b16 %v10017_v44, %v10047_v9  ;;  %v10049_v13 = vld [vmem:[#allocation24_spill] sm:$0xff]  ;;  %v10050_v9 = vld [vmem:[#allocation17_spill] sm:$0xff] }
 0x13a   : > { %v2633_v24 = vcombine.high %v2622_v46, %v2629_v55  ;;  %v2632_v11 = vcombine.low %v2622_v46, %v2629_v55  ;;  %v10048_v61 = vunpack.i.h.s16 %v10017_v44  ;;  %v2802_v45 = vcombine.low %v6611_v60, %v10049_v13  ;;  %v7216_v0 = vld [vmem:[%s9904_s1 + $0x214] ss:$8 sps:$4 sm:$0xff]  }
 0x13b   : > { %v2803_v53 = vcombine.low %v1297_v52, %v1311_v6  ;;  %v9027_v46 = vrot.slane %v2631_v59, %v7695_v10  ;;  %v6647_v26 = vcombine.high %v1297_v52, %v1311_v6  ;;  %v7219_v60 = vld [vmem:[%s9904_s1 + $0x514] ss:$8 sps:$4 sm:$0xff]   ;;  %v10053_v6 = vcombine.high %v8428_v39, %v8443_v17 }
 0x13c   : > { %v6617_v57 = vpack.i.b16 %v8322_v40, %v10048_v61  ;;  %v9030_v55 = vrot.slane %v2633_v24, %v7695_v10  ;;  %v10052_v61 = vcombine.high %v10050_v9, %v10051_v2  ;;  %v9042_v13 = vrot.slane %v2632_v11, %v7695_v10  ;;  %4780 = vmatmul.mubr.bf16.vlgmr.msra.gmra.mrb[0].mxu0 %v2458_v7  ;;  %v7217_v7 = vld [vmem:[%s9904_s1 + $0x510] ss:$8 sps:$4 sm:$0xff]  }
 0x13d   : > { %v9045_v24 = vrot.slane %v2802_v45, %v7695_v10  ;;  %v9048_v58 = vrot.slane %v2803_v53, %v7695_v10  ;;  %v9058_v11 = vrot.slane %v2630_v37, %v7695_v10  ;;  %4839 = vmatpush1.bf16.msra.mxu0 %v7211_v56  ;;  %v1919_v37 = vunpack.i.h.s16 %v8322_v40  ;;  %v7225_v56 = vld [vmem:[%s9904_s1 + $0x524] ss:$8 sps:$4 sm:$0xff]  }
 0x13e   : > { %4507 = vmatmul.mubr.bf16.vlgmr.msra.gmra.mrb[0].mxu1 %v10052_v61  ;;  %v2805_v59 = vcombine.low %v6615_v38, %v6617_v57  ;;  %v2664_v2 = vcombine.low %v9027_v46, %v9030_v55  ;;  %v7214_v38 = vld [vmem:[%s9904_s1 + $0x210] ss:$8 sps:$4 sm:$0xff]   ;;  %v2826_v57 = vrot.slane %v6647_v26, %v7695_v10  ;;  %v1439_v45 = vcombine.high %v10017_v44, %v10017_v44 }
 0x13f   : > { %4516 = vmatprep.mubr.bf16.mxu1 %v10053_v6  ;;  %4566 = vmatpush1.bf16.msra.mxu1 %v7208_v15  ;;  %v2835_v17 = vcombine.high %v9045_v24, %v9048_v58  ;;  %v7222_v15 = vld [vmem:[%s9904_s1 + $0x224] ss:$8 sps:$4 sm:$0xff]   ;;  %v10054_v53 = vcombine.low %v8288_v25, %v8483_v30  ;;  %v10055_v40 = vcombine.high %v8288_v25, %v8483_v30  ;;  %v7220_v25 = vld [vmem:[%s9904_s1 + $0x220] ss:$8 sps:$4 sm:$0xff]  }
 0x140   : > { %v2833_v39 = vrot.slane %v2805_v59, %v7695_v10  ;;  %4789 = vmatprep.mubr.bf16.mxu0 %v2664_v2  ;;  %4567 = vmatprep.subr.bf16.mxu1 %v7216_v0  ;;  %v2662_v9 = vcombine.low %v9058_v11, %v9042_v13  ;;  %v2799_v61 = vcombine.high %v8678_v29, %v8690_v1  ;;  %v7223_v1 = vld [vmem:[%s9904_s1 + $0x520] ss:$8 sps:$4 sm:$0xff]  }
 0x141   : > { %v1551_v26 = vrot.slane %v10054_v53, %v7695_v10  ;;  %v1565_v0 = vrot.slane %v10055_v40, %v7695_v10  ;;  %4840 = vmatprep.subr.bf16.mxu0 %v7219_v60  ;;  %v9092_v44 = vrot.slane %v2835_v17, %v7695_v10  ;;  %v1923_v53 = vunpack.i.h.s16 %v1439_v45 }
 0x142   : > { %v2837_v59 = vcombine.high %v2826_v57, %v2833_v39  ;;  %v2836_v6 = vcombine.low %v2826_v57, %v2833_v39  ;;  %4841 = vmatpush1.bf16.msra.mxu0 %v7217_v7  ;;  %v6619_v60 = vpack.i.b16 %v1439_v45, %v1919_v37  ;;  %v6625_v29 = vpack.i.b16 %v8705_v18, %v8564_v21  ;;  %v10056_v7 = vld [vmem:[#allocation29_spill] sm:$0xff]  ;;  %v10057_v39 = vld [vmem:[#allocation34_spill] sm:$0xff] }
 0x143   : > { %v1566_v2 = vcombine.high %v1551_v26, %v1551_v26  ;;  %v1567_v52 = vcombine.high %v1565_v0, %v1565_v0  ;;  %4568 = vmatpush1.bf16.msra.mxu1 %v7214_v38  ;;  %4842 = vmatprep.subr.bf16.mxu0 %v7225_v56  ;;  %v7228_v38 = vld [vmem:[%s9904_s1 + $0x234] ss:$8 sps:$4 sm:$0xff]   ;;  %v6621_v57 = vpack.i.b16 %v10056_v7, %v1923_v53  ;;  %v1951_v37 = vunpack.i.h.s16 %v8705_v18 }
 0x144   : > { %v9098_v30 = vrot.slane %v2837_v59, %v7695_v10  ;;  %4569 = vmatprep.subr.bf16.mxu1 %v7222_v15  ;;  %v3007_v17 = vcombine.low %v10057_v39, %v1551_v26  ;;  %v7231_v15 = vld [vmem:[%s9904_s1 + $0x534] ss:$8 sps:$4 sm:$0xff]   ;;  %v2795_v56 = vcombine.high %v8696_v54, %v8699_v5  ;;  %v1955_v26 = vunpack.i.h.s16 %v8593_v48  ;;  %4790 = vmatmul.mubr.bf16.gmra.mrb[4].mxu0 %v2662_v9 }
 0x145   : > { %v3008_v40 = vcombine.low %v1565_v0, %v1566_v2  ;;  %v3009_v45 = vcombine.low %v1567_v52, %v6625_v29  ;;  %v2834_v0 = vcombine.low %v9045_v24, %v9048_v58  ;;  %v3006_v62 = vcombine.low %v6619_v60, %v6621_v57  ;;  %v7229_v58 = vld [vmem:[%s9904_s1 + $0x530] ss:$8 sps:$4 sm:$0xff]   ;;  %v7234_v24 = vld [vmem:[%s9904_s1 + $0x244] ss:$8 sps:$4 sm:$0xff]   ;;  %v7232_v57 = vld [vmem:[%s9904_s1 + $0x240] ss:$8 sps:$4 sm:$0xff]  }
 0x146   : > { %4517 = vmatmul.mubr.bf16.gmra.mrb[4].mxu1 %v2591_v23  ;;  %v2868_v21 = vcombine.low %v9092_v44, %v9098_v30  ;;  %v3023_v14 = vrot.slane %v3007_v17, %v7695_v10  ;;  %v7226_v23 = vld [vmem:[%s9904_s1 + $0x230] ss:$8 sps:$4 sm:$0xff]   ;;  %v1693_v5 = vcombine.high %v8705_v18, %v8705_v18  ;;  %4843 = vmatpush1.bf16.msra.mxu0 %v7223_v1  ;;  %v7237_v18 = vld [vmem:[%s9904_s1 + $0x544] ss:$8 sps:$4 sm:$0xff]  }
 0x147   : > { %4526 = vmatprep.mubr.bf16.mxu1 %v2799_v61  ;;  %4570 = vmatpush1.bf16.msra.mxu1 %v7220_v25  ;;  %v3030_v59 = vrot.slane %v3008_v40, %v7695_v10  ;;  %v3037_v54 = vrot.slane %v3009_v45, %v7695_v10  ;;  %v9139_v52 = vrot.slane %v2836_v6, %v7695_v10  ;;  %v7243_v45 = vld [vmem:[%s9904_s1 + $0x554] ss:$8 sps:$4 sm:$0xff]  }
 0x148   : > { %4799 = vmatprep.mubr.bf16.mxu0 %v2868_v21  ;;  %4571 = vmatprep.subr.bf16.mxu1 %v7228_v38  ;;  %v3016_v9 = vrot.slane %v3006_v62, %v7695_v10  ;;  %v6627_v61 = vpack.i.b16 %v8593_v48, %v1951_v37  ;;  %v1959_v53 = vunpack.i.h.s16 %v1693_v5  ;;  %v6629_v25 = vpack.i.b16 %v1693_v5, %v1955_v26 }
 0x149   : > { %4844 = vmatprep.subr.bf16.mxu0 %v7231_v15  ;;  %v3041_v2 = vcombine.high %v3030_v59, %v3037_v54  ;;  %v10058_v60 = vcombine.low %v8870_v27, %v8878_v4  ;;  %v9151_v6 = vrot.slane %v2834_v0, %v7695_v10  ;;  %v3003_v1 = vcombine.high %v8825_v51, %v8819_v12  ;;  %v7235_v51 = vld [vmem:[%s9904_s1 + $0x540] ss:$8 sps:$4 sm:$0xff]  }
 0x14a   : > { %v3039_v48 = vcombine.high %v3016_v9, %v3023_v14  ;;  %v10059_v38 = vcombine.high %v8870_v27, %v8878_v4  ;;  %v3040_v17 = vcombine.low %v3030_v59, %v3037_v54  ;;  %v6631_v40 = vpack.i.b16 %v8638_v8, %v1959_v53  ;;  %4845 = vmatpush1.bf16.msra.mxu0 %v7229_v58  ;;  %v7240_v8 = vld [vmem:[%s9904_s1 + $0x254] ss:$8 sps:$4 sm:$0xff]   ;;  %v7246_v59 = vld [vmem:[%s9904_s1 + $0x264] ss:$8 sps:$4 sm:$0xff]  }
 0x14b   : > { %v3234_v29 = vrot.slane %v10058_v60, %v7695_v10  ;;  %4572 = vmatpush1.bf16.msra.mxu1 %v7226_v23  ;;  %v9163_v39 = vrot.slane %v3041_v2, %v7695_v10  ;;  %v3210_v37 = vcombine.low %v6627_v61, %v6629_v25  ;;  %v2866_v12 = vcombine.low %v9151_v6, %v9139_v52  ;;  %v7244_v60 = vld [vmem:[%s9904_s1 + $0x260] ss:$8 sps:$4 sm:$0xff]  }
 0x14c   : > { %v3241_v7 = vrot.slane %v10059_v38, %v7695_v10  ;;  %4573 = vmatprep.subr.bf16.mxu1 %v7234_v24  ;;  %v9172_v27 = vrot.slane %v3039_v48, %v7695_v10  ;;  %v3038_v4 = vcombine.low %v3016_v9, %v3023_v14  ;;  %v10060_v21 = vcombine.low %v8668_v3, %v8719_v41  ;;  %v7238_v3 = vld [vmem:[%s9904_s1 + $0x250] ss:$8 sps:$4 sm:$0xff]   ;;  %v7249_v24 = vld [vmem:[%s9904_s1 + $0x564] ss:$8 sps:$4 sm:$0xff]   ;;  %v7252_v38 = vld [vmem:[%s9904_s1 + $0x274] ss:$8 sps:$4 sm:$0xff]  }
 0x14d   : > { %4846 = vmatprep.subr.bf16.mxu0 %v7237_v18  ;;  %v3211_v26 = vcombine.low %v6631_v40, %v8707_v50  ;;  %4800 = vmatmul.mubr.bf16.gmra.mrb[8].mxu0 %v2866_v12  ;;  %v9191_v41 = vrot.slane %v3040_v17, %v7695_v10  ;;  %v7241_v50 = vld [vmem:[%s9904_s1 + $0x550] ss:$8 sps:$4 sm:$0xff]   ;;  %v2461_v5 = vcombine.high %v8984_v32, %v8987_v28  ;;  %v7255_v17 = vld [vmem:[%s9904_s1 + $0x574] ss:$8 sps:$4 sm:$0xff]   ;;  %v7285_v32 = vld [vmem:[%s9904_s1 + $0x5c4] ss:$8 sps:$4 sm:$0xff]  }
 0x14e   : > { %v1812_v15 = vrot.slane %v10060_v21, %v7695_v10  ;;  %4527 = vmatmul.mubr.bf16.gmra.mrb[8].mxu1 %v2795_v56  ;;  %v3245_v0 = vcombine.high %v3234_v29, %v3241_v7  ;;  %v3072_v62 = vcombine.low %v9172_v27, %v9163_v39  ;;  %v3220_v56 = vrot.slane %v3210_v37, %v7695_v10  ;;  %v7280_v28 = vld [vmem:[%s9904_s1 + $0x2c0] ss:$8 sps:$4 sm:$0xff]  }
 0x14f   : > { %4536 = vmatprep.mubr.bf16.mxu1 %v3003_v1  ;;  %4574 = vmatpush1.bf16.msra.mxu1 %v7232_v57  ;;  %v3227_v14 = vrot.slane %v3211_v26, %v7695_v10  ;;  %v3244_v23 = vcombine.low %v3234_v29, %v3241_v7  ;;  %v9202_v54 = vrot.slane %v3038_v4, %v7695_v10  ;;  %v7250_v4 = vld [vmem:[%s9904_s1 + $0x270] ss:$8 sps:$4 sm:$0xff]   ;;  %v7258_v26 = vld [vmem:[%s9904_s1 + $0x284] ss:$8 sps:$4 sm:$0xff]  }
 0x150   : > { %4809 = vmatprep.mubr.bf16.mxu0 %v3072_v62  ;;  %4847 = vmatpush1.bf16.msra.mxu0 %v7235_v51  ;;  %v1983_v58 = vunpack.i.l.s16 %v1812_v15  ;;  %v9210_v61 = vrot.slane %v3245_v0, %v7695_v10  ;;  %v2999_v2 = vcombine.high %v8834_v49, %v8822_v22  ;;  %v2459_v53 = vcombine.high %v8990_v16, %v8993_v43  ;;  %v7247_v49 = vld [vmem:[%s9904_s1 + $0x560] ss:$8 sps:$4 sm:$0xff]   ;;  %v10077_v43 = vld [vmem:[#allocation37_spill] sm:$0xff] }
 0x151   : > { %4575 = vmatprep.subr.bf16.mxu1 %v7240_v8  ;;  %4848 = vmatprep.subr.bf16.mxu0 %v7243_v45  ;;  %v3243_v9 = vcombine.high %v3220_v56, %v3227_v14  ;;  %v3242_v18 = vcombine.low %v3220_v56, %v3227_v14  ;;  %v2665_v25 = vcombine.high %v9027_v46, %v9030_v55  ;;  %v7253_v45 = vld [vmem:[%s9904_s1 + $0x570] ss:$8 sps:$4 sm:$0xff]   ;;  %v10061_v62 = vld [vmem:[#allocation14_spill] sm:$0xff] }
 0x152   : > { %v3070_v29 = vcombine.low %v9202_v54, %v9191_v41  ;;  %v3207_v1 = vcombine.high %v8891_v35, %v8888_v31  ;;  %v9229_v22 = vrot.slane %v3244_v23, %v7695_v10  ;;  %v2663_v31 = vcombine.high %v9058_v11, %v9042_v13  ;;  %v7261_v14 = vld [vmem:[%s9904_s1 + $0x584] ss:$8 sps:$4 sm:$0xff]  }
 0x153   : > { %4576 = vmatpush1.bf16.msra.mxu1 %v7238_v3  ;;  %v9226_v48 = vrot.slane %v3243_v9, %v7695_v10  ;;  %v9238_v7 = vrot.slane %v3242_v18, %v7695_v10  ;;  %v2869_v35 = vcombine.high %v9092_v44, %v9098_v30  ;;  %v3333_v40 = vrot.slane %v1983_v58, %v7695_v10  ;;  %v7259_v18 = vld [vmem:[%s9904_s1 + $0x580] ss:$8 sps:$4 sm:$0xff]  }
 0x154   : > { %4849 = vmatpush1.bf16.msra.mxu0 %v7241_v50  ;;  %4577 = vmatprep.subr.bf16.mxu1 %v7246_v59  ;;  %v2867_v37 = vcombine.high %v9151_v6, %v9139_v52  ;;  %v3004_v12 = vcombine.low %v8828_v34, %v8831_v42  ;;  %v3073_v51 = vcombine.high %v9172_v27, %v9163_v39  ;;  %v10062_v50 = vld [vmem:[#allocation26_spill] sm:$0xff]  ;;  %v10063_v59 = vld [vmem:[#allocation23_spill] sm:$0xff]  ;;  %v10078_v42 = vld [vmem:[#allocation21_spill] sm:$0xff] }
 0x155   : > { %4850 = vmatprep.subr.bf16.mxu0 %v7249_v24  ;;  %v3276_v57 = vcombine.low %v9226_v48, %v9210_v61  ;;  %4810 = vmatmul.mubr.bf16.gmra.mrb[12].mxu0 %v3070_v29  ;;  %v3000_v21 = vcombine.low %v8837_v63, %v8840_v20  ;;  %v3071_v15 = vcombine.high %v9202_v54, %v9191_v41  ;;  %v7256_v24 = vld [vmem:[%s9904_s1 + $0x280] ss:$8 sps:$4 sm:$0xff]   ;;  %v7264_v29 = vld [vmem:[%s9904_s1 + $0x294] ss:$8 sps:$4 sm:$0xff]  }
 0x156   : > { %4537 = vmatmul.mubr.bf16.gmra.mrb[12].mxu1 %v2999_v2  ;;  %v3208_v8 = vcombine.low %v8894_v36, %v8900_v47  ;;  %v3277_v0 = vcombine.high %v9226_v48, %v9210_v61  ;;  %v3204_v3 = vcombine.low %v10061_v62, %v8915_v33  ;;  %v3275_v56 = vcombine.high %v9238_v7, %v9229_v22  ;;  %v10064_v2 = vld [vmem:[#allocation16_spill] sm:$0xff]  ;;  %v10076_v16 = vld [vmem:[#allocation38_spill] sm:$0xff]  ;;  %v10079_v20 = vld [vmem:[#allocation27_spill] sm:$0xff] }
 0x157   : > { %4546 = vmatprep.mubr.bf16.mxu1 %v3207_v1  ;;  %4578 = vmatpush1.bf16.msra.mxu1 %v7244_v60  ;;  %v3334_v23 = vcombine.high %v3333_v40, %v3333_v40  ;;  %v3203_v58 = vcombine.high %v10063_v59, %v10062_v50  ;;  %v3274_v9 = vcombine.low %v9238_v7, %v9229_v22  ;;  %v10065_v50 = vld [vmem:[#allocation12_spill] sm:$0xff]  ;;  %v10066_v59 = vld [vmem:[#allocation10_spill] sm:$0xff] }
 0x158   : > { %4819 = vmatprep.mubr.bf16.mxu0 %v3276_v57  ;;  %4851 = vmatpush1.bf16.msra.mxu0 %v7247_v49  ;;  %v3325_v60 = vcombine.high %v10064_v2, %v10064_v2  ;;  %v7267_v49 = vld [vmem:[%s9904_s1 + $0x594] ss:$8 sps:$4 sm:$0xff]   ;;  %v7265_v57 = vld [vmem:[%s9904_s1 + $0x590] ss:$8 sps:$4 sm:$0xff]   ;;  %v2796_v46 = vcombine.low %v10077_v43, %v10076_v16 }
 0x159   : > { %4579 = vmatprep.subr.bf16.mxu1 %v7252_v38  ;;  %4852 = vmatprep.subr.bf16.mxu0 %v7255_v17  ;;  %v9296_v1 = vrot.slane %v3334_v23, %v7695_v10  ;;  %v7262_v38 = vld [vmem:[%s9904_s1 + $0x290] ss:$8 sps:$4 sm:$0xff]   ;;  %v7270_v17 = vld [vmem:[%s9904_s1 + $0x2a4] ss:$8 sps:$4 sm:$0xff]   ;;  %v7271_v23 = vld [vmem:[%s9904_s1 + $0x5a0] ss:$8 sps:$4 sm:$0xff]  }
 0x15a   : > { %v7288_v2 = vld [vmem:[%s9904_s1 + $0x2d4] ss:$8 sps:$4 sm:$0xff]  }
 0x15b   : > { %4580 = vmatpush1.bf16.msra.mxu1 %v7250_v4  ;;  %v7273_v4 = vld [vmem:[%s9904_s1 + $0x5a4] ss:$8 sps:$4 sm:$0xff]   ;;  %v3350_v34 = vcombine.high %v9296_v1, %v9296_v1 }
 0x15c   : > { %4853 = vmatpush1.bf16.msra.mxu0 %v7253_v45  ;;  %4581 = vmatprep.subr.bf16.mxu1 %v7258_v26  ;;  %v3323_v45 = vcombine.high %v8950_v19, %v8950_v19  ;;  %v7268_v26 = vld [vmem:[%s9904_s1 + $0x2a0] ss:$8 sps:$4 sm:$0xff]   ;;  %v7276_v19 = vld [vmem:[%s9904_s1 + $0x2b4] ss:$8 sps:$4 sm:$0xff]  }
 0x15d   : > { %4854 = vmatprep.subr.bf16.mxu0 %v7261_v14  ;;  %4820 = vmatmul.mubr.bf16.gmra.mrb[16].mxu0 %v3274_v9  ;;  %v9320_v14 = vrot.slane %v3333_v40, %v7695_v10  ;;  %v7274_v40 = vld [vmem:[%s9904_s1 + $0x2b0] ss:$8 sps:$4 sm:$0xff]  }
 0x15e   : > { %4547 = vmatmul.mubr.bf16.gmra.mrb[16].mxu1 %v3203_v58  ;;  %4829 = vmatprep.mubr.bf16.mxu0 %v9296_v1  ;;  %v2392_v58 = vcombine.low %v10066_v59, %v10065_v50  ;;  %v7277_v9 = vld [vmem:[%s9904_s1 + $0x5b0] ss:$8 sps:$4 sm:$0xff]  }
 0x15f   : > { %4556 = vmatprep.mubr.bf16.mxu1 %v3325_v60  ;;  %4582 = vmatpush1.bf16.msra.mxu1 %v7256_v24  ;;  %v7279_v24 = vld [vmem:[%s9904_s1 + $0x5b4] ss:$8 sps:$4 sm:$0xff]   ;;  %v7301_v50 = vld [vmem:[%s9904_s1 + $0x5f0] ss:$8 sps:$4 sm:$0xff]   ;;  %v3349_v63 = vcombine.high %v9320_v14, %v9320_v14 }
 0x160   : > { %4855 = vmatpush1.bf16.msra.mxu0 %v7259_v18  ;;  %4583 = vmatprep.subr.bf16.mxu1 %v7264_v29  ;;  %v7282_v18 = vld [vmem:[%s9904_s1 + $0x2c4] ss:$8 sps:$4 sm:$0xff]   ;;  %v7291_v60 = vld [vmem:[%s9904_s1 + $0x5d4] ss:$8 sps:$4 sm:$0xff]   ;;  %v7286_v29 = vld [vmem:[%s9904_s1 + $0x2d0] ss:$8 sps:$4 sm:$0xff]  }
 0x161   : > { %4856 = vmatprep.subr.bf16.mxu0 %v7267_v49  ;;  %v7289_v49 = vld [vmem:[%s9904_s1 + $0x5d0] ss:$8 sps:$4 sm:$0xff]  }
 0x162   : > { %v10067_v59 = vld [vmem:[#allocation32_spill] sm:$0xff] }
 0x163   : > { %4584 = vmatpush1.bf16.msra.mxu1 %v7262_v38  ;;  %v7294_v38 = vld [vmem:[%s9904_s1 + $0x2e4] ss:$8 sps:$4 sm:$0xff]  }
 0x164   : > { %4857 = vmatpush1.bf16.msra.mxu0 %v7265_v57  ;;  %4585 = vmatprep.subr.bf16.mxu1 %v7270_v17  ;;  %v7297_v57 = vld [vmem:[%s9904_s1 + $0x5e4] ss:$8 sps:$4 sm:$0xff]   ;;  %v7292_v17 = vld [vmem:[%s9904_s1 + $0x2e0] ss:$8 sps:$4 sm:$0xff]  }
 0x165   : > { %4858 = vmatprep.subr.bf16.mxu0 %v7273_v4  ;;  %4830 = vmatmul.mubr.bf16.gmra.mrb[20].mxu0 %v9320_v14  ;;  %v7295_v4 = vld [vmem:[%s9904_s1 + $0x5e0] ss:$8 sps:$4 sm:$0xff]  }
 0x166   : > { %4557 = vmatmul.mubr.bf16.gmra.mrb[20].mxu1 %v3323_v45  ;;  %4870 = vmatprep.mubr.bf16.mxu0 %v2461_v5  ;;  %v7283_v5 = vld [vmem:[%s9904_s1 + $0x5c0] ss:$8 sps:$4 sm:$0xff]   ;;  %v7300_v45 = vld [vmem:[%s9904_s1 + $0x2f4] ss:$8 sps:$4 sm:$0xff]  }
 0x167   : > { %4597 = vmatprep.mubr.bf16.mxu1 %v2392_v58  ;;  %4586 = vmatpush1.bf16.msra.mxu1 %v7268_v26  ;;  %v7303_v26 = vld [vmem:[%s9904_s1 + $0x5f4] ss:$8 sps:$4 sm:$0xff]   ;;  %v10068_v58 = vld [vmem:[#allocation30_spill] sm:$0xff] }
 0x168   : > { %4859 = vmatpush1.bf16.msra.mxu0 %v7271_v23  ;;  %4587 = vmatprep.subr.bf16.mxu1 %v7276_v19  ;;  %v7298_v23 = vld [vmem:[%s9904_s1 + $0x2f0] ss:$8 sps:$4 sm:$0xff]   ;;  %v2596_v19 = vcombine.low %v10068_v58, %v10067_v59 }
 0x169   : > { %4860 = vmatprep.subr.bf16.mxu0 %v7279_v24  ;;  %v10069_v24 = vld [vmem:[#allocation19_spill] sm:$0xff] }
 0x16b   : > { %4588 = vmatpush1.bf16.msra.mxu1 %v7274_v40  ;;  %v10070_v40 = vld [vmem:[#allocation20_spill] sm:$0xff] }
 0x16c   : > { %4861 = vmatpush1.bf16.msra.mxu0 %v7277_v9  ;;  %4589 = vmatprep.subr.bf16.mxu1 %v7282_v18  ;;  %v10071_v9 = vcombine.low %v10069_v24, %v10070_v40  ;;  %v10072_v18 = vld [vmem:[#allocation33_spill] sm:$0xff] }
 0x16d   : > { %4862 = vmatprep.subr.bf16.mxu0 %v7285_v32  ;;  %v10073_v32 = vld [vmem:[#allocation31_spill] sm:$0xff] }
 0x16f   : > { %4590 = vmatpush1.bf16.msra.mxu1 %v7280_v28  ;;  %v2592_v28 = vcombine.low %v10073_v32, %v10072_v18 }
 0x170   : > { %4863 = vmatpush1.bf16.msra.mxu0 %v7283_v5  ;;  %4591 = vmatprep.subr.bf16.mxu1 %v7288_v2  ;;  %v10074_v5 = vld [vmem:[#allocation36_spill] sm:$0xff]  ;;  %v10075_v2 = vld [vmem:[#allocation35_spill] sm:$0xff] }
 0x171   : > { %4864 = vmatprep.subr.bf16.mxu0 %v7291_v60  ;;  %v2800_v60 = vcombine.low %v10075_v2, %v10074_v5 }
 0x173   : > { %4592 = vmatpush1.bf16.msra.mxu1 %v7286_v29 }
 0x174   : > { %4865 = vmatpush1.bf16.msra.mxu0 %v7289_v49  ;;  %4593 = vmatprep.subr.bf16.mxu1 %v7294_v38 }
 0x175   : > { %4866 = vmatprep.subr.bf16.mxu0 %v7297_v57 }
 0x177   : > { %4594 = vmatpush1.bf16.msra.mxu1 %v7292_v17 }
 0x178   : > { %4867 = vmatpush1.bf16.msra.mxu0 %v7295_v4  ;;  %4595 = vmatprep.subr.bf16.mxu1 %v7300_v45 }
 0x179   : > { %4868 = vmatprep.subr.bf16.mxu0 %v7303_v26 }
 0x17b   : > { %4596 = vmatpush1.bf16.msra.mxu1 %v7298_v23 }
 0x17c   : > { %4869 = vmatpush1.bf16.msra.mxu0 %v7301_v50 }
 0x17e   : > { %4598 = vmatmul.mubr.bf16.vlgmr.msra.gmra.mrb[0].mxu1 %v10071_v9 }
 0x17f   : > { %4871 = vmatmul.mubr.bf16.vlgmr.msra.gmra.mrb[0].mxu0 %v2459_v53  ;;  %4607 = vmatprep.mubr.bf16.mxu1 %v2596_v19 }
 0x180   : > { %4880 = vmatprep.mubr.bf16.mxu0 %v2665_v25 }
 0x186   : > { %4608 = vmatmul.mubr.bf16.gmra.mrb[4].mxu1 %v2592_v28 }
 0x187   : > { %4881 = vmatmul.mubr.bf16.gmra.mrb[4].mxu0 %v2663_v31  ;;  %4617 = vmatprep.mubr.bf16.mxu1 %v2800_v60 }
 0x188   : > { %4890 = vmatprep.mubr.bf16.mxu0 %v2869_v35 }
 0x18e   : > { %4618 = vmatmul.mubr.bf16.gmra.mrb[8].mxu1 %v2796_v46 }
 0x18f   : > { %4891 = vmatmul.mubr.bf16.gmra.mrb[8].mxu0 %v2867_v37  ;;  %4627 = vmatprep.mubr.bf16.mxu1 %v3004_v12 }
 0x190   : > { %4900 = vmatprep.mubr.bf16.mxu0 %v3073_v51 }
 0x196   : > { %4628 = vmatmul.mubr.bf16.gmra.mrb[12].mxu1 %v3000_v21 }
 0x197   : > { %4901 = vmatmul.mubr.bf16.gmra.mrb[12].mxu0 %v3071_v15  ;;  %4637 = vmatprep.mubr.bf16.mxu1 %v3208_v8 }
 0x198   : > { %4910 = vmatprep.mubr.bf16.mxu0 %v3277_v0 }
 0x19e   : > { %4638 = vmatmul.mubr.bf16.gmra.mrb[16].mxu1 %v3204_v3 }
 0x19f   : > { %4911 = vmatmul.mubr.bf16.gmra.mrb[16].mxu0 %v3275_v56  ;;  %4647 = vmatprep.mubr.bf16.mxu1 %v10078_v42 }
 0x1a0   : > { %4920 = vmatprep.mubr.bf16.mxu0 %v3350_v34 }
 0x1a6   : > { %4648 = vmatmul.mubr.bf16.gmra.mrb[20].mxu1 %v10079_v20 }
 0x1a7   : > { %4921 = vmatmul.mubr.bf16.gmra.mrb[20].mxu0 %v3349_v63 }
 0x251   : > { %v4599_v36 = vpop.f32.mrb[0].mxu1 }
 0x252   : > { %v4872_v47 = vpop.f32.mrb[0].mxu0  ;;  %v4601_v33 = vpop.f32.mrb[1].mxu1 }
 0x253   : > { %v6872_v55 = vadd.f32 %v4872_v47, %v4599_v36  ;;  %v4874_v13 = vpop.f32.mrb[1].mxu0  ;;  %v4603_v11 = vpop.f32.mrb[2].mxu1 }
 0x254   : > { %v6873_v44 = vadd.f32 %v4874_v13, %v4601_v33  ;;  %v4876_v30 = vpop.f32.mrb[2].mxu0  ;;  %v4605_v52 = vpop.f32.mrb[3].mxu1 }
 0x255   : > { %v6874_v6 = vadd.f32 %v4876_v30, %v4603_v11  ;;  %v4878_v39 = vpop.f32.mrb[3].mxu0  ;;  %v6399_v61 = vmul.f32 %v6872_v55, %v6872_v55 }
 0x256   : > { %v4951_v27 = vcombine.low %v6872_v55, %v6873_v44  ;;  %v4952_v41 = vcombine.high %v6872_v55, %v6873_v44  ;;  %v6400_v54 = vmul.f32 %v6873_v44, %v6873_v44  ;;  %v6875_v48 = vadd.f32 %v4878_v39, %v4605_v52 }
 0x257   : > { %v9447_v53 = vadd.f32 %v6874_v6, %v6872_v55  ;;  %v6401_v25 = vmul.f32 %v6874_v6, %v6874_v6  ;;  %v6349_v31 = vsel %vm497_vm1, %v6873_v44, 0.0 }
 0x258   : > { %v4959_v22 = vrot.slane %v4951_v27, %v7695_v10  ;;  %v4966_v7 = vrot.slane %v4952_v41, %v7695_v10  ;;  %v9453_v35 = vsel %vm497_vm1, %v6400_v54, 0.0  ;;  %v5001_v12 = vcombine.low %v6874_v6, %v6875_v48 }
 0x259   : > { %v9455_v37 = vadd.f32 %v6401_v25, %v6399_v61  ;;  %v5002_v51 = vcombine.high %v6874_v6, %v6875_v48  ;;  %v6350_v21 = vsel %vm497_vm1, %v6875_v48, 0.0  ;;  %v4609_v15 = vpop.f32.mrb[4].mxu1  ;;  %v6402_v38 = vmul.f32 %v6875_v48, %v6875_v48 }
 0x25a   : > { %v4967_v8 = vcombine.high %v4959_v22, %v4959_v22  ;;  %v4968_v0 = vcombine.high %v4966_v7, %v4966_v7  ;;  %v4975_v62 = vrot.slane %v4959_v22, %v7695_v10  ;;  %v4982_v3 = vrot.slane %v4966_v7, %v7695_v10  ;;  %v4882_v56 = vpop.f32.mrb[4].mxu0  ;;  %v4611_v1 = vpop.f32.mrb[5].mxu1 }
 0x25b   : > { %v5009_v14 = vrot.slane %v5001_v12, %v7695_v10  ;;  %v5016_v29 = vrot.slane %v5002_v51, %v7695_v10  ;;  %v9462_v49 = vadd.f32 %v6350_v21, %v6349_v31  ;;  %v4884_v57 = vpop.f32.mrb[5].mxu0  ;;  %v9464_v17 = vpop.f32.mrb[6].mxu1  ;;  %v9469_v26 = vadd.f32 %v4882_v56, %v4609_v15 }
 0x25c   : > { %v4989_v4 = vrot.slane %v4967_v8, %v7695_v10  ;;  %v4996_v45 = vrot.slane %v4968_v0, %v7695_v10  ;;  %v9471_v23 = vadd.f32 %v4884_v57, %v4611_v1  ;;  %v9473_v50 = vpop.f32.mrb[6].mxu0  ;;  %v9475_v59 = vpop.f32.mrb[7].mxu1  ;;  %v6439_v8 = vsel %vm497_vm1, %v6402_v38, 0.0 }
 0x25d   : > { %v5017_v58 = vcombine.high %v5009_v14, %v5009_v14  ;;  %v5018_v19 = vcombine.high %v5016_v29, %v5016_v29  ;;  %v5025_v24 = vrot.slane %v5009_v14, %v7695_v10  ;;  %v5032_v40 = vrot.slane %v5016_v29, %v7695_v10  ;;  %v9479_v9 = vpop.f32.mrb[7].mxu0 }
 0x25e   : > { %v5466_v18 = vcombine.low %v4975_v62, %v4989_v4  ;;  %v6849_v32 = vcombine.high %v4975_v62, %v4989_v4  ;;  %v5468_v28 = vcombine.low %v4982_v3, %v4996_v45  ;;  %v6850_v5 = vcombine.high %v4982_v3, %v4996_v45 }
 0x25f   : > { %v5039_v2 = vrot.slane %v5017_v58, %v7695_v10  ;;  %v9483_v60 = vrot.slane %v5018_v19, %v7695_v10  ;;  %v5047_v16 = vcombine.high %v5025_v24, %v5025_v24  ;;  %v5048_v43 = vcombine.high %v5032_v40, %v5032_v40 }
 0x260   : > { %v5476_v46 = vrot.slane %v5466_v18, %v7695_v10  ;;  %v5483_v34 = vrot.slane %v6849_v32, %v7695_v10  ;;  %v5490_v42 = vrot.slane %v5468_v28, %v7695_v10  ;;  %v5497_v63 = vrot.slane %v6850_v5, %v7695_v10 }
 0x261   : > { %v5049_v20 = vcombine.high %v5039_v2, %v5039_v2  ;;  %v5538_v36 = vrot.slane %v5025_v24, %v7695_v10  ;;  %v5554_v47 = vcombine.low %v5039_v2, %v5047_v16  ;;  %v5556_v33 = vcombine.low %v9483_v60, %v5048_v43  ;;  %v4619_v55 = vpop.f32.mrb[8].mxu1 }
 0x262   : > { %v5498_v13 = vcombine.low %v5476_v46, %v5483_v34  ;;  %v5499_v11 = vcombine.high %v5476_v46, %v5483_v34  ;;  %v5500_v44 = vcombine.low %v5490_v42, %v5497_v63  ;;  %v5501_v30 = vcombine.high %v5490_v42, %v5497_v63  ;;  %v4892_v52 = vpop.f32.mrb[8].mxu0  ;;  %v9496_v6 = vpop.f32.mrb[9].mxu1 }
 0x263   : > { %v5539_v39 = vcombine.high %v5538_v36, %v5538_v36  ;;  %v5555_v27 = vcombine.low %v5049_v20, %v5032_v40  ;;  %v5564_v41 = vrot.slane %v5554_v47, %v7695_v10  ;;  %v9500_v54 = vrot.slane %v5556_v33, %v7695_v10  ;;  %6859 = vst.sshfl [vmem:[%s9488_s27 + $0x10] sm:$0x1 pattern:$0x73625140] %v5538_v36  ;;  %v9503_v61 = vpop.f32.mrb[9].mxu0  ;;  %v9505_v25 = vpop.f32.mrb[10].mxu1 }
 0x264   : > { %v5508_v48 = vrot.slane %v5498_v13, %v7695_v10  ;;  %v5515_v22 = vrot.slane %v5499_v11, %v7695_v10  ;;  %v5522_v7 = vrot.slane %v5500_v44, %v7695_v10  ;;  %v5529_v31 = vrot.slane %v5501_v30, %v7695_v10  ;;  %v9511_v12 = vpop.f32.mrb[10].mxu0  ;;  %v9513_v51 = vpop.f32.mrb[11].mxu1 }
 0x265   : > { %v5553_v21 = vrot.slane %v5539_v39, %v7695_v10  ;;  %v5571_v15 = vrot.slane %v5555_v27, %v7695_v10  ;;  %v6332_v0 = vadd.f32 %v9469_v26, %v9447_v53  ;;  %v9520_v62 = vpop.f32.mrb[11].mxu0  ;;  %v6440_v1 = vadd.f32 %v6439_v8, %v9453_v35 }
 0x266   : > { %v5530_v3 = vcombine.low %v5508_v48, %v5522_v7  ;;  %v5531_v56 = vcombine.low %v5515_v22, %v5529_v31  ;;  %v6403_v14 = vmul.f32 %v9469_v26, %v9469_v26  ;;  %v5050_v4 = vcombine.high %v9483_v60, %v9483_v60 }
 0x267   : > { %v5586_v29 = vcombine.low %v5564_v41, %v5571_v15  ;;  %v5587_v57 = vcombine.high %v5564_v41, %v5571_v15  ;;  %6298 = vst.msk [vmem:[%s9488_s27 + $0x18] sm:$0x1] %vm6297_vm3, %v5553_v21  ;;  %v5051_v38 = vcombine.low %v9469_v26, %v9471_v23  ;;  %v5052_v35 = vcombine.high %v9469_v26, %v9471_v23 }
 0x268   : > { %6294 = vst [vmem:[%s9488_s27] sm:$0xff] %v5530_v3  ;;  %6295 = vst.msk [vmem:[%s9488_s27 + $0x8] sm:$0xff] %vm497_vm1, %v5531_v56  ;;  %v6422_v53 = vadd.f32 %v9455_v37, %v6403_v14  ;;  %v6352_v45 = vsel %vm497_vm1, %v9471_v23, 0.0  ;;  %v6404_v58 = vmul.f32 %v9471_v23, %v9471_v23  ;;  %v6878_v28 = vadd.f32 %v9473_v50, %v9464_v17 }
 0x269   : > { %v9542_v19 = vrot.slane %v5586_v29, %v7695_v10  ;;  %v9545_v24 = vrot.slane %v5587_v57, %v7695_v10  ;;  %v5059_v40 = vrot.slane %v5051_v38, %v7695_v10  ;;  %v6353_v18 = vadd.f32 %v6352_v45, %v9462_v49  ;;  %v9549_v37 = vpop.f32.mrb[12].mxu1 }
 0x26a   : > { %v5066_v26 = vrot.slane %v5052_v35, %v7695_v10  ;;  %v6441_v32 = vsel %vm497_vm1, %v6404_v58, 0.0  ;;  %v6879_v23 = vadd.f32 %v9479_v9, %v9475_v59  ;;  %v9557_v5 = vpop.f32.mrb[12].mxu0  ;;  %v9559_v2 = vpop.f32.mrb[13].mxu1  ;;  %v9564_v43 = vadd.f32 %v4892_v52, %v4619_v55 }
 0x26b   : > { %v5067_v60 = vcombine.high %v5059_v40, %v5059_v40  ;;  %v5075_v16 = vrot.slane %v5059_v40, %v7695_v10  ;;  %v9562_v49 = vadd.f32 %v6441_v32, %v6440_v1  ;;  %v9566_v46 = vpop.f32.mrb[13].mxu0  ;;  %v9568_v34 = vpop.f32.mrb[14].mxu1  ;;  %v6333_v50 = vadd.f32 %v6878_v28, %v6332_v0 }
 0x26c   : > { %v5068_v42 = vcombine.high %v5066_v26, %v5066_v26  ;;  %v5082_v17 = vrot.slane %v5066_v26, %v7695_v10  ;;  %v6405_v59 = vmul.f32 %v6878_v28, %v6878_v28  ;;  %v9571_v9 = vpop.f32.mrb[14].mxu0  ;;  %v9573_v63 = vpop.f32.mrb[15].mxu1  ;;  %v5101_v47 = vcombine.low %v6878_v28, %v6879_v23 }
 0x26d   : > { %v5089_v20 = vrot.slane %v5067_v60, %v7695_v10  ;;  %v5557_v36 = vcombine.low %v5050_v4, %v5075_v16  ;;  %v5102_v33 = vcombine.high %v6878_v28, %v6879_v23  ;;  %v9576_v55 = vpop.f32.mrb[15].mxu0  ;;  %v6354_v44 = vsel %vm497_vm1, %v6879_v23, 0.0 }
 0x26e   : > { %v5096_v13 = vrot.slane %v5068_v42, %v7695_v10  ;;  %v9579_v11 = vadd.f32 %v6422_v53, %v6405_v59  ;;  %v6406_v30 = vmul.f32 %v6879_v23, %v6879_v23  ;;  %v5109_v41 = vrot.slane %v5101_v47, %v7695_v10 }
 0x26f   : > { %v5585_v52 = vrot.slane %v5557_v36, %v7695_v10  ;;  %v5626_v39 = vrot.slane %v5089_v20, %v7695_v10  ;;  %v6851_v27 = vcombine.high %v5075_v16, %v5089_v20  ;;  %v5116_v7 = vrot.slane %v5102_v33, %v7695_v10 }
 0x270   : > { %v5643_v48 = vcombine.low %v5082_v17, %v5096_v13  ;;  %v6852_v22 = vcombine.high %v5082_v17, %v5096_v13  ;;  %v9586_v31 = vadd.f32 %v6354_v44, %v6353_v18  ;;  %v5117_v14 = vcombine.high %v5109_v41, %v5109_v41 }
 0x271   : > { %v5588_v21 = vcombine.low %v9500_v54, %v5585_v52  ;;  %v5589_v15 = vcombine.high %v9500_v54, %v5585_v52  ;;  %v5627_v8 = vcombine.high %v5626_v39, %v5626_v39  ;;  %v5652_v0 = vrot.slane %v6851_v27, %v7695_v10  ;;  %6860 = vst.sshfl [vmem:[%s9488_s27 + $0x30] sm:$0x1 pattern:$0x73625140] %v5626_v39  ;;  %v9592_v3 = vpop.f32.mrb[16].mxu1 }
 0x272   : > { %v5659_v56 = vrot.slane %v5643_v48, %v7695_v10  ;;  %v9596_v1 = vrot.slane %v6852_v22, %v7695_v10  ;;  %v5118_v29 = vcombine.high %v5116_v7, %v5116_v7  ;;  %v9598_v57 = vpop.f32.mrb[16].mxu0  ;;  %v9600_v4 = vpop.f32.mrb[17].mxu1  ;;  %v5125_v35 = vrot.slane %v5109_v41, %v7695_v10 }
 0x273   : > { %v5610_v54 = vrot.slane %v5588_v21, %v7695_v10  ;;  %v5617_v38 = vrot.slane %v5589_v15, %v7695_v10  ;;  %v5641_v53 = vrot.slane %v5627_v8, %v7695_v10  ;;  %v9606_v45 = vpop.f32.mrb[17].mxu0  ;;  %v9608_v58 = vpop.f32.mrb[18].mxu1  ;;  %v5132_v26 = vrot.slane %v5116_v7, %v7695_v10 }
 0x274   : > { %v5674_v40 = vcombine.low %v5652_v0, %v5659_v56  ;;  %v5675_v18 = vcombine.high %v5652_v0, %v5659_v56  ;;  %v5139_v32 = vrot.slane %v5117_v14, %v7695_v10  ;;  %v9612_v28 = vpop.f32.mrb[18].mxu0  ;;  %v9614_v23 = vpop.f32.mrb[19].mxu1  ;;  %v9621_v42 = vrot.slane %v5118_v29, %v7695_v10 }
 0x275   : > { %v5618_v60 = vcombine.low %v9542_v19, %v5610_v54  ;;  %v5619_v16 = vcombine.low %v9545_v24, %v5617_v38  ;;  %6302 = vst.msk [vmem:[%s9488_s27 + $0x38] sm:$0x1] %vm6297_vm3, %v5641_v53  ;;  %v5147_v17 = vcombine.high %v5125_v35, %v5125_v35  ;;  %v9623_v59 = vpop.f32.mrb[19].mxu0  ;;  %v5148_v47 = vcombine.high %v5132_v26, %v5132_v26 }
 0x276   : > { %v5684_v20 = vrot.slane %v5674_v40, %v7695_v10  ;;  %v5691_v36 = vrot.slane %v5675_v18, %v7695_v10  ;;  %v5149_v33 = vcombine.high %v5139_v32, %v5139_v32  ;;  %v5645_v19 = vcombine.low %v5125_v35, %v5139_v32 }
 0x277   : > { %6299 = vst [vmem:[%s9488_s27 + $0x20] sm:$0xff] %v5618_v60  ;;  %6300 = vst.msk [vmem:[%s9488_s27 + $0x28] sm:$0xff] %vm497_vm1, %v5619_v16  ;;  %v5714_v24 = vrot.slane %v5147_v17, %v7695_v10  ;;  %v6443_v13 = vsel %vm497_vm1, %v6406_v30, 0.0  ;;  %v6334_v44 = vadd.f32 %v9564_v43, %v6333_v50  ;;  %v5731_v39 = vcombine.low %v9621_v42, %v5148_v47 }
 0x278   : > { %v5730_v52 = vcombine.low %v5149_v33, %v5132_v26  ;;  %v6444_v27 = vadd.f32 %v6443_v13, %v9562_v49  ;;  %v6407_v41 = vmul.f32 %v9564_v43, %v9564_v43  ;;  %v5673_v48 = vrot.slane %v5645_v19, %v7695_v10 }
 0x279   : > { %v5715_v22 = vcombine.high %v5714_v24, %v5714_v24  ;;  %6861 = vst.sshfl [vmem:[%s9488_s27 + $0x50] sm:$0x1 pattern:$0x73625140] %v5714_v24  ;;  %v6881_v7 = vadd.f32 %v9503_v61, %v9496_v6  ;;  %v5150_v30 = vcombine.high %v9621_v42, %v9621_v42  ;;  %v9643_v21 = vpop.f32.mrb[20].mxu1  ;;  %v5747_v15 = vrot.slane %v5731_v39, %v7695_v10 }
 0x27a   : > { %v5740_v50 = vrot.slane %v5730_v52, %v7695_v10  ;;  %v6424_v49 = vadd.f32 %v9579_v11, %v6407_v41  ;;  %v9650_v8 = vadd.f32 %v9511_v12, %v9505_v25  ;;  %v9652_v0 = vpop.f32.mrb[20].mxu0  ;;  %v9654_v56 = vpop.f32.mrb[21].mxu1  ;;  %v5676_v6 = vcombine.low %v9596_v1, %v5673_v48 }
 0x27b   : > { %v5677_v61 = vcombine.high %v9596_v1, %v5673_v48  ;;  %v5729_v14 = vrot.slane %v5715_v22, %v7695_v10  ;;  %v5151_v29 = vcombine.low %v9564_v43, %v6881_v7  ;;  %v9660_v54 = vpop.f32.mrb[21].mxu0  ;;  %v4653_v11 = vpop.f32.mrb[22].mxu1  ;;  %v5152_v25 = vcombine.high %v9564_v43, %v6881_v7 }
 0x27c   : > { %v5762_v38 = vcombine.low %v5740_v50, %v5747_v15  ;;  %v5763_v53 = vcombine.high %v5740_v50, %v5747_v15  ;;  %v6356_v12 = vsel %vm497_vm1, %v6881_v7, 0.0  ;;  %v4926_v35 = vpop.f32.mrb[22].mxu0  ;;  %v4654_v40 = vpop.f32.mrb[23].mxu1  ;;  %v5698_v18 = vrot.slane %v5676_v6, %v7695_v10 }
 0x27d   : > { %v5705_v26 = vrot.slane %v5677_v61, %v7695_v10  ;;  %6306 = vst.msk [vmem:[%s9488_s27 + $0x58] sm:$0x1] %vm6297_vm3, %v5729_v14  ;;  %v5159_v1 = vrot.slane %v5151_v29, %v7695_v10  ;;  %v6357_v32 = vadd.f32 %v6356_v12, %v9586_v31  ;;  %v4927_v60 = vpop.f32.mrb[23].mxu0  ;;  %v5166_v42 = vrot.slane %v5152_v25, %v7695_v10 }
 0x27e   : > { %v9671_v16 = vrot.slane %v5762_v38, %v7695_v10  ;;  %v9674_v43 = vrot.slane %v5763_v53, %v7695_v10  ;;  %v6408_v17 = vmul.f32 %v6881_v7, %v6881_v7  ;;  %v5706_v47 = vcombine.low %v5684_v20, %v5698_v18 }
 0x27f   : > { %v5707_v33 = vcombine.low %v5691_v36, %v5705_v26  ;;  %v5167_v19 = vcombine.high %v5159_v1, %v5159_v1  ;;  %v5175_v24 = vrot.slane %v5159_v1, %v7695_v10  ;;  %v5168_v13 = vcombine.high %v5166_v42, %v5166_v42 }
 0x280   : > { %v5182_v52 = vrot.slane %v5166_v42, %v7695_v10  ;;  %v6445_v31 = vsel %vm497_vm1, %v6408_v17, 0.0  ;;  %v6335_v39 = vadd.f32 %v9650_v8, %v6334_v44  ;;  %6303 = vst [vmem:[%s9488_s27 + $0x40] sm:$0xff] %v5706_v47  ;;  %v6409_v36 = vmul.f32 %v9650_v8, %v9650_v8 }
 0x281   : > { %6304 = vst.msk [vmem:[%s9488_s27 + $0x48] sm:$0xff] %vm497_vm1, %v5707_v33  ;;  %v5189_v41 = vrot.slane %v5167_v19, %v7695_v10  ;;  %v5197_v48 = vcombine.high %v5175_v24, %v5175_v24  ;;  %v5732_v22 = vcombine.low %v5150_v30, %v5175_v24  ;;  %v6446_v7 = vadd.f32 %v6445_v31, %v6444_v27 }
 0x282   : > { %v5196_v20 = vrot.slane %v5168_v13, %v7695_v10  ;;  %v6883_v50 = vadd.f32 %v9520_v62, %v9513_v51  ;;  %v9692_v15 = vadd.f32 %v9557_v5, %v9549_v37  ;;  %v6885_v30 = vadd.f32 %v9566_v46, %v9559_v2 }
 0x283   : > { %v5199_v44 = vcombine.high %v5189_v41, %v5189_v41  ;;  %v5733_v6 = vcombine.low %v5189_v41, %v5197_v48  ;;  %v5754_v61 = vrot.slane %v5732_v22, %v7695_v10  ;;  %v6425_v29 = vadd.f32 %v6424_v49, %v6409_v36 }
 0x284   : > { %v5818_v27 = vcombine.low %v5182_v52, %v5196_v20  ;;  %v6853_v14 = vcombine.high %v5182_v52, %v5196_v20  ;;  %v5201_v11 = vcombine.low %v9650_v8, %v6883_v50  ;;  %v5202_v62 = vcombine.high %v9650_v8, %v6883_v50 }
 0x285   : > { %v5761_v38 = vrot.slane %v5733_v6, %v7695_v10  ;;  %v5802_v51 = vrot.slane %v5199_v44, %v7695_v10  ;;  %v6358_v37 = vsel %vm497_vm1, %v6883_v50, 0.0  ;;  %v6410_v31 = vmul.f32 %v6883_v50, %v6883_v50 }
 0x286   : > { %v5828_v5 = vrot.slane %v5818_v27, %v7695_v10  ;;  %v5835_v53 = vrot.slane %v6853_v14, %v7695_v10  ;;  %v5209_v2 = vrot.slane %v5201_v11, %v7695_v10  ;;  %v6359_v46 = vadd.f32 %v6358_v37, %v6357_v32 }
 0x287   : > { %v5764_v25 = vcombine.low %v5754_v61, %v5761_v38  ;;  %v5765_v12 = vcombine.high %v5754_v61, %v5761_v38  ;;  %v5803_v49 = vcombine.high %v5802_v51, %v5802_v51  ;;  %6862 = vst.sshfl [vmem:[%s9488_s27 + $0x70] sm:$0x1 pattern:$0x73625140] %v5802_v51  ;;  %v5216_v35 = vrot.slane %v5202_v62, %v7695_v10 }
 0x288   : > { %v5850_v40 = vcombine.low %v5828_v5, %v5835_v53  ;;  %v5851_v18 = vcombine.high %v5828_v5, %v5835_v53  ;;  %v5217_v26 = vcombine.high %v5209_v2, %v5209_v2  ;;  %v5225_v8 = vrot.slane %v5209_v2, %v7695_v10 }
 0x289   : > { %v5786_v1 = vrot.slane %v5764_v25, %v7695_v10  ;;  %v5793_v60 = vrot.slane %v5765_v12, %v7695_v10  ;;  %v5817_v42 = vrot.slane %v5803_v49, %v7695_v10  ;;  %v5218_v32 = vcombine.high %v5216_v35, %v5216_v35 }
 0x28a   : > { %v5860_v17 = vrot.slane %v5850_v40, %v7695_v10  ;;  %v5867_v47 = vrot.slane %v5851_v18, %v7695_v10  ;;  %v5232_v33 = vrot.slane %v5216_v35, %v7695_v10  ;;  %v5239_v19 = vrot.slane %v5217_v26, %v7695_v10 }
 0x28b   : > { %v5794_v24 = vcombine.low %v9671_v16, %v5786_v1  ;;  %v5795_v13 = vcombine.low %v9674_v43, %v5793_v60  ;;  %6310 = vst.msk [vmem:[%s9488_s27 + $0x78] sm:$0x1] %vm6297_vm3, %v5817_v42  ;;  %v5246_v52 = vrot.slane %v5218_v32, %v7695_v10  ;;  %v6447_v36 = vsel %vm497_vm1, %v6410_v31, 0.0 }
 0x28c   : > { %v5248_v41 = vcombine.high %v5232_v33, %v5232_v33  ;;  %v5820_v48 = vcombine.low %v5225_v8, %v5239_v19  ;;  %v6854_v22 = vcombine.high %v5225_v8, %v5239_v19  ;;  %v5890_v20 = vrot.slane %v5232_v33, %v7695_v10 }
 0x28d   : > { %6307 = vst [vmem:[%s9488_s27 + $0x60] sm:$0xff] %v5794_v24  ;;  %6308 = vst.msk [vmem:[%s9488_s27 + $0x68] sm:$0xff] %vm497_vm1, %v5795_v13  ;;  %v6336_v16 = vadd.f32 %v9692_v15, %v6335_v39  ;;  %v6411_v43 = vmul.f32 %v9692_v15, %v9692_v15  ;;  %v5250_v44 = vcombine.high %v5246_v52, %v5246_v52  ;;  %v6360_v25 = vsel %vm497_vm1, %v6885_v30, 0.0 }
 0x28e   : > { %v5842_v6 = vrot.slane %v5820_v48, %v7695_v10  ;;  %v5849_v50 = vrot.slane %v6854_v22, %v7695_v10  ;;  %v5891_v61 = vcombine.high %v5890_v20, %v5890_v20  ;;  %v5906_v27 = vcombine.low %v5246_v52, %v5248_v41  ;;  %6863 = vst.sshfl [vmem:[%s9488_s27 + $0x90] sm:$0x1 pattern:$0x73625140] %v5890_v20 }
 0x28f   : > { %v6448_v14 = vadd.f32 %v6447_v36, %v6446_v7  ;;  %v6426_v11 = vadd.f32 %v6425_v29, %v6411_v43  ;;  %v5251_v38 = vcombine.low %v9692_v15, %v6885_v30  ;;  %v5252_v51 = vcombine.high %v9692_v15, %v6885_v30 }
 0x290   : > { %v5852_v62 = vcombine.low %v5842_v6, %v5849_v50  ;;  %v5853_v39 = vcombine.high %v5842_v6, %v5849_v50  ;;  %v5905_v37 = vrot.slane %v5891_v61, %v7695_v10  ;;  %v5916_v5 = vrot.slane %v5906_v27, %v7695_v10 }
 0x291   : > { %v5259_v53 = vrot.slane %v5251_v38, %v7695_v10  ;;  %v5266_v2 = vrot.slane %v5252_v51, %v7695_v10  ;;  %v6412_v12 = vmul.f32 %v6885_v30, %v6885_v30  ;;  %v6361_v15 = vadd.f32 %v6360_v25, %v6359_v46 }
 0x292   : > { %v5874_v7 = vrot.slane %v5852_v62, %v7695_v10  ;;  %v5881_v29 = vrot.slane %v5853_v39, %v7695_v10  ;;  %6314 = vst.msk [vmem:[%s9488_s27 + $0x98] sm:$0x1] %vm6297_vm3, %v5905_v37  ;;  %v6886_v49 = vadd.f32 %v9571_v9, %v9568_v34  ;;  %v6887_v19 = vadd.f32 %v9576_v55, %v9573_v63 }
 0x293   : > { %v5267_v35 = vcombine.high %v5259_v53, %v5259_v53  ;;  %v5268_v40 = vcombine.high %v5266_v2, %v5266_v2  ;;  %v5275_v18 = vrot.slane %v5259_v53, %v7695_v10  ;;  %v5282_v26 = vrot.slane %v5266_v2, %v7695_v10 }
 0x294   : > { %v5882_v8 = vcombine.low %v5860_v17, %v5874_v7  ;;  %v5883_v30 = vcombine.low %v5867_v47, %v5881_v29  ;;  %v6449_v1 = vsel %vm497_vm1, %v6412_v12, 0.0  ;;  %v6337_v60 = vadd.f32 %v6886_v49, %v6336_v16 }
 0x295   : > { %v5289_v42 = vrot.slane %v5267_v35, %v7695_v10  ;;  %v5296_v32 = vrot.slane %v5268_v40, %v7695_v10  ;;  %v5297_v33 = vcombine.high %v5275_v18, %v5275_v18  ;;  %v5907_v46 = vcombine.low %v5250_v44, %v5275_v18 }
 0x296   : > { %6311 = vst [vmem:[%s9488_s27 + $0x80] sm:$0xff] %v5882_v8  ;;  %6312 = vst.msk [vmem:[%s9488_s27 + $0x88] sm:$0xff] %vm497_vm1, %v5883_v30  ;;  %v6450_v34 = vadd.f32 %v6449_v1, %v6448_v14  ;;  %v6413_v9 = vmul.f32 %v6886_v49, %v6886_v49  ;;  %v9756_v17 = vadd.f32 %v9598_v57, %v9592_v3  ;;  %v6362_v61 = vsel %vm497_vm1, %v6887_v19, 0.0 }
 0x297   : > { %v5299_v47 = vcombine.high %v5289_v42, %v5289_v42  ;;  %v5908_v24 = vcombine.low %v5289_v42, %v5297_v33  ;;  %v5923_v13 = vrot.slane %v5907_v46, %v7695_v10  ;;  %v5978_v52 = vrot.slane %v5296_v32, %v7695_v10 }
 0x298   : > { %v6855_v31 = vcombine.high %v5282_v26, %v5296_v32  ;;  %v6427_v41 = vadd.f32 %v6426_v11, %v6413_v9  ;;  %v5301_v48 = vcombine.low %v6886_v49, %v6887_v19  ;;  %v5302_v22 = vcombine.high %v6886_v49, %v6887_v19 }
 0x299   : > { %v5909_v20 = vcombine.low %v5299_v47, %v5282_v26  ;;  %v5930_v36 = vrot.slane %v5908_v24, %v7695_v10  ;;  %v5938_v16 = vcombine.low %v5916_v5, %v5923_v13  ;;  %v5939_v43 = vcombine.high %v5916_v5, %v5923_v13  ;;  %6864 = vst.sshfl [vmem:[%s9488_s27 + $0xb0] sm:$0x1 pattern:$0x73625140] %v5978_v52 }
 0x29a   : > { %v5979_v63 = vcombine.high %v5978_v52, %v5978_v52  ;;  %v6004_v55 = vrot.slane %v6855_v31, %v7695_v10  ;;  %v5309_v3 = vrot.slane %v5301_v48, %v7695_v10  ;;  %v5316_v57 = vrot.slane %v5302_v22, %v7695_v10 }
 0x29b   : > { %v5937_v44 = vrot.slane %v5909_v20, %v7695_v10  ;;  %v5948_v6 = vrot.slane %v5938_v16, %v7695_v10  ;;  %v5955_v50 = vrot.slane %v5939_v43, %v7695_v10  ;;  %v6363_v37 = vadd.f32 %v6362_v61, %v6361_v15 }
 0x29c   : > { %v5993_v27 = vrot.slane %v5979_v63, %v7695_v10  ;;  %v5317_v14 = vcombine.high %v5309_v3, %v5309_v3  ;;  %v5318_v11 = vcombine.high %v5316_v57, %v5316_v57  ;;  %v5325_v38 = vrot.slane %v5309_v3, %v7695_v10 }
 0x29d   : > { %v5940_v51 = vcombine.low %v5930_v36, %v5937_v44  ;;  %v5941_v62 = vcombine.high %v5930_v36, %v5937_v44  ;;  %v5332_v39 = vrot.slane %v5316_v57, %v7695_v10  ;;  %v6414_v2 = vmul.f32 %v6887_v19, %v6887_v19 }
 0x29e   : > { %6318 = vst.msk [vmem:[%s9488_s27 + $0xb8] sm:$0x1] %vm6297_vm3, %v5993_v27  ;;  %v5339_v5 = vrot.slane %v5317_v14, %v7695_v10  ;;  %v5346_v53 = vrot.slane %v5318_v11, %v7695_v10  ;;  %v9777_v25 = vadd.f32 %v9756_v17, %v6337_v60  ;;  %v6415_v15 = vmul.f32 %v9756_v17, %v9756_v17 }
 0x29f   : > { %v5962_v12 = vrot.slane %v5940_v51, %v7695_v10  ;;  %v5969_v7 = vrot.slane %v5941_v62, %v7695_v10  ;;  %v5348_v29 = vcombine.high %v5332_v39, %v5332_v39  ;;  %v6451_v18 = vsel %vm497_vm1, %v6414_v2, 0.0 }
 0x2a0   : > { %v5995_v49 = vcombine.low %v5325_v38, %v5339_v5  ;;  %v6856_v35 = vcombine.high %v5325_v38, %v5339_v5  ;;  %v5997_v40 = vcombine.low %v5332_v39, %v5346_v53  ;;  %v6452_v1 = vadd.f32 %v6451_v18, %v6450_v34 }
 0x2a1   : > { %v5970_v26 = vcombine.low %v5948_v6, %v5962_v12  ;;  %v5971_v8 = vcombine.low %v5955_v50, %v5969_v7  ;;  %v6066_v30 = vrot.slane %v5348_v29, %v7695_v10  ;;  %v9788_v33 = vadd.f32 %v6427_v41, %v6415_v15 }
 0x2a2   : > { %v6011_v60 = vrot.slane %v5995_v49, %v7695_v10  ;;  %v6018_v42 = vrot.slane %v6856_v35, %v7695_v10  ;;  %v6025_v32 = vrot.slane %v5997_v40, %v7695_v10  ;;  %v6889_v9 = vadd.f32 %v9606_v45, %v9600_v4 }
 0x2a3   : > { %6315 = vst [vmem:[%s9488_s27 + $0xa0] sm:$0xff] %v5970_v26  ;;  %6316 = vst.msk [vmem:[%s9488_s27 + $0xa8] sm:$0xff] %vm497_vm1, %v5971_v8  ;;  %v6067_v46 = vcombine.high %v6066_v30, %v6066_v30  ;;  %v5350_v19 = vcombine.high %v5346_v53, %v5346_v53  ;;  %v9798_v34 = vadd.f32 %v9612_v28, %v9608_v58 }
 0x2a4   : > { %6865 = vst.sshfl [vmem:[%s9488_s27 + $0xd0] sm:$0x1 pattern:$0x73625140] %v6066_v30  ;;  %v6026_v47 = vcombine.low %v6004_v55, %v6011_v60  ;;  %v6027_v24 = vcombine.high %v6004_v55, %v6011_v60  ;;  %v6028_v13 = vcombine.low %v6018_v42, %v6025_v32  ;;  %v6029_v52 = vcombine.high %v6018_v42, %v6025_v32 }
 0x2a5   : > { %v6081_v31 = vrot.slane %v6067_v46, %v7695_v10  ;;  %v5351_v41 = vcombine.low %v9756_v17, %v6889_v9  ;;  %v5352_v48 = vcombine.high %v9756_v17, %v6889_v9  ;;  %v6364_v22 = vsel %vm497_vm1, %v6889_v9, 0.0 }
 0x2a6   : > { %v6036_v20 = vrot.slane %v6026_v47, %v7695_v10  ;;  %v6043_v4 = vrot.slane %v6027_v24, %v7695_v10  ;;  %v6050_v45 = vrot.slane %v6028_v13, %v7695_v10  ;;  %v6057_v58 = vrot.slane %v6029_v52, %v7695_v10 }
 0x2a7   : > { %6322 = vst.msk [vmem:[%s9488_s27 + $0xd8] sm:$0x1] %vm6297_vm3, %v6081_v31  ;;  %v5359_v28 = vrot.slane %v5351_v41, %v7695_v10  ;;  %v5366_v36 = vrot.slane %v5352_v48, %v7695_v10  ;;  %v9812_v16 = vadd.f32 %v6364_v22, %v6363_v37  ;;  %v6416_v17 = vmul.f32 %v6889_v9, %v6889_v9 }
 0x2a8   : > { %v6058_v43 = vcombine.low %v6036_v20, %v6050_v45  ;;  %v6059_v63 = vcombine.low %v6043_v4, %v6057_v58  ;;  %v9816_v55 = vmul.f32 %v9798_v34, %v9798_v34  ;;  %v6891_v3 = vadd.f32 %v9623_v59, %v9614_v23 }
 0x2a9   : > { %v5367_v57 = vcombine.high %v5359_v28, %v5359_v28  ;;  %v5368_v44 = vcombine.high %v5366_v36, %v5366_v36  ;;  %v5375_v6 = vrot.slane %v5359_v28, %v7695_v10  ;;  %v5382_v50 = vrot.slane %v5366_v36, %v7695_v10 }
 0x2aa   : > { %6319 = vst [vmem:[%s9488_s27 + $0xc0] sm:$0xff] %v6058_v43  ;;  %6320 = vst.msk [vmem:[%s9488_s27 + $0xc8] sm:$0xff] %vm497_vm1, %v6059_v63  ;;  %v6453_v61 = vsel %vm497_vm1, %v6416_v17, 0.0  ;;  %v5401_v27 = vcombine.low %v9798_v34, %v6891_v3  ;;  %v5402_v14 = vcombine.high %v9798_v34, %v6891_v3  ;;  %v9829_v11 = vsel %vm497_vm1, %v6891_v3, 0.0 }
 0x2ab   : > { %v5389_v23 = vrot.slane %v5367_v57, %v7695_v10  ;;  %v5396_v59 = vrot.slane %v5368_v44, %v7695_v10  ;;  %v5397_v38 = vcombine.high %v5375_v6, %v5375_v6  ;;  %v5398_v51 = vcombine.high %v5382_v50, %v5382_v50 }
 0x2ac   : > { %v6082_v62 = vcombine.low %v5350_v19, %v5375_v6  ;;  %v9833_v39 = vadd.f32 %v6453_v61, %v6452_v1  ;;  %v5409_v37 = vrot.slane %v5401_v27, %v7695_v10  ;;  %v5416_v5 = vrot.slane %v5402_v14, %v7695_v10 }
 0x2ad   : > { %v5399_v53 = vcombine.high %v5389_v23, %v5389_v23  ;;  %v5400_v2 = vcombine.high %v5396_v59, %v5396_v59  ;;  %v6083_v12 = vcombine.low %v5389_v23, %v5397_v38  ;;  %v6085_v7 = vcombine.low %v5396_v59, %v5398_v51 }
 0x2ae   : > { %v6092_v29 = vrot.slane %v6082_v62, %v7695_v10  ;;  %v5417_v15 = vcombine.high %v5409_v37, %v5409_v37  ;;  %v5418_v49 = vcombine.high %v5416_v5, %v5416_v5  ;;  %v5425_v35 = vrot.slane %v5409_v37, %v7695_v10 }
 0x2af   : > { %v6084_v40 = vcombine.low %v5399_v53, %v5382_v50  ;;  %v6099_v18 = vrot.slane %v6083_v12, %v7695_v10  ;;  %v6113_v26 = vrot.slane %v6085_v7, %v7695_v10  ;;  %v6154_v8 = vrot.slane %v5400_v2, %v7695_v10 }
 0x2b0   : > { %v5432_v30 = vrot.slane %v5416_v5, %v7695_v10  ;;  %v5439_v1 = vrot.slane %v5417_v15, %v7695_v10  ;;  %v5446_v60 = vrot.slane %v5418_v49, %v7695_v10  ;;  %v6418_v42 = vmul.f32 %v6891_v3, %v6891_v3 }
 0x2b1   : > { %v6106_v32 = vrot.slane %v6084_v40, %v7695_v10  ;;  %v6114_v46 = vcombine.low %v6092_v29, %v6099_v18  ;;  %v6115_v9 = vcombine.high %v6092_v29, %v6099_v18  ;;  %v6155_v19 = vcombine.high %v6154_v8, %v6154_v8  ;;  %6866 = vst.sshfl [vmem:[%s9488_s27 + $0xf0] sm:$0x1 pattern:$0x73625140] %v6154_v8 }
 0x2b2   : > { %v6170_v47 = vcombine.low %v5425_v35, %v5439_v1  ;;  %v6857_v24 = vcombine.high %v5425_v35, %v5439_v1  ;;  %v6172_v13 = vcombine.low %v5432_v30, %v5446_v60  ;;  %v6858_v52 = vcombine.high %v5432_v30, %v5446_v60 }
 0x2b3   : > { %v6116_v31 = vcombine.low %v6106_v32, %v6113_v26  ;;  %v6117_v41 = vcombine.high %v6106_v32, %v6113_v26  ;;  %v6124_v48 = vrot.slane %v6114_v46, %v7695_v10  ;;  %v6131_v22 = vrot.slane %v6115_v9, %v7695_v10 }
 0x2b4   : > { %v6169_v20 = vrot.slane %v6155_v19, %v7695_v10  ;;  %v6180_v4 = vrot.slane %v6170_v47, %v7695_v10  ;;  %v6187_v45 = vrot.slane %v6857_v24, %v7695_v10  ;;  %v6194_v58 = vrot.slane %v6172_v13, %v7695_v10 }
 0x2b5   : > { %v6138_v28 = vrot.slane %v6116_v31, %v7695_v10  ;;  %v6145_v36 = vrot.slane %v6117_v41, %v7695_v10  ;;  %v6201_v17 = vrot.slane %v6858_v52, %v7695_v10  ;;  %v6455_v43 = vsel %vm497_vm1, %v6418_v42, 0.0 }
 0x2b6   : > { %6326 = vst.msk [vmem:[%s9488_s27 + $0xf8] sm:$0x1] %vm6297_vm3, %v6169_v20  ;;  %v6202_v63 = vcombine.low %v6180_v4, %v6187_v45  ;;  %v6203_v3 = vcombine.high %v6180_v4, %v6187_v45  ;;  %v6892_v57 = vadd.f32 %v9652_v0, %v9643_v21  ;;  %v6339_v44 = vadd.f32 %v9798_v34, %v9777_v25 }
 0x2b7   : > { %v6146_v6 = vcombine.low %v6124_v48, %v6138_v28  ;;  %v6147_v50 = vcombine.low %v6131_v22, %v6145_v36  ;;  %v6204_v61 = vcombine.low %v6194_v58, %v6201_v17  ;;  %v6205_v27 = vcombine.high %v6194_v58, %v6201_v17 }
 0x2b8   : > { %v6212_v14 = vrot.slane %v6202_v63, %v7695_v10  ;;  %v6219_v23 = vrot.slane %v6203_v3, %v7695_v10  ;;  %v6341_v59 = vsel %vm6340_vm4, %v6892_v57, 0.0  ;;  %v6419_v38 = vmul.f32 %v6892_v57, %v6892_v57 }
 0x2b9   : > { %6323 = vst [vmem:[%s9488_s27 + $0xe0] sm:$0xff] %v6146_v6  ;;  %6324 = vst.msk [vmem:[%s9488_s27 + $0xe8] sm:$0xff] %vm497_vm1, %v6147_v50  ;;  %v6226_v21 = vrot.slane %v6204_v61, %v7695_v10  ;;  %v6233_v0 = vrot.slane %v6205_v27, %v7695_v10  ;;  %v6342_v25 = vadd.f32 %v6341_v59, %v6339_v44  ;;  %v10080_v17 = vlaneseq }
 0x2ba   : > { %v6429_v34 = vadd.f32 %v9788_v33, %v9816_v55  ;;  %v6430_v51 = vsel %vm6340_vm4, %v6419_v38, 0.0  ;;  %v6893_v62 = vadd.f32 %v9660_v54, %v9654_v56  ;;  %v6367_v37 = vadd.f32 %v9829_v11, %v9812_v16 }
 0x2bb   : > { %v6456_v5 = vadd.f32 %v6455_v43, %v9833_v39  ;;  %v6234_v53 = vcombine.low %v6212_v14, %v6226_v21  ;;  %v6235_v2 = vcombine.low %v6219_v23, %v6233_v0  ;;  %v6343_v12 = vrot.slane %v6342_v25, 4 }
 0x2bc   : > { %v6431_v7 = vadd.f32 %v6430_v51, %v6429_v34  ;;  %v5451_v29 = vcombine.low %v6892_v57, %v6893_v62  ;;  %v6368_v15 = vsel %vm6297_vm3, %v6893_v62, 0.0  ;;  %v6420_v49 = vmul.f32 %v6893_v62, %v6893_v62 }
 0x2bd   : > { %6327 = vst [vmem:[%s9488_s27 + $0x100] sm:$0xff] %v6234_v53  ;;  %6328 = vst.msk [vmem:[%s9488_s27 + $0x108] sm:$0xff] %vm497_vm1, %v6235_v2  ;;  %v6344_v33 = vadd.f32 %v6343_v12, %v6342_v25  ;;  %v6369_v35 = vadd.f32 %v6368_v15, %v6367_v37  ;;  %vm6396_vm5 = vcmp.lt.s32.totalorder %v10080_v17, 192 }
 0x2be   : > { %v6432_v55 = vrot.slane %v6431_v7, 4  ;;  %v5458_v56 = vrot.slane %v5451_v29, %v7695_v10  ;;  %v6457_v54 = vsel %vm6297_vm3, %v6420_v49, 0.0 }
 0x2bf   : > { %v6345_v16 = vrot.slane %v6344_v33, 2  ;;  %v6370_v39 = vrot.slane %v6369_v35, 4  ;;  %v6458_v40 = vadd.f32 %v6457_v54, %v6456_v5 }
 0x2c0   : > { %v6433_v11 = vadd.f32 %v6432_v55, %v6431_v7  ;;  %v5465_v18 = vrot.slane %v5458_v56, %v7695_v10 }
 0x2c1   : > { %v6346_v26 = vadd.f32 %v6345_v16, %v6344_v33  ;;  %v6371_v30 = vadd.f32 %v6370_v39, %v6369_v35  ;;  %v6459_v1 = vrot.slane %v6458_v40, 4 }
 0x2c2   : > { %v6434_v8 = vrot.slane %v6433_v11, 2  ;;  %v6242_v60 = vrot.slane %v5465_v18, %v7695_v10 }
 0x2c3   : > { %v6347_v42 = vrot.slane %v6346_v26, 1  ;;  %v6372_v46 = vrot.slane %v6371_v30, 2  ;;  %v6460_v9 = vadd.f32 %v6459_v1, %v6458_v40 }
 0x2c4   : > { %v6435_v32 = vadd.f32 %v6434_v8, %v6433_v11  ;;  %v6243_v19 = vcombine.high %v6242_v60, %v6242_v60  ;;  %6867 = vst.sshfl [vmem:[%s9488_s27 + $0x110] sm:$0x1 pattern:$0x73625140] %v6242_v60 }
 0x2c5   : > { %v6373_v24 = vadd.f32 %v6372_v46, %v6371_v30  ;;  %v6461_v13 = vrot.slane %v6460_v9, 2  ;;  %v6348_v31 = vadd.f32 %v6347_v42, %v6346_v26 }
 0x2c6   : > { %v6436_v47 = vrot.slane %v6435_v32, 1  ;;  %v6257_v52 = vrot.slane %v6243_v19, %v7695_v10 }
 0x2c7   : > { %v6374_v41 = vrot.slane %v6373_v24, 1  ;;  %v6462_v48 = vadd.f32 %v6461_v13, %v6460_v9 }
 0x2c8   : > { %6330 = vst.msk [vmem:[%s9488_s27 + $0x118] sm:$0x1] %vm6297_vm3, %v6257_v52  ;;  %v6437_v22 = vadd.f32 %v6436_v47, %v6435_v32 }
 0x2c9   : > { %v6375_v20 = vadd.f32 %v6374_v41, %v6373_v24  ;;  %v6463_v4 = vrot.slane %v6462_v48, 1 }
 0x2cb   : > { %v6378_v45 = vcombine.low %v6348_v31, %v6375_v20  ;;  %v6464_v58 = vadd.f32 %v6463_v4, %v6462_v48 }
 0x2cd   : > { %v6385_v28 = vrot.slane %v6378_v45, %v7695_v10  ;;  %v6467_v36 = vcombine.low %v6437_v22, %v6464_v58 }
 0x2cf   : > { %v6392_v43 = vrot.slane %v6385_v28, %v7695_v10  ;;  %v6474_v63 = vrot.slane %v6467_v36, %v7695_v10 }
 0x2d1   : > { %6398 = vst.msk [vmem:[%s183_s4] ss:$2 sm:$0x3] %vm6396_vm5, %v6392_v43  ;;  %v6481_v3 = vrot.slane %v6474_v63, %v7695_v10 }
 0x2d3   : > { %6868 = vst.msk [vmem:[%s183_s4 + $0x1] ss:$2 sm:$0x3] %vm6396_vm5, %v6481_v3 }
 0x2d4 PF: > { %s14_s12 = sadd.s32 1, %s7317_s12  }
 0x2d5   : > { %p11_p4 = scmp.ge.s32.totalorder %s14_s12, 4  }
 0x2d7   :  { %13 = sbr.rel (!%p11_p4) target bundleno = 1 (0x1), region = 71 }

// kernel: cnn_block2.5
= control target key start
LH: loop header
LB: loop body
LE: loop exit
PB: predicated region body
PF: predicated region fallthrough
CT: control target
= control target key end

     0   :  { %s336_s12 = smov 0   ;;  %s362_s0 = inlined_call_operand.vmem [shape: f32[2,16,384], index: 0, kind: input, shape index: {}]   ;;  %s363_s1 = inlined_call_operand.vmem [shape: f32[1,384], index: 1, kind: input, shape index: {}]   ;;  %s364_s2 = inlined_call_operand.vmem [shape: f32[1,384], index: 2, kind: input, shape index: {}]   ;;  %s365_s3 = inlined_call_operand.vmem [shape: f32[2,16,384], index: 3, kind: output, shape index: {}]  }
   0x1 LB: > { %s290_s13 = sadd.s32 4294967295, %s314_s12   ;;  %p294_p0 = scmp.ge.s32.totalorder %s314_s12, 1  ;;  %s314_s12 = sphi %s336_s12, %s13_s12  }
   0x2   : > { %p137_p1 = scmp.lt.s32.totalorder %s314_s12, 3 }
   0x4   : > { %p138_p2 = pnand %p294_p0, %p137_p1 }
   0x5   : > { %p161_p3 = scmp.lt.s32.totalorder (!%p138_p2), %s290_s13, 1  ;;  %v179_v0 = vlaneseq (!%p138_p2)  ;;  %v177_v2 = vld [vmem:[%s363_s1] sm:$0x7] (!%p138_p2) }
   0x6   : > { %141 = sbr.rel (%p138_p2) target bundleno = 27 (0x1b), region = 32  ;;  %v200_v3 = vld [vmem:[%s364_s2] sm:$0x7] (!%p138_p2) }
   0x7   : > { %v180_v1 = vshrl.u32 (!%p138_p2), %v179_v0, 7 }
   0x9   : > { %v181_v4 = vsub.s32 (!%p138_p2), 0, %v180_v1  ;;  %v185_v5 = vsub.s32 (!%p138_p2), 1, %v180_v1  ;;  %v189_v6 = vsub.s32 (!%p138_p2), 2, %v180_v1 }
   0xb   : > { %v182_v7 = vrot.slane (!%p138_p2), %v177_v2, %v181_v4  ;;  %v205_v8 = vrot.slane (!%p138_p2), %v200_v3, %v181_v4  ;;  %v186_v9 = vrot.slane (!%p138_p2), %v177_v2, %v185_v5  ;;  %v209_v10 = vrot.slane (!%p138_p2), %v200_v3, %v185_v5 }
   0xc   : > { %v190_v14 = vrot.slane (!%p138_p2), %v177_v2, %v189_v6  ;;  %v213_v15 = vrot.slane (!%p138_p2), %v200_v3, %v189_v6 }
   0xd   : > { %s367_s13 = smov (!%p161_p3, %s290_s13), 1 }
   0xe   : > { %s299_s18 = smul.u32 48, %s367_s13 }
  0x10   : > { %s165_s21 = scalar_lea.vmem %s362_s0, %s299_s18  ;;  %s170_s24 = scalar_lea.vmem %s365_s3, %s299_s18 }
  0x11   : > { %v171_v11 = vld [vmem:[%s165_s21] sm:$0xff]  ;;  %v172_v12 = vld [vmem:[%s165_s21 + $0x8] sm:$0xff]  ;;  %v173_v13 = vld [vmem:[%s165_s21 + $0x10] sm:$0xff] }
  0x12   : > { %v194_v16 = vmul.f32 %v182_v7, %v171_v11  ;;  %v195_v17 = vmul.f32 %v186_v9, %v172_v12  ;;  %v174_v18 = vld [vmem:[%s165_s21 + $0x18] sm:$0xff]  ;;  %v175_v19 = vld [vmem:[%s165_s21 + $0x20] sm:$0xff]  ;;  %v176_v20 = vld [vmem:[%s165_s21 + $0x28] sm:$0xff]  ;;  %v196_v21 = vmul.f32 %v190_v14, %v173_v13 }
  0x13   : > { %v197_v22 = vmul.f32 %v182_v7, %v174_v18  ;;  %v198_v23 = vmul.f32 %v186_v9, %v175_v19  ;;  %v199_v24 = vmul.f32 %v190_v14, %v176_v20 }
  0x14   : > { %v217_v25 = vadd.f32 %v205_v8, %v194_v16  ;;  %v218_v26 = vadd.f32 %v209_v10, %v195_v17  ;;  %v219_v27 = vadd.f32 %v213_v15, %v196_v21 }
  0x15   : > { %v220_v28 = vadd.f32 %v205_v8, %v197_v22  ;;  %v221_v29 = vadd.f32 %v209_v10, %v198_v23  ;;  %v222_v30 = vadd.f32 %v213_v15, %v199_v24 }
  0x16   : > { %v223_v31 = vmax.f32 %v217_v25, 0.0  ;;  %v224_v32 = vmax.f32 %v218_v26, 0.0  ;;  %v225_v33 = vmax.f32 %v219_v27, 0.0 }
  0x17   : > { %v226_v34 = vmax.f32 %v220_v28, 0.0  ;;  %v227_v35 = vmax.f32 %v221_v29, 0.0  ;;  %v228_v36 = vmax.f32 %v222_v30, 0.0 }
  0x18   : > { %229 = vst [vmem:[%s170_s24] sm:$0xff] %v223_v31  ;;  %230 = vst [vmem:[%s170_s24 + $0x8] sm:$0xff] %v224_v32 }
  0x19   : > { %231 = vst [vmem:[%s170_s24 + $0x10] sm:$0xff] %v225_v33  ;;  %232 = vst [vmem:[%s170_s24 + $0x18] sm:$0xff] %v226_v34 }
  0x1a   : > { %233 = vst [vmem:[%s170_s24 + $0x20] sm:$0xff] %v227_v35  ;;  %234 = vst [vmem:[%s170_s24 + $0x28] sm:$0xff] %v228_v36 }
  0x1b PF: > { %s13_s12 = sadd.s32 1, %s314_s12  }
  0x1c   : > { %p10_p4 = scmp.ge.s32.totalorder %s13_s12, 4  }
  0x1e   :  { %12 = sbr.rel (!%p10_p4) target bundleno = 1 (0x1), region = 62 }

// kernel: cnn_block2.4
= control target key start
LH: loop header
LB: loop body
LE: loop exit
PB: predicated region body
PF: predicated region fallthrough
CT: control target
= control target key end

     0   :  { %s11567_s18 = smov 0   ;;  %s15000_s0 = inlined_call_operand.vmem [shape: f32[2,9,9,192], index: 0, kind: input, shape index: {}]   ;;  %s15001_s1 = inlined_call_operand.vmem [shape: f32[1,192], index: 1, kind: input, shape index: {}]   ;;  %s15002_s2 = inlined_call_operand.vmem [shape: f32[1,192], index: 2, kind: input, shape index: {}]   ;;  %s15003_s3 = inlined_call_operand.vmem [shape: bf16[4,768,384], index: 3, kind: input, shape index: {}]   ;;  %s15004_s4 = inlined_call_operand.vmem [shape: f32[2,16,384], index: 4, kind: output, shape index: {0}]   ;;  %s15005_s5 = inlined_call_operand.vmem [shape: f32[2,2,384], index: 5, kind: output, shape index: {1}]  }
   0x1 LB: > { %s8677_s19 = sadd.s32 4294967295, %s11531_s18   ;;  %p8681_p0 = scmp.ge.s32.totalorder %s11531_s18, 1  ;;  %s11531_s18 = sphi %s11567_s18, %s16_s18  }
   0x2   : > { %p190_p1 = scmp.lt.s32.totalorder %s11531_s18, 3 }
   0x4   : > { %p191_p2 = pnand %p8681_p0, %p190_p1 }
   0x6   : > { %194 = sbr.rel (%p191_p2) target bundleno = 1079 (0x437), region = 36 }
   0xd   : > { %vm425_vm0 = vcmask 1043456   ;;  %vm426_vm1 = vcmask 523268   ;;  %vm429_vm2 = vcmask 1041408   ;;  %v436_v0 = vld [vmem:[#allocation2 + $0x8] sm:$0x33]  ;;  %vm432_vm5 = vcmask 521220  }
   0xe   : > { %vm427_vm3 = vmor %vm426_vm1, %vm425_vm0  ;;  %vm430_vm4 = vsmask.f32 1280  ;;  %vm433_vm6 = vsmask.f32 5376  ;;  %v11533_v1 = vmov 0   ;;  %vm444_vm8 = vcmask 1040384  }
   0xf   : > { %428 = vst.msk [vmem:[#allocation2] sm:$0xff] %vm427_vm3, %v11533_v1  ;;  %vm11579_vm7 = vmand %vm429_vm2, %vm430_vm4  ;;  %v441_v3 = vld [vmem:[#allocation2 + $0xa8] sm:$0x33]  ;;  %vm445_vm9 = vsmask.f32 256  ;;  %v15006_v4 = vlaneseq  ;;  %vm447_vm11 = vcmask 520196  }
  0x10   : > { %440 = vst.msk [vmem:[#allocation2 + $0xa0] sm:$0xff] %vm427_vm3, %v11533_v1  ;;  %vm434_vm10 = vmand %vm432_vm5, %vm433_vm6  ;;  %vm448_vm12 = vsmask.f32 4352  ;;  %vm484_vm14 = vcmask 1041409   ;;  %vm486_vm15 = vcmask 521221   ;;  %p223_p3 = scmp.lt.s32.totalorder %s8677_s19, 1 }
  0x11   : > { %vm435_vm13 = vmor %vm434_vm10, %vm11579_vm7  ;;  %v11589_v5 = vshrl.u32 %v15006_v4, 7  ;;  %v275_v8 = vld [vmem:[%s15001_s1] sm:$0x3]  ;;  %v454_v14 = vld [vmem:[#allocation2 + $0x10] sm:$0x11]  ;;  %s11534_s28 = smov 64  }
  0x12   : > { %v437_v6 = vsel %vm435_vm13, 0, %v436_v0  ;;  %v442_v7 = vsel %vm435_vm13, 0, %v441_v3  ;;  %vm446_vm3 = vmand %vm444_vm8, %vm445_vm9  ;;  %v323_v9 = vld [vmem:[%s15002_s2] sm:$0x3]  ;;  %s15094_s19 = smov (!%p223_p3, %s8677_s19), 1 }
  0x13   : > { %15019 = vst [vmem:[#allocation4_spill] sm:$0xff] %v11589_v5  ;;  %438 = vst [vmem:[#allocation2 + $0x8] sm:$0x33] %v437_v6  ;;  %v279_v10 = vsub.s32 0, %v11589_v5  ;;  %v283_v11 = vsub.s32 1, %v11589_v5  ;;  %s10685_s24 = smul.u32 288, %s15094_s19 }
  0x14   : > { %vm449_vm5 = vmand %vm447_vm11, %vm448_vm12  ;;  %443 = vst [vmem:[#allocation2 + $0xa8] sm:$0x33] %v442_v7  ;;  %v457_v12 = vld [vmem:[#allocation2 + $0x20] sm:$0x11]  ;;  %v460_v15 = vld [vmem:[#allocation2 + $0x30] sm:$0x11] }
  0x15   : > { %vm11606_vm7 = vmor %vm449_vm5, %vm446_vm3  ;;  %v11613_v16 = vrot.slane %v275_v8, %v279_v10  ;;  %v11615_v17 = vrot.slane %v275_v8, %v283_v11  ;;  %v463_v18 = vld [vmem:[#allocation2 + $0x40] sm:$0x11]  ;;  %v466_v19 = vld [vmem:[#allocation2 + $0x50] sm:$0x11]  ;;  %v11619_v21 = vrot.slane %v323_v9, %v279_v10  ;;  %s11636_s27 = scalar_lea.vmem %s15000_s0, %s10685_s24  ;;  %v11638_v27 = vrot.slane %v323_v9, %v283_v11  ;;  %s10686_s9 = smul.u32 48, %s15094_s19 }
  0x16   : > { %vm485_vm10 = vmand %vm484_vm14, %vm430_vm4  ;;  %v451_v20 = vld [vmem:[#allocation2] sm:$0x11]  ;;  %v458_v22 = vsel %vm11606_vm7, 0, %v457_v12  ;;  %v455_v23 = vsel %vm11606_vm7, 0, %v454_v14  ;;  %v461_v24 = vsel %vm11606_vm7, 0, %v460_v15  ;;  %v464_v28 = vsel %vm11606_vm7, 0, %v463_v18 }
  0x17   : > { %vm487_vm12 = vmand %vm486_vm15, %vm433_vm6  ;;  %v452_v25 = vsel %vm11606_vm7, 0, %v451_v20  ;;  %459 = vst [vmem:[#allocation2 + $0x20] sm:$0x11] %v458_v22  ;;  %v467_v29 = vsel %vm11606_vm7, 0, %v466_v19  ;;  %v469_v30 = vld [vmem:[#allocation2 + $0x60] sm:$0x11]  ;;  %s14803_s12 = scalar_lea.vmem %s15004_s4, %s10686_s9 }
  0x18   : > { %vm11629_vm4 = vmor %vm487_vm12, %vm485_vm10  ;;  %456 = vst [vmem:[#allocation2 + $0x10] sm:$0x11] %v455_v23  ;;  %v243_v31 = vld [vmem:[%s11636_s27 + $0x20] sm:$0xff]  ;;  %v244_v32 = vld [vmem:[%s11636_s27 + $0x28] sm:$0xff]  ;;  %v470_v33 = vsel %vm11606_vm7, 0, %v469_v30  ;;  %vm8536_vm12 = vcmask 1045509  }
  0x19   : > { %462 = vst [vmem:[#allocation2 + $0x30] sm:$0x11] %v461_v24  ;;  %453 = vst [vmem:[#allocation2] sm:$0x11] %v452_v25  ;;  %v245_v34 = vld [vmem:[%s11636_s27 + $0x30] sm:$0x1]  ;;  %v291_v36 = vmul.f32 %v11613_v16, %v243_v31  ;;  %v292_v37 = vmul.f32 %v11615_v17, %v244_v32 }
  0x1a   : > { %465 = vst [vmem:[#allocation2 + $0x40] sm:$0x11] %v464_v28  ;;  %468 = vst [vmem:[#allocation2 + $0x50] sm:$0x11] %v467_v29  ;;  %v246_v35 = vld [vmem:[%s11636_s27 + $0x38] sm:$0x1]  ;;  %v293_v38 = vmul.f32 %v11613_v16, %v245_v34 }
  0x1b   : > { %471 = vst [vmem:[#allocation2 + $0x60] sm:$0x11] %v470_v33  ;;  %vm724_vm6 = vsmask.f32 7938  ;;  %vm727_vm13 = vsmask.f32 7954  ;;  %v294_v39 = vmul.f32 %v11615_v17, %v246_v35  ;;  %v339_v41 = vadd.f32 %v11619_v21, %v291_v36  ;;  %vm11713_vm10 = vmor %vm447_vm11, %vm444_vm8 }
  0x1c   : > { %v239_v40 = vld [vmem:[%s11636_s27] sm:$0xff]  ;;  %v340_v42 = vadd.f32 %v11638_v27, %v292_v37  ;;  %vm594_vm15 = vsmask.f32 4368  ;;  %v240_v43 = vld [vmem:[%s11636_s27 + $0x8] sm:$0xff]  ;;  %v241_v44 = vld [vmem:[%s11636_s27 + $0x10] sm:$0x1]  ;;  %v341_v46 = vadd.f32 %v11619_v21, %v293_v38 }
  0x1d   : > { %v287_v45 = vmul.f32 %v11613_v16, %v239_v40  ;;  %v342_v47 = vadd.f32 %v11638_v27, %v294_v39  ;;  %v242_v48 = vld [vmem:[%s11636_s27 + $0x18] sm:$0x1]  ;;  %v288_v49 = vmul.f32 %v11615_v17, %v240_v43  ;;  %v289_v50 = vmul.f32 %v11613_v16, %v241_v44  ;;  %v247_v51 = vld [vmem:[%s11636_s27 + $0x40] sm:$0xff]  ;;  %v11666_v52 = vld [vmem:[#allocation2 + $0x8] sm:$0x11]  ;;  %s10687_s13 = smul.u32 6, %s15094_s19 }
  0x1e   : > { %v375_v53 = vmax.f32 %v339_v41, 0.0  ;;  %v376_v54 = vmax.f32 %v340_v42, 0.0  ;;  %v290_v55 = vmul.f32 %v11615_v17, %v242_v48  ;;  %v377_v57 = vmax.f32 %v341_v46, 0.0  ;;  %v248_v61 = vld [vmem:[%s11636_s27 + $0x48] sm:$0xff]  ;;  %vm11675_vm3 = vmand %vm425_vm0, %vm724_vm6  ;;  %v249_v11 = vld [vmem:[%s11636_s27 + $0x50] sm:$0x1] }
  0x1f   : > { %v335_v56 = vadd.f32 %v11619_v21, %v287_v45  ;;  %v378_v58 = vmax.f32 %v342_v47, 0.0  ;;  %v336_v59 = vadd.f32 %v11638_v27, %v288_v49  ;;  %v337_v60 = vadd.f32 %v11619_v21, %v289_v50  ;;  %vm11685_vm5 = vmand %vm426_vm1, %vm727_vm13  ;;  %v250_v12 = vld [vmem:[%s11636_s27 + $0x58] sm:$0x1]  ;;  %v737_v34 = vld [vmem:[#allocation2 + $0x20] sm:$0xff]  ;;  %s237_s15 = scalar_lea.vmem %s15005_s5, %s10687_s13 }
  0x20   : > { %v11679_v63 = vld [vmem:[#allocation2] sm:$0xff]  ;;  %v10013_v0 = vpack.c.bf16 %v376_v54, %v375_v53  ;;  %v338_v1 = vadd.f32 %v11638_v27, %v290_v55  ;;  %v295_v3 = vmul.f32 %v11613_v16, %v247_v51  ;;  %v296_v19 = vmul.f32 %v11615_v17, %v248_v61  ;;  %vm11698_vm0 = vmor %vm11685_vm5, %vm11675_vm3  ;;  %v252_v48 = vld [vmem:[%s11636_s27 + $0x68] sm:$0xff] }
  0x21   : > { %v371_v2 = vmax.f32 %v335_v56, 0.0  ;;  %v8714_v7 = vcombine.low %v11679_v63, %v11666_v52  ;;  %v10014_v8 = vpack.c.bf16 %v378_v58, %v377_v57  ;;  %v372_v9 = vmax.f32 %v336_v59, 0.0  ;;  %vm11706_vm1 = vmor %vm445_vm9, %vm594_vm15  ;;  %v251_v47 = vld [vmem:[%s11636_s27 + $0x60] sm:$0xff]  ;;  %v253_v49 = vld [vmem:[%s11636_s27 + $0x70] sm:$0x1] }
  0x22   : > { %v373_v10 = vmax.f32 %v337_v60, 0.0  ;;  %v609_v14 = vshrl.u32 %v10013_v0, 16  ;;  %v612_v15 = vshll.u32 %v10013_v0, 16  ;;  %v374_v18 = vmax.f32 %v338_v1, 0.0  ;;  %v730_v53 = vld [vmem:[#allocation2 + $0x10] sm:$0xff] }
  0x23   : > { %v913_v20 = vshrl.u32 %v8714_v7, 16  ;;  %v915_v22 = vshll.u32 %v8714_v7, 16  ;;  %v617_v23 = vshll.u32 %v10014_v8, 16  ;;  %v10011_v24 = vpack.c.bf16 %v372_v9, %v371_v2  ;;  %v254_v56 = vld [vmem:[%s11636_s27 + $0x78] sm:$0x1]  ;;  %v255_v2 = vld [vmem:[%s11636_s27 + $0x80] sm:$0xff] }
  0x24   : > { %v611_v28 = vrot.slane %v609_v14, 7  ;;  %v10012_v29 = vpack.c.bf16 %v374_v18, %v373_v10  ;;  %v297_v30 = vmul.f32 %v11613_v16, %v249_v11  ;;  %v298_v31 = vmul.f32 %v11615_v17, %v250_v12  ;;  %v256_v9 = vld [vmem:[%s11636_s27 + $0x88] sm:$0xff]  ;;  %v258_v18 = vld [vmem:[%s11636_s27 + $0x98] sm:$0x1] }
  0x25   : > { %v917_v32 = vrot.slane %v915_v22, 1  ;;  %v597_v35 = vshrl.u32 %v10011_v24, 16  ;;  %v600_v36 = vshll.u32 %v10011_v24, 16  ;;  %v343_v37 = vadd.f32 %v11619_v21, %v295_v3  ;;  %v12254_v25 = vld [vmem:[#allocation2 + $0x8] sm:$0x11] }
  0x26   : > { %v614_v38 = vor.u32 %v612_v15, %v611_v28  ;;  %v615_v39 = vrot.slane %v611_v28, 4  ;;  %v605_v41 = vshll.u32 %v10012_v29, 16  ;;  %v344_v42 = vadd.f32 %v11638_v27, %v296_v19  ;;  %v257_v15 = vld [vmem:[%s11636_s27 + $0x90] sm:$0x1]  ;;  %v11041_v26 = vld [vmem:[%s15003_s3 + $0x158] ss:$12 sps:$4 sm:$0xff]  }
  0x27   : > { %v918_v43 = vor.u32 %v917_v32, %v913_v20  ;;  %v599_v44 = vrot.slane %v597_v35, 7  ;;  %v345_v45 = vadd.f32 %v11619_v21, %v297_v30  ;;  %v346_v46 = vadd.f32 %v11638_v27, %v298_v31  ;;  %v741_v20 = vld [vmem:[#allocation2 + $0x30] sm:$0xff] }
  0x28   : > { %v619_v50 = vsel %vm11706_vm1, %v615_v39, %v617_v23  ;;  %v11727_v51 = vsel %vm11698_vm0, %v614_v38, %v737_v34  ;;  %v379_v54 = vmax.f32 %v343_v37, 0.0  ;;  %v380_v55 = vmax.f32 %v344_v42, 0.0  ;;  %v10712_v28 = vld [vmem:[%s15003_s3 + $0x4] ss:$12 sps:$4 sm:$0xff]   ;;  %v10716_v39 = vld [vmem:[%s15003_s3] ss:$12 sps:$4 sm:$0xff]  }
  0x29   : > { %1066 = vrot.lane.b32.xlu0 %v918_v43, %s11534_s28  ;;  %739 = vst [vmem:[#allocation2 + $0x20] sm:$0xff] %v11727_v51  ;;  %740 = vst.msk [vmem:[#allocation2 + $0x28] sm:$0x11] %vm11713_vm10, %v619_v50  ;;  %v602_v57 = vor.u32 %v600_v36, %v599_v44  ;;  %v603_v58 = vrot.slane %v599_v44, 4  ;;  %v381_v59 = vmax.f32 %v345_v45, 0.0  ;;  %v382_v60 = vmax.f32 %v346_v46, 0.0  ;;  %2616 = vmatprep.subr.bf16.mxu1 %v10712_v28 }
  0x2a   : > { %v10015_v61 = vpack.c.bf16 %v380_v55, %v379_v54  ;;  %v299_v62 = vmul.f32 %v11613_v16, %v251_v47  ;;  %v300_v0 = vmul.f32 %v11615_v17, %v252_v48  ;;  %v301_v1 = vmul.f32 %v11613_v16, %v253_v49  ;;  %v10714_v34 = vld [vmem:[%s15003_s3 + $0x484] ss:$12 sps:$4 sm:$0xff]   ;;  %2617 = vmatpush1.bf16.msra.mxu1 %v10716_v39  ;;  %v10720_v54 = vld [vmem:[%s15003_s3 + $0x1c] ss:$12 sps:$4 sm:$0xff]  }
  0x2b   : > { %v607_v3 = vsel %vm11706_vm1, %v603_v58, %v605_v41  ;;  %v11742_v6 = vsel %vm11698_vm0, %v602_v57, %v730_v53  ;;  %v10016_v7 = vpack.c.bf16 %v382_v60, %v381_v59  ;;  %v302_v8 = vmul.f32 %v11615_v17, %v254_v56  ;;  %v10717_v41 = vld [vmem:[%s15003_s3 + $0x480] ss:$12 sps:$4 sm:$0xff]   ;;  %4070 = vmatprep.subr.bf16.mxu0 %v10714_v34  ;;  %v10722_v55 = vld [vmem:[%s15003_s3 + $0x49c] ss:$12 sps:$4 sm:$0xff]  }
  0x2c   : > { %732 = vst [vmem:[#allocation2 + $0x10] sm:$0xff] %v11742_v6  ;;  %736 = vst.msk [vmem:[#allocation2 + $0x18] sm:$0x11] %vm11713_vm10, %v607_v3  ;;  %v621_v10 = vshrl.u32 %v10015_v61, 16  ;;  %v624_v11 = vshll.u32 %v10015_v61, 16  ;;  %v347_v12 = vadd.f32 %v11619_v21, %v299_v62  ;;  %v348_v14 = vadd.f32 %v11638_v27, %v300_v0  ;;  %v259_v53 = vld [vmem:[%s11636_s27 + $0xa0] sm:$0xff]  ;;  %4071 = vmatpush1.bf16.msra.mxu0 %v10717_v41 }
  0x2d   : > { %v629_v19 = vshll.u32 %v10016_v7, 16  ;;  %v349_v22 = vadd.f32 %v11619_v21, %v301_v1  ;;  %v350_v23 = vadd.f32 %v11638_v27, %v302_v8  ;;  %v303_v24 = vmul.f32 %v11613_v16, %v255_v2  ;;  %v260_v60 = vld [vmem:[%s11636_s27 + $0xa8] sm:$0xff]  ;;  %v10724_v61 = vld [vmem:[%s15003_s3 + $0x18] ss:$12 sps:$4 sm:$0xff]   ;;  %2618 = vmatprep.subr.bf16.mxu1 %v10720_v54  ;;  %4072 = vmatprep.subr.bf16.mxu0 %v10722_v55  ;;  %v10733_v39 = vld [vmem:[%s15003_s3 + $0x4b0] ss:$12 sps:$4 sm:$0xff]  }
  0x2e   : > { %v623_v29 = vrot.slane %v621_v10, 7  ;;  %v383_v30 = vmax.f32 %v347_v12, 0.0  ;;  %v384_v31 = vmax.f32 %v348_v14, 0.0  ;;  %v304_v32 = vmul.f32 %v11615_v17, %v256_v9  ;;  %v10725_v62 = vld [vmem:[%s15003_s3 + $0x498] ss:$12 sps:$4 sm:$0xff]   ;;  %2619 = vmatpush1.bf16.msra.mxu1 %v10724_v61 }
  0x2f   : > { %v385_v35 = vmax.f32 %v349_v22, 0.0  ;;  %v386_v36 = vmax.f32 %v350_v23, 0.0  ;;  %v305_v37 = vmul.f32 %v11613_v16, %v257_v15  ;;  %v306_v38 = vmul.f32 %v11615_v17, %v258_v18  ;;  %v745_v7 = vld [vmem:[#allocation2 + $0x40] sm:$0xff]  ;;  %v261_v14 = vld [vmem:[%s11636_s27 + $0xb0] sm:$0x1] }
  0x30   : > { %v11771_v42 = vld [vmem:[#allocation2 + $0x28] sm:$0x11]  ;;  %v626_v43 = vor.u32 %v624_v11, %v623_v29  ;;  %v627_v44 = vrot.slane %v623_v29, 4  ;;  %v10017_v45 = vpack.c.bf16 %v384_v31, %v383_v30  ;;  %v351_v46 = vadd.f32 %v11619_v21, %v303_v24  ;;  %v263_v30 = vld [vmem:[%s11636_s27 + $0xc0] sm:$0xff]  ;;  %4073 = vmatpush1.bf16.msra.mxu0 %v10725_v62  ;;  %v266_v61 = vld [vmem:[%s11636_s27 + $0xd8] sm:$0x1] }
  0x31   : > { %v8718_v47 = vcombine.low %v11727_v51, %v11771_v42  ;;  %v10018_v48 = vpack.c.bf16 %v386_v36, %v385_v35  ;;  %v352_v49 = vadd.f32 %v11638_v27, %v304_v32  ;;  %v353_v50 = vadd.f32 %v11619_v21, %v305_v37  ;;  %v10728_v31 = vld [vmem:[%s15003_s3 + $0x34] ss:$12 sps:$4 sm:$0xff]   ;;  %v10736_v54 = vld [vmem:[%s15003_s3 + $0x4c] ss:$12 sps:$4 sm:$0xff]  }
  0x32   : > { %v631_v56 = vsel %vm11706_vm1, %v627_v44, %v629_v19  ;;  %v11789_v57 = vsel %vm11698_vm0, %v626_v43, %v741_v20  ;;  %v633_v58 = vshrl.u32 %v10017_v45, 16  ;;  %v636_v59 = vshll.u32 %v10017_v45, 16  ;;  %v262_v20 = vld [vmem:[%s11636_s27 + $0xb8] sm:$0x1]  ;;  %v10730_v37 = vld [vmem:[%s15003_s3 + $0x4b4] ss:$12 sps:$4 sm:$0xff]   ;;  %2620 = vmatprep.subr.bf16.mxu1 %v10728_v31 }
  0x33   : > { %v941_v0 = vshrl.u32 %v8718_v47, 16  ;;  %v943_v1 = vshll.u32 %v8718_v47, 16  ;;  %v11798_v2 = vld [vmem:[#allocation2 + $0x18] sm:$0x11]  ;;  %743 = vst [vmem:[#allocation2 + $0x30] sm:$0xff] %v11789_v57  ;;  %v641_v3 = vshll.u32 %v10018_v48, 16  ;;  %v354_v8 = vadd.f32 %v11638_v27, %v306_v38  ;;  %4074 = vmatprep.subr.bf16.mxu0 %v10730_v37 }
  0x34   : > { %744 = vst.msk [vmem:[#allocation2 + $0x38] sm:$0x11] %vm11713_vm10, %v631_v56  ;;  %v8716_v9 = vcombine.low %v11742_v6, %v11798_v2  ;;  %v635_v10 = vrot.slane %v633_v58, 7  ;;  %v387_v11 = vmax.f32 %v351_v46, 0.0  ;;  %v388_v12 = vmax.f32 %v352_v49, 0.0  ;;  %v264_v46 = vld [vmem:[%s11636_s27 + $0xc8] sm:$0xff]  ;;  %4075 = vmatpush1.bf16.msra.mxu0 %v10733_v39 }
  0x35   : > { %v945_v15 = vrot.slane %v943_v1, 1  ;;  %v389_v18 = vmax.f32 %v353_v50, 0.0  ;;  %v390_v19 = vmax.f32 %v354_v8, 0.0  ;;  %v307_v22 = vmul.f32 %v11613_v16, %v259_v53  ;;  %v10732_v38 = vld [vmem:[%s15003_s3 + $0x30] ss:$12 sps:$4 sm:$0xff]  }
  0x36   : > { %v927_v23 = vshrl.u32 %v8716_v9, 16  ;;  %v929_v24 = vshll.u32 %v8716_v9, 16  ;;  %v638_v28 = vor.u32 %v636_v59, %v635_v10  ;;  %v639_v29 = vrot.slane %v635_v10, 4  ;;  %v265_v53 = vld [vmem:[%s11636_s27 + $0xd0] sm:$0x1]  ;;  %2621 = vmatpush1.bf16.msra.mxu1 %v10732_v38 }
  0x37   : > { %v946_v32 = vor.u32 %v945_v15, %v941_v0  ;;  %v10019_v34 = vpack.c.bf16 %v388_v12, %v387_v11  ;;  %v10020_v35 = vpack.c.bf16 %v390_v19, %v389_v18  ;;  %v308_v36 = vmul.f32 %v11615_v17, %v260_v60  ;;  %2622 = vmatprep.subr.bf16.mxu1 %v10736_v54  ;;  %v10740_v8 = vld [vmem:[%s15003_s3 + $0x48] ss:$12 sps:$4 sm:$0xff]   ;;  %v10745_v54 = vld [vmem:[%s15003_s3 + $0x4e4] ss:$12 sps:$4 sm:$0xff]  }
  0x38   : > { %v931_v41 = vrot.slane %v929_v24, 1  ;;  %v643_v43 = vsel %vm11706_vm1, %v639_v29, %v641_v3  ;;  %v11827_v44 = vsel %vm11698_vm0, %v638_v28, %v745_v7  ;;  %v309_v45 = vmul.f32 %v11613_v16, %v261_v14  ;;  %v10738_v7 = vld [vmem:[%s15003_s3 + $0x4cc] ss:$12 sps:$4 sm:$0xff]   ;;  %v749_v9 = vld [vmem:[#allocation2 + $0x50] sm:$0xff] }
  0x39   : > { %1074 = vrot.lane.b32.xlu1 %v946_v32, %s11534_s28  ;;  %747 = vst [vmem:[#allocation2 + $0x40] sm:$0xff] %v11827_v44  ;;  %748 = vst.msk [vmem:[#allocation2 + $0x48] sm:$0x11] %vm11713_vm10, %v643_v43  ;;  %v645_v47 = vshrl.u32 %v10019_v34, 16  ;;  %v648_v48 = vshll.u32 %v10019_v34, 16  ;;  %v653_v49 = vshll.u32 %v10020_v35, 16  ;;  %v310_v50 = vmul.f32 %v11615_v17, %v262_v20  ;;  %4076 = vmatprep.subr.bf16.mxu0 %v10738_v7 }
  0x3a   : > { %v932_v55 = vor.u32 %v931_v41, %v927_v23  ;;  %v355_v58 = vadd.f32 %v11619_v21, %v307_v22  ;;  %v356_v59 = vadd.f32 %v11638_v27, %v308_v36  ;;  %v357_v60 = vadd.f32 %v11619_v21, %v309_v45  ;;  %v10741_v15 = vld [vmem:[%s15003_s3 + $0x4c8] ss:$12 sps:$4 sm:$0xff]   ;;  %2623 = vmatpush1.bf16.msra.mxu1 %v10740_v8  ;;  %v10743_v36 = vld [vmem:[%s15003_s3 + $0x64] ss:$12 sps:$4 sm:$0xff]  }
  0x3b   : > { %v11840_v56 = vld [vmem:[#allocation2 + $0x38] sm:$0x11]  ;;  %v647_v0 = vrot.slane %v645_v47, 7  ;;  %v358_v1 = vadd.f32 %v11638_v27, %v310_v50  ;;  %v311_v3 = vmul.f32 %v11613_v16, %v263_v30  ;;  %v312_v14 = vmul.f32 %v11615_v17, %v264_v46  ;;  %v472_v35 = vld [vmem:[#allocation2 + $0x70] sm:$0x11]  ;;  %4077 = vmatpush1.bf16.msra.mxu0 %v10741_v15  ;;  %v267_v45 = vld [vmem:[%s11636_s27 + $0xe0] sm:$0xff]  ;;  %2624 = vmatprep.subr.bf16.mxu1 %v10743_v36 }
  0x3c   : > { %v8720_v62 = vcombine.low %v11789_v57, %v11840_v56  ;;  %1070 = vrot.lane.b32.xlu0 %v932_v55, %s11534_s28  ;;  %v391_v10 = vmax.f32 %v355_v58, 0.0  ;;  %v392_v11 = vmax.f32 %v356_v59, 0.0  ;;  %v393_v12 = vmax.f32 %v357_v60, 0.0  ;;  %v268_v46 = vld [vmem:[%s11636_s27 + $0xe8] sm:$0xff]  ;;  %4078 = vmatprep.subr.bf16.mxu0 %v10745_v54  ;;  %v10755_v36 = vld [vmem:[%s15003_s3 + $0x94] ss:$12 sps:$4 sm:$0xff]  }
  0x3d   : > { %v650_v20 = vor.u32 %v648_v48, %v647_v0  ;;  %v651_v22 = vrot.slane %v647_v0, 4  ;;  %v394_v23 = vmax.f32 %v358_v1, 0.0  ;;  %v313_v28 = vmul.f32 %v11613_v16, %v265_v53  ;;  %v10747_v55 = vld [vmem:[%s15003_s3 + $0x60] ss:$12 sps:$4 sm:$0xff]   ;;  %v269_v0 = vld [vmem:[%s11636_s27 + $0xf0] sm:$0x1] }
  0x3e   : > { %v955_v18 = vshrl.u32 %v8720_v62, 16  ;;  %v957_v19 = vshll.u32 %v8720_v62, 16  ;;  %v10021_v24 = vpack.c.bf16 %v392_v11, %v391_v10  ;;  %v314_v29 = vmul.f32 %v11615_v17, %v266_v61  ;;  %v10748_v58 = vld [vmem:[%s15003_s3 + $0x4e0] ss:$12 sps:$4 sm:$0xff]   ;;  %v270_v1 = vld [vmem:[%s11636_s27 + $0xf8] sm:$0x1]  ;;  %2625 = vmatpush1.bf16.msra.mxu1 %v10747_v55 }
  0x3f   : > { %v655_v31 = vsel %vm11706_vm1, %v651_v22, %v653_v49  ;;  %v11867_v32 = vsel %vm11698_vm0, %v650_v20, %v749_v9  ;;  %v359_v34 = vadd.f32 %v11619_v21, %v311_v3  ;;  %v10022_v38 = vpack.c.bf16 %v394_v23, %v393_v12  ;;  %v753_v49 = vld [vmem:[#allocation2 + $0x60] sm:$0xff]  ;;  %v10749_v10 = vld [vmem:[%s15003_s3 + $0x7c] ss:$12 sps:$4 sm:$0xff]   ;;  %4079 = vmatpush1.bf16.msra.mxu0 %v10748_v58 }
  0x40   : > { %v959_v30 = vrot.slane %v957_v19, 1  ;;  %v11873_v37 = vld [vmem:[#allocation2 + $0x48] sm:$0x11]  ;;  %751 = vst [vmem:[#allocation2 + $0x50] sm:$0xff] %v11867_v32  ;;  %752 = vst.msk [vmem:[#allocation2 + $0x58] sm:$0x11] %vm11713_vm10, %v655_v31  ;;  %v360_v43 = vadd.f32 %v11638_v27, %v312_v14  ;;  %v361_v50 = vadd.f32 %v11619_v21, %v313_v28  ;;  %v362_v53 = vadd.f32 %v11638_v27, %v314_v29 }
  0x41   : > { %v657_v39 = vshrl.u32 %v10021_v24, 16  ;;  %v660_v41 = vshll.u32 %v10021_v24, 16  ;;  %v8722_v48 = vcombine.low %v11827_v44, %v11873_v37  ;;  %v665_v60 = vshll.u32 %v10022_v38, 16  ;;  %v10751_v19 = vld [vmem:[%s15003_s3 + $0x4fc] ss:$12 sps:$4 sm:$0xff]   ;;  %2626 = vmatprep.subr.bf16.mxu1 %v10749_v10 }
  0x42   : > { %v960_v47 = vor.u32 %v959_v30, %v955_v18  ;;  %v395_v61 = vmax.f32 %v359_v34, 0.0  ;;  %v396_v62 = vmax.f32 %v360_v43, 0.0  ;;  %v397_v8 = vmax.f32 %v361_v50, 0.0  ;;  %v475_v18 = vld [vmem:[#allocation2 + $0x80] sm:$0x11]  ;;  %4080 = vmatprep.subr.bf16.mxu0 %v10751_v19 }
  0x43   : > { %v659_v59 = vrot.slane %v657_v39, 7  ;;  %v969_v3 = vshrl.u32 %v8722_v48, 16  ;;  %v971_v7 = vshll.u32 %v8722_v48, 16  ;;  %v398_v9 = vmax.f32 %v362_v53, 0.0  ;;  %v10753_v28 = vld [vmem:[%s15003_s3 + $0x78] ss:$12 sps:$4 sm:$0xff]  }
  0x44   : > { %1078 = vrot.lane.b32.xlu1 %v960_v47, %s11534_s28  ;;  %v473_v14 = vsel %vm11606_vm7, 0, %v472_v35  ;;  %v10023_v15 = vpack.c.bf16 %v396_v62, %v395_v61  ;;  %v315_v23 = vmul.f32 %v11613_v16, %v267_v45  ;;  %v316_v24 = vmul.f32 %v11615_v17, %v268_v46  ;;  %v10754_v29 = vld [vmem:[%s15003_s3 + $0x4f8] ss:$12 sps:$4 sm:$0xff]   ;;  %2627 = vmatpush1.bf16.msra.mxu1 %v10753_v28  ;;  %v10757_v50 = vld [vmem:[%s15003_s3 + $0x514] ss:$12 sps:$4 sm:$0xff]  }
  0x45   : > { %v662_v11 = vor.u32 %v660_v41, %v659_v59  ;;  %v663_v12 = vrot.slane %v659_v59, 4  ;;  %v973_v20 = vrot.slane %v971_v7, 1  ;;  %474 = vst [vmem:[#allocation2 + $0x70] sm:$0x11] %v473_v14  ;;  %v10024_v22 = vpack.c.bf16 %v398_v9, %v397_v8  ;;  %4081 = vmatpush1.bf16.msra.mxu0 %v10754_v29  ;;  %v10759_v53 = vld [vmem:[%s15003_s3 + $0x90] ss:$12 sps:$4 sm:$0xff]   ;;  %2628 = vmatprep.subr.bf16.mxu1 %v10755_v36 }
  0x46   : > { %v669_v34 = vshrl.u32 %v10023_v15, 16  ;;  %v672_v35 = vshll.u32 %v10023_v15, 16  ;;  %v317_v43 = vmul.f32 %v11613_v16, %v269_v0  ;;  %v318_v45 = vmul.f32 %v11615_v17, %v270_v1  ;;  %v10760_v59 = vld [vmem:[%s15003_s3 + $0x510] ss:$12 sps:$4 sm:$0xff]   ;;  %4082 = vmatprep.subr.bf16.mxu0 %v10757_v50  ;;  %v10763_v10 = vld [vmem:[%s15003_s3 + $0x52c] ss:$12 sps:$4 sm:$0xff]  }
  0x47   : > { %v667_v30 = vsel %vm11706_vm1, %v663_v12, %v665_v60  ;;  %v11917_v31 = vsel %vm11698_vm0, %v662_v11, %v753_v49  ;;  %v974_v38 = vor.u32 %v973_v20, %v969_v3  ;;  %v11922_v39 = vld [vmem:[#allocation2 + $0x58] sm:$0x11]  ;;  %v677_v41 = vshll.u32 %v10024_v22, 16  ;;  %v10765_v15 = vld [vmem:[%s15003_s3 + $0xa8] ss:$12 sps:$4 sm:$0xff]  }
  0x48   : > { %755 = vst [vmem:[#allocation2 + $0x60] sm:$0xff] %v11917_v31  ;;  %756 = vst.msk [vmem:[#allocation2 + $0x68] sm:$0x11] %vm11713_vm10, %v667_v30  ;;  %v8724_v46 = vcombine.low %v11867_v32, %v11922_v39  ;;  %v671_v47 = vrot.slane %v669_v34, 7  ;;  %v363_v48 = vadd.f32 %v11619_v21, %v315_v23  ;;  %v364_v49 = vadd.f32 %v11638_v27, %v316_v24  ;;  %v10761_v60 = vld [vmem:[%s15003_s3 + $0xac] ss:$12 sps:$4 sm:$0xff]  }
  0x49   : > { %1082 = vrot.lane.b32.xlu0 %v974_v38, %s11534_s28  ;;  %v365_v54 = vadd.f32 %v11619_v21, %v317_v43  ;;  %v366_v55 = vadd.f32 %v11638_v27, %v318_v45  ;;  %v476_v58 = vsel %vm11606_vm7, 0, %v475_v18  ;;  %2629 = vmatpush1.bf16.msra.mxu1 %v10759_v53  ;;  %v10766_v22 = vld [vmem:[%s15003_s3 + $0x528] ss:$12 sps:$4 sm:$0xff]   ;;  %v10767_v23 = vld [vmem:[%s15003_s3 + $0xc4] ss:$12 sps:$4 sm:$0xff]   ;;  %v11981_v36 = vcombine.high %v11679_v63, %v11666_v52 }
  0x4a   : > { %v983_v61 = vshrl.u32 %v8724_v46, 16  ;;  %v985_v62 = vshll.u32 %v8724_v46, 16  ;;  %v674_v0 = vor.u32 %v672_v35, %v671_v47  ;;  %v675_v1 = vrot.slane %v671_v47, 4  ;;  %477 = vst [vmem:[#allocation2 + $0x80] sm:$0x11] %v476_v58  ;;  %4083 = vmatpush1.bf16.msra.mxu0 %v10760_v59  ;;  %2630 = vmatprep.subr.bf16.mxu1 %v10761_v60 }
  0x4b   : > { %v399_v3 = vmax.f32 %v363_v48, 0.0  ;;  %v400_v7 = vmax.f32 %v364_v49, 0.0  ;;  %v401_v8 = vmax.f32 %v365_v54, 0.0  ;;  %v402_v9 = vmax.f32 %v366_v55, 0.0  ;;  %4084 = vmatprep.subr.bf16.mxu0 %v10763_v10  ;;  %v10769_v35 = vld [vmem:[%s15003_s3 + $0x544] ss:$12 sps:$4 sm:$0xff]  }
  0x4c   : > { %v987_v11 = vrot.slane %v985_v62, 1  ;;  %v679_v12 = vsel %vm11706_vm1, %v675_v1, %v677_v41  ;;  %v757_v14 = vld [vmem:[#allocation2 + $0x70] sm:$0xff]  ;;  %v10771_v38 = vld [vmem:[%s15003_s3 + $0xc0] ss:$12 sps:$4 sm:$0xff]   ;;  %v10773_v50 = vld [vmem:[%s15003_s3 + $0xdc] ss:$12 sps:$4 sm:$0xff]   ;;  %v11997_v55 = vcombine.high %v11727_v51, %v11771_v42 }
  0x4d   : > { %v11960_v18 = vsel %vm11698_vm0, %v674_v0, %v757_v14  ;;  %760 = vst.msk [vmem:[#allocation2 + $0x78] sm:$0x11] %vm11713_vm10, %v679_v12  ;;  %v10025_v19 = vpack.c.bf16 %v400_v7, %v399_v3  ;;  %v10026_v20 = vpack.c.bf16 %v402_v9, %v401_v8  ;;  %2631 = vmatpush1.bf16.msra.mxu1 %v10765_v15  ;;  %v10772_v48 = vld [vmem:[%s15003_s3 + $0x540] ss:$12 sps:$4 sm:$0xff]   ;;  %v922_v54 = vshll.u32 %v11981_v36, 16 }
  0x4e   : > { %v988_v24 = vor.u32 %v987_v11, %v983_v61  ;;  %759 = vst [vmem:[#allocation2 + $0x70] sm:$0xff] %v11960_v18  ;;  %4085 = vmatpush1.bf16.msra.mxu0 %v10766_v22  ;;  %2632 = vmatprep.subr.bf16.mxu1 %v10767_v23  ;;  %v489_v58 = vld [vmem:[#allocation2 + $0x8] sm:$0x22]  ;;  %v492_v0 = vld [vmem:[#allocation2 + $0x18] sm:$0x22]  ;;  %v12029_v22 = vcombine.high %v11827_v44, %v11873_v37  ;;  %vm1110_vm8 = vcmask 523264  }
  0x4f   : > { %v11970_v28 = vld [vmem:[#allocation2 + $0x68] sm:$0x11]  ;;  %v681_v30 = vshrl.u32 %v10025_v19, 16  ;;  %v684_v34 = vshll.u32 %v10025_v19, 16  ;;  %v689_v46 = vshll.u32 %v10026_v20, 16  ;;  %4086 = vmatprep.subr.bf16.mxu0 %v10769_v35  ;;  %v920_v19 = vshrl.u32 %v11981_v36, 16 }
  0x50   : > { %v8726_v29 = vcombine.low %v11917_v31, %v11970_v28  ;;  %1086 = vrot.lane.b32.xlu1 %v988_v24, %s11534_s28  ;;  %v495_v1 = vld [vmem:[#allocation2 + $0x28] sm:$0x22]  ;;  %v10777_v42 = vld [vmem:[%s15003_s3 + $0xd8] ss:$12 sps:$4 sm:$0xff]   ;;  %v10779_v9 = vld [vmem:[%s15003_s3 + $0xf4] ss:$12 sps:$4 sm:$0xff]   ;;  %v12042_v37 = vcombine.high %v11742_v6, %v11798_v2 }
  0x51   : > { %v683_v45 = vrot.slane %v681_v30, 7  ;;  %v761_v47 = vld [vmem:[#allocation2 + $0x80] sm:$0xff]  ;;  %2633 = vmatpush1.bf16.msra.mxu1 %v10771_v38  ;;  %v10775_v51 = vld [vmem:[%s15003_s3 + $0x55c] ss:$12 sps:$4 sm:$0xff]   ;;  %v924_v20 = vrot.slane %v922_v54, 1  ;;  %v490_v23 = vsel %vm11629_vm4, 0, %v489_v58  ;;  %v12071_v58 = vcombine.high %v11917_v31, %v11970_v28 }
  0x52   : > { %v997_v41 = vshrl.u32 %v8726_v29, 16  ;;  %v999_v43 = vshll.u32 %v8726_v29, 16  ;;  %4087 = vmatpush1.bf16.msra.mxu0 %v10772_v48  ;;  %v498_v3 = vld [vmem:[#allocation2 + $0x38] sm:$0x22]  ;;  %v501_v7 = vld [vmem:[#allocation2 + $0x48] sm:$0x22]  ;;  %2634 = vmatprep.subr.bf16.mxu1 %v10773_v50 }
  0x53   : > { %v686_v52 = vor.u32 %v684_v34, %v683_v45  ;;  %v687_v63 = vrot.slane %v683_v45, 4  ;;  %v10778_v8 = vld [vmem:[%s15003_s3 + $0x558] ss:$12 sps:$4 sm:$0xff]   ;;  %v507_v14 = vld [vmem:[#allocation2 + $0x68] sm:$0x22]  ;;  %4088 = vmatprep.subr.bf16.mxu0 %v10775_v51  ;;  %v950_v34 = vshll.u32 %v11997_v55, 16 }
  0x54   : > { %v1001_v49 = vrot.slane %v999_v43, 1  ;;  %v11992_v53 = vld [vmem:[#allocation2 + $0x78] sm:$0x11]  ;;  %v504_v12 = vld [vmem:[#allocation2 + $0x58] sm:$0x22]  ;;  %v493_v36 = vsel %vm11629_vm4, 0, %v492_v0 }
  0x55   : > { %v8728_v60 = vcombine.low %v11960_v18, %v11992_v53  ;;  %v691_v61 = vsel %vm11706_vm1, %v687_v63, %v689_v46  ;;  %v12005_v62 = vsel %vm11698_vm0, %v686_v52, %v761_v47  ;;  %v10781_v15 = vld [vmem:[%s15003_s3 + $0x574] ss:$12 sps:$4 sm:$0xff]   ;;  %v510_v24 = vld [vmem:[#allocation2 + $0x78] sm:$0x22]  ;;  %2635 = vmatpush1.bf16.msra.mxu1 %v10777_v42  ;;  %491 = vst [vmem:[#allocation2 + $0x8] sm:$0x22] %v490_v23 }
  0x56   : > { %v1002_v59 = vor.u32 %v1001_v49, %v997_v41  ;;  %763 = vst [vmem:[#allocation2 + $0x80] sm:$0xff] %v12005_v62  ;;  %764 = vst.msk [vmem:[#allocation2 + $0x88] sm:$0x11] %vm11713_vm10, %v691_v61  ;;  %v10783_v29 = vld [vmem:[%s15003_s3 + $0xf0] ss:$12 sps:$4 sm:$0xff]   ;;  %4089 = vmatpush1.bf16.msra.mxu0 %v10778_v8  ;;  %2636 = vmatprep.subr.bf16.mxu1 %v10779_v9  ;;  %v496_v38 = vsel %vm11629_vm4, 0, %v495_v1  ;;  %v925_v47 = vor.u32 %v924_v20, %v920_v19 }
  0x57   : > { %v1011_v10 = vshrl.u32 %v8728_v60, 16  ;;  %v1013_v11 = vshll.u32 %v8728_v60, 16  ;;  %v513_v35 = vld [vmem:[#allocation2 + $0x88] sm:$0x22]  ;;  %v10784_v44 = vld [vmem:[%s15003_s3 + $0x570] ss:$12 sps:$4 sm:$0xff]   ;;  %4090 = vmatprep.subr.bf16.mxu0 %v10781_v15  ;;  %v12082_v1 = vcombine.high %v11789_v57, %v11840_v56  ;;  %v12092_v42 = vcombine.high %v11867_v32, %v11922_v39 }
  0x58   : > { %1090 = vrot.lane.b32.xlu0 %v1002_v59, %s11534_s28  ;;  %v478_v41 = vld [vmem:[#allocation2 + $0x90] sm:$0x11]  ;;  %v948_v45 = vshrl.u32 %v11997_v55, 16  ;;  %494 = vst [vmem:[#allocation2 + $0x18] sm:$0x22] %v493_v36  ;;  %v499_v46 = vsel %vm11629_vm4, 0, %v498_v3 }
  0x59   : > { %v1015_v30 = vrot.slane %v1013_v11, 1  ;;  %497 = vst [vmem:[#allocation2 + $0x28] sm:$0x22] %v496_v38  ;;  %v502_v6 = vsel %vm11629_vm4, 0, %v501_v7  ;;  %v10785_v2 = vld [vmem:[%s15003_s3 + $0x10c] ss:$12 sps:$4 sm:$0xff]   ;;  %2637 = vmatpush1.bf16.msra.mxu1 %v10783_v29 }
  0x5a   : > { %v978_v48 = vshll.u32 %v12029_v22, 16  ;;  %v12057_v49 = vld [vmem:[#allocation2] sm:$0xee]  ;;  %500 = vst [vmem:[#allocation2 + $0x38] sm:$0x22] %v499_v46  ;;  %v505_v52 = vsel %vm11629_vm4, 0, %v504_v12  ;;  %4091 = vmatpush1.bf16.msra.mxu0 %v10784_v44  ;;  %2638 = vmatprep.subr.bf16.mxu1 %v10785_v2 }
  0x5b   : > { %v1016_v43 = vor.u32 %v1015_v30, %v1011_v10  ;;  %503 = vst [vmem:[#allocation2 + $0x48] sm:$0x22] %v502_v6  ;;  %v508_v63 = vsel %vm11629_vm4, 0, %v507_v14  ;;  %v10787_v50 = vld [vmem:[%s15003_s3 + $0x58c] ss:$12 sps:$4 sm:$0xff]   ;;  %v952_v55 = vrot.slane %v950_v34, 1 }
  0x5c   : > { %506 = vst [vmem:[#allocation2 + $0x58] sm:$0x22] %v505_v52  ;;  %509 = vst [vmem:[#allocation2 + $0x68] sm:$0x22] %v508_v63  ;;  %v511_v59 = vsel %vm11629_vm4, 0, %v510_v24  ;;  %v514_v60 = vsel %vm11629_vm4, 0, %v513_v35  ;;  %4092 = vmatprep.subr.bf16.mxu0 %v10787_v50  ;;  %v12117_v35 = vcombine.high %v11960_v18, %v11992_v53 }
  0x5d   : > { %1094 = vrot.lane.b32.xlu1 %v1016_v43, %s11534_s28  ;;  %v12067_v54 = vld [vmem:[#allocation2 + $0x88] sm:$0x11]  ;;  %v936_v0 = vshll.u32 %v12042_v37, 16  ;;  %512 = vst [vmem:[#allocation2 + $0x78] sm:$0x22] %v511_v59  ;;  %v479_v3 = vsel %vm11606_vm7, 0, %v478_v41  ;;  %v953_v32 = vor.u32 %v952_v55, %v948_v45 }
  0x5e   : > { %v8730_v61 = vcombine.low %v12005_v62, %v12067_v54  ;;  %515 = vst [vmem:[#allocation2 + $0x88] sm:$0x22] %v514_v60  ;;  %v10789_v31 = vld [vmem:[%s15003_s3 + $0x108] ss:$12 sps:$4 sm:$0xff]   ;;  %v10791_v57 = vld [vmem:[%s15003_s3 + $0x124] ss:$12 sps:$4 sm:$0xff]   ;;  %v12121_v44 = vcombine.high %v12005_v62, %v12067_v54 }
  0x5f   : > { %v10790_v51 = vld [vmem:[%s15003_s3 + $0x588] ss:$12 sps:$4 sm:$0xff]   ;;  %v976_v8 = vshrl.u32 %v12029_v22, 16  ;;  %v980_v9 = vrot.slane %v978_v48, 1  ;;  %480 = vst [vmem:[#allocation2 + $0x90] sm:$0x11] %v479_v3  ;;  %2639 = vmatpush1.bf16.msra.mxu1 %v10789_v31 }
  0x60   : > { %v1025_v56 = vshrl.u32 %v8730_v61, 16  ;;  %v1027_v7 = vshll.u32 %v8730_v61, 16  ;;  %v802_v10 = vld [vmem:[#allocation2 + $0x8] sm:$0x33]  ;;  %v1006_v11 = vshll.u32 %v12071_v58, 16  ;;  %v934_v20 = vshrl.u32 %v12042_v37, 16  ;;  %4093 = vmatpush1.bf16.msra.mxu0 %v10790_v51  ;;  %2640 = vmatprep.subr.bf16.mxu1 %v10791_v57 }
  0x61   : > { %1068 = vrot.lane.b32.xlu1 %v925_v47, %s11534_s28  ;;  %v8759_v12 = vcombine.high %v12057_v49, %v802_v10  ;;  %v10793_v14 = vld [vmem:[%s15003_s3 + $0x5a4] ss:$12 sps:$4 sm:$0xff]   ;;  %v10795_v15 = vld [vmem:[%s15003_s3 + $0x120] ss:$12 sps:$4 sm:$0xff]   ;;  %v938_v22 = vrot.slane %v936_v0, 1  ;;  %v964_v23 = vshll.u32 %v12082_v1, 16  ;;  %v981_v34 = vor.u32 %v980_v9, %v976_v8 }
  0x62   : > { %v1029_v19 = vrot.slane %v1027_v7, 1  ;;  %v10796_v24 = vld [vmem:[%s15003_s3 + $0x5a0] ss:$12 sps:$4 sm:$0xff]   ;;  %v992_v29 = vshll.u32 %v12092_v42, 16  ;;  %4094 = vmatprep.subr.bf16.mxu0 %v10793_v14  ;;  %v1004_v37 = vshrl.u32 %v12071_v58, 16  ;;  %v1008_v36 = vrot.slane %v1006_v11, 1 }
  0x63   : > { %2641 = vmatpush1.bf16.msra.mxu1 %v10795_v15  ;;  %v1263_v38 = vshrl.u32 %v8759_v12, 16  ;;  %v1266_v41 = vshll.u32 %v8759_v12, 16  ;;  %v939_v43 = vor.u32 %v938_v22, %v934_v20  ;;  %v962_v45 = vshrl.u32 %v12082_v1, 16  ;;  %v12129_v2 = vld [vmem:[#allocation2 + $0x10] sm:$0xee]  ;;  %v271_v8 = vld [vmem:[%s11636_s27 + $0x100] sm:$0xff] }
  0x64   : > { %v1030_v30 = vor.u32 %v1029_v19, %v1025_v56  ;;  %v966_v46 = vrot.slane %v964_v23, 1  ;;  %4095 = vmatpush1.bf16.msra.mxu0 %v10796_v24  ;;  %v990_v18 = vshrl.u32 %v12092_v42, 16  ;;  %v994_v6 = vrot.slane %v992_v29, 1  ;;  %v803_v52 = vld [vmem:[#allocation2 + $0x18] sm:$0x33] }
  0x65   : > { %1076 = vrot.lane.b32.xlu1 %v953_v32, %s11534_s28  ;;  %v8758_v62 = vcombine.low %v12057_v49, %v802_v10  ;;  %v1020_v47 = vshll.u32 %v12117_v35, 16  ;;  %v1034_v48 = vshll.u32 %v12121_v44, 16  ;;  %v10797_v63 = vld [vmem:[%s15003_s3 + $0x13c] ss:$12 sps:$4 sm:$0xff]   ;;  %v1009_v50 = vor.u32 %v1008_v36, %v1004_v37  ;;  %v12138_v60 = vld [vmem:[#allocation2 + $0x20] sm:$0xee] }
  0x66   : > { %1098 = vrot.lane.b32.xlu0 %v1030_v30, %s11534_s28  ;;  %v1265_v55 = vrot.slane %v1263_v38, 1  ;;  %v1268_v58 = vrot.slane %v1266_v41, 2  ;;  %v8761_v59 = vcombine.high %v12129_v2, %v803_v52  ;;  %v967_v61 = vor.u32 %v966_v46, %v962_v45  ;;  %v10799_v0 = vld [vmem:[%s15003_s3 + $0x5bc] ss:$12 sps:$4 sm:$0xff]   ;;  %v10801_v1 = vld [vmem:[%s15003_s3 + $0x138] ss:$12 sps:$4 sm:$0xff]   ;;  %2642 = vmatprep.subr.bf16.mxu1 %v10797_v63 }
  0x67   : > { %v10802_v31 = vld [vmem:[%s15003_s3 + $0x5b8] ss:$12 sps:$4 sm:$0xff]   ;;  %v1255_v51 = vshrl.u32 %v8758_v62, 16  ;;  %v804_v42 = vld [vmem:[#allocation2 + $0x28] sm:$0x33]  ;;  %v1258_v3 = vshll.u32 %v8758_v62, 16  ;;  %v12152_v7 = vcombine.low %v12129_v2, %v803_v52  ;;  %4096 = vmatprep.subr.bf16.mxu0 %v10799_v0  ;;  %2643 = vmatpush1.bf16.msra.mxu1 %v10801_v1  ;;  %v995_v19 = vor.u32 %v994_v6, %v990_v18 }
  0x68   : > { %v1032_v57 = vshrl.u32 %v12121_v44, 16  ;;  %v1036_v56 = vrot.slane %v1034_v48, 1  ;;  %v10803_v9 = vld [vmem:[%s15003_s3 + $0x154] ss:$12 sps:$4 sm:$0xff]   ;;  %v1269_v10 = vor.u32 %v1268_v58, %v1265_v55  ;;  %v1279_v32 = vshrl.u32 %v8761_v59, 16  ;;  %4097 = vmatpush1.bf16.msra.mxu0 %v10802_v31  ;;  %v272_v37 = vld [vmem:[%s11636_s27 + $0x108] sm:$0xff] }
  0x69   : > { %1084 = vrot.lane.b32.xlu1 %v981_v34, %s11534_s28  ;;  %v1282_v11 = vshll.u32 %v8761_v59, 16  ;;  %v8763_v12 = vcombine.high %v12138_v60, %v804_v42  ;;  %v12160_v14 = vld [vmem:[#allocation2 + $0x30] sm:$0xee]  ;;  %v1018_v20 = vshrl.u32 %v12117_v35, 16  ;;  %v1022_v22 = vrot.slane %v1020_v47, 1  ;;  %2644 = vmatprep.subr.bf16.mxu1 %v10803_v9 }
  0x6a   : > { %1072 = vrot.lane.b32.xlu0 %v939_v43, %s11534_s28  ;;  %v10805_v15 = vld [vmem:[%s15003_s3 + $0x5d4] ss:$12 sps:$4 sm:$0xff]   ;;  %v8762_v23 = vcombine.low %v12138_v60, %v804_v42  ;;  %v273_v24 = vld [vmem:[%s11636_s27 + $0x110] sm:$0x1]  ;;  %v274_v29 = vld [vmem:[%s11636_s27 + $0x118] sm:$0x1]  ;;  %v319_v36 = vmul.f32 %v11613_v16, %v271_v8  ;;  %v1037_v41 = vor.u32 %v1036_v56, %v1032_v57  ;;  %v320_v0 = vmul.f32 %v11615_v17, %v272_v37 }
  0x6b   : > { %v10807_v30 = vld [vmem:[%s15003_s3 + $0x150] ss:$12 sps:$4 sm:$0xff]   ;;  %v12173_v34 = vrot.slane %v1255_v51, 1  ;;  %4098 = vmatprep.subr.bf16.mxu0 %v10805_v15  ;;  %v1260_v38 = vrot.slane %v1258_v3, 2  ;;  %v1271_v43 = vshrl.u32 %v12152_v7, 16  ;;  %v1281_v18 = vrot.slane %v1279_v32, 1 }
  0x6c   : > { %v805_v44 = vld [vmem:[#allocation2 + $0x38] sm:$0x33]  ;;  %2645 = vmatpush1.bf16.msra.mxu1 %v10807_v30  ;;  %v1284_v6 = vrot.slane %v1282_v11, 2  ;;  %v1295_v62 = vshrl.u32 %v8763_v12, 16  ;;  %v1298_v47 = vshll.u32 %v8763_v12, 16  ;;  %v1023_v63 = vor.u32 %v1022_v22, %v1018_v20 }
  0x6d   : > { %1092 = vrot.lane.b32.xlu1 %v1009_v50, %s11534_s28  ;;  %v10808_v35 = vld [vmem:[%s15003_s3 + $0x5d0] ss:$12 sps:$4 sm:$0xff]   ;;  %v8765_v45 = vcombine.high %v12160_v14, %v805_v44  ;;  %v10809_v46 = vld [vmem:[%s15003_s3 + $0x16c] ss:$12 sps:$4 sm:$0xff]   ;;  %v12186_v48 = vld [vmem:[#allocation2 + $0x40] sm:$0xee]  ;;  %v321_v1 = vmul.f32 %v11613_v16, %v273_v24  ;;  %v322_v31 = vmul.f32 %v11615_v17, %v274_v29  ;;  %v1261_v3 = vor.u32 %v1260_v38, %v12173_v34 }
  0x6e   : > { %1080 = vrot.lane.b32.xlu0 %v967_v61, %s11534_s28  ;;  %v806_v52 = vld [vmem:[#allocation2 + $0x48] sm:$0x33]  ;;  %v1274_v50 = vshll.u32 %v12152_v7, 16  ;;  %v1287_v55 = vshrl.u32 %v8762_v23, 16  ;;  %v1290_v58 = vshll.u32 %v8762_v23, 16  ;;  %4099 = vmatpush1.bf16.msra.mxu0 %v10808_v35  ;;  %v8764_v61 = vcombine.low %v12160_v14, %v805_v44 }
  0x6f   : > { %v10811_v59 = vld [vmem:[%s15003_s3 + $0x5ec] ss:$12 sps:$4 sm:$0xff]   ;;  %2646 = vmatprep.subr.bf16.mxu1 %v10809_v46  ;;  %v10813_v51 = vld [vmem:[%s15003_s3 + $0x168] ss:$12 sps:$4 sm:$0xff]   ;;  %v1273_v57 = vrot.slane %v1271_v43, 1  ;;  %v1311_v56 = vshrl.u32 %v8765_v45, 16  ;;  %v1285_v16 = vor.u32 %v1284_v6, %v1281_v18  ;;  %v8767_v9 = vcombine.high %v12186_v48, %v806_v52 }
  0x70   : > { %v10814_v42 = vld [vmem:[%s15003_s3 + $0x5e8] ss:$12 sps:$4 sm:$0xff]   ;;  %v1314_v7 = vshll.u32 %v8765_v45, 16  ;;  %4100 = vmatprep.subr.bf16.mxu0 %v10811_v59  ;;  %v1297_v8 = vrot.slane %v1295_v62, 1  ;;  %v1300_v17 = vrot.slane %v1298_v47, 2  ;;  %2647 = vmatpush1.bf16.msra.mxu1 %v10813_v51  ;;  %v12207_v32 = vrot.slane %v1287_v55, 1 }
  0x71   : > { %1432 = vrot.lane.b32.xlu1 %v1269_v10, %s11534_s28  ;;  %v1276_v10 = vrot.slane %v1274_v50, 2  ;;  %v1292_v11 = vrot.slane %v1290_v58, 2  ;;  %v8766_v12 = vcombine.low %v12186_v48, %v806_v52  ;;  %v10817_v15 = vld [vmem:[%s15003_s3 + $0x184] ss:$12 sps:$4 sm:$0xff]   ;;  %v1306_v20 = vshll.u32 %v8764_v61, 16 }
  0x72   : > { %1088 = vrot.lane.b32.xlu0 %v995_v19, %s11534_s28  ;;  %v1303_v19 = vshrl.u32 %v8764_v61, 16  ;;  %v12213_v22 = vld [vmem:[#allocation2 + $0x50] sm:$0xee]  ;;  %v367_v23 = vadd.f32 %v11619_v21, %v319_v36  ;;  %4101 = vmatpush1.bf16.msra.mxu0 %v10814_v42  ;;  %v1313_v29 = vrot.slane %v1311_v56, 1  ;;  %v1316_v30 = vrot.slane %v1314_v7, 2 }
  0x73   : > { %v10820_v24 = vld [vmem:[%s15003_s3 + $0x604] ss:$12 sps:$4 sm:$0xff]   ;;  %v807_v34 = vld [vmem:[#allocation2 + $0x58] sm:$0x33]  ;;  %v368_v44 = vadd.f32 %v11638_v27, %v320_v0  ;;  %v369_v37 = vadd.f32 %v11619_v21, %v321_v1  ;;  %2689 = vmatprep.subr.bf16.mxu1 %v10817_v15  ;;  %v1301_v35 = vor.u32 %v1300_v17, %v1297_v8  ;;  %v1327_v38 = vshrl.u32 %v8767_v9, 16 }
  0x74   : > { %v8769_v36 = vcombine.high %v12213_v22, %v807_v34  ;;  %v12223_v43 = vld [vmem:[#allocation2 + $0x60] sm:$0xee]  ;;  %v1277_v45 = vor.u32 %v1276_v10, %v1273_v57  ;;  %v1293_v46 = vor.u32 %v1292_v11, %v12207_v32  ;;  %v1319_v18 = vshrl.u32 %v8766_v12, 16  ;;  %v808_v6 = vld [vmem:[#allocation2 + $0x68] sm:$0x33]  ;;  %4143 = vmatprep.subr.bf16.mxu0 %v10820_v24 }
  0x75   : > { %1100 = vrot.lane.b32.xlu1 %v1037_v41, %s11534_s28  ;;  %v1330_v41 = vshll.u32 %v8767_v9, 16  ;;  %v370_v62 = vadd.f32 %v11638_v27, %v322_v31  ;;  %v1305_v21 = vrot.slane %v1303_v19, 1  ;;  %v1308_v47 = vrot.slane %v1306_v20, 2  ;;  %v12231_v42 = vld [vmem:[#allocation2 + $0x70] sm:$0xee] }
  0x76   : > { %1096 = vrot.lane.b32.xlu0 %v1023_v63, %s11534_s28  ;;  %v1322_v52 = vshll.u32 %v8766_v12, 16  ;;  %v8771_v63 = vcombine.high %v12223_v43, %v808_v6  ;;  %v1317_v50 = vor.u32 %v1316_v30, %v1313_v29  ;;  %v8768_v55 = vcombine.low %v12213_v22, %v807_v34  ;;  %v809_v31 = vld [vmem:[#allocation2 + $0x78] sm:$0x33]  ;;  %v810_v30 = vld [vmem:[#allocation2 + $0x88] sm:$0x33] }
  0x77   : > { %v403_v58 = vmax.f32 %v367_v23, 0.0  ;;  %v404_v59 = vmax.f32 %v368_v44, 0.0  ;;  %v1329_v61 = vrot.slane %v1327_v38, 1  ;;  %v1332_v0 = vrot.slane %v1330_v41, 2  ;;  %v12236_v23 = vld [vmem:[#allocation2 + $0x80] sm:$0xee] }
  0x78   : > { %v1343_v1 = vshrl.u32 %v8769_v36, 16  ;;  %v1346_v51 = vshll.u32 %v8769_v36, 16  ;;  %v1321_v27 = vrot.slane %v1319_v18, 1  ;;  %v406_v57 = vmax.f32 %v370_v62, 0.0  ;;  %v765_v36 = vld [vmem:[#allocation2 + $0x90] sm:$0xff] }
  0x79   : > { %1436 = vrot.lane.b32.xlu1 %v1285_v16, %s11534_s28  ;;  %v10027_v56 = vpack.c.bf16 %v404_v59, %v403_v58  ;;  %v1324_v7 = vrot.slane %v1322_v52, 2  ;;  %v1359_v16 = vshrl.u32 %v8771_v63, 16  ;;  %v1362_v8 = vshll.u32 %v8771_v63, 16 }
  0x7a   : > { %1430 = vrot.lane.b32.xlu0 %v1261_v3, %s11534_s28  ;;  %v405_v3 = vmax.f32 %v369_v37, 0.0  ;;  %v8773_v17 = vcombine.high %v12231_v42, %v809_v31  ;;  %v1335_v9 = vshrl.u32 %v8768_v55, 16  ;;  %v1333_v12 = vor.u32 %v1332_v0, %v1329_v61 }
  0x7b   : > { %v693_v32 = vshrl.u32 %v10027_v56, 16  ;;  %v696_v11 = vshll.u32 %v10027_v56, 16  ;;  %v1338_v15 = vshll.u32 %v8768_v55, 16  ;;  %v1345_v19 = vrot.slane %v1343_v1, 1  ;;  %v12258_v56 = vld [vmem:[#allocation2 + $0x18] sm:$0x11] }
  0x7c   : > { %v10028_v10 = vpack.c.bf16 %v406_v57, %v405_v3  ;;  %v1348_v20 = vrot.slane %v1346_v51, 2  ;;  %v1309_v24 = vor.u32 %v1308_v47, %v1305_v21  ;;  %v8770_v29 = vcombine.low %v12223_v43, %v808_v6 }
  0x7d   : > { %1440 = vrot.lane.b32.xlu1 %v1301_v35, %s11534_s28  ;;  %v695_v34 = vrot.slane %v693_v32, 7  ;;  %v1361_v37 = vrot.slane %v1359_v16, 1  ;;  %v1364_v35 = vrot.slane %v1362_v8, 2  ;;  %v8772_v38 = vcombine.low %v12231_v42, %v809_v31 }
  0x7e   : > { %1434 = vrot.lane.b32.xlu0 %v1277_v45, %s11534_s28  ;;  %v701_v44 = vshll.u32 %v10028_v10, 16  ;;  %v1375_v41 = vshrl.u32 %v8773_v17, 16  ;;  %v1378_v45 = vshll.u32 %v8773_v17, 16  ;;  %v8775_v18 = vcombine.high %v12236_v23, %v810_v30 }
  0x7f   : > { %v698_v62 = vor.u32 %v696_v11, %v695_v34  ;;  %v699_v52 = vrot.slane %v695_v34, 4  ;;  %v1325_v63 = vor.u32 %v1324_v7, %v1321_v27  ;;  %v1340_v21 = vrot.slane %v1338_v15, 2  ;;  %v12262_v7 = vld [vmem:[#allocation2 + $0x28] sm:$0x11] }
  0x80   : > { %v1349_v6 = vor.u32 %v1348_v20, %v1345_v19  ;;  %v1351_v47 = vshrl.u32 %v8770_v29, 16  ;;  %v1365_v59 = vor.u32 %v1364_v35, %v1361_v37  ;;  %v1367_v61 = vshrl.u32 %v8772_v38, 16 }
  0x81   : > { %1444 = vrot.lane.b32.xlu1 %v1317_v50, %s11534_s28  ;;  %v1354_v50 = vshll.u32 %v8770_v29, 16  ;;  %v703_v55 = vsel %vm11706_vm1, %v699_v52, %v701_v44  ;;  %v766_v58 = vsel %vm11698_vm0, %v698_v62, %v765_v36  ;;  %v1370_v0 = vshll.u32 %v8772_v38, 16 }
  0x82   : > { %1438 = vrot.lane.b32.xlu0 %v1293_v46, %s11534_s28  ;;  %v1337_v46 = vrot.slane %v1335_v9, 1  ;;  %v8774_v1 = vcombine.low %v12236_v23, %v810_v30  ;;  %767 = vst [vmem:[#allocation2 + $0x90] sm:$0xff] %v766_v58  ;;  %768 = vst.msk [vmem:[#allocation2 + $0x98] sm:$0x11] %vm11713_vm10, %v703_v55  ;;  %v1377_v51 = vrot.slane %v1375_v41, 1  ;;  %v1380_v27 = vrot.slane %v1378_v45, 2 }
  0x83   : > { %v1391_v31 = vshrl.u32 %v8775_v18, 16  ;;  %v1394_v33 = vshll.u32 %v8775_v18, 16  ;;  %v8736_v57 = vcombine.low %v12057_v49, %v12254_v25  ;;  %v8738_v40 = vcombine.low %v12129_v2, %v12258_v56 }
  0x84   : > { %v8740_v16 = vcombine.low %v12138_v60, %v12262_v7  ;;  %v1341_v8 = vor.u32 %v1340_v21, %v1337_v46  ;;  %v1353_v17 = vrot.slane %v1351_v47, 1  ;;  %v1356_v9 = vrot.slane %v1354_v50, 2  ;;  %v12281_v21 = vld [vmem:[#allocation2 + $0x48] sm:$0x11] }
  0x85   : > { %1448 = vrot.lane.b32.xlu1 %v1333_v12, %s11534_s28  ;;  %v1369_v32 = vrot.slane %v1367_v61, 1  ;;  %v1177_v49 = vrot.slane %v8736_v57, 1  ;;  %v1372_v11 = vrot.slane %v1370_v0, 2  ;;  %v1381_v12 = vor.u32 %v1380_v27, %v1377_v51 }
  0x86   : > { %1442 = vrot.lane.b32.xlu0 %v1309_v24, %s11534_s28  ;;  %v1383_v15 = vshrl.u32 %v8774_v1, 16  ;;  %v1386_v19 = vshll.u32 %v8774_v1, 16  ;;  %v1393_v2 = vrot.slane %v1391_v31, 1  ;;  %v1396_v20 = vrot.slane %v1394_v33, 2 }
  0x87   : > { %v1179_v24 = vrot.slane %v8738_v40, 1  ;;  %v1181_v60 = vrot.slane %v8740_v16, 1  ;;  %v1357_v29 = vor.u32 %v1356_v9, %v1353_v17  ;;  %v1373_v38 = vor.u32 %v1372_v11, %v1369_v32  ;;  %v11499_v17 = vld [vmem:[#allocation2 + $0x20] sm:$0xff] }
  0x88   : > { %v1385_v41 = vrot.slane %v1383_v15, 1  ;;  %v1388_v36 = vrot.slane %v1386_v19, 2  ;;  %v1397_v45 = vor.u32 %v1396_v20, %v1393_v2  ;;  %v8746_v47 = vcombine.low %v12213_v22, %v11922_v39  ;;  %v11501_v15 = vld [vmem:[#allocation2 + $0x10] sm:$0xff] }
  0x89   : > { %1452 = vrot.lane.b32.xlu1 %v1349_v6, %s11534_s28  ;;  %v789_v30 = vld [vmem:[#allocation2 + $0x98] sm:$0x11]  ;;  %v12271_v37 = vcombine.low %v1177_v49, %v1179_v24  ;;  %v12273_v35 = vcombine.low %v1179_v24, %v1181_v60  ;;  %v8744_v6 = vcombine.low %v12186_v48, %v12281_v21  ;;  %v8748_v50 = vcombine.low %v12223_v43, %v11970_v28  ;;  %v11500_v49 = vld [vmem:[#allocation2] sm:$0xff] }
  0x8a   : > { %1446 = vrot.lane.b32.xlu0 %v1325_v63, %s11534_s28  ;;  %v8732_v34 = vcombine.low %v766_v58, %v789_v30  ;;  %v8733_v44 = vcombine.high %v766_v58, %v789_v30  ;;  %v12277_v63 = vld [vmem:[#allocation2 + $0x38] sm:$0x11]  ;;  %v8750_v58 = vcombine.low %v12231_v42, %v11992_v53  ;;  %v1187_v28 = vrot.slane %v8746_v47, 1  ;;  %v10815_v24 = vld [vmem:[%s15003_s3 + $0x180] ss:$12 sps:$4 sm:$0xff]  }
  0x8b   : > { %15034 = vst [vmem:[#allocation5_spill] sm:$0xff] %v12273_v35  ;;  %v8742_v46 = vcombine.low %v12160_v14, %v12277_v63  ;;  %v1389_v14 = vor.u32 %v1388_v36, %v1385_v41  ;;  %v1185_v48 = vrot.slane %v8744_v6, 1  ;;  %v1189_v43 = vrot.slane %v8748_v50, 1  ;;  %v10818_v30 = vld [vmem:[%s15003_s3 + $0x600] ss:$12 sps:$4 sm:$0xff]  }
  0x8c   : > { %v1041_v18 = vshll.u32 %v8732_v34, 16  ;;  %v1046_v62 = vshrl.u32 %v8733_v44, 16  ;;  %v1048_v52 = vshll.u32 %v8733_v44, 16  ;;  %v1039_v0 = vshrl.u32 %v8732_v34, 16  ;;  %v10821_v50 = vld [vmem:[%s15003_s3 + $0x198] ss:$12 sps:$4 sm:$0xff]  }
  0x8d   : > { %1456 = vrot.lane.b32.xlu1 %v1365_v59, %s11534_s28  ;;  %v1183_v61 = vrot.slane %v8742_v46, 1  ;;  %v12299_v27 = vrot.slane %v8750_v58, 1  ;;  %v12301_v31 = vcombine.low %v1185_v48, %v1187_v28  ;;  %v12303_v33 = vcombine.low %v1187_v28, %v1189_v43  ;;  %v10832_v28 = vld [vmem:[%s15003_s3 + $0x634] ss:$12 sps:$4 sm:$0xff]   ;;  %v11513_v59 = vld [vmem:[#allocation2 + $0x58] sm:$0x11] }
  0x8e   : > { %1450 = vrot.lane.b32.xlu0 %v1341_v8, %s11534_s28  ;;  %v1050_v55 = vrot.slane %v1048_v52, 1  ;;  %v1043_v39 = vrot.slane %v1041_v18, 1  ;;  %v516_v8 = vld [vmem:[#allocation2 + $0x98] sm:$0x22]  ;;  %v8705_v9 = vcombine.high %v11499_v17, %v11499_v17  ;;  %v8703_v11 = vcombine.high %v11500_v49, %v11500_v49  ;;  %v11502_v52 = vld [vmem:[#allocation2 + $0x30] sm:$0xff] }
  0x8f   : > { %v12295_v22 = vcombine.low %v1181_v60, %v1183_v61  ;;  %v12297_v51 = vcombine.low %v1183_v61, %v1185_v48  ;;  %v12307_v57 = vcombine.low %v1189_v43, %v12299_v27  ;;  %v517_v32 = vsel %vm11629_vm4, 0, %v516_v8  ;;  %v10826_v18 = vld [vmem:[%s15003_s3 + $0x61c] ss:$12 sps:$4 sm:$0xff]   ;;  %v10829_v48 = vld [vmem:[%s15003_s3 + $0x1b4] ss:$12 sps:$4 sm:$0xff]  }
  0x90   : > { %v1051_v1 = vor.u32 %v1050_v55, %v1046_v62  ;;  %v1044_v40 = vor.u32 %v1043_v39, %v1039_v0  ;;  %518 = vst [vmem:[#allocation2 + $0x98] sm:$0x22] %v517_v32  ;;  %v8704_v19 = vcombine.high %v11501_v15, %v11501_v15  ;;  %v12331_v34 = vcombine.low %v11500_v49, %v11501_v15  ;;  %v10824_v55 = vld [vmem:[%s15003_s3 + $0x618] ss:$12 sps:$4 sm:$0xff]   ;;  %v10827_v32 = vld [vmem:[%s15003_s3 + $0x1b0] ss:$12 sps:$4 sm:$0xff]  }
  0x91   : > { %1460 = vrot.lane.b32.xlu1 %v1381_v12, %s11534_s28  ;;  %15035 = vst [vmem:[#allocation6_spill] sm:$0xff] %v12297_v51  ;;  %v12333_v44 = vcombine.low %v11501_v15, %v11499_v17  ;;  %v8706_v46 = vcombine.high %v11502_v52, %v11502_v52  ;;  %v10830_v49 = vld [vmem:[%s15003_s3 + $0x630] ss:$12 sps:$4 sm:$0xff]   ;;  %vm8530_vm9 = vcmask 1042434   ;;  %vm8532_vm11 = vcmask 1043459  }
  0x92   : > { %1454 = vrot.lane.b32.xlu0 %v1357_v29, %s11534_s28  ;;  %vm8540_vm6 = vcmask 1047559  }
  0x95   : > { %1464 = vrot.lane.b32.xlu1 %v1397_v45, %s11534_s28  ;;  %v10823_v45 = vld [vmem:[%s15003_s3 + $0x19c] ss:$12 sps:$4 sm:$0xff]  }
  0x96   : > { %1458 = vrot.lane.b32.xlu0 %v1373_v38, %s11534_s28  ;;  %v800_v38 = vld [vmem:[#allocation2 + $0x90] sm:$0xee] }
  0x97   : > { %v811_v62 = vld [vmem:[#allocation2 + $0x98] sm:$0x33] }
  0x98   : > { %v8777_v6 = vcombine.high %v800_v38, %v811_v62  ;;  %v8776_v47 = vcombine.low %v800_v38, %v811_v62  ;;  %v10833_v38 = vld [vmem:[%s15003_s3 + $0x1c8] ss:$12 sps:$4 sm:$0xff]   ;;  %v10841_v62 = vld [vmem:[%s15003_s3 + $0x1e4] ss:$12 sps:$4 sm:$0xff]  }
  0x99   : > { %1104 = vrot.lane.b32.xlu1 %v1051_v1, %s11534_s28 }
  0x9a   : > { %1462 = vrot.lane.b32.xlu0 %v1389_v14, %s11534_s28  ;;  %v1407_v58 = vshrl.u32 %v8777_v6, 16  ;;  %v1410_v61 = vshll.u32 %v8777_v6, 16  ;;  %v1399_v14 = vshrl.u32 %v8776_v47, 16  ;;  %v1402_v0 = vshll.u32 %v8776_v47, 16  ;;  %v10844_v6 = vld [vmem:[%s15003_s3 + $0x664] ss:$12 sps:$4 sm:$0xff]  }
  0x9b   : > { %v12311_v16 = vpop.permute.xlu0 %1066 }
  0x9c   : > { %v1488_v60 = vsel %vm1110_vm8, %v8703_v11, %v12311_v16  ;;  %v1409_v43 = vrot.slane %v1407_v58, 1  ;;  %v1401_v8 = vrot.slane %v1399_v14, 1  ;;  %v12373_v11 = vcombine.low %v11499_v17, %v11502_v52  ;;  %v10839_v58 = vld [vmem:[%s15003_s3 + $0x1e0] ss:$12 sps:$4 sm:$0xff]   ;;  %v10847_v14 = vld [vmem:[%s15003_s3 + $0x1fc] ss:$12 sps:$4 sm:$0xff]  }
  0x9d   : > { %v1404_v15 = vrot.slane %v1402_v0, 2 }
  0x9e   : > { %1102 = vrot.lane.b32.xlu0 %v1044_v40, %s11534_s28  ;;  %v1412_v40 = vrot.slane %v1410_v61, 2  ;;  %v10842_v61 = vld [vmem:[%s15003_s3 + $0x660] ss:$12 sps:$4 sm:$0xff]  }
  0xab   : > { %v12315_v12 = vpop.permute.xlu1 %1074 }
  0xac   : > { %v1494_v2 = vsel %vm1110_vm8, %v8705_v9, %v12315_v12 }
  0xae   : > { %v12319_v20 = vpop.permute.xlu0 %1070 }
  0xaf   : > { %v1491_v29 = vsel %vm1110_vm8, %v8704_v19, %v12319_v20  ;;  %v11503_v19 = vld [vmem:[#allocation2 + $0x40] sm:$0xff] }
  0xb0   : > { %v12335_v41 = vcombine.low %v1488_v60, %v1491_v29  ;;  %v12337_v36 = vcombine.low %v1491_v29, %v1494_v2  ;;  %v1413_v60 = vor.u32 %v1412_v40, %v1409_v43  ;;  %v10838_v29 = vld [vmem:[%s15003_s3 + $0x64c] ss:$12 sps:$4 sm:$0xff]   ;;  %v12403_v47 = vcombine.low %v11502_v52, %v11503_v19  ;;  %v10850_v52 = vld [vmem:[%s15003_s3 + $0x67c] ss:$12 sps:$4 sm:$0xff]  }
  0xb2   : > { %2648 = vmatprep.mubr.bf16.mxu1 %v12335_v41  ;;  %4102 = vmatprep.mubr.bf16.mxu0 %v12337_v36 }
  0xb3   : > { %2649 = vmatmul.mubr.bf16.vlgmr.msra.gmra.mrb[0].mxu1 %v12331_v34  ;;  %4103 = vmatmul.mubr.bf16.vlgmr.msra.gmra.mrb[0].mxu0 %v12333_v44 }
  0xb4   : > { %2690 = vmatpush1.bf16.msra.mxu1 %v10815_v24  ;;  %4144 = vmatpush1.bf16.msra.mxu0 %v10818_v30  ;;  %v8707_v24 = vcombine.high %v11503_v19, %v11503_v19  ;;  %v1405_v30 = vor.u32 %v1404_v15, %v1401_v8  ;;  %v10853_v8 = vld [vmem:[%s15003_s3 + $0x214] ss:$12 sps:$4 sm:$0xff]  }
  0xb5   : > { %2691 = vmatprep.subr.bf16.mxu1 %v10823_v45  ;;  %4145 = vmatprep.subr.bf16.mxu0 %v10826_v18  ;;  %v10836_v45 = vld [vmem:[%s15003_s3 + $0x648] ss:$12 sps:$4 sm:$0xff]  }
  0xb6   : > { %v12355_v1 = vpop.permute.xlu1 %1078  ;;  %1468 = vrot.lane.b32.xlu1 %v1413_v60, %s11534_s28  ;;  %1466 = vrot.lane.b32.xlu0 %v1405_v30, %s11534_s28 }
  0xb7   : > { %v1497_v39 = vsel %vm1110_vm8, %v8706_v46, %v12355_v1 }
  0xb8   : > { %v12365_v9 = vcombine.low %v1494_v2, %v1497_v39  ;;  %2692 = vmatpush1.bf16.msra.mxu1 %v10821_v50  ;;  %4146 = vmatpush1.bf16.msra.mxu0 %v10824_v55  ;;  %v10835_v2 = vld [vmem:[%s15003_s3 + $0x1cc] ss:$12 sps:$4 sm:$0xff]   ;;  %v11504_v50 = vld [vmem:[#allocation2 + $0x50] sm:$0xff] }
  0xb9   : > { %2693 = vmatprep.subr.bf16.mxu1 %v10829_v48  ;;  %4147 = vmatprep.subr.bf16.mxu0 %v10832_v28  ;;  %v8708_v55 = vcombine.high %v11504_v50, %v11504_v50  ;;  %v10848_v28 = vld [vmem:[%s15003_s3 + $0x678] ss:$12 sps:$4 sm:$0xff]   ;;  %v12429_v43 = vcombine.low %v11503_v19, %v11504_v50  ;;  %v10851_v19 = vld [vmem:[%s15003_s3 + $0x210] ss:$12 sps:$4 sm:$0xff]  }
  0xba   : > { %2658 = vmatprep.mubr.bf16.mxu1 %v12365_v9 }
  0xbb   : > { %v12383_v17 = vpop.permute.xlu0 %1082  ;;  %2659 = vmatmul.mubr.bf16.gmra.mrb[4].mxu1 %v12373_v11 }
  0xbc   : > { %v1500_v18 = vsel %vm1110_vm8, %v8707_v24, %v12383_v17  ;;  %2694 = vmatpush1.bf16.msra.mxu1 %v10827_v32  ;;  %4148 = vmatpush1.bf16.msra.mxu0 %v10830_v49  ;;  %v10856_v32 = vld [vmem:[%s15003_s3 + $0x694] ss:$12 sps:$4 sm:$0xff]   ;;  %v10854_v24 = vld [vmem:[%s15003_s3 + $0x690] ss:$12 sps:$4 sm:$0xff]  }
  0xbd   : > { %v12398_v46 = vcombine.low %v1497_v39, %v1500_v18  ;;  %2695 = vmatprep.subr.bf16.mxu1 %v10835_v2  ;;  %4149 = vmatprep.subr.bf16.mxu0 %v10838_v29  ;;  %v10845_v39 = vld [vmem:[%s15003_s3 + $0x1f8] ss:$12 sps:$4 sm:$0xff]  }
  0xbe   : > { %v11505_v49 = vld [vmem:[#allocation2 + $0x60] sm:$0xff]  ;;  %v10859_v2 = vld [vmem:[%s15003_s3 + $0x22c] ss:$12 sps:$4 sm:$0xff]  }
  0xbf   : > { %4112 = vmatprep.mubr.bf16.mxu0 %v12398_v46  ;;  %v8709_v15 = vcombine.high %v11505_v49, %v11505_v49  ;;  %v10862_v29 = vld [vmem:[%s15003_s3 + $0x6ac] ss:$12 sps:$4 sm:$0xff]  }
  0xc0   : > { %2696 = vmatpush1.bf16.msra.mxu1 %v10833_v38  ;;  %4150 = vmatpush1.bf16.msra.mxu0 %v10836_v45  ;;  %v10857_v45 = vld [vmem:[%s15003_s3 + $0x228] ss:$12 sps:$4 sm:$0xff]  }
  0xc1   : > { %2697 = vmatprep.subr.bf16.mxu1 %v10841_v62  ;;  %4151 = vmatprep.subr.bf16.mxu0 %v10844_v6  ;;  %v12465_v62 = vcombine.low %v11504_v50, %v11505_v49  ;;  %v11506_v6 = vld [vmem:[#allocation2 + $0x70] sm:$0xff]  ;;  %v10863_v50 = vld [vmem:[%s15003_s3 + $0x240] ss:$12 sps:$4 sm:$0xff]  }
  0xc2   : > { %v12418_v0 = vpop.permute.xlu1 %1086  ;;  %4113 = vmatmul.mubr.bf16.gmra.mrb[4].mxu0 %v12403_v47 }
  0xc3   : > { %v1503_v48 = vsel %vm1110_vm8, %v8708_v55, %v12418_v0  ;;  %v8710_v55 = vcombine.high %v11506_v6, %v11506_v6 }
  0xc4   : > { %v12431_v40 = vcombine.low %v1500_v18, %v1503_v48  ;;  %2698 = vmatpush1.bf16.msra.mxu1 %v10839_v58  ;;  %4152 = vmatpush1.bf16.msra.mxu0 %v10842_v61  ;;  %v10860_v18 = vld [vmem:[%s15003_s3 + $0x6a8] ss:$12 sps:$4 sm:$0xff]   ;;  %v10865_v58 = vld [vmem:[%s15003_s3 + $0x244] ss:$12 sps:$4 sm:$0xff]  }
  0xc5   : > { %2699 = vmatprep.subr.bf16.mxu1 %v10847_v14  ;;  %4153 = vmatprep.subr.bf16.mxu0 %v10850_v52  ;;  %v10868_v61 = vld [vmem:[%s15003_s3 + $0x6c4] ss:$12 sps:$4 sm:$0xff]   ;;  %v10866_v52 = vld [vmem:[%s15003_s3 + $0x6c0] ss:$12 sps:$4 sm:$0xff]  }
  0xc6   : > { %2668 = vmatprep.mubr.bf16.mxu1 %v12431_v40 }
  0xc7   : > { %2669 = vmatmul.mubr.bf16.gmra.mrb[8].mxu1 %v12429_v43 }
  0xc8   : > { %2700 = vmatpush1.bf16.msra.mxu1 %v10845_v39  ;;  %4154 = vmatpush1.bf16.msra.mxu0 %v10848_v28  ;;  %v10871_v39 = vld [vmem:[%s15003_s3 + $0x25c] ss:$12 sps:$4 sm:$0xff]  }
  0xc9   : > { %2701 = vmatprep.subr.bf16.mxu1 %v10853_v8  ;;  %4155 = vmatprep.subr.bf16.mxu0 %v10856_v32  ;;  %v10874_v8 = vld [vmem:[%s15003_s3 + $0x6dc] ss:$12 sps:$4 sm:$0xff]   ;;  %v12493_v32 = vcombine.low %v11505_v49, %v11506_v6  ;;  %v10877_v49 = vld [vmem:[%s15003_s3 + $0x274] ss:$12 sps:$4 sm:$0xff]  }
  0xca   : > { %v12450_v60 = vpop.permute.xlu0 %1090 }
  0xcb   : > { %v1506_v30 = vsel %vm1110_vm8, %v8709_v15, %v12450_v60 }
  0xcc   : > { %v12457_v38 = vcombine.low %v1503_v48, %v1506_v30  ;;  %2702 = vmatpush1.bf16.msra.mxu1 %v10851_v19  ;;  %4156 = vmatpush1.bf16.msra.mxu0 %v10854_v24  ;;  %v10869_v19 = vld [vmem:[%s15003_s3 + $0x258] ss:$12 sps:$4 sm:$0xff]  }
  0xcd   : > { %2703 = vmatprep.subr.bf16.mxu1 %v10859_v2  ;;  %4157 = vmatprep.subr.bf16.mxu0 %v10862_v29  ;;  %v10872_v24 = vld [vmem:[%s15003_s3 + $0x6d8] ss:$12 sps:$4 sm:$0xff]  }
  0xce   : > { %4122 = vmatprep.mubr.bf16.mxu0 %v12457_v38  ;;  %v11507_v2 = vld [vmem:[#allocation2 + $0x80] sm:$0xff] }
  0xcf   : > { %v12474_v14 = vpop.permute.xlu1 %1094  ;;  %4123 = vmatmul.mubr.bf16.gmra.mrb[8].mxu0 %v12465_v62  ;;  %v8711_v29 = vcombine.high %v11507_v2, %v11507_v2 }
  0xd0   : > { %v1509_v48 = vsel %vm1110_vm8, %v8710_v55, %v12474_v14  ;;  %2704 = vmatpush1.bf16.msra.mxu1 %v10857_v45  ;;  %4158 = vmatpush1.bf16.msra.mxu0 %v10860_v18  ;;  %v481_v45 = vld [vmem:[#allocation2 + $0xa0] sm:$0x11]  ;;  %v10875_v55 = vld [vmem:[%s15003_s3 + $0x270] ss:$12 sps:$4 sm:$0xff]  }
  0xd1   : > { %v12488_v28 = vcombine.low %v1506_v30, %v1509_v48  ;;  %2705 = vmatprep.subr.bf16.mxu1 %v10865_v58  ;;  %4159 = vmatprep.subr.bf16.mxu0 %v10868_v61  ;;  %v10880_v30 = vld [vmem:[%s15003_s3 + $0x6f4] ss:$12 sps:$4 sm:$0xff]   ;;  %v482_v18 = vsel %vm11606_vm7, 0, %v481_v45  ;;  %vm8534_vm7 = vcmask 1044484  }
  0xd2   : > { %483 = vst [vmem:[#allocation2 + $0xa0] sm:$0x11] %v482_v18  ;;  %v790_v18 = vld [vmem:[#allocation2 + $0xa8] sm:$0x11] }
  0xd3   : > { %v1069_v15 = vpop.permute.xlu1 %1068  ;;  %2678 = vmatprep.mubr.bf16.mxu1 %v12488_v28 }
  0xd4   : > { %2706 = vmatpush1.bf16.msra.mxu1 %v10863_v50  ;;  %4160 = vmatpush1.bf16.msra.mxu0 %v10866_v52  ;;  %v10878_v50 = vld [vmem:[%s15003_s3 + $0x6f0] ss:$12 sps:$4 sm:$0xff]   ;;  %v10883_v52 = vld [vmem:[%s15003_s3 + $0x28c] ss:$12 sps:$4 sm:$0xff]  }
  0xd5   : > { %2707 = vmatprep.subr.bf16.mxu1 %v10871_v39  ;;  %4161 = vmatprep.subr.bf16.mxu0 %v10874_v8  ;;  %v10886_v39 = vld [vmem:[%s15003_s3 + $0x70c] ss:$12 sps:$4 sm:$0xff]  }
  0xd6   : > { %2679 = vmatmul.mubr.bf16.gmra.mrb[12].mxu1 %v12493_v32 }
  0xd7   : > { %2721 = vmatprep.mubr.bf16.mxu1 %v12271_v37  ;;  %v1077_v61 = vpop.permute.xlu1 %1076 }
  0xd8   : > { %v12515_v58 = vpop.permute.xlu0 %1098  ;;  %2708 = vmatpush1.bf16.msra.mxu1 %v10869_v19  ;;  %4162 = vmatpush1.bf16.msra.mxu0 %v10872_v24  ;;  %v10881_v19 = vld [vmem:[%s15003_s3 + $0x288] ss:$12 sps:$4 sm:$0xff]   ;;  %v1111_v24 = vsel %vm1110_vm8, %v12311_v16, %v1069_v15 }
  0xd9   : > { %v12522_v13 = vsel %vm1110_vm8, %v8711_v29, %v12515_v58  ;;  %2709 = vmatprep.subr.bf16.mxu1 %v10877_v49  ;;  %4163 = vmatprep.subr.bf16.mxu0 %v10880_v30  ;;  %v1113_v29 = vsel %vm1110_vm8, %v12315_v12, %v1077_v61  ;;  %v10884_v49 = vld [vmem:[%s15003_s3 + $0x708] ss:$12 sps:$4 sm:$0xff]   ;;  %v12543_v30 = vcombine.low %v11506_v6, %v11507_v2  ;;  %v10892_v12 = vld [vmem:[%s15003_s3 + $0x724] ss:$12 sps:$4 sm:$0xff]   ;;  %v10887_v2 = vld [vmem:[%s15003_s3 + $0x2a0] ss:$12 sps:$4 sm:$0xff]  }
  0xda   : > { %v12531_v8 = vcombine.low %v1509_v48, %v12522_v13  ;;  %v10889_v48 = vld [vmem:[%s15003_s3 + $0x2a4] ss:$12 sps:$4 sm:$0xff]  }
  0xdb   : > { %15036 = vst [vmem:[#allocation7_spill] sm:$0xff] %v12543_v30 }
  0xdc   : > { %v1073_v45 = vpop.permute.xlu0 %1072  ;;  %2710 = vmatpush1.bf16.msra.mxu1 %v10875_v55  ;;  %4164 = vmatpush1.bf16.msra.mxu0 %v10878_v50  ;;  %v779_v55 = vld [vmem:[#allocation2 + $0xa0] sm:$0xff] }
  0xdd   : > { %v1112_v16 = vsel %vm1110_vm8, %v12319_v20, %v1073_v45  ;;  %2711 = vmatprep.subr.bf16.mxu1 %v10883_v52  ;;  %4165 = vmatprep.subr.bf16.mxu0 %v10886_v39  ;;  %v10890_v20 = vld [vmem:[%s15003_s3 + $0x720] ss:$12 sps:$4 sm:$0xff]   ;;  %v8735_v61 = vcombine.high %v779_v55, %v790_v18  ;;  %v8734_v50 = vcombine.low %v779_v55, %v790_v18  ;;  %v10895_v39 = vld [vmem:[%s15003_s3 + $0x2bc] ss:$12 sps:$4 sm:$0xff]   ;;  %v10893_v55 = vld [vmem:[%s15003_s3 + $0x2b8] ss:$12 sps:$4 sm:$0xff]  }
  0xde   : > { %v12553_v15 = vcombine.low %v1111_v24, %v1112_v16  ;;  %v12555_v6 = vcombine.low %v1112_v16, %v1113_v29  ;;  %4132 = vmatprep.mubr.bf16.mxu0 %v12531_v8  ;;  %v10898_v24 = vld [vmem:[%s15003_s3 + $0x73c] ss:$12 sps:$4 sm:$0xff]  }
  0xdf   : > { %4133 = vmatmul.mubr.bf16.gmra.mrb[12].mxu0 %v12543_v30  ;;  %v1060_v16 = vshrl.u32 %v8735_v61, 16  ;;  %v1062_v4 = vshll.u32 %v8735_v61, 16  ;;  %v11508_v61 = vld [vmem:[#allocation2] sm:$0xee] }
  0xe0   : > { %15037 = vst [vmem:[#allocation8_spill] sm:$0xff] %v12555_v6  ;;  %v1081_v52 = vpop.permute.xlu0 %1080  ;;  %2712 = vmatpush1.bf16.msra.mxu1 %v10881_v19  ;;  %4166 = vmatpush1.bf16.msra.mxu0 %v10884_v49  ;;  %v1053_v19 = vshrl.u32 %v8734_v50, 16  ;;  %v1055_v49 = vshll.u32 %v8734_v50, 16  ;;  %v10899_v50 = vld [vmem:[%s15003_s3 + $0x2d0] ss:$12 sps:$4 sm:$0xff]  }
  0xe1   : > { %v12573_v45 = vsel %vm1110_vm8, %v12355_v1, %v1081_v52  ;;  %2713 = vmatprep.subr.bf16.mxu1 %v10889_v48  ;;  %4167 = vmatprep.subr.bf16.mxu0 %v10892_v12  ;;  %v1064_v10 = vrot.slane %v1062_v4, 1  ;;  %v10896_v1 = vld [vmem:[%s15003_s3 + $0x738] ss:$12 sps:$4 sm:$0xff]   ;;  %v10904_v12 = vld [vmem:[%s15003_s3 + $0x754] ss:$12 sps:$4 sm:$0xff]  }
  0xe2   : > { %v12576_v18 = vcombine.low %v1113_v29, %v12573_v45  ;;  %4175 = vmatprep.mubr.bf16.mxu0 %v12273_v35  ;;  %v10901_v29 = vld [vmem:[%s15003_s3 + $0x2d4] ss:$12 sps:$4 sm:$0xff]   ;;  %v1057_v48 = vrot.slane %v1055_v49, 1  ;;  %v10902_v52 = vld [vmem:[%s15003_s3 + $0x750] ss:$12 sps:$4 sm:$0xff]  }
  0xe3   : > { %v1065_v4 = vor.u32 %v1064_v10, %v1060_v16  ;;  %v11509_v10 = vld [vmem:[#allocation2 + $0x10] sm:$0xee] }
  0xe4   : > { %v12582_v3 = vpop.permute.xlu0 %1088  ;;  %2714 = vmatpush1.bf16.msra.mxu1 %v10887_v2  ;;  %4168 = vmatpush1.bf16.msra.mxu0 %v10890_v20  ;;  %v8737_v2 = vcombine.high %v11508_v61, %v12254_v25  ;;  %v1058_v20 = vor.u32 %v1057_v48, %v1053_v19  ;;  %v10907_v25 = vld [vmem:[%s15003_s3 + $0x2ec] ss:$12 sps:$4 sm:$0xff]   ;;  %v8739_v16 = vcombine.high %v11509_v10, %v12258_v56  ;;  %v10905_v48 = vld [vmem:[%s15003_s3 + $0x2e8] ss:$12 sps:$4 sm:$0xff]   ;;  %v11510_v56 = vld [vmem:[#allocation2 + $0x20] sm:$0xee] }
  0xe5   : > { %2715 = vmatprep.subr.bf16.mxu1 %v10895_v39  ;;  %4169 = vmatprep.subr.bf16.mxu0 %v10898_v24  ;;  %v1085_v39 = vpop.permute.xlu1 %1084  ;;  %v10910_v19 = vld [vmem:[%s15003_s3 + $0x76c] ss:$12 sps:$4 sm:$0xff]   ;;  %v10916_v61 = vld [vmem:[%s15003_s3 + $0x784] ss:$12 sps:$4 sm:$0xff]  }
  0xe6   : > { %1108 = vrot.lane.b32.xlu1 %v1065_v4, %s11534_s28  ;;  %v1178_v49 = vrot.slane %v8737_v2, 1  ;;  %1106 = vrot.lane.b32.xlu0 %v1058_v20, %s11534_s28  ;;  %v1180_v4 = vrot.slane %v8739_v16, 1  ;;  %v11511_v10 = vld [vmem:[#allocation2 + $0x30] sm:$0xee]  ;;  %v10914_v16 = vld [vmem:[%s15003_s3 + $0x780] ss:$12 sps:$4 sm:$0xff]  }
  0xe7   : > { %v10942_v35 = vld [vmem:[%s15003_s3 + $0x7e4] ss:$12 sps:$4 sm:$0xff]  }
  0xe8   : > { %v12601_v24 = vpop.permute.xlu0 %1096  ;;  %2716 = vmatpush1.bf16.msra.mxu1 %v10893_v55  ;;  %4170 = vmatpush1.bf16.msra.mxu0 %v10896_v1  ;;  %v10908_v55 = vld [vmem:[%s15003_s3 + $0x768] ss:$12 sps:$4 sm:$0xff]  }
  0xe9   : > { %2717 = vmatprep.subr.bf16.mxu1 %v10901_v29  ;;  %4171 = vmatprep.subr.bf16.mxu0 %v10904_v12  ;;  %v8741_v29 = vcombine.high %v11510_v56, %v12262_v7  ;;  %v10913_v12 = vld [vmem:[%s15003_s3 + $0x304] ss:$12 sps:$4 sm:$0xff]   ;;  %v12626_v2 = vpop.permute.xlu1 %1092  ;;  %v10911_v7 = vld [vmem:[%s15003_s3 + $0x300] ss:$12 sps:$4 sm:$0xff]   ;;  %v10922_v56 = vld [vmem:[%s15003_s3 + $0x79c] ss:$12 sps:$4 sm:$0xff]  }
  0xec   : > { %v12617_v1 = vpop.permute.xlu0 %1430  ;;  %2718 = vmatpush1.bf16.msra.mxu1 %v10899_v50  ;;  %4172 = vmatpush1.bf16.msra.mxu0 %v10902_v52  ;;  %v1182_v52 = vrot.slane %v8741_v29, 1  ;;  %v10917_v29 = vld [vmem:[%s15003_s3 + $0x318] ss:$12 sps:$4 sm:$0xff]  }
  0xed   : > { %2719 = vmatprep.subr.bf16.mxu1 %v10907_v25  ;;  %4173 = vmatprep.subr.bf16.mxu0 %v10910_v19  ;;  %v1521_v20 = vsel %vm1110_vm8, %v1178_v49, %v12617_v1  ;;  %v8743_v25 = vcombine.high %v11511_v10, %v12277_v63  ;;  %v10919_v49 = vld [vmem:[%s15003_s3 + $0x31c] ss:$12 sps:$4 sm:$0xff]  }
  0xf0   : > { %v12633_v50 = vpop.permute.xlu0 %1434  ;;  %2720 = vmatpush1.bf16.msra.mxu1 %v10905_v48  ;;  %4174 = vmatpush1.bf16.msra.mxu0 %v10908_v55  ;;  %v11512_v48 = vld [vmem:[#allocation2 + $0x40] sm:$0xee] }
  0xf1   : > { %v1524_v19 = vsel %vm1110_vm8, %v1180_v4, %v12633_v50  ;;  %2762 = vmatprep.subr.bf16.mxu1 %v10913_v12  ;;  %4216 = vmatprep.subr.bf16.mxu0 %v10916_v61  ;;  %v8745_v55 = vcombine.high %v11512_v48, %v12281_v21  ;;  %v12655_v12 = vpop.permute.xlu1 %1432  ;;  %v1184_v61 = vrot.slane %v8743_v25, 1  ;;  %v10927_v21 = vld [vmem:[%s15003_s3 + $0x334] ss:$12 sps:$4 sm:$0xff]  }
  0xf2   : > { %v12647_v63 = vcombine.low %v1521_v20, %v1524_v19  ;;  %v10920_v20 = vld [vmem:[%s15003_s3 + $0x798] ss:$12 sps:$4 sm:$0xff]   ;;  %v10930_v48 = vld [vmem:[%s15003_s3 + $0x7b4] ss:$12 sps:$4 sm:$0xff]  }
  0xf3   : > { %2722 = vmatmul.mubr.bf16.vlgmr.msra.gmra.mrb[0].mxu1 %v12553_v15  ;;  %4176 = vmatmul.mubr.bf16.vlgmr.msra.gmra.mrb[0].mxu0 %v12555_v6 }
  0xf4   : > { %v12657_v4 = vpop.permute.xlu0 %1438  ;;  %2763 = vmatpush1.bf16.msra.mxu1 %v10911_v7  ;;  %4217 = vmatpush1.bf16.msra.mxu0 %v10914_v16  ;;  %v1115_v7 = vsel %vm1110_vm8, %v12383_v17, %v1085_v39  ;;  %v10925_v16 = vld [vmem:[%s15003_s3 + $0x330] ss:$12 sps:$4 sm:$0xff]   ;;  %v10933_v17 = vld [vmem:[%s15003_s3 + $0x34c] ss:$12 sps:$4 sm:$0xff]  }
  0xf5   : > { %v1527_v10 = vsel %vm1110_vm8, %v1182_v52, %v12657_v4  ;;  %2764 = vmatprep.subr.bf16.mxu1 %v10919_v49  ;;  %4218 = vmatprep.subr.bf16.mxu0 %v10922_v56  ;;  %v1186_v52 = vrot.slane %v8745_v55, 1  ;;  %v10928_v49 = vld [vmem:[%s15003_s3 + $0x7b0] ss:$12 sps:$4 sm:$0xff]   ;;  %v12688_v39 = vcombine.low %v12573_v45, %v1115_v7  ;;  %v10931_v45 = vld [vmem:[%s15003_s3 + $0x348] ss:$12 sps:$4 sm:$0xff]  }
  0xf6   : > { %v12672_v25 = vcombine.low %v1524_v19, %v1527_v10  ;;  %2731 = vmatprep.mubr.bf16.mxu1 %v12295_v22  ;;  %4185 = vmatprep.mubr.bf16.mxu0 %v12297_v51  ;;  %v11514_v55 = vld [vmem:[#allocation2 + $0x50] sm:$0xee] }
  0xf7   : > { %15038 = vst [vmem:[#allocation9_spill] sm:$0xff] %v12688_v39  ;;  %v8747_v5 = vcombine.high %v11514_v55, %v11513_v59  ;;  %v10934_v59 = vld [vmem:[%s15003_s3 + $0x7c8] ss:$12 sps:$4 sm:$0xff]  }
  0xf8   : > { %v12682_v56 = vpop.permute.xlu0 %1442  ;;  %2765 = vmatpush1.bf16.msra.mxu1 %v10917_v29  ;;  %4219 = vmatpush1.bf16.msra.mxu0 %v10920_v20  ;;  %v10936_v29 = vld [vmem:[%s15003_s3 + $0x7cc] ss:$12 sps:$4 sm:$0xff]   ;;  %v1101_v20 = vpop.permute.xlu1 %1100 }
  0xf9   : > { %v1530_v19 = vsel %vm1110_vm8, %v1184_v61, %v12682_v56  ;;  %2766 = vmatprep.subr.bf16.mxu1 %v10927_v21  ;;  %4220 = vmatprep.subr.bf16.mxu0 %v10930_v48  ;;  %v10939_v21 = vld [vmem:[%s15003_s3 + $0x364] ss:$12 sps:$4 sm:$0xff]   ;;  %v1188_v48 = vrot.slane %v8747_v5, 1  ;;  %v11515_v55 = vld [vmem:[#allocation2 + $0x68] sm:$0x11] }
  0xfa   : > { %v12695_v51 = vcombine.low %v1527_v10, %v1530_v19  ;;  %v10937_v5 = vld [vmem:[%s15003_s3 + $0x360] ss:$12 sps:$4 sm:$0xff]  }
  0xfb   : > { %2732 = vmatmul.mubr.bf16.gmra.mrb[4].mxu1 %v12576_v18  ;;  %4186 = vmatmul.mubr.bf16.gmra.mrb[4].mxu0 %v12688_v39  ;;  %v11516_v39 = vld [vmem:[#allocation2 + $0x60] sm:$0xee] }
  0xfc   : > { %v12705_v61 = vpop.permute.xlu0 %1446  ;;  %2767 = vmatpush1.bf16.msra.mxu1 %v10925_v16  ;;  %4221 = vmatpush1.bf16.msra.mxu0 %v10928_v49  ;;  %v8749_v6 = vcombine.high %v11516_v39, %v11515_v55  ;;  %v1116_v16 = vsel %vm1110_vm8, %v12418_v0, %v12582_v3  ;;  %v1117_v49 = vsel %vm1110_vm8, %v12450_v60, %v12626_v2  ;;  %v10940_v3 = vld [vmem:[%s15003_s3 + $0x7e0] ss:$12 sps:$4 sm:$0xff]   ;;  %v1437_v0 = vpop.permute.xlu1 %1436  ;;  %v10945_v2 = vld [vmem:[%s15003_s3 + $0x37c] ss:$12 sps:$4 sm:$0xff]  }
  0xfd   : > { %v1533_v10 = vsel %vm1110_vm8, %v1186_v52, %v12705_v61  ;;  %2768 = vmatprep.subr.bf16.mxu1 %v10933_v17  ;;  %4222 = vmatprep.subr.bf16.mxu0 %v10936_v29  ;;  %v15039_v52 = vcombine.low %v12236_v23, %v12067_v54  ;;  %v12741_v39 = vcombine.low %v1115_v7, %v1116_v16 }
  0xfe   : > { %v12721_v30 = vcombine.low %v1530_v19, %v1533_v10  ;;  %2741 = vmatprep.mubr.bf16.mxu1 %v12301_v31  ;;  %4195 = vmatprep.mubr.bf16.mxu0 %v12303_v33  ;;  %v12743_v19 = vcombine.low %v1116_v16, %v1117_v49  ;;  %v1190_v55 = vrot.slane %v8749_v6, 1  ;;  %v10943_v6 = vld [vmem:[%s15003_s3 + $0x378] ss:$12 sps:$4 sm:$0xff]   ;;  %v12782_v16 = vsel %vm1110_vm8, %v12515_v58, %v1101_v20  ;;  %v10949_v58 = vld [vmem:[%s15003_s3 + $0x390] ss:$12 sps:$4 sm:$0xff]  }
  0xff   : > { %v12731_v17 = vrot.slane %v15039_v52, 1  ;;  %v10948_v52 = vld [vmem:[%s15003_s3 + $0x7fc] ss:$12 sps:$4 sm:$0xff]   ;;  %v15041_v20 = vcombine.high %v12236_v23, %v12067_v54  ;;  %v10960_v54 = vld [vmem:[%s15003_s3 + $0x82c] ss:$12 sps:$4 sm:$0xff]  }
 0x100   : > { %v12736_v60 = vpop.permute.xlu0 %1450  ;;  %2769 = vmatpush1.bf16.msra.mxu1 %v10931_v45  ;;  %4223 = vmatpush1.bf16.msra.mxu0 %v10934_v59 }
 0x101   : > { %v1536_v29 = vsel %vm1110_vm8, %v1188_v48, %v12736_v60  ;;  %2770 = vmatprep.subr.bf16.mxu1 %v10939_v21  ;;  %4224 = vmatprep.subr.bf16.mxu0 %v10942_v35  ;;  %v12754_v59 = vcombine.low %v12299_v27, %v12731_v17  ;;  %v15040_v35 = vcombine.high %v12231_v42, %v11992_v53  ;;  %v10946_v27 = vld [vmem:[%s15003_s3 + $0x7f8] ss:$12 sps:$4 sm:$0xff]   ;;  %v10951_v48 = vld [vmem:[%s15003_s3 + $0x394] ss:$12 sps:$4 sm:$0xff]  }
 0x102   : > { %v12750_v45 = vcombine.low %v1533_v10, %v1536_v29  ;;  %v10954_v53 = vld [vmem:[%s15003_s3 + $0x814] ss:$12 sps:$4 sm:$0xff]   ;;  %v1118_v42 = vsel %vm1110_vm8, %v12474_v14, %v12601_v24 }
 0x103   : > { %2742 = vmatmul.mubr.bf16.gmra.mrb[8].mxu1 %v12741_v39  ;;  %4196 = vmatmul.mubr.bf16.gmra.mrb[8].mxu0 %v12743_v19  ;;  %v1192_v21 = vrot.slane %v15040_v35, 1  ;;  %v10958_v35 = vld [vmem:[%s15003_s3 + $0x828] ss:$12 sps:$4 sm:$0xff]  }
 0x104   : > { %v12761_v7 = vpop.permute.xlu0 %1454  ;;  %2771 = vmatpush1.bf16.msra.mxu1 %v10937_v5  ;;  %4225 = vmatpush1.bf16.msra.mxu0 %v10940_v3  ;;  %v1441_v5 = vpop.permute.xlu1 %1440 }
 0x105   : > { %v1539_v10 = vsel %vm1110_vm8, %v1190_v55, %v12761_v7  ;;  %2772 = vmatprep.subr.bf16.mxu1 %v10945_v2  ;;  %4226 = vmatprep.subr.bf16.mxu0 %v10948_v52  ;;  %v1474_v2 = vsel %vm1110_vm8, %v12617_v1, %v12655_v12  ;;  %v1475_v55 = vsel %vm1110_vm8, %v12633_v50, %v1437_v0  ;;  %v10952_v1 = vld [vmem:[%s15003_s3 + $0x810] ss:$12 sps:$4 sm:$0xff]   ;;  %v10957_v50 = vld [vmem:[%s15003_s3 + $0x3ac] ss:$12 sps:$4 sm:$0xff]  }
 0x106   : > { %v12784_v3 = vcombine.low %v1536_v29, %v1539_v10  ;;  %2751 = vmatprep.mubr.bf16.mxu1 %v12307_v57  ;;  %4205 = vmatprep.mubr.bf16.mxu0 %v12754_v59  ;;  %v12795_v14 = vsel %vm1110_vm8, %v12657_v4, %v1441_v5  ;;  %v1194_v29 = vrot.slane %v15041_v20, 1  ;;  %v12811_v12 = vcombine.low %v1117_v49, %v1118_v42  ;;  %v10955_v49 = vld [vmem:[%s15003_s3 + $0x3a8] ss:$12 sps:$4 sm:$0xff]   ;;  %v10964_v5 = vld [vmem:[%s15003_s3 + $0x840] ss:$12 sps:$4 sm:$0xff]  }
 0x107   : > { %v12814_v4 = vcombine.low %v1118_v42, %v12782_v16  ;;  %v12821_v23 = vcombine.low %v1474_v2, %v1475_v55  ;;  %v12824_v52 = vcombine.low %v1475_v55, %v12795_v14  ;;  %v10961_v42 = vld [vmem:[%s15003_s3 + $0x3c0] ss:$12 sps:$4 sm:$0xff]   ;;  %v10969_v2 = vld [vmem:[%s15003_s3 + $0x3dc] ss:$12 sps:$4 sm:$0xff]   ;;  %v10970_v20 = vld [vmem:[%s15003_s3 + $0x858] ss:$12 sps:$4 sm:$0xff]  }
 0x108   : > { %v12800_v24 = vpop.permute.xlu0 %1458  ;;  %2773 = vmatpush1.bf16.msra.mxu1 %v10943_v6  ;;  %4227 = vmatpush1.bf16.msra.mxu0 %v10946_v27  ;;  %v10963_v27 = vld [vmem:[%s15003_s3 + $0x3c4] ss:$12 sps:$4 sm:$0xff]   ;;  %v10972_v55 = vld [vmem:[%s15003_s3 + $0x85c] ss:$12 sps:$4 sm:$0xff]  }
 0x109   : > { %v1542_v0 = vsel %vm1110_vm8, %v1192_v21, %v12800_v24  ;;  %2774 = vmatprep.subr.bf16.mxu1 %v10951_v48  ;;  %4228 = vmatprep.subr.bf16.mxu0 %v10954_v53  ;;  %v10966_v48 = vld [vmem:[%s15003_s3 + $0x844] ss:$12 sps:$4 sm:$0xff]  }
 0x10a   : > { %v12826_v6 = vcombine.low %v1539_v10, %v1542_v0 }
 0x10b   : > { %2752 = vmatmul.mubr.bf16.gmra.mrb[12].mxu1 %v12811_v12  ;;  %4206 = vmatmul.mubr.bf16.gmra.mrb[12].mxu0 %v12814_v4 }
 0x10c   : > { %v12836_v21 = vpop.permute.xlu0 %1462  ;;  %2775 = vmatpush1.bf16.msra.mxu1 %v10949_v58  ;;  %4229 = vmatpush1.bf16.msra.mxu0 %v10952_v1  ;;  %v10967_v58 = vld [vmem:[%s15003_s3 + $0x3d8] ss:$12 sps:$4 sm:$0xff]   ;;  %v10978_v1 = vld [vmem:[%s15003_s3 + $0x874] ss:$12 sps:$4 sm:$0xff]  }
 0x10d   : > { %v12843_v10 = vsel %vm1110_vm8, %v1194_v29, %v12836_v21  ;;  %2776 = vmatprep.subr.bf16.mxu1 %v10957_v50  ;;  %4230 = vmatprep.subr.bf16.mxu0 %v10960_v54  ;;  %v10975_v29 = vld [vmem:[%s15003_s3 + $0x3f4] ss:$12 sps:$4 sm:$0xff]   ;;  %v10973_v50 = vld [vmem:[%s15003_s3 + $0x3f0] ss:$12 sps:$4 sm:$0xff]   ;;  %v10981_v54 = vld [vmem:[%s15003_s3 + $0x40c] ss:$12 sps:$4 sm:$0xff]  }
 0x10e   : > { %v12849_v53 = vcombine.low %v1542_v0, %v12843_v10  ;;  %2794 = vmatprep.mubr.bf16.mxu1 %v12821_v23  ;;  %4248 = vmatprep.mubr.bf16.mxu0 %v12824_v52  ;;  %v10976_v0 = vld [vmem:[%s15003_s3 + $0x870] ss:$12 sps:$4 sm:$0xff]  }
 0x110   : > { %2777 = vmatpush1.bf16.msra.mxu1 %v10955_v49  ;;  %4231 = vmatpush1.bf16.msra.mxu0 %v10958_v35  ;;  %v10984_v49 = vld [vmem:[%s15003_s3 + $0x88c] ss:$12 sps:$4 sm:$0xff]   ;;  %v10979_v35 = vld [vmem:[%s15003_s3 + $0x408] ss:$12 sps:$4 sm:$0xff]  }
 0x111   : > { %2778 = vmatprep.subr.bf16.mxu1 %v10963_v27  ;;  %4232 = vmatprep.subr.bf16.mxu0 %v10966_v48  ;;  %v10982_v27 = vld [vmem:[%s15003_s3 + $0x888] ss:$12 sps:$4 sm:$0xff]   ;;  %v10987_v48 = vld [vmem:[%s15003_s3 + $0x424] ss:$12 sps:$4 sm:$0xff]  }
 0x114   : > { %2779 = vmatpush1.bf16.msra.mxu1 %v10961_v42  ;;  %4233 = vmatpush1.bf16.msra.mxu0 %v10964_v5  ;;  %v10990_v42 = vld [vmem:[%s15003_s3 + $0x8a4] ss:$12 sps:$4 sm:$0xff]   ;;  %v10985_v5 = vld [vmem:[%s15003_s3 + $0x420] ss:$12 sps:$4 sm:$0xff]  }
 0x115   : > { %2780 = vmatprep.subr.bf16.mxu1 %v10969_v2  ;;  %4234 = vmatprep.subr.bf16.mxu0 %v10972_v55  ;;  %v10988_v2 = vld [vmem:[%s15003_s3 + $0x8a0] ss:$12 sps:$4 sm:$0xff]   ;;  %v1445_v55 = vpop.permute.xlu1 %1444 }
 0x118   : > { %2781 = vmatpush1.bf16.msra.mxu1 %v10967_v58  ;;  %4235 = vmatpush1.bf16.msra.mxu0 %v10970_v20  ;;  %v10993_v58 = vld [vmem:[%s15003_s3 + $0x43c] ss:$12 sps:$4 sm:$0xff]  }
 0x119   : > { %2782 = vmatprep.subr.bf16.mxu1 %v10975_v29  ;;  %4236 = vmatprep.subr.bf16.mxu0 %v10978_v1  ;;  %v10996_v20 = vld [vmem:[%s15003_s3 + $0x8bc] ss:$12 sps:$4 sm:$0xff]   ;;  %v10991_v29 = vld [vmem:[%s15003_s3 + $0x438] ss:$12 sps:$4 sm:$0xff]  }
 0x11a   : > { %v10994_v1 = vld [vmem:[%s15003_s3 + $0x8b8] ss:$12 sps:$4 sm:$0xff]  }
 0x11c   : > { %2783 = vmatpush1.bf16.msra.mxu1 %v10973_v50  ;;  %4237 = vmatpush1.bf16.msra.mxu0 %v10976_v0  ;;  %v10999_v50 = vld [vmem:[%s15003_s3 + $0x454] ss:$12 sps:$4 sm:$0xff]  }
 0x11d   : > { %2784 = vmatprep.subr.bf16.mxu1 %v10981_v54  ;;  %4238 = vmatprep.subr.bf16.mxu0 %v10984_v49  ;;  %v11002_v0 = vld [vmem:[%s15003_s3 + $0x8d4] ss:$12 sps:$4 sm:$0xff]   ;;  %v1449_v54 = vpop.permute.xlu1 %1448  ;;  %v10997_v49 = vld [vmem:[%s15003_s3 + $0x450] ss:$12 sps:$4 sm:$0xff]  }
 0x120   : > { %2785 = vmatpush1.bf16.msra.mxu1 %v10979_v35  ;;  %4239 = vmatpush1.bf16.msra.mxu0 %v10982_v27  ;;  %v11000_v35 = vld [vmem:[%s15003_s3 + $0x8d0] ss:$12 sps:$4 sm:$0xff]   ;;  %v11005_v27 = vld [vmem:[%s15003_s3 + $0x46c] ss:$12 sps:$4 sm:$0xff]  }
 0x121   : > { %2786 = vmatprep.subr.bf16.mxu1 %v10987_v48  ;;  %4240 = vmatprep.subr.bf16.mxu0 %v10990_v42  ;;  %v11008_v48 = vld [vmem:[%s15003_s3 + $0x8ec] ss:$12 sps:$4 sm:$0xff]   ;;  %v11003_v42 = vld [vmem:[%s15003_s3 + $0x468] ss:$12 sps:$4 sm:$0xff]  }
 0x124   : > { %2787 = vmatpush1.bf16.msra.mxu1 %v10985_v5  ;;  %4241 = vmatpush1.bf16.msra.mxu0 %v10988_v2  ;;  %v1453_v5 = vpop.permute.xlu1 %1452  ;;  %v11006_v2 = vld [vmem:[%s15003_s3 + $0x8e8] ss:$12 sps:$4 sm:$0xff]  }
 0x125   : > { %2788 = vmatprep.subr.bf16.mxu1 %v10993_v58  ;;  %4242 = vmatprep.subr.bf16.mxu0 %v10996_v20  ;;  %v11009_v58 = vld [vmem:[%s15003_s3 + $0xc8] ss:$12 sps:$4 sm:$0xff]   ;;  %v11012_v20 = vld [vmem:[%s15003_s3 + $0x904] ss:$12 sps:$4 sm:$0xff]  }
 0x128   : > { %2789 = vmatpush1.bf16.msra.mxu1 %v10991_v29  ;;  %4243 = vmatpush1.bf16.msra.mxu0 %v10994_v1  ;;  %v1477_v29 = vsel %vm1110_vm8, %v12682_v56, %v1445_v55  ;;  %v1478_v1 = vsel %vm1110_vm8, %v12705_v61, %v1449_v54  ;;  %v11014_v56 = vld [vmem:[%s15003_s3 + $0xe0] ss:$12 sps:$4 sm:$0xff]   ;;  %v1457_v55 = vpop.permute.xlu1 %1456  ;;  %v11015_v54 = vld [vmem:[%s15003_s3 + $0x918] ss:$12 sps:$4 sm:$0xff]  }
 0x129   : > { %2790 = vmatprep.subr.bf16.mxu1 %v10999_v50  ;;  %4244 = vmatprep.subr.bf16.mxu0 %v11002_v0  ;;  %v11010_v50 = vld [vmem:[%s15003_s3 + $0x900] ss:$12 sps:$4 sm:$0xff]   ;;  %v11013_v0 = vld [vmem:[%s15003_s3 + $0x8] ss:$12 sps:$4 sm:$0xff]   ;;  %v12965_v61 = vcombine.low %v1477_v29, %v1478_v1 }
 0x12c   : > { %2791 = vmatpush1.bf16.msra.mxu1 %v10997_v49  ;;  %4245 = vmatpush1.bf16.msra.mxu0 %v11000_v35  ;;  %v12960_v49 = vcombine.low %v12795_v14, %v1477_v29  ;;  %v11017_v35 = vld [vmem:[%s15003_s3 + $0x91c] ss:$12 sps:$4 sm:$0xff]   ;;  %v11020_v14 = vld [vmem:[%s15003_s3 + $0x20] ss:$12 sps:$4 sm:$0xff]   ;;  %v11025_v29 = vld [vmem:[%s15003_s3 + $0x38] ss:$12 sps:$4 sm:$0xff]  }
 0x12d   : > { %2792 = vmatprep.subr.bf16.mxu1 %v11005_v27  ;;  %4246 = vmatprep.subr.bf16.mxu0 %v11008_v48  ;;  %v11021_v27 = vld [vmem:[%s15003_s3 + $0xf8] ss:$12 sps:$4 sm:$0xff]   ;;  %v11024_v48 = vld [vmem:[%s15003_s3 + $0x934] ss:$12 sps:$4 sm:$0xff]  }
 0x130   : > { %2793 = vmatpush1.bf16.msra.mxu1 %v11003_v42  ;;  %4247 = vmatpush1.bf16.msra.mxu0 %v11006_v2  ;;  %v1479_v42 = vsel %vm1110_vm8, %v12736_v60, %v1453_v5  ;;  %v1480_v2 = vsel %vm1110_vm8, %v12761_v7, %v1457_v55  ;;  %v11026_v60 = vld [vmem:[%s15003_s3 + $0x110] ss:$12 sps:$4 sm:$0xff]   ;;  %v11027_v5 = vld [vmem:[%s15003_s3 + $0x948] ss:$12 sps:$4 sm:$0xff]  }
 0x131   : > { %10029 = vmatprep.subr.bf16.mxu1 %v11009_v58  ;;  %5536 = vmatprep.subr.bf16.mxu0 %v11012_v20  ;;  %v11022_v58 = vld [vmem:[%s15003_s3 + $0x930] ss:$12 sps:$4 sm:$0xff]   ;;  %v1461_v20 = vpop.permute.xlu1 %1460  ;;  %v13001_v7 = vcombine.low %v1479_v42, %v1480_v2 }
 0x132   : > { %v11034_v55 = vld [vmem:[%s15003_s3 + $0x964] ss:$12 sps:$4 sm:$0xff]  }
 0x133   : > { %2795 = vmatmul.mubr.bf16.vlgmr.msra.gmra.mrb[0].mxu1 %v12647_v63  ;;  %4249 = vmatmul.mubr.bf16.vlgmr.msra.gmra.mrb[0].mxu0 %v12672_v25 }
 0x134   : > { %10030 = vmatpush3.bf16.msra.mxu1 %v11013_v0  ;;  %5537 = vmatpush1.bf16.msra.mxu0 %v11010_v50  ;;  %v12996_v50 = vcombine.low %v1478_v1, %v1479_v42  ;;  %v11029_v0 = vld [vmem:[%s15003_s3 + $0x94c] ss:$12 sps:$4 sm:$0xff]   ;;  %v11030_v1 = vld [vmem:[%s15003_s3 + $0x50] ss:$12 sps:$4 sm:$0xff]  }
 0x135   : > { %2804 = vmatprep.mubr.bf16.mxu1 %v12960_v49  ;;  %10031 = vmatprep.subr.bf16.mxu1 %v11014_v56  ;;  %v11031_v56 = vld [vmem:[%s15003_s3 + $0x128] ss:$12 sps:$4 sm:$0xff]  }
 0x136   : > { %5538 = vmatprep.subr.bf16.mxu0 %v11017_v35  ;;  %4258 = vmatprep.mubr.bf16.mxu0 %v12965_v61  ;;  %v1465_v35 = vpop.permute.xlu1 %1464 }
 0x138   : > { %10032 = vmatpush3.bf16.msra.mxu1 %v11020_v14  ;;  %5539 = vmatpush1.bf16.msra.mxu0 %v11015_v54  ;;  %v1481_v54 = vsel %vm1110_vm8, %v12800_v24, %v1461_v20  ;;  %v13026_v14 = vsel %vm1110_vm8, %v12836_v21, %v1465_v35  ;;  %v11036_v24 = vld [vmem:[%s15003_s3 + $0x140] ss:$12 sps:$4 sm:$0xff]   ;;  %v11039_v20 = vld [vmem:[%s15003_s3 + $0x97c] ss:$12 sps:$4 sm:$0xff]  }
 0x139   : > { %10033 = vmatprep.subr.bf16.mxu1 %v11021_v27  ;;  %5540 = vmatprep.subr.bf16.mxu0 %v11024_v48  ;;  %v11032_v27 = vld [vmem:[%s15003_s3 + $0x960] ss:$12 sps:$4 sm:$0xff]   ;;  %v11035_v48 = vld [vmem:[%s15003_s3 + $0x68] ss:$12 sps:$4 sm:$0xff]   ;;  %v13034_v42 = vcombine.low %v1480_v2, %v1481_v54  ;;  %v11037_v2 = vld [vmem:[%s15003_s3 + $0x978] ss:$12 sps:$4 sm:$0xff]  }
 0x13a   : > { %v519_v21 = vld [vmem:[#allocation2 + $0xa8] sm:$0x22] }
 0x13b   : > { %2805 = vmatmul.mubr.bf16.gmra.mrb[4].mxu1 %v12695_v51  ;;  %4259 = vmatmul.mubr.bf16.gmra.mrb[4].mxu0 %v12721_v30 }
 0x13c   : > { %10034 = vmatpush3.bf16.msra.mxu1 %v11025_v29  ;;  %5541 = vmatpush1.bf16.msra.mxu0 %v11022_v58  ;;  %v13040_v58 = vcombine.low %v1481_v54, %v13026_v14  ;;  %v520_v29 = vsel %vm11629_vm4, 0, %v519_v21  ;;  %v11049_v54 = vld [vmem:[%s15003_s3 + $0x9ac] ss:$12 sps:$4 sm:$0xff]   ;;  %v11050_v21 = vld [vmem:[%s15003_s3 + $0xb0] ss:$12 sps:$4 sm:$0xff]   ;;  %vm8538_vm4 = vcmask 1046534  }
 0x13d   : > { %2814 = vmatprep.mubr.bf16.mxu1 %v12996_v50  ;;  %10035 = vmatprep.subr.bf16.mxu1 %v11026_v60  ;;  %521 = vst [vmem:[#allocation2 + $0xa8] sm:$0x22] %v520_v29  ;;  %v11040_v60 = vld [vmem:[%s15003_s3 + $0x80] ss:$12 sps:$4 sm:$0xff]  }
 0x13e   : > { %5542 = vmatprep.subr.bf16.mxu0 %v11029_v0  ;;  %4268 = vmatprep.mubr.bf16.mxu0 %v13001_v7  ;;  %v11042_v0 = vld [vmem:[%s15003_s3 + $0x990] ss:$12 sps:$4 sm:$0xff]  }
 0x140   : > { %10036 = vmatpush3.bf16.msra.mxu1 %v11030_v1  ;;  %5543 = vmatpush1.bf16.msra.mxu0 %v11027_v5  ;;  %v11044_v5 = vld [vmem:[%s15003_s3 + $0x994] ss:$12 sps:$4 sm:$0xff]   ;;  %v11045_v1 = vld [vmem:[%s15003_s3 + $0x98] ss:$12 sps:$4 sm:$0xff]  }
 0x141   : > { %10037 = vmatprep.subr.bf16.mxu1 %v11031_v56  ;;  %5544 = vmatprep.subr.bf16.mxu0 %v11034_v55  ;;  %v11046_v56 = vld [vmem:[%s15003_s3 + $0x170] ss:$12 sps:$4 sm:$0xff]   ;;  %v801_v55 = vld [vmem:[#allocation2 + $0xa0] sm:$0xee] }
 0x143   : > { %2815 = vmatmul.mubr.bf16.gmra.mrb[8].mxu1 %v12750_v45  ;;  %4269 = vmatmul.mubr.bf16.gmra.mrb[8].mxu0 %v12784_v3 }
 0x144   : > { %10038 = vmatpush3.bf16.msra.mxu1 %v11035_v48  ;;  %5545 = vmatpush1.bf16.msra.mxu0 %v11032_v27  ;;  %v812_v35 = vld [vmem:[#allocation2 + $0xa8] sm:$0x33] }
 0x145   : > { %2824 = vmatprep.mubr.bf16.mxu1 %v13034_v42  ;;  %10039 = vmatprep.subr.bf16.mxu1 %v11036_v24  ;;  %v11047_v27 = vld [vmem:[%s15003_s3 + $0x9a8] ss:$12 sps:$4 sm:$0xff]   ;;  %v8779_v48 = vcombine.high %v801_v55, %v812_v35  ;;  %v8778_v24 = vcombine.low %v801_v55, %v812_v35 }
 0x146   : > { %5546 = vmatprep.subr.bf16.mxu0 %v11039_v20  ;;  %4278 = vmatprep.mubr.bf16.mxu0 %v13040_v58  ;;  %v11051_v20 = vld [vmem:[%s15003_s3 + $0x248] ss:$12 sps:$4 sm:$0xff]  }
 0x147   : > { %v1423_v29 = vshrl.u32 %v8779_v48, 16 }
 0x148   : > { %10040 = vmatpush3.bf16.msra.mxu1 %v11040_v60  ;;  %5547 = vmatpush1.bf16.msra.mxu0 %v11037_v2  ;;  %v1426_v2 = vshll.u32 %v8779_v48, 16  ;;  %v1415_v60 = vshrl.u32 %v8778_v24, 16  ;;  %v11055_v48 = vld [vmem:[%s15003_s3 + $0x188] ss:$12 sps:$4 sm:$0xff]  }
 0x149   : > { %10041 = vmatprep.subr.bf16.mxu1 %v11041_v26  ;;  %5548 = vmatprep.subr.bf16.mxu0 %v11044_v5  ;;  %v1418_v26 = vshll.u32 %v8778_v24, 16  ;;  %v11052_v5 = vld [vmem:[%s15003_s3 + $0x9c0] ss:$12 sps:$4 sm:$0xff]   ;;  %v11059_v24 = vld [vmem:[%s15003_s3 + $0x9dc] ss:$12 sps:$4 sm:$0xff]  }
 0x14a   : > { %v1428_v55 = vrot.slane %v1426_v2, 2  ;;  %v1417_v35 = vrot.slane %v1415_v60, 1  ;;  %v11062_v2 = vld [vmem:[%s15003_s3 + $0x9f0] ss:$12 sps:$4 sm:$0xff]   ;;  %v11065_v60 = vld [vmem:[%s15003_s3 + $0x1b8] ss:$12 sps:$4 sm:$0xff]  }
 0x14b   : > { %2825 = vmatmul.mubr.bf16.gmra.mrb[12].mxu1 %v12826_v6  ;;  %4279 = vmatmul.mubr.bf16.gmra.mrb[12].mxu0 %v12849_v53 }
 0x14c   : > { %10042 = vmatpush3.bf16.msra.mxu1 %v11045_v1  ;;  %2867 = vmatprep.mubr.bf16.mxu1 %v12335_v41  ;;  %v11054_v41 = vld [vmem:[%s15003_s3 + $0x9c4] ss:$12 sps:$4 sm:$0xff]   ;;  %v1425_v1 = vrot.slane %v1423_v29, 1 }
 0x14d   : > { %5549 = vmatpush1.bf16.msra.mxu0 %v11042_v0  ;;  %5568 = vmatprep.mubr.bf16.mxu0 %v12365_v9  ;;  %v1420_v0 = vrot.slane %v1418_v26, 2  ;;  %v11066_v26 = vld [vmem:[%s15003_s3 + $0x290] ss:$12 sps:$4 sm:$0xff]  }
 0x14e   : > { %10043 = vmatprep.subr.bf16.mxu1 %v11046_v56  ;;  %5550 = vmatprep.subr.bf16.mxu0 %v11049_v54  ;;  %v11056_v56 = vld [vmem:[%s15003_s3 + $0x260] ss:$12 sps:$4 sm:$0xff]   ;;  %v1429_v54 = vor.u32 %v1428_v55, %v1425_v1  ;;  %v11070_v1 = vld [vmem:[%s15003_s3 + $0x1d0] ss:$12 sps:$4 sm:$0xff]   ;;  %v11071_v55 = vld [vmem:[%s15003_s3 + $0x2a8] ss:$12 sps:$4 sm:$0xff]  }
 0x14f   : > { %v1421_v29 = vor.u32 %v1420_v0, %v1417_v35  ;;  %v11074_v35 = vld [vmem:[%s15003_s3 + $0xa24] ss:$12 sps:$4 sm:$0xff]   ;;  %v11075_v0 = vld [vmem:[%s15003_s3 + $0x1e8] ss:$12 sps:$4 sm:$0xff]  }
 0x150   : > { %10044 = vmatpush3.bf16.msra.mxu1 %v11050_v21  ;;  %1472 = vrot.lane.b32.xlu1 %v1429_v54, %s11534_s28  ;;  %v11060_v21 = vld [vmem:[%s15003_s3 + $0x1a0] ss:$12 sps:$4 sm:$0xff]   ;;  %v11079_v54 = vld [vmem:[%s15003_s3 + $0xa3c] ss:$12 sps:$4 sm:$0xff]  }
 0x151   : > { %5551 = vmatpush1.bf16.msra.mxu0 %v11047_v27  ;;  %10069 = vmatprep.subr.bf16.mxu1 %v11051_v20  ;;  %v11057_v27 = vld [vmem:[%s15003_s3 + $0x9d8] ss:$12 sps:$4 sm:$0xff]  }
 0x152   : > { %5552 = vmatprep.subr.bf16.mxu0 %v11054_v41  ;;  %v11061_v20 = vld [vmem:[%s15003_s3 + $0x278] ss:$12 sps:$4 sm:$0xff]   ;;  %1470 = vrot.lane.b32.xlu0 %v1421_v29, %s11534_s28  ;;  %v11080_v29 = vld [vmem:[%s15003_s3 + $0x200] ss:$12 sps:$4 sm:$0xff]  }
 0x153   : > { %2868 = vmatmul.mubr.bf16.vlgmr.msra.gmra.mrb[16].mxu1 %v12331_v34  ;;  %v11064_v34 = vld [vmem:[%s15003_s3 + $0x9f4] ss:$12 sps:$4 sm:$0xff]   ;;  %v11069_v41 = vld [vmem:[%s15003_s3 + $0xa0c] ss:$12 sps:$4 sm:$0xff]  }
 0x154   : > { %2875 = vmatprep.mubr.bf16.mxu1 %v12365_v9  ;;  %10070 = vmatpush3.bf16.msra.mxu1 %v11055_v48  ;;  %v11072_v48 = vld [vmem:[%s15003_s3 + $0xa20] ss:$12 sps:$4 sm:$0xff]  }
 0x155   : > { %5553 = vmatpush1.bf16.msra.mxu0 %v11052_v5  ;;  %10071 = vmatprep.subr.bf16.mxu1 %v11056_v56  ;;  %v11067_v5 = vld [vmem:[%s15003_s3 + $0xa08] ss:$12 sps:$4 sm:$0xff]   ;;  %v11076_v56 = vld [vmem:[%s15003_s3 + $0x2c0] ss:$12 sps:$4 sm:$0xff]  }
 0x156   : > { %5554 = vmatprep.subr.bf16.mxu0 %v11059_v24  ;;  %v11077_v24 = vld [vmem:[%s15003_s3 + $0xa38] ss:$12 sps:$4 sm:$0xff]  }
 0x158   : > { %10072 = vmatpush3.bf16.msra.mxu1 %v11060_v21  ;;  %v11084_v21 = vld [vmem:[%s15003_s3 + $0xa54] ss:$12 sps:$4 sm:$0xff]  }
 0x159   : > { %5555 = vmatpush1.bf16.msra.mxu0 %v11057_v27  ;;  %10073 = vmatprep.subr.bf16.mxu1 %v11061_v20  ;;  %v11081_v27 = vld [vmem:[%s15003_s3 + $0x2d8] ss:$12 sps:$4 sm:$0xff]   ;;  %v11082_v20 = vld [vmem:[%s15003_s3 + $0xa50] ss:$12 sps:$4 sm:$0xff]  }
 0x15a   : > { %5556 = vmatprep.subr.bf16.mxu0 %v11064_v34  ;;  %v11085_v34 = vld [vmem:[%s15003_s3 + $0x218] ss:$12 sps:$4 sm:$0xff]  }
 0x15b   : > { %2876 = vmatmul.mubr.bf16.gmra.mrb[20].mxu1 %v12373_v11 }
 0x15c   : > { %2883 = vmatprep.mubr.bf16.mxu1 %v12431_v40  ;;  %10074 = vmatpush3.bf16.msra.mxu1 %v11065_v60  ;;  %v11089_v60 = vld [vmem:[%s15003_s3 + $0xa6c] ss:$12 sps:$4 sm:$0xff]  }
 0x15d   : > { %5557 = vmatpush1.bf16.msra.mxu0 %v11062_v2  ;;  %10075 = vmatprep.subr.bf16.mxu1 %v11066_v26  ;;  %v11086_v2 = vld [vmem:[%s15003_s3 + $0x2f0] ss:$12 sps:$4 sm:$0xff]   ;;  %v11087_v26 = vld [vmem:[%s15003_s3 + $0xa68] ss:$12 sps:$4 sm:$0xff]  }
 0x15e   : > { %5558 = vmatprep.subr.bf16.mxu0 %v11069_v41  ;;  %v11090_v41 = vld [vmem:[%s15003_s3 + $0x230] ss:$12 sps:$4 sm:$0xff]  }
 0x160   : > { %10076 = vmatpush3.bf16.msra.mxu1 %v11070_v1  ;;  %v11094_v1 = vld [vmem:[%s15003_s3 + $0xa84] ss:$12 sps:$4 sm:$0xff]  }
 0x161   : > { %5559 = vmatpush1.bf16.msra.mxu0 %v11067_v5  ;;  %10077 = vmatprep.subr.bf16.mxu1 %v11071_v55  ;;  %v11091_v5 = vld [vmem:[%s15003_s3 + $0x3c8] ss:$12 sps:$4 sm:$0xff]  }
 0x162   : > { %5560 = vmatprep.subr.bf16.mxu0 %v11074_v35  ;;  %v11095_v55 = vld [vmem:[%s15003_s3 + $0x308] ss:$12 sps:$4 sm:$0xff]   ;;  %v11096_v35 = vld [vmem:[%s15003_s3 + $0x3e0] ss:$12 sps:$4 sm:$0xff]  }
 0x163   : > { %2884 = vmatmul.mubr.bf16.gmra.mrb[24].mxu1 %v12429_v43 }
 0x164   : > { %2891 = vmatprep.mubr.bf16.mxu1 %v12488_v28  ;;  %10078 = vmatpush3.bf16.msra.mxu1 %v11075_v0  ;;  %v11099_v0 = vld [vmem:[%s15003_s3 + $0xa9c] ss:$12 sps:$4 sm:$0xff]  }
 0x165   : > { %5561 = vmatpush1.bf16.msra.mxu0 %v11072_v48  ;;  %10079 = vmatprep.subr.bf16.mxu1 %v11076_v56  ;;  %v11100_v48 = vld [vmem:[%s15003_s3 + $0x320] ss:$12 sps:$4 sm:$0xff]   ;;  %v11097_v56 = vld [vmem:[%s15003_s3 + $0xa98] ss:$12 sps:$4 sm:$0xff]  }
 0x166   : > { %5562 = vmatprep.subr.bf16.mxu0 %v11079_v54  ;;  %v11101_v54 = vld [vmem:[%s15003_s3 + $0x3f8] ss:$12 sps:$4 sm:$0xff]  }
 0x168   : > { %10080 = vmatpush3.bf16.msra.mxu1 %v11080_v29  ;;  %v11105_v29 = vld [vmem:[%s15003_s3 + $0x338] ss:$12 sps:$4 sm:$0xff]  }
 0x169   : > { %5563 = vmatpush1.bf16.msra.mxu0 %v11077_v24  ;;  %10081 = vmatprep.subr.bf16.mxu1 %v11081_v27  ;;  %v11102_v24 = vld [vmem:[%s15003_s3 + $0xab0] ss:$12 sps:$4 sm:$0xff]  }
 0x16a   : > { %5564 = vmatprep.subr.bf16.mxu0 %v11084_v21  ;;  %v11106_v27 = vld [vmem:[%s15003_s3 + $0x410] ss:$12 sps:$4 sm:$0xff]   ;;  %v11109_v21 = vld [vmem:[%s15003_s3 + $0xacc] ss:$12 sps:$4 sm:$0xff]  }
 0x16b   : > { %2892 = vmatmul.mubr.bf16.gmra.mrb[28].mxu1 %v12493_v32 }
 0x16c   : > { %10082 = vmatpush3.bf16.msra.mxu1 %v11085_v34  ;;  %2932 = vmatprep.mubr.bf16.mxu1 %v12271_v37  ;;  %v11092_v37 = vld [vmem:[%s15003_s3 + $0xa80] ss:$12 sps:$4 sm:$0xff]   ;;  %v11517_v34 = vld [vmem:[#allocation2 + $0x90] sm:$0xff] }
 0x16d   : > { %5565 = vmatpush1.bf16.msra.mxu0 %v11082_v20  ;;  %10083 = vmatprep.subr.bf16.mxu1 %v11086_v2  ;;  %v11110_v20 = vld [vmem:[%s15003_s3 + $0x350] ss:$12 sps:$4 sm:$0xff]   ;;  %v8712_v2 = vcombine.high %v11517_v34, %v11517_v34 }
 0x16e   : > { %5566 = vmatprep.subr.bf16.mxu0 %v11089_v60  ;;  %v13242_v60 = vpop.permute.xlu0 %1102 }
 0x170   : > { %10084 = vmatpush3.bf16.msra.mxu1 %v11090_v41  ;;  %v11111_v41 = vld [vmem:[%s15003_s3 + $0x428] ss:$12 sps:$4 sm:$0xff]  }
 0x171   : > { %5567 = vmatpush1.bf16.msra.mxu0 %v11087_v26  ;;  %10109 = vmatprep.subr.bf16.mxu1 %v11091_v5  ;;  %v11107_v26 = vld [vmem:[%s15003_s3 + $0xac8] ss:$12 sps:$4 sm:$0xff]   ;;  %v11114_v5 = vld [vmem:[%s15003_s3 + $0xae4] ss:$12 sps:$4 sm:$0xff]  }
 0x172   : > { %5609 = vmatprep.subr.bf16.mxu0 %v11094_v1  ;;  %v11112_v1 = vld [vmem:[%s15003_s3 + $0xae0] ss:$12 sps:$4 sm:$0xff]  }
 0x173   : > { %2933 = vmatmul.mubr.bf16.vlgmr.msra.gmra.mrb[32].mxu1 %v12553_v15  ;;  %v11104_v15 = vld [vmem:[%s15003_s3 + $0xab4] ss:$12 sps:$4 sm:$0xff]  }
 0x174   : > { %5569 = vmatmul.mubr.bf16.vlgmr.msra.gmra.mrb[0].mxu0 %v12373_v11  ;;  %10110 = vmatpush3.bf16.msra.mxu1 %v11095_v55  ;;  %v11115_v55 = vld [vmem:[%s15003_s3 + $0x368] ss:$12 sps:$4 sm:$0xff]  }
 0x175   : > { %5578 = vmatprep.mubr.bf16.mxu0 %v12431_v40  ;;  %5610 = vmatpush1.bf16.msra.mxu0 %v11092_v37  ;;  %v13263_v37 = vsel %vm1110_vm8, %v8712_v2, %v13242_v60  ;;  %v11518_v2 = vld [vmem:[#allocation2 + $0x80] sm:$0xff] }
 0x176   : > { %10111 = vmatprep.subr.bf16.mxu1 %v11096_v35  ;;  %5611 = vmatprep.subr.bf16.mxu0 %v11099_v0  ;;  %v11116_v35 = vld [vmem:[%s15003_s3 + $0x440] ss:$12 sps:$4 sm:$0xff]   ;;  %v11119_v0 = vld [vmem:[%s15003_s3 + $0xafc] ss:$12 sps:$4 sm:$0xff]  }
 0x177   : > { %2940 = vmatprep.mubr.bf16.mxu1 %v12295_v22 }
 0x178   : > { %10112 = vmatpush3.bf16.msra.mxu1 %v11100_v48  ;;  %v11120_v48 = vld [vmem:[%s15003_s3 + $0x380] ss:$12 sps:$4 sm:$0xff]  }
 0x179   : > { %5612 = vmatpush1.bf16.msra.mxu0 %v11097_v56  ;;  %10113 = vmatprep.subr.bf16.mxu1 %v11101_v54  ;;  %v13276_v56 = vcombine.low %v12522_v13, %v13263_v37  ;;  %v11117_v54 = vld [vmem:[%s15003_s3 + $0xaf8] ss:$12 sps:$4 sm:$0xff]   ;;  %v11124_v13 = vld [vmem:[%s15003_s3 + $0xb14] ss:$12 sps:$4 sm:$0xff]  }
 0x17a   : > { %5613 = vmatprep.subr.bf16.mxu0 %v11104_v15  ;;  %v11121_v15 = vld [vmem:[%s15003_s3 + $0x458] ss:$12 sps:$4 sm:$0xff]  }
 0x17b   : > { %2941 = vmatmul.mubr.bf16.gmra.mrb[36].mxu1 %v12576_v18 }
 0x17c   : > { %5579 = vmatmul.mubr.bf16.gmra.mrb[4].mxu0 %v12429_v43  ;;  %10114 = vmatpush3.bf16.msra.mxu1 %v11105_v29  ;;  %v11125_v29 = vld [vmem:[%s15003_s3 + $0x398] ss:$12 sps:$4 sm:$0xff]  }
 0x17d   : > { %5588 = vmatprep.mubr.bf16.mxu0 %v12488_v28  ;;  %5614 = vmatpush1.bf16.msra.mxu0 %v11102_v24  ;;  %v11122_v24 = vld [vmem:[%s15003_s3 + $0xb10] ss:$12 sps:$4 sm:$0xff]  }
 0x17e   : > { %10115 = vmatprep.subr.bf16.mxu1 %v11106_v27  ;;  %5615 = vmatprep.subr.bf16.mxu0 %v11109_v21  ;;  %v11126_v27 = vld [vmem:[%s15003_s3 + $0x470] ss:$12 sps:$4 sm:$0xff]   ;;  %v11129_v21 = vld [vmem:[%s15003_s3 + $0xb2c] ss:$12 sps:$4 sm:$0xff]  }
 0x17f   : > { %2948 = vmatprep.mubr.bf16.mxu1 %v12301_v31 }
 0x180   : > { %10116 = vmatpush3.bf16.msra.mxu1 %v11110_v20  ;;  %v11130_v20 = vld [vmem:[%s15003_s3 + $0x3b0] ss:$12 sps:$4 sm:$0xff]  }
 0x181   : > { %5616 = vmatpush1.bf16.msra.mxu0 %v11107_v26  ;;  %10117 = vmatprep.subr.bf16.mxu1 %v11111_v41  ;;  %v13306_v26 = vcombine.low %v11518_v2, %v11517_v34  ;;  %v11127_v41 = vld [vmem:[%s15003_s3 + $0xb28] ss:$12 sps:$4 sm:$0xff]   ;;  %v11134_v34 = vld [vmem:[%s15003_s3 + $0xb44] ss:$12 sps:$4 sm:$0xff]  }
 0x182   : > { %5617 = vmatprep.subr.bf16.mxu0 %v11114_v5  ;;  %v11131_v5 = vld [vmem:[%s15003_s3 + $0x548] ss:$12 sps:$4 sm:$0xff]   ;;  %v11154_v2 = vld [vmem:[%s15003_s3 + $0xba4] ss:$12 sps:$4 sm:$0xff]  }
 0x183   : > { %2949 = vmatmul.mubr.bf16.gmra.mrb[40].mxu1 %v12741_v39 }
 0x184   : > { %5589 = vmatmul.mubr.bf16.gmra.mrb[8].mxu0 %v12493_v32  ;;  %10118 = vmatpush3.bf16.msra.mxu1 %v11115_v55  ;;  %v11136_v55 = vld [vmem:[%s15003_s3 + $0x560] ss:$12 sps:$4 sm:$0xff]  }
 0x185   : > { %5598 = vmatprep.mubr.bf16.mxu0 %v13276_v56  ;;  %5618 = vmatpush1.bf16.msra.mxu0 %v11112_v1  ;;  %v11135_v1 = vld [vmem:[%s15003_s3 + $0x488] ss:$12 sps:$4 sm:$0xff]  }
 0x186   : > { %10119 = vmatprep.subr.bf16.mxu1 %v11116_v35  ;;  %5619 = vmatprep.subr.bf16.mxu0 %v11119_v0  ;;  %v11139_v35 = vld [vmem:[%s15003_s3 + $0xb5c] ss:$12 sps:$4 sm:$0xff]   ;;  %v11140_v0 = vld [vmem:[%s15003_s3 + $0x4a0] ss:$12 sps:$4 sm:$0xff]  }
 0x187   : > { %2956 = vmatprep.mubr.bf16.mxu1 %v12307_v57 }
 0x188   : > { %10120 = vmatpush3.bf16.msra.mxu1 %v11120_v48  ;;  %v11137_v48 = vld [vmem:[%s15003_s3 + $0xb58] ss:$12 sps:$4 sm:$0xff]  }
 0x189   : > { %5620 = vmatpush1.bf16.msra.mxu0 %v11117_v54  ;;  %10121 = vmatprep.subr.bf16.mxu1 %v11121_v15  ;;  %v11141_v54 = vld [vmem:[%s15003_s3 + $0x578] ss:$12 sps:$4 sm:$0xff]   ;;  %v11144_v15 = vld [vmem:[%s15003_s3 + $0xb74] ss:$12 sps:$4 sm:$0xff]  }
 0x18a   : > { %5621 = vmatprep.subr.bf16.mxu0 %v11124_v13  ;;  %v11145_v13 = vld [vmem:[%s15003_s3 + $0x4b8] ss:$12 sps:$4 sm:$0xff]  }
 0x18b   : > { %2957 = vmatmul.mubr.bf16.gmra.mrb[44].mxu1 %v12811_v12 }
 0x18c   : > { %10122 = vmatpush3.bf16.msra.mxu1 %v11125_v29  ;;  %2997 = vmatprep.mubr.bf16.mxu1 %v12821_v23  ;;  %v11132_v23 = vld [vmem:[%s15003_s3 + $0xb40] ss:$12 sps:$4 sm:$0xff]  }
 0x18d   : > { %5622 = vmatpush1.bf16.msra.mxu0 %v11122_v24  ;;  %10123 = vmatprep.subr.bf16.mxu1 %v11126_v27  ;;  %v11146_v24 = vld [vmem:[%s15003_s3 + $0x590] ss:$12 sps:$4 sm:$0xff]   ;;  %v11149_v29 = vld [vmem:[%s15003_s3 + $0xb8c] ss:$12 sps:$4 sm:$0xff]  }
 0x18e   : > { %5623 = vmatprep.subr.bf16.mxu0 %v11129_v21  ;;  %5599 = vmatmul.mubr.bf16.gmra.mrb[12].mxu0 %v13306_v26  ;;  %v11150_v27 = vld [vmem:[%s15003_s3 + $0x4d0] ss:$12 sps:$4 sm:$0xff]   ;;  %v11147_v21 = vld [vmem:[%s15003_s3 + $0xb88] ss:$12 sps:$4 sm:$0xff]  }
 0x18f   : > { %5641 = vmatprep.mubr.bf16.mxu0 %v12295_v22 }
 0x190   : > { %10124 = vmatpush3.bf16.msra.mxu1 %v11130_v20  ;;  %v11151_v20 = vld [vmem:[%s15003_s3 + $0x5a8] ss:$12 sps:$4 sm:$0xff]  }
 0x191   : > { %5624 = vmatpush1.bf16.msra.mxu0 %v11127_v41  ;;  %10149 = vmatprep.subr.bf16.mxu1 %v11131_v5  ;;  %v11152_v41 = vld [vmem:[%s15003_s3 + $0xba0] ss:$12 sps:$4 sm:$0xff]   ;;  %v11155_v5 = vld [vmem:[%s15003_s3 + $0x4e8] ss:$12 sps:$4 sm:$0xff]  }
 0x192   : > { %5625 = vmatprep.subr.bf16.mxu0 %v11134_v34  ;;  %v11156_v34 = vld [vmem:[%s15003_s3 + $0x5c0] ss:$12 sps:$4 sm:$0xff]  }
 0x193   : > { %2998 = vmatmul.mubr.bf16.vlgmr.msra.gmra.mrb[48].mxu1 %v12647_v63  ;;  %v11142_v63 = vld [vmem:[%s15003_s3 + $0xb70] ss:$12 sps:$4 sm:$0xff]  }
 0x194   : > { %3005 = vmatprep.mubr.bf16.mxu1 %v12960_v49  ;;  %10150 = vmatpush3.bf16.msra.mxu1 %v11135_v1  ;;  %v11160_v1 = vld [vmem:[%s15003_s3 + $0x500] ss:$12 sps:$4 sm:$0xff]  }
 0x195   : > { %5626 = vmatpush1.bf16.msra.mxu0 %v11132_v23  ;;  %10151 = vmatprep.subr.bf16.mxu1 %v11136_v55  ;;  %v11159_v23 = vld [vmem:[%s15003_s3 + $0xbbc] ss:$12 sps:$4 sm:$0xff]   ;;  %v11157_v55 = vld [vmem:[%s15003_s3 + $0xbb8] ss:$12 sps:$4 sm:$0xff]  }
 0x196   : > { %5627 = vmatprep.subr.bf16.mxu0 %v11139_v35  ;;  %v11162_v35 = vld [vmem:[%s15003_s3 + $0x5d8] ss:$12 sps:$4 sm:$0xff]  }
 0x198   : > { %10152 = vmatpush3.bf16.msra.mxu1 %v11140_v0  ;;  %v11165_v0 = vld [vmem:[%s15003_s3 + $0xbd4] ss:$12 sps:$4 sm:$0xff]  }
 0x199   : > { %5628 = vmatpush1.bf16.msra.mxu0 %v11137_v48  ;;  %10153 = vmatprep.subr.bf16.mxu1 %v11141_v54  ;;  %v11163_v48 = vld [vmem:[%s15003_s3 + $0xbd0] ss:$12 sps:$4 sm:$0xff]   ;;  %v11166_v54 = vld [vmem:[%s15003_s3 + $0x518] ss:$12 sps:$4 sm:$0xff]  }
 0x19a   : > { %5629 = vmatprep.subr.bf16.mxu0 %v11144_v15  ;;  %v11167_v15 = vld [vmem:[%s15003_s3 + $0x5f0] ss:$12 sps:$4 sm:$0xff]  }
 0x19b   : > { %3006 = vmatmul.mubr.bf16.gmra.mrb[52].mxu1 %v12695_v51 }
 0x19c   : > { %3013 = vmatprep.mubr.bf16.mxu1 %v12996_v50  ;;  %10154 = vmatpush3.bf16.msra.mxu1 %v11145_v13  ;;  %v11171_v13 = vld [vmem:[%s15003_s3 + $0x530] ss:$12 sps:$4 sm:$0xff]  }
 0x19d   : > { %5630 = vmatpush1.bf16.msra.mxu0 %v11142_v63  ;;  %10155 = vmatprep.subr.bf16.mxu1 %v11146_v24  ;;  %v11170_v63 = vld [vmem:[%s15003_s3 + $0xbec] ss:$12 sps:$4 sm:$0xff]   ;;  %v11168_v24 = vld [vmem:[%s15003_s3 + $0xbe8] ss:$12 sps:$4 sm:$0xff]  }
 0x19e   : > { %5631 = vmatprep.subr.bf16.mxu0 %v11149_v29  ;;  %v11172_v29 = vld [vmem:[%s15003_s3 + $0x6c8] ss:$12 sps:$4 sm:$0xff]  }
 0x1a0   : > { %10156 = vmatpush3.bf16.msra.mxu1 %v11150_v27  ;;  %v11175_v27 = vld [vmem:[%s15003_s3 + $0xc04] ss:$12 sps:$4 sm:$0xff]  }
 0x1a1   : > { %5632 = vmatpush1.bf16.msra.mxu0 %v11147_v21  ;;  %10157 = vmatprep.subr.bf16.mxu1 %v11151_v20  ;;  %v11176_v21 = vld [vmem:[%s15003_s3 + $0x608] ss:$12 sps:$4 sm:$0xff]   ;;  %v11177_v20 = vld [vmem:[%s15003_s3 + $0x6e0] ss:$12 sps:$4 sm:$0xff]  }
 0x1a2   : > { %5633 = vmatprep.subr.bf16.mxu0 %v11154_v2  ;;  %v11180_v2 = vld [vmem:[%s15003_s3 + $0xc1c] ss:$12 sps:$4 sm:$0xff]  }
 0x1a3   : > { %3014 = vmatmul.mubr.bf16.gmra.mrb[56].mxu1 %v12750_v45 }
 0x1a4   : > { %3021 = vmatprep.mubr.bf16.mxu1 %v13034_v42  ;;  %10158 = vmatpush3.bf16.msra.mxu1 %v11155_v5  ;;  %v11183_v5 = vld [vmem:[%s15003_s3 + $0x620] ss:$12 sps:$4 sm:$0xff]  }
 0x1a5   : > { %5634 = vmatpush1.bf16.msra.mxu0 %v11152_v41  ;;  %10159 = vmatprep.subr.bf16.mxu1 %v11156_v34  ;;  %v11178_v41 = vld [vmem:[%s15003_s3 + $0xc18] ss:$12 sps:$4 sm:$0xff]   ;;  %v11187_v34 = vld [vmem:[%s15003_s3 + $0xc34] ss:$12 sps:$4 sm:$0xff]  }
 0x1a6   : > { %5635 = vmatprep.subr.bf16.mxu0 %v11159_v23  ;;  %v11185_v23 = vld [vmem:[%s15003_s3 + $0xc30] ss:$12 sps:$4 sm:$0xff]  }
 0x1a8   : > { %10160 = vmatpush3.bf16.msra.mxu1 %v11160_v1  ;;  %v11188_v1 = vld [vmem:[%s15003_s3 + $0x638] ss:$12 sps:$4 sm:$0xff]  }
 0x1a9   : > { %5636 = vmatpush1.bf16.msra.mxu0 %v11157_v55  ;;  %10161 = vmatprep.subr.bf16.mxu1 %v11162_v35  ;;  %v11189_v55 = vld [vmem:[%s15003_s3 + $0x710] ss:$12 sps:$4 sm:$0xff]   ;;  %v11192_v35 = vld [vmem:[%s15003_s3 + $0xc4c] ss:$12 sps:$4 sm:$0xff]  }
 0x1aa   : > { %5637 = vmatprep.subr.bf16.mxu0 %v11165_v0  ;;  %v11190_v0 = vld [vmem:[%s15003_s3 + $0xc48] ss:$12 sps:$4 sm:$0xff]  }
 0x1ab   : > { %3022 = vmatmul.mubr.bf16.gmra.mrb[60].mxu1 %v12826_v6 }
 0x1ac   : > { %10162 = vmatpush3.bf16.msra.mxu1 %v11166_v54  ;;  %4321 = vmatprep.mubr.bf16.mxu1 %v12337_v36  ;;  %v11173_v36 = vld [vmem:[%s15003_s3 + $0xc00] ss:$12 sps:$4 sm:$0xff]   ;;  %v13471_v54 = vld [vmem:[#allocation2 + $0x90] sm:$0xee] }
 0x1ad   : > { %5638 = vmatpush1.bf16.msra.mxu0 %v11163_v48  ;;  %10163 = vmatprep.subr.bf16.mxu1 %v11167_v15  ;;  %v13469_v48 = vld [vmem:[#allocation2 + $0x98] sm:$0x11] }
 0x1ae   : > { %5639 = vmatprep.subr.bf16.mxu0 %v11170_v63  ;;  %v8754_v15 = vcombine.low %v13471_v54, %v13469_v48  ;;  %v11193_v63 = vld [vmem:[%s15003_s3 + $0x650] ss:$12 sps:$4 sm:$0xff]  }
 0x1b0   : > { %10164 = vmatpush3.bf16.msra.mxu1 %v11171_v13  ;;  %v11194_v13 = vld [vmem:[%s15003_s3 + $0x728] ss:$12 sps:$4 sm:$0xff]  }
 0x1b1   : > { %5640 = vmatpush1.bf16.msra.mxu0 %v11168_v24  ;;  %10189 = vmatprep.subr.bf16.mxu1 %v11172_v29  ;;  %v11197_v24 = vld [vmem:[%s15003_s3 + $0xc64] ss:$12 sps:$4 sm:$0xff]   ;;  %v13487_v29 = vrot.slane %v8754_v15, 1  ;;  %v11212_v15 = vld [vmem:[%s15003_s3 + $0xcac] ss:$12 sps:$4 sm:$0xff]  }
 0x1b2   : > { %5682 = vmatprep.subr.bf16.mxu0 %v11175_v27  ;;  %v11195_v27 = vld [vmem:[%s15003_s3 + $0xc60] ss:$12 sps:$4 sm:$0xff]  }
 0x1b3   : > { %4322 = vmatmul.mubr.bf16.vlgmr.msra.gmra.mrb[64].mxu1 %v12333_v44  ;;  %v11184_v44 = vld [vmem:[%s15003_s3 + $0x6f8] ss:$12 sps:$4 sm:$0xff]  }
 0x1b4   : > { %5642 = vmatmul.mubr.bf16.vlgmr.msra.gmra.mrb[0].mxu0 %v12576_v18  ;;  %4329 = vmatprep.mubr.bf16.mxu1 %v12398_v46 }
 0x1b5   : > { %10190 = vmatpush3.bf16.msra.mxu1 %v11176_v21  ;;  %5683 = vmatpush1.bf16.msra.mxu0 %v11173_v36  ;;  %v11198_v36 = vld [vmem:[%s15003_s3 + $0x668] ss:$12 sps:$4 sm:$0xff]   ;;  %v11199_v21 = vld [vmem:[%s15003_s3 + $0x740] ss:$12 sps:$4 sm:$0xff]  }
 0x1b6   : > { %10191 = vmatprep.subr.bf16.mxu1 %v11177_v20  ;;  %5684 = vmatprep.subr.bf16.mxu0 %v11180_v2  ;;  %v11202_v20 = vld [vmem:[%s15003_s3 + $0xc7c] ss:$12 sps:$4 sm:$0xff]   ;;  %v11200_v2 = vld [vmem:[%s15003_s3 + $0xc78] ss:$12 sps:$4 sm:$0xff]  }
 0x1b7   : > { %5651 = vmatprep.mubr.bf16.mxu0 %v12301_v31 }
 0x1b9   : > { %10192 = vmatpush3.bf16.msra.mxu1 %v11183_v5  ;;  %5685 = vmatpush1.bf16.msra.mxu0 %v11178_v41  ;;  %v13507_v41 = vcombine.low %v12731_v17, %v13487_v29  ;;  %v1105_v5 = vpop.permute.xlu1 %1104  ;;  %v11207_v17 = vld [vmem:[%s15003_s3 + $0xc94] ss:$12 sps:$4 sm:$0xff]  }
 0x1ba   : > { %10193 = vmatprep.subr.bf16.mxu1 %v11184_v44  ;;  %5686 = vmatprep.subr.bf16.mxu0 %v11187_v34  ;;  %v11203_v44 = vld [vmem:[%s15003_s3 + $0x680] ss:$12 sps:$4 sm:$0xff]   ;;  %v11204_v34 = vld [vmem:[%s15003_s3 + $0x758] ss:$12 sps:$4 sm:$0xff]  }
 0x1bb   : > { %4330 = vmatmul.mubr.bf16.gmra.mrb[68].mxu1 %v12403_v47 }
 0x1bc   : > { %5652 = vmatmul.mubr.bf16.gmra.mrb[4].mxu0 %v12741_v39  ;;  %4337 = vmatprep.mubr.bf16.mxu1 %v12457_v38 }
 0x1bd   : > { %10194 = vmatpush3.bf16.msra.mxu1 %v11188_v1  ;;  %5687 = vmatpush1.bf16.msra.mxu0 %v11185_v23  ;;  %v13522_v23 = vsel %vm1110_vm8, %v13242_v60, %v1105_v5  ;;  %v11205_v1 = vld [vmem:[%s15003_s3 + $0xc90] ss:$12 sps:$4 sm:$0xff]   ;;  %v11220_v5 = vld [vmem:[%s15003_s3 + $0xcd8] ss:$12 sps:$4 sm:$0xff]  }
 0x1be   : > { %10195 = vmatprep.subr.bf16.mxu1 %v11189_v55  ;;  %5688 = vmatprep.subr.bf16.mxu0 %v11192_v35  ;;  %v11208_v55 = vld [vmem:[%s15003_s3 + $0x698] ss:$12 sps:$4 sm:$0xff]   ;;  %v13533_v35 = vcombine.low %v12782_v16, %v13522_v23  ;;  %v11209_v60 = vld [vmem:[%s15003_s3 + $0x770] ss:$12 sps:$4 sm:$0xff]   ;;  %v11210_v16 = vld [vmem:[%s15003_s3 + $0xca8] ss:$12 sps:$4 sm:$0xff]  }
 0x1bf   : > { %5661 = vmatprep.mubr.bf16.mxu0 %v12307_v57 }
 0x1c1   : > { %10196 = vmatpush3.bf16.msra.mxu1 %v11193_v63  ;;  %5689 = vmatpush1.bf16.msra.mxu0 %v11190_v0  ;;  %v15042_v0 = vld [vmem:[#allocation7_spill] sm:$0xff]  ;;  %v15043_v63 = vld [vmem:[#allocation5_spill] sm:$0xff] }
 0x1c2   : > { %10197 = vmatprep.subr.bf16.mxu1 %v11194_v13  ;;  %5690 = vmatprep.subr.bf16.mxu0 %v11197_v24  ;;  %v11213_v13 = vld [vmem:[%s15003_s3 + $0x6b0] ss:$12 sps:$4 sm:$0xff]   ;;  %v11214_v24 = vld [vmem:[%s15003_s3 + $0x848] ss:$12 sps:$4 sm:$0xff]  }
 0x1c3   : > { %4338 = vmatmul.mubr.bf16.gmra.mrb[72].mxu1 %v12465_v62 }
 0x1c4   : > { %5662 = vmatmul.mubr.bf16.gmra.mrb[8].mxu0 %v12811_v12  ;;  %4345 = vmatprep.mubr.bf16.mxu1 %v12531_v8 }
 0x1c5   : > { %10198 = vmatpush3.bf16.msra.mxu1 %v11198_v36  ;;  %5691 = vmatpush1.bf16.msra.mxu0 %v11195_v27  ;;  %v11217_v27 = vld [vmem:[%s15003_s3 + $0xcc4] ss:$12 sps:$4 sm:$0xff]   ;;  %v11215_v36 = vld [vmem:[%s15003_s3 + $0xcc0] ss:$12 sps:$4 sm:$0xff]  }
 0x1c6   : > { %10199 = vmatprep.subr.bf16.mxu1 %v11199_v21  ;;  %5692 = vmatprep.subr.bf16.mxu0 %v11202_v20  ;;  %v11218_v21 = vld [vmem:[%s15003_s3 + $0x788] ss:$12 sps:$4 sm:$0xff]   ;;  %v11219_v20 = vld [vmem:[%s15003_s3 + $0x860] ss:$12 sps:$4 sm:$0xff]  }
 0x1c7   : > { %5671 = vmatprep.mubr.bf16.mxu0 %v13507_v41 }
 0x1c9   : > { %10200 = vmatpush3.bf16.msra.mxu1 %v11203_v44  ;;  %5693 = vmatpush1.bf16.msra.mxu0 %v11200_v2  ;;  %v11222_v2 = vld [vmem:[%s15003_s3 + $0xcdc] ss:$12 sps:$4 sm:$0xff]   ;;  %v15044_v44 = vld [vmem:[#allocation8_spill] sm:$0xff] }
 0x1ca   : > { %10201 = vmatprep.subr.bf16.mxu1 %v11204_v34  ;;  %5694 = vmatprep.subr.bf16.mxu0 %v11207_v17  ;;  %v11223_v34 = vld [vmem:[%s15003_s3 + $0x7a0] ss:$12 sps:$4 sm:$0xff]   ;;  %v11224_v17 = vld [vmem:[%s15003_s3 + $0x878] ss:$12 sps:$4 sm:$0xff]  }
 0x1cb   : > { %4346 = vmatmul.mubr.bf16.gmra.mrb[76].mxu1 %v15042_v0 }
 0x1cc   : > { %5672 = vmatmul.mubr.bf16.gmra.mrb[12].mxu0 %v13533_v35  ;;  %4386 = vmatprep.mubr.bf16.mxu1 %v15043_v63  ;;  %v11229_v63 = vld [vmem:[%s15003_s3 + $0x890] ss:$12 sps:$4 sm:$0xff]  }
 0x1cd   : > { %10202 = vmatpush3.bf16.msra.mxu1 %v11208_v55  ;;  %5695 = vmatpush1.bf16.msra.mxu0 %v11205_v1  ;;  %v11227_v1 = vld [vmem:[%s15003_s3 + $0xcf4] ss:$12 sps:$4 sm:$0xff]  }
 0x1ce   : > { %5714 = vmatprep.mubr.bf16.mxu0 %v12960_v49  ;;  %10203 = vmatprep.subr.bf16.mxu1 %v11209_v60  ;;  %v15045_v55 = vld [vmem:[#allocation6_spill] sm:$0xff]  ;;  %v11225_v60 = vld [vmem:[%s15003_s3 + $0xcf0] ss:$12 sps:$4 sm:$0xff]  }
 0x1cf   : > { %5696 = vmatprep.subr.bf16.mxu0 %v11212_v15  ;;  %v11228_v15 = vld [vmem:[%s15003_s3 + $0x7b8] ss:$12 sps:$4 sm:$0xff]  }
 0x1d1   : > { %10204 = vmatpush3.bf16.msra.mxu1 %v11213_v13  ;;  %5697 = vmatpush1.bf16.msra.mxu0 %v11210_v16  ;;  %v11232_v16 = vld [vmem:[%s15003_s3 + $0xd0c] ss:$12 sps:$4 sm:$0xff]   ;;  %v11230_v13 = vld [vmem:[%s15003_s3 + $0xd08] ss:$12 sps:$4 sm:$0xff]  }
 0x1d2   : > { %10229 = vmatprep.subr.bf16.mxu1 %v11214_v24  ;;  %5698 = vmatprep.subr.bf16.mxu0 %v11217_v27  ;;  %v15046_v24 = vld [vmem:[#allocation9_spill] sm:$0xff] }
 0x1d3   : > { %v11233_v27 = vld [vmem:[%s15003_s3 + $0x7d0] ss:$12 sps:$4 sm:$0xff]  }
 0x1d4   : > { %4387 = vmatmul.mubr.bf16.vlgmr.msra.gmra.mrb[80].mxu1 %v15044_v44  ;;  %v11242_v44 = vld [vmem:[%s15003_s3 + $0xd3c] ss:$12 sps:$4 sm:$0xff]  }
 0x1d5   : > { %10230 = vmatpush3.bf16.msra.mxu1 %v11218_v21  ;;  %5699 = vmatpush1.bf16.msra.mxu0 %v11215_v36  ;;  %v11234_v36 = vld [vmem:[%s15003_s3 + $0x8a8] ss:$12 sps:$4 sm:$0xff]   ;;  %v11237_v21 = vld [vmem:[%s15003_s3 + $0xd24] ss:$12 sps:$4 sm:$0xff]  }
 0x1d6   : > { %10231 = vmatprep.subr.bf16.mxu1 %v11219_v20  ;;  %5700 = vmatprep.subr.bf16.mxu0 %v11222_v2  ;;  %v11235_v20 = vld [vmem:[%s15003_s3 + $0xd20] ss:$12 sps:$4 sm:$0xff]   ;;  %v11238_v2 = vld [vmem:[%s15003_s3 + $0x7e8] ss:$12 sps:$4 sm:$0xff]  }
 0x1d7   : > { %4394 = vmatprep.mubr.bf16.mxu1 %v15045_v55 }
 0x1d9   : > { %10232 = vmatpush3.bf16.msra.mxu1 %v11223_v34  ;;  %5701 = vmatpush1.bf16.msra.mxu0 %v11220_v5  ;;  %v11239_v5 = vld [vmem:[%s15003_s3 + $0x8c0] ss:$12 sps:$4 sm:$0xff]   ;;  %v11240_v34 = vld [vmem:[%s15003_s3 + $0xd38] ss:$12 sps:$4 sm:$0xff]  }
 0x1da   : > { %10233 = vmatprep.subr.bf16.mxu1 %v11224_v17  ;;  %5702 = vmatprep.subr.bf16.mxu0 %v11227_v1  ;;  %v11243_v17 = vld [vmem:[%s15003_s3 + $0x800] ss:$12 sps:$4 sm:$0xff]   ;;  %v11244_v1 = vld [vmem:[%s15003_s3 + $0x8d8] ss:$12 sps:$4 sm:$0xff]  }
 0x1dc   : > { %4395 = vmatmul.mubr.bf16.gmra.mrb[84].mxu1 %v15046_v24 }
 0x1dd   : > { %10234 = vmatpush3.bf16.msra.mxu1 %v11228_v15  ;;  %5703 = vmatpush1.bf16.msra.mxu0 %v11225_v60  ;;  %v11247_v60 = vld [vmem:[%s15003_s3 + $0xd54] ss:$12 sps:$4 sm:$0xff]   ;;  %v11248_v15 = vld [vmem:[%s15003_s3 + $0x818] ss:$12 sps:$4 sm:$0xff]  }
 0x1de   : > { %10235 = vmatprep.subr.bf16.mxu1 %v11229_v63  ;;  %5704 = vmatprep.subr.bf16.mxu0 %v11232_v16  ;;  %v11245_v63 = vld [vmem:[%s15003_s3 + $0xd50] ss:$12 sps:$4 sm:$0xff]  }
 0x1df   : > { %4402 = vmatprep.mubr.bf16.mxu1 %v12303_v33  ;;  %v11249_v16 = vld [vmem:[%s15003_s3 + $0x8f0] ss:$12 sps:$4 sm:$0xff]  }
 0x1e1   : > { %10236 = vmatpush3.bf16.msra.mxu1 %v11233_v27  ;;  %5705 = vmatpush1.bf16.msra.mxu0 %v11230_v13  ;;  %v11252_v13 = vld [vmem:[%s15003_s3 + $0xd6c] ss:$12 sps:$4 sm:$0xff]   ;;  %v11250_v27 = vld [vmem:[%s15003_s3 + $0xd68] ss:$12 sps:$4 sm:$0xff]  }
 0x1e2   : > { %10237 = vmatprep.subr.bf16.mxu1 %v11234_v36  ;;  %5706 = vmatprep.subr.bf16.mxu0 %v11237_v21  ;;  %v11253_v36 = vld [vmem:[%s15003_s3 + $0x830] ss:$12 sps:$4 sm:$0xff]   ;;  %v11254_v21 = vld [vmem:[%s15003_s3 + $0x9c8] ss:$12 sps:$4 sm:$0xff]  }
 0x1e4   : > { %4403 = vmatmul.mubr.bf16.gmra.mrb[88].mxu1 %v12743_v19 }
 0x1e5   : > { %10238 = vmatpush3.bf16.msra.mxu1 %v11238_v2  ;;  %5707 = vmatpush1.bf16.msra.mxu0 %v11235_v20  ;;  %v11257_v20 = vld [vmem:[%s15003_s3 + $0xd84] ss:$12 sps:$4 sm:$0xff]   ;;  %v11258_v2 = vld [vmem:[%s15003_s3 + $0x908] ss:$12 sps:$4 sm:$0xff]  }
 0x1e6   : > { %10239 = vmatprep.subr.bf16.mxu1 %v11239_v5  ;;  %5708 = vmatprep.subr.bf16.mxu0 %v11242_v44  ;;  %v11259_v5 = vld [vmem:[%s15003_s3 + $0x9e0] ss:$12 sps:$4 sm:$0xff]   ;;  %v11262_v44 = vld [vmem:[%s15003_s3 + $0xd9c] ss:$12 sps:$4 sm:$0xff]  }
 0x1e7   : > { %4410 = vmatprep.mubr.bf16.mxu1 %v12754_v59 }
 0x1e9   : > { %10240 = vmatpush3.bf16.msra.mxu1 %v11243_v17  ;;  %5709 = vmatpush1.bf16.msra.mxu0 %v11240_v34  ;;  %v11260_v34 = vld [vmem:[%s15003_s3 + $0xd98] ss:$12 sps:$4 sm:$0xff]   ;;  %v11263_v17 = vld [vmem:[%s15003_s3 + $0x920] ss:$12 sps:$4 sm:$0xff]  }
 0x1ea   : > { %10241 = vmatprep.subr.bf16.mxu1 %v11244_v1  ;;  %5710 = vmatprep.subr.bf16.mxu0 %v11247_v60  ;;  %v11264_v1 = vld [vmem:[%s15003_s3 + $0x9f8] ss:$12 sps:$4 sm:$0xff]   ;;  %v11265_v60 = vld [vmem:[%s15003_s3 + $0xdb0] ss:$12 sps:$4 sm:$0xff]  }
 0x1ec   : > { %4411 = vmatmul.mubr.bf16.gmra.mrb[92].mxu1 %v12814_v4 }
 0x1ed   : > { %10242 = vmatpush3.bf16.msra.mxu1 %v11248_v15  ;;  %4451 = vmatprep.mubr.bf16.mxu1 %v12824_v52  ;;  %v11255_v52 = vld [vmem:[%s15003_s3 + $0xd80] ss:$12 sps:$4 sm:$0xff]   ;;  %v11268_v15 = vld [vmem:[%s15003_s3 + $0x938] ss:$12 sps:$4 sm:$0xff]  }
 0x1ee   : > { %5711 = vmatpush1.bf16.msra.mxu0 %v11245_v63  ;;  %10243 = vmatprep.subr.bf16.mxu1 %v11249_v16  ;;  %v11269_v63 = vld [vmem:[%s15003_s3 + $0xa10] ss:$12 sps:$4 sm:$0xff]   ;;  %v11272_v16 = vld [vmem:[%s15003_s3 + $0xdcc] ss:$12 sps:$4 sm:$0xff]  }
 0x1ef   : > { %5712 = vmatprep.subr.bf16.mxu0 %v11252_v13  ;;  %v1469_v13 = vpop.permute.xlu1 %1468 }
 0x1f1   : > { %10244 = vmatpush3.bf16.msra.mxu1 %v11253_v36  ;;  %v11270_v36 = vld [vmem:[%s15003_s3 + $0xdc8] ss:$12 sps:$4 sm:$0xff]  }
 0x1f2   : > { %5713 = vmatpush1.bf16.msra.mxu0 %v11250_v27  ;;  %10269 = vmatprep.subr.bf16.mxu1 %v11254_v21  ;;  %v1467_v27 = vpop.permute.xlu0 %1466  ;;  %v11273_v21 = vld [vmem:[%s15003_s3 + $0x950] ss:$12 sps:$4 sm:$0xff]  }
 0x1f3   : > { %7002 = vmatprep.subr.bf16.mxu0 %v11257_v20  ;;  %v11274_v20 = vld [vmem:[%s15003_s3 + $0xa28] ss:$12 sps:$4 sm:$0xff]  }
 0x1f4   : > { %4452 = vmatmul.mubr.bf16.vlgmr.msra.gmra.mrb[96].mxu1 %v12672_v25  ;;  %v11267_v25 = vld [vmem:[%s15003_s3 + $0xdb4] ss:$12 sps:$4 sm:$0xff]  }
 0x1f5   : > { %5715 = vmatmul.mubr.bf16.vlgmr.msra.gmra.mrb[0].mxu0 %v12695_v51  ;;  %4459 = vmatprep.mubr.bf16.mxu1 %v12965_v61 }
 0x1f6   : > { %5724 = vmatprep.mubr.bf16.mxu0 %v12996_v50  ;;  %10270 = vmatpush3.bf16.msra.mxu1 %v11258_v2  ;;  %v8755_v2 = vcombine.high %v13471_v54, %v13469_v48 }
 0x1f7   : > { %7003 = vmatpush1.bf16.msra.mxu0 %v11255_v52  ;;  %10271 = vmatprep.subr.bf16.mxu1 %v11259_v5  ;;  %v11277_v52 = vld [vmem:[%s15003_s3 + $0xde4] ss:$12 sps:$4 sm:$0xff]   ;;  %v13720_v5 = vsel %vm1110_vm8, %v1467_v27, %v1469_v13 }
 0x1f8   : > { %7004 = vmatprep.subr.bf16.mxu0 %v11262_v44  ;;  %v11278_v44 = vld [vmem:[%s15003_s3 + $0x968] ss:$12 sps:$4 sm:$0xff]   ;;  %v1196_v48 = vrot.slane %v8755_v2, 1  ;;  %v13733_v54 = vcombine.low %v13026_v14, %v13720_v5  ;;  %v11283_v14 = vld [vmem:[%s15003_s3 + $0x980] ss:$12 sps:$4 sm:$0xff]  }
 0x1f9   : > { %v11289_v2 = vld [vmem:[%s15003_s3 + $0xa70] ss:$12 sps:$4 sm:$0xff]  }
 0x1fa   : > { %10272 = vmatpush3.bf16.msra.mxu1 %v11263_v17  ;;  %v11279_v17 = vld [vmem:[%s15003_s3 + $0xa40] ss:$12 sps:$4 sm:$0xff]  }
 0x1fb   : > { %7005 = vmatpush1.bf16.msra.mxu0 %v11260_v34  ;;  %10273 = vmatprep.subr.bf16.mxu1 %v11264_v1  ;;  %v11275_v34 = vld [vmem:[%s15003_s3 + $0xde0] ss:$12 sps:$4 sm:$0xff]   ;;  %v11282_v1 = vld [vmem:[%s15003_s3 + $0xdfc] ss:$12 sps:$4 sm:$0xff]  }
 0x1fc   : > { %4460 = vmatmul.mubr.bf16.gmra.mrb[100].mxu1 %v12721_v30  ;;  %7006 = vmatprep.subr.bf16.mxu0 %v11267_v25 }
 0x1fd   : > { %5725 = vmatmul.mubr.bf16.gmra.mrb[4].mxu0 %v12750_v45  ;;  %4467 = vmatprep.mubr.bf16.mxu1 %v13001_v7 }
 0x1fe   : > { %5734 = vmatprep.mubr.bf16.mxu0 %v13034_v42  ;;  %10274 = vmatpush3.bf16.msra.mxu1 %v11268_v15  ;;  %v11280_v15 = vld [vmem:[%s15003_s3 + $0xdf8] ss:$12 sps:$4 sm:$0xff]  }
 0x1ff   : > { %7007 = vmatpush1.bf16.msra.mxu0 %v11265_v60  ;;  %10275 = vmatprep.subr.bf16.mxu1 %v11269_v63  ;;  %v11284_v63 = vld [vmem:[%s15003_s3 + $0xa58] ss:$12 sps:$4 sm:$0xff]  }
 0x200   : > { %7008 = vmatprep.subr.bf16.mxu0 %v11272_v16  ;;  %v13756_v16 = vsel %vm1110_vm8, %v1196_v48, %v1467_v27  ;;  %v11285_v27 = vld [vmem:[%s15003_s3 + $0xe10] ss:$12 sps:$4 sm:$0xff]   ;;  %v11290_v48 = vld [vmem:[%s15003_s3 + $0xe28] ss:$12 sps:$4 sm:$0xff]  }
 0x202   : > { %10276 = vmatpush3.bf16.msra.mxu1 %v11273_v21 }
 0x203   : > { %7009 = vmatpush1.bf16.msra.mxu0 %v11270_v36  ;;  %10277 = vmatprep.subr.bf16.mxu1 %v11274_v20  ;;  %v11287_v36 = vld [vmem:[%s15003_s3 + $0xe14] ss:$12 sps:$4 sm:$0xff]   ;;  %v11288_v20 = vld [vmem:[%s15003_s3 + $0x998] ss:$12 sps:$4 sm:$0xff]  }
 0x204   : > { %4468 = vmatmul.mubr.bf16.gmra.mrb[104].mxu1 %v12784_v3  ;;  %7010 = vmatprep.subr.bf16.mxu0 %v11277_v52  ;;  %v13770_v52 = vcombine.low %v12843_v10, %v13756_v16 }
 0x205   : > { %5735 = vmatmul.mubr.bf16.gmra.mrb[8].mxu0 %v12826_v6  ;;  %4475 = vmatprep.mubr.bf16.mxu1 %v13040_v58 }
 0x206   : > { %5744 = vmatprep.mubr.bf16.mxu0 %v13733_v54  ;;  %10278 = vmatpush3.bf16.msra.mxu1 %v11278_v44  ;;  %v13742_v25 = vpop.f32.mrb[0].mxu1  ;;  %v11292_v44 = vld [vmem:[%s15003_s3 + $0xe2c] ss:$12 sps:$4 sm:$0xff]  }
 0x207   : > { %7011 = vmatpush1.bf16.msra.mxu0 %v11275_v34  ;;  %v13747_v60 = vpop.f32.mrb[1].mxu1  ;;  %10279 = vmatprep.subr.bf16.mxu1 %v11279_v17  ;;  %v11293_v34 = vld [vmem:[%s15003_s3 + $0x9b0] ss:$12 sps:$4 sm:$0xff]  }
 0x208   : > { %7012 = vmatprep.subr.bf16.mxu0 %v11282_v1  ;;  %v13758_v13 = vpop.f32.mrb[2].mxu1 }
 0x209   : > { %v13763_v21 = vpop.f32.mrb[3].mxu1 }
 0x20a   : > { %10280 = vmatpush3.bf16.msra.mxu1 %v11283_v14  ;;  %v11297_v14 = vld [vmem:[%s15003_s3 + $0xe44] ss:$12 sps:$4 sm:$0xff]  }
 0x20b   : > { %7013 = vmatpush1.bf16.msra.mxu0 %v11280_v15  ;;  %10281 = vmatprep.subr.bf16.mxu1 %v11284_v63  ;;  %v11298_v63 = vld [vmem:[%s15003_s3 + $0xa88] ss:$12 sps:$4 sm:$0xff]  }
 0x20c   : > { %4476 = vmatmul.mubr.bf16.gmra.mrb[108].mxu1 %v12849_v53  ;;  %7014 = vmatprep.subr.bf16.mxu0 %v11287_v36  ;;  %v11295_v36 = vld [vmem:[%s15003_s3 + $0xe40] ss:$12 sps:$4 sm:$0xff]  }
 0x20d   : > { %5745 = vmatmul.mubr.bf16.gmra.mrb[12].mxu0 %v13770_v52  ;;  %5787 = vmatprep.mubr.bf16.mxu1 %v12365_v9  ;;  %v11294_v9 = vld [vmem:[%s15003_s3 + $0xb48] ss:$12 sps:$4 sm:$0xff]  }
 0x20e   : > { %10282 = vmatpush3.bf16.msra.mxu1 %v11288_v20  ;;  %7034 = vmatprep.mubr.bf16.mxu0 %v12398_v46  ;;  %v13785_v10 = vpop.f32.mrb[4].mxu1  ;;  %v11299_v20 = vld [vmem:[%s15003_s3 + $0xb60] ss:$12 sps:$4 sm:$0xff]  }
 0x20f   : > { %7015 = vmatpush1.bf16.msra.mxu0 %v11285_v27  ;;  %v13790_v17 = vpop.f32.mrb[5].mxu1  ;;  %10283 = vmatprep.subr.bf16.mxu1 %v11289_v2  ;;  %v11302_v27 = vld [vmem:[%s15003_s3 + $0xe5c] ss:$12 sps:$4 sm:$0xff]  }
 0x210   : > { %7016 = vmatprep.subr.bf16.mxu0 %v11292_v44  ;;  %v13798_v1 = vpop.f32.mrb[6].mxu1  ;;  %v11303_v44 = vld [vmem:[%s15003_s3 + $0xaa0] ss:$12 sps:$4 sm:$0xff]  }
 0x211   : > { %v13803_v15 = vpop.f32.mrb[7].mxu1 }
 0x212   : > { %15047 = vst [vmem:[#allocation7_spill] sm:$0xff] %v13803_v15  ;;  %10284 = vmatpush3.bf16.msra.mxu1 %v11293_v34 }
 0x213   : > { %7017 = vmatpush1.bf16.msra.mxu0 %v11290_v48  ;;  %10309 = vmatprep.subr.bf16.mxu1 %v11294_v9  ;;  %v11300_v48 = vld [vmem:[%s15003_s3 + $0xe58] ss:$12 sps:$4 sm:$0xff]   ;;  %v11307_v9 = vld [vmem:[%s15003_s3 + $0xe74] ss:$12 sps:$4 sm:$0xff]  }
 0x214   : > { %7018 = vmatprep.subr.bf16.mxu0 %v11297_v14 }
 0x215   : > { %5788 = vmatmul.mubr.bf16.vlgmr.msra.gmra.mrb[112].mxu1 %v12373_v11  ;;  %v11304_v11 = vld [vmem:[%s15003_s3 + $0xb78] ss:$12 sps:$4 sm:$0xff]  }
 0x216   : > { %5795 = vmatprep.mubr.bf16.mxu1 %v12431_v40  ;;  %10310 = vmatpush3.bf16.msra.mxu1 %v11298_v63  ;;  %v13819_v2 = vpop.f32.mrb[8].mxu1  ;;  %v11308_v63 = vld [vmem:[%s15003_s3 + $0xab8] ss:$12 sps:$4 sm:$0xff]  }
 0x217   : > { %15048 = vst [vmem:[#allocation5_spill] sm:$0xff] %v13819_v2  ;;  %7019 = vmatpush1.bf16.msra.mxu0 %v11295_v36  ;;  %v13824_v34 = vpop.f32.mrb[9].mxu1  ;;  %10311 = vmatprep.subr.bf16.mxu1 %v11299_v20  ;;  %v11305_v36 = vld [vmem:[%s15003_s3 + $0xe70] ss:$12 sps:$4 sm:$0xff]  }
 0x218   : > { %15049 = vst [vmem:[#allocation8_spill] sm:$0xff] %v13824_v34  ;;  %7020 = vmatprep.subr.bf16.mxu0 %v11302_v27  ;;  %v13832_v40 = vpop.f32.mrb[10].mxu1  ;;  %v11309_v20 = vld [vmem:[%s15003_s3 + $0xb90] ss:$12 sps:$4 sm:$0xff]   ;;  %v11312_v27 = vld [vmem:[%s15003_s3 + $0xe8c] ss:$12 sps:$4 sm:$0xff]  }
 0x219   : > { %15050 = vst [vmem:[#allocation6_spill] sm:$0xff] %v13832_v40  ;;  %v13837_v14 = vpop.f32.mrb[11].mxu1  ;;  %v11348_v40 = vld [vmem:[%s15003_s3 + $0xc38] ss:$12 sps:$4 sm:$0xff]  }
 0x21a   : > { %15051 = vst [vmem:[#allocation9_spill] sm:$0xff] %v13837_v14  ;;  %10312 = vmatpush3.bf16.msra.mxu1 %v11303_v44  ;;  %v11357_v34 = vld [vmem:[%s15003_s3 + $0xf64] ss:$12 sps:$4 sm:$0xff]  }
 0x21b   : > { %7021 = vmatpush1.bf16.msra.mxu0 %v11300_v48  ;;  %10313 = vmatprep.subr.bf16.mxu1 %v11304_v11  ;;  %v11313_v48 = vld [vmem:[%s15003_s3 + $0xad0] ss:$12 sps:$4 sm:$0xff]  }
 0x21c   : > { %7022 = vmatprep.subr.bf16.mxu0 %v11307_v9  ;;  %v11310_v9 = vld [vmem:[%s15003_s3 + $0xe88] ss:$12 sps:$4 sm:$0xff]  }
 0x21d   : > { %5796 = vmatmul.mubr.bf16.gmra.mrb[116].mxu1 %v12429_v43  ;;  %v11314_v43 = vld [vmem:[%s15003_s3 + $0xba8] ss:$12 sps:$4 sm:$0xff]  }
 0x21e   : > { %5803 = vmatprep.mubr.bf16.mxu1 %v12488_v28  ;;  %10314 = vmatpush3.bf16.msra.mxu1 %v11308_v63  ;;  %v13853_v44 = vpop.f32.mrb[12].mxu1  ;;  %v11317_v63 = vld [vmem:[%s15003_s3 + $0xea4] ss:$12 sps:$4 sm:$0xff]  }
 0x21f   : > { %15052 = vst [vmem:[#allocation10_spill] sm:$0xff] %v13853_v44  ;;  %7023 = vmatpush1.bf16.msra.mxu0 %v11305_v36  ;;  %v13858_v11 = vpop.f32.mrb[13].mxu1  ;;  %10315 = vmatprep.subr.bf16.mxu1 %v11309_v20  ;;  %v11318_v36 = vld [vmem:[%s15003_s3 + $0xae8] ss:$12 sps:$4 sm:$0xff]   ;;  %v11315_v20 = vld [vmem:[%s15003_s3 + $0xea0] ss:$12 sps:$4 sm:$0xff]  }
 0x220   : > { %15053 = vst [vmem:[#allocation11_spill] sm:$0xff] %v13858_v11  ;;  %7024 = vmatprep.subr.bf16.mxu0 %v11312_v27  ;;  %v13866_v28 = vpop.f32.mrb[14].mxu1  ;;  %v11319_v27 = vld [vmem:[%s15003_s3 + $0xbc0] ss:$12 sps:$4 sm:$0xff]  }
 0x221   : > { %15054 = vst [vmem:[#allocation12_spill] sm:$0xff] %v13866_v28  ;;  %v13871_v44 = vpop.f32.mrb[15].mxu1  ;;  %v11324_v28 = vld [vmem:[%s15003_s3 + $0xbd8] ss:$12 sps:$4 sm:$0xff]  }
 0x222   : > { %15055 = vst [vmem:[#allocation13_spill] sm:$0xff] %v13871_v44  ;;  %10316 = vmatpush3.bf16.msra.mxu1 %v11313_v48  ;;  %v11322_v44 = vld [vmem:[%s15003_s3 + $0xebc] ss:$12 sps:$4 sm:$0xff]  }
 0x223   : > { %7025 = vmatpush1.bf16.msra.mxu0 %v11310_v9  ;;  %10317 = vmatprep.subr.bf16.mxu1 %v11314_v43  ;;  %v11323_v9 = vld [vmem:[%s15003_s3 + $0xb00] ss:$12 sps:$4 sm:$0xff]  }
 0x224   : > { %7026 = vmatprep.subr.bf16.mxu0 %v11317_v63  ;;  %v11320_v63 = vld [vmem:[%s15003_s3 + $0xeb8] ss:$12 sps:$4 sm:$0xff]  }
 0x225   : > { %5804 = vmatmul.mubr.bf16.gmra.mrb[120].mxu1 %v12493_v32 }
 0x226   : > { %5811 = vmatprep.mubr.bf16.mxu1 %v13276_v56  ;;  %10318 = vmatpush3.bf16.msra.mxu1 %v11318_v36  ;;  %v10045_v48 = vpop.f32.mrb[16].mxu1  ;;  %v11327_v36 = vld [vmem:[%s15003_s3 + $0xed4] ss:$12 sps:$4 sm:$0xff]  }
 0x227   : > { %7027 = vmatpush1.bf16.msra.mxu0 %v11315_v20  ;;  %v10046_v43 = vpop.f32.mrb[17].mxu1  ;;  %10319 = vmatprep.subr.bf16.mxu1 %v11319_v27  ;;  %v11328_v27 = vld [vmem:[%s15003_s3 + $0xb18] ss:$12 sps:$4 sm:$0xff]  }
 0x228   : > { %v13896_v32 = vadd.f32 %v10046_v43, %v10045_v48  ;;  %7028 = vmatprep.subr.bf16.mxu0 %v11322_v44  ;;  %v10048_v56 = vpop.f32.mrb[18].mxu1  ;;  %v11325_v48 = vld [vmem:[%s15003_s3 + $0xed0] ss:$12 sps:$4 sm:$0xff]  }
 0x229   : > { %v10049_v11 = vpop.f32.mrb[19].mxu1  ;;  %v11329_v44 = vld [vmem:[%s15003_s3 + $0xbf0] ss:$12 sps:$4 sm:$0xff]  }
 0x22a   : > { %10320 = vmatpush3.bf16.msra.mxu1 %v11323_v9  ;;  %v13901_v20 = vadd.f32 %v10049_v11, %v10048_v56  ;;  %v11332_v11 = vld [vmem:[%s15003_s3 + $0xeec] ss:$12 sps:$4 sm:$0xff]   ;;  %v11334_v56 = vld [vmem:[%s15003_s3 + $0xcc8] ss:$12 sps:$4 sm:$0xff]  }
 0x22b   : > { %7029 = vmatpush1.bf16.msra.mxu0 %v11320_v63  ;;  %10321 = vmatprep.subr.bf16.mxu1 %v11324_v28  ;;  %v11333_v28 = vld [vmem:[%s15003_s3 + $0xb30] ss:$12 sps:$4 sm:$0xff]   ;;  %v11330_v63 = vld [vmem:[%s15003_s3 + $0xee8] ss:$12 sps:$4 sm:$0xff]  }
 0x22c   : > { %7030 = vmatprep.subr.bf16.mxu0 %v11327_v36 }
 0x22d   : > { %5812 = vmatmul.mubr.bf16.gmra.mrb[124].mxu1 %v13306_v26 }
 0x22e   : > { %10322 = vmatpush3.bf16.msra.mxu1 %v11328_v27  ;;  %v10051_v9 = vpop.f32.mrb[20].mxu1  ;;  %5852 = vmatprep.mubr.bf16.mxu1 %v12295_v22  ;;  %v11337_v27 = vld [vmem:[%s15003_s3 + $0xf04] ss:$12 sps:$4 sm:$0xff]  }
 0x22f   : > { %7031 = vmatpush1.bf16.msra.mxu0 %v11325_v48  ;;  %v10052_v43 = vpop.f32.mrb[21].mxu1  ;;  %10323 = vmatprep.subr.bf16.mxu1 %v11329_v44  ;;  %v11338_v44 = vld [vmem:[%s15003_s3 + $0xc08] ss:$12 sps:$4 sm:$0xff]  }
 0x230   : > { %v13926_v26 = vadd.f32 %v10052_v43, %v10051_v9  ;;  %7032 = vmatprep.subr.bf16.mxu0 %v11332_v11  ;;  %v10054_v36 = vpop.f32.mrb[22].mxu1  ;;  %v11335_v9 = vld [vmem:[%s15003_s3 + $0xf00] ss:$12 sps:$4 sm:$0xff]  }
 0x231   : > { %v10055_v22 = vpop.f32.mrb[23].mxu1  ;;  %v11339_v11 = vld [vmem:[%s15003_s3 + $0xce0] ss:$12 sps:$4 sm:$0xff]  }
 0x232   : > { %10324 = vmatpush3.bf16.msra.mxu1 %v11333_v28  ;;  %v13931_v48 = vadd.f32 %v10055_v22, %v10054_v36  ;;  %v11342_v28 = vld [vmem:[%s15003_s3 + $0xf1c] ss:$12 sps:$4 sm:$0xff]   ;;  %v11340_v36 = vld [vmem:[%s15003_s3 + $0xf18] ss:$12 sps:$4 sm:$0xff]  }
 0x233   : > { %7033 = vmatpush1.bf16.msra.mxu0 %v11330_v63  ;;  %10349 = vmatprep.subr.bf16.mxu1 %v11334_v56  ;;  %v11343_v63 = vld [vmem:[%s15003_s3 + $0xc20] ss:$12 sps:$4 sm:$0xff]  }
 0x234   : > { %7075 = vmatprep.subr.bf16.mxu0 %v11337_v27 }
 0x235   : > { %5853 = vmatmul.mubr.bf16.vlgmr.msra.gmra.mrb[128].mxu1 %v12576_v18  ;;  %v11344_v18 = vld [vmem:[%s15003_s3 + $0xcf8] ss:$12 sps:$4 sm:$0xff]  }
 0x236   : > { %7035 = vmatmul.mubr.bf16.vlgmr.msra.gmra.mrb[0].mxu0 %v12403_v47  ;;  %10350 = vmatpush3.bf16.msra.mxu1 %v11338_v44  ;;  %v10057_v43 = vpop.f32.mrb[24].mxu1  ;;  %v11347_v44 = vld [vmem:[%s15003_s3 + $0xf34] ss:$12 sps:$4 sm:$0xff]  }
 0x237   : > { %7044 = vmatprep.mubr.bf16.mxu0 %v12457_v38  ;;  %7076 = vmatpush1.bf16.msra.mxu0 %v11335_v9  ;;  %v10058_v56 = vpop.f32.mrb[25].mxu1 }
 0x238   : > { %v13957_v27 = vadd.f32 %v10058_v56, %v10057_v43  ;;  %10351 = vmatprep.subr.bf16.mxu1 %v11339_v11  ;;  %7077 = vmatprep.subr.bf16.mxu0 %v11342_v28  ;;  %v10060_v22 = vpop.f32.mrb[26].mxu1  ;;  %v11345_v11 = vld [vmem:[%s15003_s3 + $0xf30] ss:$12 sps:$4 sm:$0xff]  }
 0x239   : > { %v10061_v14 = vpop.f32.mrb[27].mxu1  ;;  %5860 = vmatprep.mubr.bf16.mxu1 %v12301_v31  ;;  %v11349_v28 = vld [vmem:[%s15003_s3 + $0xd10] ss:$12 sps:$4 sm:$0xff]   ;;  %v11352_v31 = vld [vmem:[%s15003_s3 + $0xf4c] ss:$12 sps:$4 sm:$0xff]  }
 0x23a   : > { %10352 = vmatpush3.bf16.msra.mxu1 %v11343_v63  ;;  %v13963_v9 = vadd.f32 %v10061_v14, %v10060_v22  ;;  %v11521_v14 = vld [vmem:[#allocation2 + $0xa0] sm:$0xff]  ;;  %v11353_v56 = vld [vmem:[%s15003_s3 + $0xc50] ss:$12 sps:$4 sm:$0xff]   ;;  %v11354_v22 = vld [vmem:[%s15003_s3 + $0xd28] ss:$12 sps:$4 sm:$0xff]  }
 0x23b   : > { %7078 = vmatpush1.bf16.msra.mxu0 %v11340_v36  ;;  %10353 = vmatprep.subr.bf16.mxu1 %v11344_v18  ;;  %v8713_v43 = vcombine.high %v11521_v14, %v11521_v14  ;;  %v13982_v36 = vpop.permute.xlu0 %1106 }
 0x23c   : > { %7079 = vmatprep.subr.bf16.mxu0 %v11347_v44 }
 0x23d   : > { %5861 = vmatmul.mubr.bf16.gmra.mrb[132].mxu1 %v12741_v39  ;;  %v11350_v39 = vld [vmem:[%s15003_s3 + $0xf48] ss:$12 sps:$4 sm:$0xff]  }
 0x23e   : > { %7045 = vmatmul.mubr.bf16.gmra.mrb[4].mxu0 %v12465_v62  ;;  %10354 = vmatpush3.bf16.msra.mxu1 %v11348_v40  ;;  %v10063_v63 = vpop.f32.mrb[28].mxu1 }
 0x23f   : > { %7054 = vmatprep.mubr.bf16.mxu0 %v12531_v8  ;;  %7080 = vmatpush1.bf16.msra.mxu0 %v11345_v11  ;;  %v10064_v18 = vpop.f32.mrb[29].mxu1  ;;  %v1518_v11 = vsel %vm1110_vm8, %v8713_v43, %v13982_v36 }
 0x240   : > { %v13991_v40 = vadd.f32 %v10064_v18, %v10063_v63  ;;  %10355 = vmatprep.subr.bf16.mxu1 %v11349_v28  ;;  %7081 = vmatprep.subr.bf16.mxu0 %v11352_v31  ;;  %v10066_v44 = vpop.f32.mrb[30].mxu1  ;;  %v11358_v63 = vld [vmem:[%s15003_s3 + $0xc68] ss:$12 sps:$4 sm:$0xff]   ;;  %v11355_v28 = vld [vmem:[%s15003_s3 + $0xf60] ss:$12 sps:$4 sm:$0xff]   ;;  %v14014_v31 = vcombine.low %v13263_v37, %v1518_v11 }
 0x241   : > { %v10067_v2 = vpop.f32.mrb[31].mxu1  ;;  %5868 = vmatprep.mubr.bf16.mxu1 %v12307_v57  ;;  %v11359_v57 = vld [vmem:[%s15003_s3 + $0xd40] ss:$12 sps:$4 sm:$0xff]   ;;  %v11360_v18 = vld [vmem:[%s15003_s3 + $0xf78] ss:$12 sps:$4 sm:$0xff]  }
 0x242   : > { %10356 = vmatpush3.bf16.msra.mxu1 %v11353_v56  ;;  %v13999_v15 = vadd.f32 %v10067_v2, %v10066_v44  ;;  %v11362_v2 = vld [vmem:[%s15003_s3 + $0xf7c] ss:$12 sps:$4 sm:$0xff]  }
 0x243   : > { %7082 = vmatpush1.bf16.msra.mxu0 %v11350_v39  ;;  %10357 = vmatprep.subr.bf16.mxu1 %v11354_v22  ;;  %v11367_v22 = vld [vmem:[%s15003_s3 + $0xf94] ss:$12 sps:$4 sm:$0xff]  }
 0x244   : > { %7083 = vmatprep.subr.bf16.mxu0 %v11357_v34  ;;  %v11363_v34 = vld [vmem:[%s15003_s3 + $0xc80] ss:$12 sps:$4 sm:$0xff]  }
 0x245   : > { %5869 = vmatmul.mubr.bf16.gmra.mrb[136].mxu1 %v12811_v12  ;;  %v11364_v12 = vld [vmem:[%s15003_s3 + $0xd58] ss:$12 sps:$4 sm:$0xff]  }
 0x246   : > { %7055 = vmatmul.mubr.bf16.gmra.mrb[8].mxu0 %v15042_v0  ;;  %10358 = vmatpush3.bf16.msra.mxu1 %v11358_v63  ;;  %v10085_v43 = vpop.f32.mrb[32].mxu1 }
 0x247   : > { %7064 = vmatprep.mubr.bf16.mxu0 %v14014_v31  ;;  %7084 = vmatpush1.bf16.msra.mxu0 %v11355_v28  ;;  %v10086_v56 = vpop.f32.mrb[33].mxu1  ;;  %v11368_v28 = vld [vmem:[%s15003_s3 + $0xc98] ss:$12 sps:$4 sm:$0xff]  }
 0x248   : > { %v10087_v37 = vadd.f32 %v10086_v56, %v10085_v43  ;;  %10359 = vmatprep.subr.bf16.mxu1 %v11359_v57  ;;  %7085 = vmatprep.subr.bf16.mxu0 %v11362_v2  ;;  %v10088_v39 = vpop.f32.mrb[34].mxu1  ;;  %v11365_v57 = vld [vmem:[%s15003_s3 + $0xf90] ss:$12 sps:$4 sm:$0xff]  }
 0x249   : > { %v10089_v44 = vpop.f32.mrb[35].mxu1  ;;  %5876 = vmatprep.mubr.bf16.mxu1 %v13507_v41  ;;  %v11369_v2 = vld [vmem:[%s15003_s3 + $0xd70] ss:$12 sps:$4 sm:$0xff]  }
 0x24a   : > { %v14033_v11 = vadd.f32 %v10087_v37, %v13896_v32  ;;  %10360 = vmatpush3.bf16.msra.mxu1 %v11363_v34  ;;  %v10090_v63 = vadd.f32 %v10089_v44, %v10088_v39  ;;  %v11372_v32 = vld [vmem:[%s15003_s3 + $0xfac] ss:$12 sps:$4 sm:$0xff]   ;;  %v11522_v43 = vld [vmem:[#allocation2 + $0x90] sm:$0xff] }
 0x24b   : > { %7086 = vmatpush1.bf16.msra.mxu0 %v11360_v18  ;;  %10361 = vmatprep.subr.bf16.mxu1 %v11364_v12  ;;  %v14050_v34 = vcombine.low %v11522_v43, %v11521_v14  ;;  %v11373_v18 = vld [vmem:[%s15003_s3 + $0xcb0] ss:$12 sps:$4 sm:$0xff]   ;;  %v11370_v12 = vld [vmem:[%s15003_s3 + $0xfa8] ss:$12 sps:$4 sm:$0xff]   ;;  %v11383_v43 = vld [vmem:[%s15003_s3 + $0xda0] ss:$12 sps:$4 sm:$0xff]  }
 0x24c   : > { %v14045_v41 = vadd.f32 %v10090_v63, %v13901_v20  ;;  %7087 = vmatprep.subr.bf16.mxu0 %v11367_v22  ;;  %v11377_v14 = vld [vmem:[%s15003_s3 + $0xe48] ss:$12 sps:$4 sm:$0xff]  }
 0x24d   : > { %5877 = vmatmul.mubr.bf16.gmra.mrb[140].mxu1 %v13533_v35  ;;  %v11378_v63 = vld [vmem:[%s15003_s3 + $0xd88] ss:$12 sps:$4 sm:$0xff]  }
 0x24e   : > { %10362 = vmatpush3.bf16.msra.mxu1 %v11368_v28  ;;  %5917 = vmatprep.mubr.bf16.mxu1 %v12960_v49  ;;  %v10091_v56 = vpop.f32.mrb[36].mxu1  ;;  %v11376_v49 = vld [vmem:[%s15003_s3 + $0xfc4] ss:$12 sps:$4 sm:$0xff]   ;;  %v11374_v28 = vld [vmem:[%s15003_s3 + $0xfc0] ss:$12 sps:$4 sm:$0xff]  }
 0x24f   : > { %7088 = vmatpush1.bf16.msra.mxu0 %v11365_v57  ;;  %v10092_v20 = vpop.f32.mrb[37].mxu1  ;;  %10363 = vmatprep.subr.bf16.mxu1 %v11369_v2  ;;  %v11382_v57 = vld [vmem:[%s15003_s3 + $0xe60] ss:$12 sps:$4 sm:$0xff]  }
 0x250   : > { %v10093_v35 = vadd.f32 %v10092_v20, %v10091_v56  ;;  %7089 = vmatprep.subr.bf16.mxu0 %v11372_v32  ;;  %v10094_v37 = vpop.f32.mrb[38].mxu1  ;;  %7065 = vmatmul.mubr.bf16.gmra.mrb[12].mxu0 %v14050_v34  ;;  %v11386_v20 = vld [vmem:[%s15003_s3 + $0xff4] ss:$12 sps:$4 sm:$0xff]  }
 0x251   : > { %v10095_v39 = vpop.f32.mrb[39].mxu1  ;;  %7107 = vmatprep.mubr.bf16.mxu0 %v15045_v55 }
 0x252   : > { %v14069_v22 = vadd.f32 %v10093_v35, %v13926_v26  ;;  %10364 = vmatpush3.bf16.msra.mxu1 %v11373_v18  ;;  %v10096_v44 = vadd.f32 %v10095_v39, %v10094_v37  ;;  %v11381_v26 = vld [vmem:[%s15003_s3 + $0xfdc] ss:$12 sps:$4 sm:$0xff]   ;;  %v11387_v18 = vld [vmem:[%s15003_s3 + $0xe78] ss:$12 sps:$4 sm:$0xff]  }
 0x253   : > { %7090 = vmatpush1.bf16.msra.mxu0 %v11370_v12  ;;  %10389 = vmatprep.subr.bf16.mxu1 %v11377_v14  ;;  %v11388_v37 = vld [vmem:[%s15003_s3 + $0xdb8] ss:$12 sps:$4 sm:$0xff]   ;;  %v11392_v39 = vld [vmem:[%s15003_s3 + $0xe90] ss:$12 sps:$4 sm:$0xff]  }
 0x254   : > { %v14081_v2 = vadd.f32 %v10096_v44, %v13931_v48  ;;  %7091 = vmatprep.subr.bf16.mxu0 %v11376_v49  ;;  %v11379_v48 = vld [vmem:[%s15003_s3 + $0xfd8] ss:$12 sps:$4 sm:$0xff]   ;;  %v11384_v49 = vld [vmem:[%s15003_s3 + $0xff0] ss:$12 sps:$4 sm:$0xff]  }
 0x255   : > { %5918 = vmatmul.mubr.bf16.vlgmr.msra.gmra.mrb[144].mxu1 %v12695_v51 }
 0x256   : > { %5925 = vmatprep.mubr.bf16.mxu1 %v12996_v50  ;;  %10390 = vmatpush3.bf16.msra.mxu1 %v11378_v63  ;;  %v10097_v32 = vpop.f32.mrb[40].mxu1 }
 0x257   : > { %7092 = vmatpush1.bf16.msra.mxu0 %v11374_v28  ;;  %v10098_v56 = vpop.f32.mrb[41].mxu1  ;;  %10391 = vmatprep.subr.bf16.mxu1 %v11382_v57  ;;  %v11393_v28 = vld [vmem:[%s15003_s3 + $0xdd0] ss:$12 sps:$4 sm:$0xff]  }
 0x258   : > { %v10099_v51 = vadd.f32 %v10098_v56, %v10097_v32  ;;  %7093 = vmatprep.subr.bf16.mxu0 %v11381_v26  ;;  %v10100_v50 = vpop.f32.mrb[42].mxu1  ;;  %v11397_v26 = vld [vmem:[%s15003_s3 + $0xea8] ss:$12 sps:$4 sm:$0xff]   ;;  %v11396_v32 = vld [vmem:[%s15003_s3 + $0x1024] ss:$12 sps:$4 sm:$0xff]  }
 0x259   : > { %v10101_v12 = vpop.f32.mrb[43].mxu1 }
 0x25a   : > { %v14101_v14 = vadd.f32 %v10099_v51, %v13957_v27  ;;  %10392 = vmatpush3.bf16.msra.mxu1 %v11383_v43  ;;  %v10102_v35 = vadd.f32 %v10101_v12, %v10100_v50  ;;  %v11391_v27 = vld [vmem:[%s15003_s3 + $0x100c] ss:$12 sps:$4 sm:$0xff]  }
 0x25b   : > { %7094 = vmatpush1.bf16.msra.mxu0 %v11379_v48  ;;  %10393 = vmatprep.subr.bf16.mxu1 %v11387_v18  ;;  %v11398_v18 = vld [vmem:[%s15003_s3 + $0xde8] ss:$12 sps:$4 sm:$0xff]   ;;  %v11394_v51 = vld [vmem:[%s15003_s3 + $0x1020] ss:$12 sps:$4 sm:$0xff]  }
 0x25c   : > { %v14113_v44 = vadd.f32 %v10102_v35, %v13963_v9  ;;  %7095 = vmatprep.subr.bf16.mxu0 %v11386_v20  ;;  %v11389_v9 = vld [vmem:[%s15003_s3 + $0x1008] ss:$12 sps:$4 sm:$0xff]   ;;  %v11402_v50 = vld [vmem:[%s15003_s3 + $0xec0] ss:$12 sps:$4 sm:$0xff]  }
 0x25d   : > { %5926 = vmatmul.mubr.bf16.gmra.mrb[148].mxu1 %v12750_v45  ;;  %v11403_v35 = vld [vmem:[%s15003_s3 + $0xe00] ss:$12 sps:$4 sm:$0xff]  }
 0x25e   : > { %5933 = vmatprep.mubr.bf16.mxu1 %v13034_v42  ;;  %10394 = vmatpush3.bf16.msra.mxu1 %v11388_v37  ;;  %v10103_v63 = vpop.f32.mrb[44].mxu1 }
 0x25f   : > { %7096 = vmatpush1.bf16.msra.mxu0 %v11384_v49  ;;  %v10104_v57 = vpop.f32.mrb[45].mxu1  ;;  %10395 = vmatprep.subr.bf16.mxu1 %v11392_v39  ;;  %v11407_v49 = vld [vmem:[%s15003_s3 + $0xed8] ss:$12 sps:$4 sm:$0xff]   ;;  %v11406_v39 = vld [vmem:[%s15003_s3 + $0x1054] ss:$12 sps:$4 sm:$0xff]  }
 0x260   : > { %v10105_v45 = vadd.f32 %v10104_v57, %v10103_v63  ;;  %7097 = vmatprep.subr.bf16.mxu0 %v11391_v27  ;;  %v10106_v42 = vpop.f32.mrb[46].mxu1  ;;  %v11408_v57 = vld [vmem:[%s15003_s3 + $0xe18] ss:$12 sps:$4 sm:$0xff]  }
 0x261   : > { %v10107_v43 = vpop.f32.mrb[47].mxu1 }
 0x262   : > { %v14133_v56 = vadd.f32 %v10105_v45, %v13991_v40  ;;  %10396 = vmatpush3.bf16.msra.mxu1 %v11393_v28  ;;  %v10108_v48 = vadd.f32 %v10107_v43, %v10106_v42  ;;  %v11401_v40 = vld [vmem:[%s15003_s3 + $0x103c] ss:$12 sps:$4 sm:$0xff]  }
 0x263   : > { %7098 = vmatpush1.bf16.msra.mxu0 %v11389_v9  ;;  %10397 = vmatprep.subr.bf16.mxu1 %v11397_v26  ;;  %v11404_v9 = vld [vmem:[%s15003_s3 + $0x1050] ss:$12 sps:$4 sm:$0xff]  }
 0x264   : > { %v14145_v20 = vadd.f32 %v10108_v48, %v13999_v15  ;;  %7099 = vmatprep.subr.bf16.mxu0 %v11396_v32  ;;  %v11399_v15 = vld [vmem:[%s15003_s3 + $0x1038] ss:$12 sps:$4 sm:$0xff]   ;;  %v11412_v26 = vld [vmem:[%s15003_s3 + $0xef0] ss:$12 sps:$4 sm:$0xff]   ;;  %v11417_v48 = vld [vmem:[%s15003_s3 + $0xfc8] ss:$12 sps:$4 sm:$0xff]  }
 0x265   : > { %5934 = vmatmul.mubr.bf16.gmra.mrb[152].mxu1 %v12826_v6  ;;  %v11413_v32 = vld [vmem:[%s15003_s3 + $0xe30] ss:$12 sps:$4 sm:$0xff]  }
 0x266   : > { %5941 = vmatprep.mubr.bf16.mxu1 %v13733_v54  ;;  %10398 = vmatpush3.bf16.msra.mxu1 %v11398_v18  ;;  %v10125_v12 = vpop.f32.mrb[48].mxu1 }
 0x267   : > { %7100 = vmatpush1.bf16.msra.mxu0 %v11394_v51  ;;  %v10126_v37 = vpop.f32.mrb[49].mxu1  ;;  %10399 = vmatprep.subr.bf16.mxu1 %v11402_v50 }
 0x268   : > { %v10127_v6 = vadd.f32 %v10126_v37, %v10125_v12  ;;  %7101 = vmatprep.subr.bf16.mxu0 %v11401_v40  ;;  %v10128_v54 = vpop.f32.mrb[50].mxu1  ;;  %v11414_v12 = vld [vmem:[%s15003_s3 + $0x1080] ss:$12 sps:$4 sm:$0xff]  }
 0x269   : > { %v10129_v27 = vpop.f32.mrb[51].mxu1 }
 0x26a   : > { %v14165_v63 = vadd.f32 %v10127_v6, %v14033_v11  ;;  %10400 = vmatpush3.bf16.msra.mxu1 %v11403_v35  ;;  %v10130_v28 = vadd.f32 %v10129_v27, %v10128_v54  ;;  %v11411_v11 = vld [vmem:[%s15003_s3 + $0x106c] ss:$12 sps:$4 sm:$0xff]   ;;  %v11418_v35 = vld [vmem:[%s15003_s3 + $0xf08] ss:$12 sps:$4 sm:$0xff]  }
 0x26b   : > { %7102 = vmatpush1.bf16.msra.mxu0 %v11399_v15  ;;  %10401 = vmatprep.subr.bf16.mxu1 %v11407_v49  ;;  %v11422_v15 = vld [vmem:[%s15003_s3 + $0xfe0] ss:$12 sps:$4 sm:$0xff]   ;;  %v11419_v6 = vld [vmem:[%s15003_s3 + $0x1098] ss:$12 sps:$4 sm:$0xff]  }
 0x26c   : > { %v14177_v45 = vadd.f32 %v10130_v28, %v14045_v41  ;;  %7103 = vmatprep.subr.bf16.mxu0 %v11406_v39  ;;  %v11409_v41 = vld [vmem:[%s15003_s3 + $0x1068] ss:$12 sps:$4 sm:$0xff]   ;;  %v11423_v54 = vld [vmem:[%s15003_s3 + $0xf20] ss:$12 sps:$4 sm:$0xff]   ;;  %v11427_v27 = vld [vmem:[%s15003_s3 + $0xff8] ss:$12 sps:$4 sm:$0xff]  }
 0x26d   : > { %5942 = vmatmul.mubr.bf16.gmra.mrb[156].mxu1 %v13770_v52 }
 0x26e   : > { %10402 = vmatpush3.bf16.msra.mxu1 %v11408_v57  ;;  %7253 = vmatprep.mubr.bf16.mxu1 %v12398_v46  ;;  %v10131_v42 = vpop.f32.mrb[52].mxu1  ;;  %v11416_v46 = vld [vmem:[%s15003_s3 + $0x1084] ss:$12 sps:$4 sm:$0xff]  }
 0x26f   : > { %7104 = vmatpush1.bf16.msra.mxu0 %v11404_v9  ;;  %v10132_v43 = vpop.f32.mrb[53].mxu1  ;;  %10403 = vmatprep.subr.bf16.mxu1 %v11412_v26  ;;  %v11424_v26 = vld [vmem:[%s15003_s3 + $0x10b0] ss:$12 sps:$4 sm:$0xff]  }
 0x270   : > { %v10133_v52 = vadd.f32 %v10132_v43, %v10131_v42  ;;  %7105 = vmatprep.subr.bf16.mxu0 %v11411_v11  ;;  %v10134_v18 = vpop.f32.mrb[54].mxu1  ;;  %v11428_v11 = vld [vmem:[%s15003_s3 + $0xf38] ss:$12 sps:$4 sm:$0xff]   ;;  %v14249_v43 = vld [vmem:[#allocation2 + $0xa8] sm:$0x11] }
 0x271   : > { %v10135_v51 = vpop.f32.mrb[55].mxu1 }
 0x272   : > { %v14197_v50 = vadd.f32 %v10133_v52, %v14069_v22  ;;  %10404 = vmatpush3.bf16.msra.mxu1 %v11413_v32  ;;  %v10136_v40 = vadd.f32 %v10135_v51, %v10134_v18  ;;  %v11421_v22 = vld [vmem:[%s15003_s3 + $0x109c] ss:$12 sps:$4 sm:$0xff]  }
 0x273   : > { %7106 = vmatpush1.bf16.msra.mxu0 %v11409_v41  ;;  %10429 = vmatprep.subr.bf16.mxu1 %v11417_v48  ;;  %v11432_v32 = vld [vmem:[%s15003_s3 + $0x1010] ss:$12 sps:$4 sm:$0xff]   ;;  %v14251_v41 = vld [vmem:[#allocation2 + $0xa0] sm:$0xee]  ;;  %v11429_v18 = vld [vmem:[%s15003_s3 + $0x10c8] ss:$12 sps:$4 sm:$0xff]  }
 0x274   : > { %v14206_v37 = vadd.f32 %v10136_v40, %v14081_v2  ;;  %7148 = vmatprep.subr.bf16.mxu0 %v11416_v46  ;;  %v11437_v40 = vld [vmem:[%s15003_s3 + $0x1028] ss:$12 sps:$4 sm:$0xff]  }
 0x275   : > { %7254 = vmatmul.mubr.bf16.vlgmr.msra.gmra.mrb[160].mxu1 %v12403_v47 }
 0x276   : > { %7108 = vmatmul.mubr.bf16.vlgmr.msra.gmra.mrb[0].mxu0 %v15046_v24  ;;  %7261 = vmatprep.mubr.bf16.mxu1 %v12457_v38  ;;  %v10137_v49 = vpop.f32.mrb[56].mxu1  ;;  %v11426_v38 = vld [vmem:[%s15003_s3 + $0x10b4] ss:$12 sps:$4 sm:$0xff]  }
 0x277   : > { %7149 = vmatpush1.bf16.msra.mxu0 %v11414_v12  ;;  %10430 = vmatpush3.bf16.msra.mxu1 %v11418_v35  ;;  %v10138_v2 = vpop.f32.mrb[57].mxu1 }
 0x278   : > { %v10139_v39 = vadd.f32 %v10138_v2, %v10137_v49  ;;  %7150 = vmatprep.subr.bf16.mxu0 %v11421_v22  ;;  %10431 = vmatprep.subr.bf16.mxu1 %v11422_v15  ;;  %v10140_v47 = vpop.f32.mrb[58].mxu1  ;;  %v11434_v49 = vld [vmem:[%s15003_s3 + $0x10e0] ss:$12 sps:$4 sm:$0xff]   ;;  %v11438_v2 = vld [vmem:[%s15003_s3 + $0xf68] ss:$12 sps:$4 sm:$0xff]  }
 0x279   : > { %v10141_v28 = vpop.f32.mrb[59].mxu1  ;;  %7117 = vmatprep.mubr.bf16.mxu0 %v12303_v33 }
 0x27a   : > { %v14231_v57 = vadd.f32 %v10139_v39, %v14101_v14  ;;  %v10142_v9 = vadd.f32 %v10141_v28, %v10140_v47  ;;  %v11431_v14 = vld [vmem:[%s15003_s3 + $0x10cc] ss:$12 sps:$4 sm:$0xff]   ;;  %v1109_v47 = vpop.permute.xlu1 %1108 }
 0x27b   : > { %7151 = vmatpush1.bf16.msra.mxu0 %v11419_v6  ;;  %10432 = vmatpush3.bf16.msra.mxu1 %v11423_v54  ;;  %v11442_v54 = vld [vmem:[%s15003_s3 + $0x1040] ss:$12 sps:$4 sm:$0xff]  }
 0x27c   : > { %v14240_v42 = vadd.f32 %v10142_v9, %v14113_v44  ;;  %7152 = vmatprep.subr.bf16.mxu0 %v11426_v38  ;;  %10433 = vmatprep.subr.bf16.mxu1 %v11427_v27  ;;  %v8756_v44 = vcombine.low %v14251_v41, %v14249_v43  ;;  %v11439_v27 = vld [vmem:[%s15003_s3 + $0x10f8] ss:$12 sps:$4 sm:$0xff]  }
 0x27d   : > { %7262 = vmatmul.mubr.bf16.gmra.mrb[164].mxu1 %v12465_v62  ;;  %v11433_v62 = vld [vmem:[%s15003_s3 + $0xf50] ss:$12 sps:$4 sm:$0xff]   ;;  %v11447_v9 = vld [vmem:[%s15003_s3 + $0x1058] ss:$12 sps:$4 sm:$0xff]  }
 0x27e   : > { %7118 = vmatmul.mubr.bf16.gmra.mrb[4].mxu0 %v12743_v19  ;;  %7269 = vmatprep.mubr.bf16.mxu1 %v12531_v8  ;;  %v10143_v48 = vpop.f32.mrb[60].mxu1  ;;  %v11436_v8 = vld [vmem:[%s15003_s3 + $0x10e4] ss:$12 sps:$4 sm:$0xff]   ;;  %v1197_v35 = vrot.slane %v8756_v44, 1 }
 0x27f   : > { %7153 = vmatpush1.bf16.msra.mxu0 %v11424_v26  ;;  %10434 = vmatpush3.bf16.msra.mxu1 %v11428_v11  ;;  %v10144_v52 = vpop.f32.mrb[61].mxu1  ;;  %v1121_v26 = vsel %vm1110_vm8, %v13982_v36, %v1109_v47  ;;  %v11448_v36 = vld [vmem:[%s15003_s3 + $0xf98] ss:$12 sps:$4 sm:$0xff]  }
 0x280   : > { %v10145_v46 = vadd.f32 %v10144_v52, %v10143_v48  ;;  %7154 = vmatprep.subr.bf16.mxu0 %v11431_v14  ;;  %10435 = vmatprep.subr.bf16.mxu1 %v11432_v32  ;;  %v10146_v51 = vpop.f32.mrb[62].mxu1  ;;  %v14290_v39 = vcombine.low %v13487_v29, %v1197_v35  ;;  %v11444_v32 = vld [vmem:[%s15003_s3 + $0x1110] ss:$12 sps:$4 sm:$0xff]   ;;  %v14317_v44 = vcombine.low %v13522_v23, %v1121_v26  ;;  %v11451_v48 = vld [vmem:[%s15003_s3 + $0x112c] ss:$12 sps:$4 sm:$0xff]  }
 0x281   : > { %v10147_v12 = vpop.f32.mrb[63].mxu1  ;;  %7127 = vmatprep.mubr.bf16.mxu0 %v12754_v59  ;;  %v11452_v52 = vld [vmem:[%s15003_s3 + $0x1070] ss:$12 sps:$4 sm:$0xff]   ;;  %v11454_v35 = vld [vmem:[%s15003_s3 + $0x1140] ss:$12 sps:$4 sm:$0xff]  }
 0x282   : > { %v14271_v22 = vadd.f32 %v10145_v46, %v14133_v56  ;;  %v10148_v15 = vadd.f32 %v10147_v12, %v10146_v51  ;;  %v11441_v56 = vld [vmem:[%s15003_s3 + $0x10fc] ss:$12 sps:$4 sm:$0xff]   ;;  %v11459_v47 = vld [vmem:[%s15003_s3 + $0x1158] ss:$12 sps:$4 sm:$0xff]  }
 0x283   : > { %7155 = vmatpush1.bf16.msra.mxu0 %v11429_v18  ;;  %10436 = vmatpush3.bf16.msra.mxu1 %v11433_v62  ;;  %v11449_v62 = vld [vmem:[%s15003_s3 + $0x1128] ss:$12 sps:$4 sm:$0xff]   ;;  %v11453_v51 = vld [vmem:[%s15003_s3 + $0xfb0] ss:$12 sps:$4 sm:$0xff]   ;;  %v11468_v26 = vld [vmem:[%s15003_s3 + $0x10b8] ss:$12 sps:$4 sm:$0xff]  }
 0x284   : > { %v14280_v6 = vadd.f32 %v10148_v15, %v14145_v20  ;;  %7156 = vmatprep.subr.bf16.mxu0 %v11436_v8  ;;  %10437 = vmatprep.subr.bf16.mxu1 %v11437_v40  ;;  %v11457_v40 = vld [vmem:[%s15003_s3 + $0x1148] ss:$12 sps:$4 sm:$0xff]  }
 0x285   : > { %7270 = vmatmul.mubr.bf16.gmra.mrb[168].mxu1 %v15042_v0  ;;  %v11443_v0 = vld [vmem:[%s15003_s3 + $0xf80] ss:$12 sps:$4 sm:$0xff]   ;;  %v11458_v15 = vld [vmem:[%s15003_s3 + $0x1088] ss:$12 sps:$4 sm:$0xff]  }
 0x286   : > { %7128 = vmatmul.mubr.bf16.gmra.mrb[8].mxu0 %v12814_v4  ;;  %7277 = vmatprep.mubr.bf16.mxu1 %v14014_v31  ;;  %v10165_v20 = vpop.f32.mrb[64].mxu1  ;;  %v11446_v31 = vld [vmem:[%s15003_s3 + $0x1114] ss:$12 sps:$4 sm:$0xff]  }
 0x287   : > { %7157 = vmatpush1.bf16.msra.mxu0 %v11434_v49  ;;  %10438 = vmatpush3.bf16.msra.mxu1 %v11438_v2  ;;  %v10166_v38 = vpop.f32.mrb[65].mxu1  ;;  %v11461_v49 = vld [vmem:[%s15003_s3 + $0x115c] ss:$12 sps:$4 sm:$0xff]   ;;  %v11462_v2 = vld [vmem:[%s15003_s3 + $0x1160] ss:$12 sps:$4 sm:$0xff]  }
 0x288   : > { %v14300_v28 = vadd.f32 %v10166_v38, %v10165_v20  ;;  %7158 = vmatprep.subr.bf16.mxu0 %v11441_v56  ;;  %10439 = vmatprep.subr.bf16.mxu1 %v11442_v54  ;;  %v10168_v29 = vpop.f32.mrb[66].mxu1 }
 0x289   : > { %v10169_v11 = vpop.f32.mrb[67].mxu1  ;;  %7137 = vmatprep.mubr.bf16.mxu0 %v14290_v39 }
 0x28a   : > { %v14311_v14 = vadd.f32 %v10169_v11, %v10168_v29  ;;  %v11467_v29 = vld [vmem:[%s15003_s3 + $0x1178] ss:$12 sps:$4 sm:$0xff]   ;;  %v11472_v11 = vld [vmem:[%s15003_s3 + $0x1190] ss:$12 sps:$4 sm:$0xff]  }
 0x28b   : > { %7159 = vmatpush1.bf16.msra.mxu0 %v11439_v27  ;;  %10440 = vmatpush3.bf16.msra.mxu1 %v11443_v0  ;;  %v11463_v27 = vld [vmem:[%s15003_s3 + $0x10a0] ss:$12 sps:$4 sm:$0xff]  }
 0x28c   : > { %7160 = vmatprep.subr.bf16.mxu0 %v11446_v31  ;;  %10441 = vmatprep.subr.bf16.mxu1 %v11447_v9  ;;  %v11466_v0 = vld [vmem:[%s15003_s3 + $0x1174] ss:$12 sps:$4 sm:$0xff]   ;;  %v11464_v9 = vld [vmem:[%s15003_s3 + $0x1170] ss:$12 sps:$4 sm:$0xff]  }
 0x28d   : > { %7278 = vmatmul.mubr.bf16.gmra.mrb[172].mxu1 %v14050_v34 }
 0x28e   : > { %7138 = vmatmul.mubr.bf16.gmra.mrb[12].mxu0 %v14317_v44  ;;  %v10171_v23 = vpop.f32.mrb[68].mxu1  ;;  %7318 = vmatprep.mubr.bf16.mxu1 %v15045_v55  ;;  %v11456_v55 = vld [vmem:[%s15003_s3 + $0x1144] ss:$12 sps:$4 sm:$0xff]  }
 0x28f   : > { %7161 = vmatpush1.bf16.msra.mxu0 %v11444_v32  ;;  %7180 = vmatprep.mubr.bf16.mxu0 %v12965_v61  ;;  %v10172_v18 = vpop.f32.mrb[69].mxu1 }
 0x290   : > { %10442 = vmatpush3.bf16.msra.mxu1 %v11448_v36  ;;  %v14335_v46 = vadd.f32 %v10172_v18, %v10171_v23  ;;  %7162 = vmatprep.subr.bf16.mxu0 %v11451_v48  ;;  %v10174_v34 = vpop.f32.mrb[70].mxu1  ;;  %v11469_v48 = vld [vmem:[%s15003_s3 + $0x1188] ss:$12 sps:$4 sm:$0xff]   ;;  %v11473_v18 = vld [vmem:[%s15003_s3 + $0x10d0] ss:$12 sps:$4 sm:$0xff]  }
 0x291   : > { %10443 = vmatprep.subr.bf16.mxu1 %v11452_v52  ;;  %v10175_v8 = vpop.f32.mrb[71].mxu1 }
 0x292   : > { %v14346_v12 = vadd.f32 %v10175_v8, %v10174_v34  ;;  %v11477_v34 = vld [vmem:[%s15003_s3 + $0x11a8] ss:$12 sps:$4 sm:$0xff]  }
 0x293   : > { %7163 = vmatpush1.bf16.msra.mxu0 %v11449_v62  ;;  %v11476_v62 = vld [vmem:[%s15003_s3 + $0x11a4] ss:$12 sps:$4 sm:$0xff]   ;;  %v11478_v8 = vld [vmem:[%s15003_s3 + $0x10e8] ss:$12 sps:$4 sm:$0xff]  }
 0x294   : > { %10444 = vmatpush3.bf16.msra.mxu1 %v11453_v51  ;;  %7164 = vmatprep.subr.bf16.mxu0 %v11456_v55  ;;  %v11474_v55 = vld [vmem:[%s15003_s3 + $0x11a0] ss:$12 sps:$4 sm:$0xff]  }
 0x295   : > { %10469 = vmatprep.subr.bf16.mxu1 %v11457_v40  ;;  %v11482_v40 = vld [vmem:[%s15003_s3 + $0x11c0] ss:$12 sps:$4 sm:$0xff]  }
 0x296   : > { %v10177_v56 = vpop.f32.mrb[72].mxu1 }
 0x297   : > { %7319 = vmatmul.mubr.bf16.vlgmr.msra.gmra.mrb[176].mxu1 %v15046_v24  ;;  %7165 = vmatpush1.bf16.msra.mxu0 %v11454_v35  ;;  %v10178_v54 = vpop.f32.mrb[73].mxu1 }
 0x298   : > { %10470 = vmatpush3.bf16.msra.mxu1 %v11458_v15  ;;  %v14364_v20 = vadd.f32 %v10178_v54, %v10177_v56  ;;  %7166 = vmatprep.subr.bf16.mxu0 %v11461_v49  ;;  %v10180_v38 = vpop.f32.mrb[74].mxu1  ;;  %v11479_v15 = vld [vmem:[%s15003_s3 + $0x11b8] ss:$12 sps:$4 sm:$0xff]   ;;  %v11486_v56 = vld [vmem:[%s15003_s3 + $0x11d4] ss:$12 sps:$4 sm:$0xff]  }
 0x299   : > { %10471 = vmatprep.subr.bf16.mxu1 %v11462_v2  ;;  %v10181_v24 = vpop.f32.mrb[75].mxu1  ;;  %7326 = vmatprep.mubr.bf16.mxu1 %v12303_v33  ;;  %v11471_v33 = vld [vmem:[%s15003_s3 + $0x118c] ss:$12 sps:$4 sm:$0xff]  }
 0x29a   : > { %v14376_v31 = vadd.f32 %v10181_v24, %v10180_v38  ;;  %v11483_v2 = vld [vmem:[%s15003_s3 + $0x1100] ss:$12 sps:$4 sm:$0xff]   ;;  %v11484_v24 = vld [vmem:[%s15003_s3 + $0x11d0] ss:$12 sps:$4 sm:$0xff]  }
 0x29b   : > { %7167 = vmatpush1.bf16.msra.mxu0 %v11459_v47  ;;  %v11487_v47 = vld [vmem:[%s15003_s3 + $0x11d8] ss:$12 sps:$4 sm:$0xff]  }
 0x29c   : > { %10472 = vmatpush3.bf16.msra.mxu1 %v11463_v27  ;;  %7168 = vmatprep.subr.bf16.mxu0 %v11466_v0 }
 0x29d   : > { %10473 = vmatprep.subr.bf16.mxu1 %v11467_v29 }
 0x29e   : > { %v10183_v32 = vpop.f32.mrb[76].mxu1 }
 0x29f   : > { %7327 = vmatmul.mubr.bf16.gmra.mrb[180].mxu1 %v12743_v19  ;;  %7169 = vmatpush1.bf16.msra.mxu0 %v11464_v9  ;;  %v10184_v36 = vpop.f32.mrb[77].mxu1  ;;  %v11492_v9 = vld [vmem:[%s15003_s3 + $0x11f0] ss:$12 sps:$4 sm:$0xff]  }
 0x2a0   : > { %10474 = vmatpush3.bf16.msra.mxu1 %v11468_v26  ;;  %v14394_v52 = vadd.f32 %v10184_v36, %v10183_v32  ;;  %7170 = vmatprep.subr.bf16.mxu0 %v11471_v33  ;;  %v10186_v23 = vpop.f32.mrb[78].mxu1  ;;  %v11489_v33 = vld [vmem:[%s15003_s3 + $0x11e8] ss:$12 sps:$4 sm:$0xff]  }
 0x2a1   : > { %10475 = vmatprep.subr.bf16.mxu1 %v11472_v11  ;;  %v10187_v19 = vpop.f32.mrb[79].mxu1  ;;  %7334 = vmatprep.mubr.bf16.mxu1 %v12754_v59  ;;  %v11481_v59 = vld [vmem:[%s15003_s3 + $0x11bc] ss:$12 sps:$4 sm:$0xff]  }
 0x2a2   : > { %v14406_v51 = vadd.f32 %v10187_v19, %v10186_v23  ;;  %v11493_v11 = vld [vmem:[%s15003_s3 + $0x1130] ss:$12 sps:$4 sm:$0xff]  }
 0x2a3   : > { %7171 = vmatpush1.bf16.msra.mxu0 %v11469_v48 }
 0x2a4   : > { %10476 = vmatpush3.bf16.msra.mxu1 %v11473_v18  ;;  %7172 = vmatprep.subr.bf16.mxu0 %v11476_v62 }
 0x2a5   : > { %10477 = vmatprep.subr.bf16.mxu1 %v11477_v34 }
 0x2a7   : > { %7335 = vmatmul.mubr.bf16.gmra.mrb[184].mxu1 %v12814_v4  ;;  %7173 = vmatpush1.bf16.msra.mxu0 %v11474_v55  ;;  %v10205_v35 = vpop.f32.mrb[80].mxu1 }
 0x2a8   : > { %10478 = vmatpush3.bf16.msra.mxu1 %v11478_v8  ;;  %v10206_v49 = vpop.f32.mrb[81].mxu1  ;;  %7174 = vmatprep.subr.bf16.mxu0 %v11481_v59 }
 0x2a9   : > { %v10207_v54 = vadd.f32 %v10206_v49, %v10205_v35  ;;  %10479 = vmatprep.subr.bf16.mxu1 %v11482_v40  ;;  %v10208_v4 = vpop.f32.mrb[82].mxu1  ;;  %7342 = vmatprep.mubr.bf16.mxu1 %v14290_v39  ;;  %v11488_v39 = vld [vmem:[%s15003_s3 + $0x1118] ss:$12 sps:$4 sm:$0xff]   ;;  %v1473_v40 = vpop.permute.xlu1 %1472  ;;  %v8757_v35 = vcombine.high %v14251_v41, %v14249_v43 }
 0x2aa   : > { %v10209_v38 = vpop.f32.mrb[83].mxu1 }
 0x2ab   : > { %v14435_v27 = vadd.f32 %v10207_v54, %v14300_v28  ;;  %7175 = vmatpush1.bf16.msra.mxu0 %v11479_v15  ;;  %v10210_v0 = vadd.f32 %v10209_v38, %v10208_v4  ;;  %v11491_v28 = vld [vmem:[%s15003_s3 + $0x11ec] ss:$12 sps:$4 sm:$0xff]   ;;  %v1198_v54 = vrot.slane %v8757_v35, 1 }
 0x2ac   : > { %10480 = vmatpush3.bf16.msra.mxu1 %v11483_v2  ;;  %7176 = vmatprep.subr.bf16.mxu0 %v11486_v56 }
 0x2ad   : > { %v14444_v29 = vadd.f32 %v10210_v0, %v14311_v14  ;;  %10481 = vmatprep.subr.bf16.mxu1 %v11487_v47 }
 0x2af   : > { %7343 = vmatmul.mubr.bf16.gmra.mrb[188].mxu1 %v14317_v44  ;;  %7177 = vmatpush1.bf16.msra.mxu0 %v11484_v24  ;;  %v10211_v26 = vpop.f32.mrb[84].mxu1 }
 0x2b0   : > { %10482 = vmatpush3.bf16.msra.mxu1 %v11488_v39  ;;  %7383 = vmatprep.mubr.bf16.mxu1 %v12965_v61  ;;  %v10212_v14 = vpop.f32.mrb[85].mxu1 }
 0x2b1   : > { %v10213_v32 = vadd.f32 %v10212_v14, %v10211_v26  ;;  %7178 = vmatprep.subr.bf16.mxu0 %v11491_v28  ;;  %10483 = vmatprep.subr.bf16.mxu1 %v11492_v9  ;;  %v10214_v36 = vpop.f32.mrb[86].mxu1 }
 0x2b2   : > { %v10215_v48 = vpop.f32.mrb[87].mxu1 }
 0x2b3   : > { %v4397_v44 = vadd.f32 %v10213_v32, %v14335_v46  ;;  %7179 = vmatpush1.bf16.msra.mxu0 %v11489_v33  ;;  %v10216_v23 = vadd.f32 %v10215_v48, %v10214_v36 }
 0x2b4   : > { %10484 = vmatpush3.bf16.msra.mxu1 %v11493_v11 }
 0x2b5   : > { %v4400_v18 = vadd.f32 %v10216_v23, %v14346_v12  ;;  %v1471_v12 = vpop.permute.xlu0 %1470 }
 0x2b6   : > { %7181 = vmatmul.mubr.bf16.vlgmr.msra.gmra.mrb[0].mxu0 %v12721_v30  ;;  %v1484_v49 = vsel %vm1110_vm8, %v1471_v12, %v1473_v40  ;;  %v1551_v41 = vsel %vm1110_vm8, %v1198_v54, %v1471_v12 }
 0x2b7   : > { %7384 = vmatmul.mubr.bf16.vlgmr.msra.gmra.mrb[192].mxu1 %v12721_v30  ;;  %7190 = vmatprep.mubr.bf16.mxu0 %v13001_v7  ;;  %v10217_v61 = vpop.f32.mrb[88].mxu1 }
 0x2b8   : > { %7391 = vmatprep.mubr.bf16.mxu1 %v13001_v7  ;;  %v10218_v62 = vpop.f32.mrb[89].mxu1 }
 0x2b9   : > { %v10219_v19 = vadd.f32 %v10218_v62, %v10217_v61  ;;  %v10220_v34 = vpop.f32.mrb[90].mxu1 }
 0x2ba   : > { %v10221_v55 = vpop.f32.mrb[91].mxu1 }
 0x2bb   : > { %v4405_v46 = vadd.f32 %v10219_v19, %v14364_v20  ;;  %v10222_v8 = vadd.f32 %v10221_v55, %v10220_v34 }
 0x2bd   : > { %v4408_v59 = vadd.f32 %v10222_v8, %v14376_v31 }
 0x2be   : > { %7191 = vmatmul.mubr.bf16.gmra.mrb[4].mxu0 %v12784_v3 }
 0x2bf   : > { %7392 = vmatmul.mubr.bf16.gmra.mrb[196].mxu1 %v12784_v3  ;;  %7200 = vmatprep.mubr.bf16.mxu0 %v13040_v58  ;;  %v10223_v30 = vpop.f32.mrb[92].mxu1  ;;  %v9847_v3 = vcombine.low %v13720_v5, %v1484_v49  ;;  %v9846_v5 = vcombine.low %v13756_v16, %v1551_v41 }
 0x2c0   : > { %7399 = vmatprep.mubr.bf16.mxu1 %v13040_v58  ;;  %v10224_v7 = vpop.f32.mrb[93].mxu1 }
 0x2c1   : > { %v10225_v15 = vadd.f32 %v10224_v7, %v10223_v30  ;;  %v10226_v20 = vpop.f32.mrb[94].mxu1 }
 0x2c2   : > { %v10227_v31 = vpop.f32.mrb[95].mxu1 }
 0x2c3   : > { %v4413_v2 = vadd.f32 %v10225_v15, %v14394_v52  ;;  %v10228_v56 = vadd.f32 %v10227_v31, %v10226_v20 }
 0x2c5   : > { %v4416_v4 = vadd.f32 %v10228_v56, %v14406_v51 }
 0x2c6   : > { %7201 = vmatmul.mubr.bf16.gmra.mrb[8].mxu0 %v12849_v53 }
 0x2c7   : > { %7400 = vmatmul.mubr.bf16.gmra.mrb[200].mxu1 %v12849_v53  ;;  %7210 = vmatprep.mubr.bf16.mxu0 %v9847_v3  ;;  %v10245_v58 = vpop.f32.mrb[96].mxu1 }
 0x2c8   : > { %7407 = vmatprep.mubr.bf16.mxu1 %v9847_v3  ;;  %v10246_v43 = vpop.f32.mrb[97].mxu1 }
 0x2c9   : > { %v10247_v47 = vadd.f32 %v10246_v43, %v10245_v58  ;;  %v10248_v38 = vpop.f32.mrb[98].mxu1 }
 0x2ca   : > { %v10249_v0 = vpop.f32.mrb[99].mxu1 }
 0x2cb   : > { %v4454_v52 = vadd.f32 %v10247_v47, %v14435_v27  ;;  %v10250_v24 = vadd.f32 %v10249_v0, %v10248_v38 }
 0x2cd   : > { %v14484_v51 = vadd.f32 %v4454_v52, %v14165_v63  ;;  %v4457_v39 = vadd.f32 %v10250_v24, %v14444_v29 }
 0x2ce   : > { %7211 = vmatmul.mubr.bf16.gmra.mrb[12].mxu0 %v9846_v5 }
 0x2cf   : > { %v14488_v53 = vadd.f32 %v4457_v39, %v14177_v45  ;;  %7408 = vmatmul.mubr.bf16.gmra.mrb[204].mxu1 %v9846_v5  ;;  %v10251_v28 = vpop.f32.mrb[100].mxu1 }
 0x2d0   : > { %v10252_v9 = vpop.f32.mrb[101].mxu1 }
 0x2d1   : > { %v10253_v26 = vadd.f32 %v10252_v9, %v10251_v28  ;;  %v10254_v33 = vpop.f32.mrb[102].mxu1 }
 0x2d2   : > { %v10255_v14 = vpop.f32.mrb[103].mxu1 }
 0x2d3   : > { %v4462_v11 = vadd.f32 %v10253_v26, %v4397_v44  ;;  %v10256_v27 = vadd.f32 %v10255_v14, %v10254_v33 }
 0x2d5   : > { %v14491_v32 = vadd.f32 %v4462_v11, %v14197_v50  ;;  %v4465_v16 = vadd.f32 %v10256_v27, %v4400_v18 }
 0x2d7   : > { %v14494_v63 = vadd.f32 %v4465_v16, %v14206_v37  ;;  %v10257_v29 = vpop.f32.mrb[104].mxu1 }
 0x2d8   : > { %v10258_v36 = vpop.f32.mrb[105].mxu1 }
 0x2d9   : > { %v10259_v48 = vadd.f32 %v10258_v36, %v10257_v29  ;;  %v10260_v45 = vpop.f32.mrb[106].mxu1 }
 0x2da   : > { %v10261_v23 = vpop.f32.mrb[107].mxu1 }
 0x2db   : > { %v4470_v61 = vadd.f32 %v10259_v48, %v4405_v46  ;;  %v10262_v62 = vadd.f32 %v10261_v23, %v10260_v45 }
 0x2dd   : > { %v14497_v19 = vadd.f32 %v4470_v61, %v14231_v57  ;;  %v4473_v34 = vadd.f32 %v10262_v62, %v4408_v59 }
 0x2df   : > { %v14500_v44 = vadd.f32 %v4473_v34, %v14240_v42  ;;  %v10263_v50 = vpop.f32.mrb[108].mxu1 }
 0x2e0   : > { %v10264_v55 = vpop.f32.mrb[109].mxu1 }
 0x2e1   : > { %v10265_v18 = vadd.f32 %v10264_v55, %v10263_v50  ;;  %v10266_v8 = vpop.f32.mrb[110].mxu1 }
 0x2e2   : > { %v10267_v37 = vpop.f32.mrb[111].mxu1 }
 0x2e3   : > { %v4478_v40 = vadd.f32 %v10265_v18, %v4413_v2  ;;  %v10268_v12 = vadd.f32 %v10267_v37, %v10266_v8 }
 0x2e5   : > { %v14503_v30 = vadd.f32 %v4478_v40, %v14271_v22  ;;  %v4481_v7 = vadd.f32 %v10268_v12, %v4416_v4 }
 0x2e7   : > { %v14506_v46 = vadd.f32 %v4481_v7, %v14280_v6 }
 0x2e8   : > { %v10285_v57 = vpop.f32.mrb[112].mxu1 }
 0x2e9   : > { %v10286_v35 = vpop.f32.mrb[113].mxu1 }
 0x2ea   : > { %v10287_v59 = vadd.f32 %v10286_v35, %v10285_v57  ;;  %v10288_v15 = vpop.f32.mrb[114].mxu1 }
 0x2eb   : > { %v10289_v42 = vpop.f32.mrb[115].mxu1 }
 0x2ec   : > { %v10290_v20 = vadd.f32 %v10289_v42, %v10288_v15 }
 0x2f0   : > { %v10291_v49 = vpop.f32.mrb[116].mxu1 }
 0x2f1   : > { %v10292_v31 = vpop.f32.mrb[117].mxu1 }
 0x2f2   : > { %v10293_v56 = vadd.f32 %v10292_v31, %v10291_v49  ;;  %v10294_v54 = vpop.f32.mrb[118].mxu1 }
 0x2f3   : > { %v10295_v3 = vpop.f32.mrb[119].mxu1 }
 0x2f4   : > { %v10296_v2 = vadd.f32 %v10295_v3, %v10294_v54 }
 0x2f8   : > { %v10297_v58 = vpop.f32.mrb[120].mxu1 }
 0x2f9   : > { %v10298_v43 = vpop.f32.mrb[121].mxu1 }
 0x2fa   : > { %v10299_v22 = vadd.f32 %v10298_v43, %v10297_v58  ;;  %v10300_v41 = vpop.f32.mrb[122].mxu1 }
 0x2fb   : > { %v10301_v4 = vpop.f32.mrb[123].mxu1 }
 0x2fc   : > { %v10302_v47 = vadd.f32 %v10301_v4, %v10300_v41 }
 0x300   : > { %v10303_v6 = vpop.f32.mrb[124].mxu1 }
 0x301   : > { %v10304_v38 = vpop.f32.mrb[125].mxu1 }
 0x302   : > { %v10305_v0 = vadd.f32 %v10304_v38, %v10303_v6  ;;  %v10306_v52 = vpop.f32.mrb[126].mxu1 }
 0x303   : > { %v10307_v24 = vpop.f32.mrb[127].mxu1 }
 0x304   : > { %v10308_v5 = vadd.f32 %v10307_v24, %v10306_v52 }
 0x308   : > { %v10325_v39 = vpop.f32.mrb[128].mxu1 }
 0x309   : > { %v10326_v28 = vpop.f32.mrb[129].mxu1 }
 0x30a   : > { %v10327_v9 = vadd.f32 %v10326_v28, %v10325_v39  ;;  %v10328_v26 = vpop.f32.mrb[130].mxu1 }
 0x30b   : > { %v10329_v33 = vpop.f32.mrb[131].mxu1 }
 0x30c   : > { %v5855_v14 = vadd.f32 %v10327_v9, %v10287_v59  ;;  %v10330_v11 = vadd.f32 %v10329_v33, %v10328_v26 }
 0x30e   : > { %v5858_v27 = vadd.f32 %v10330_v11, %v10290_v20 }
 0x310   : > { %v10331_v16 = vpop.f32.mrb[132].mxu1 }
 0x311   : > { %v10332_v29 = vpop.f32.mrb[133].mxu1 }
 0x312   : > { %v10333_v36 = vadd.f32 %v10332_v29, %v10331_v16  ;;  %v10334_v48 = vpop.f32.mrb[134].mxu1 }
 0x313   : > { %v10335_v45 = vpop.f32.mrb[135].mxu1 }
 0x314   : > { %v5863_v23 = vadd.f32 %v10333_v36, %v10293_v56  ;;  %v10336_v61 = vadd.f32 %v10335_v45, %v10334_v48 }
 0x316   : > { %v5866_v62 = vadd.f32 %v10336_v61, %v10296_v2 }
 0x318   : > { %v10337_v34 = vpop.f32.mrb[136].mxu1 }
 0x319   : > { %v10338_v50 = vpop.f32.mrb[137].mxu1 }
 0x31a   : > { %v10339_v55 = vadd.f32 %v10338_v50, %v10337_v34  ;;  %v10340_v18 = vpop.f32.mrb[138].mxu1 }
 0x31b   : > { %v10341_v8 = vpop.f32.mrb[139].mxu1 }
 0x31c   : > { %v5871_v37 = vadd.f32 %v10339_v55, %v10299_v22  ;;  %v10342_v40 = vadd.f32 %v10341_v8, %v10340_v18 }
 0x31e   : > { %v5874_v12 = vadd.f32 %v10342_v40, %v10302_v47 }
 0x320   : > { %v10343_v7 = vpop.f32.mrb[140].mxu1 }
 0x321   : > { %v10344_v57 = vpop.f32.mrb[141].mxu1 }
 0x322   : > { %v10345_v35 = vadd.f32 %v10344_v57, %v10343_v7  ;;  %v10346_v59 = vpop.f32.mrb[142].mxu1 }
 0x323   : > { %v10347_v15 = vpop.f32.mrb[143].mxu1 }
 0x324   : > { %v5879_v42 = vadd.f32 %v10345_v35, %v10305_v0  ;;  %v10348_v20 = vadd.f32 %v10347_v15, %v10346_v59 }
 0x326   : > { %v5882_v49 = vadd.f32 %v10348_v20, %v10308_v5 }
 0x328   : > { %v10365_v31 = vpop.f32.mrb[144].mxu1 }
 0x329   : > { %v10366_v56 = vpop.f32.mrb[145].mxu1 }
 0x32a   : > { %v10367_v54 = vadd.f32 %v10366_v56, %v10365_v31  ;;  %v10368_v3 = vpop.f32.mrb[146].mxu1 }
 0x32b   : > { %v10369_v2 = vpop.f32.mrb[147].mxu1 }
 0x32c   : > { %v5920_v58 = vadd.f32 %v10367_v54, %v5855_v14  ;;  %v10370_v43 = vadd.f32 %v10369_v2, %v10368_v3 }
 0x32e   : > { %v14509_v41 = vadd.f32 %v5920_v58, %v14484_v51  ;;  %v5923_v22 = vadd.f32 %v10370_v43, %v5858_v27 }
 0x330   : > { %v14512_v4 = vadd.f32 %v5923_v22, %v14488_v53  ;;  %v10371_v47 = vpop.f32.mrb[148].mxu1 }
 0x331   : > { %v10372_v6 = vpop.f32.mrb[149].mxu1 }
 0x332   : > { %v10373_v38 = vadd.f32 %v10372_v6, %v10371_v47  ;;  %v10374_v0 = vpop.f32.mrb[150].mxu1 }
 0x333   : > { %v10375_v52 = vpop.f32.mrb[151].mxu1 }
 0x334   : > { %v5928_v24 = vadd.f32 %v10373_v38, %v5863_v23  ;;  %v10376_v5 = vadd.f32 %v10375_v52, %v10374_v0 }
 0x336   : > { %v14515_v39 = vadd.f32 %v5928_v24, %v14491_v32  ;;  %v5931_v28 = vadd.f32 %v10376_v5, %v5866_v62 }
 0x338   : > { %v14518_v9 = vadd.f32 %v5931_v28, %v14494_v63  ;;  %v10377_v51 = vpop.f32.mrb[152].mxu1 }
 0x339   : > { %v10378_v26 = vpop.f32.mrb[153].mxu1 }
 0x33a   : > { %v10379_v33 = vadd.f32 %v10378_v26, %v10377_v51  ;;  %v10380_v14 = vpop.f32.mrb[154].mxu1 }
 0x33b   : > { %v10381_v53 = vpop.f32.mrb[155].mxu1 }
 0x33c   : > { %v5936_v11 = vadd.f32 %v10379_v33, %v5871_v37  ;;  %v10382_v27 = vadd.f32 %v10381_v53, %v10380_v14 }
 0x33e   : > { %v14521_v16 = vadd.f32 %v5936_v11, %v14497_v19  ;;  %v5939_v29 = vadd.f32 %v10382_v27, %v5874_v12 }
 0x340   : > { %v14524_v36 = vadd.f32 %v5939_v29, %v14500_v44  ;;  %v10383_v32 = vpop.f32.mrb[156].mxu1 }
 0x341   : > { %v10384_v48 = vpop.f32.mrb[157].mxu1 }
 0x342   : > { %v10385_v45 = vadd.f32 %v10384_v48, %v10383_v32  ;;  %v10386_v23 = vpop.f32.mrb[158].mxu1 }
 0x343   : > { %v10387_v63 = vpop.f32.mrb[159].mxu1 }
 0x344   : > { %v5944_v61 = vadd.f32 %v10385_v45, %v5879_v42  ;;  %v10388_v62 = vadd.f32 %v10387_v63, %v10386_v23 }
 0x346   : > { %v14527_v34 = vadd.f32 %v5944_v61, %v14503_v30  ;;  %v5947_v50 = vadd.f32 %v10388_v62, %v5882_v49 }
 0x348   : > { %15056 = vst [vmem:[#allocation14_spill] sm:$0xff] %v14527_v34  ;;  %v14530_v55 = vadd.f32 %v5947_v50, %v14506_v46  ;;  %v10405_v19 = vpop.f32.mrb[160].mxu1 }
 0x349   : > { %v10406_v18 = vpop.f32.mrb[161].mxu1 }
 0x34a   : > { %15057 = vst [vmem:[#allocation15_spill] sm:$0xff] %v14530_v55  ;;  %v10407_v8 = vadd.f32 %v10406_v18, %v10405_v19  ;;  %v10408_v37 = vpop.f32.mrb[162].mxu1 }
 0x34b   : > { %v10409_v44 = vpop.f32.mrb[163].mxu1 }
 0x34c   : > { %v10410_v40 = vadd.f32 %v10409_v44, %v10408_v37  ;;  %v11535_v37 = vmov 1983009808  }
 0x34d   : > { %v7703_v44 = vunpack.c.l.s4 %v11535_v37 }
 0x350   : > { %v10411_v12 = vpop.f32.mrb[164].mxu1 }
 0x351   : > { %v10412_v7 = vpop.f32.mrb[165].mxu1 }
 0x352   : > { %v10413_v57 = vadd.f32 %v10412_v7, %v10411_v12  ;;  %v10414_v35 = vpop.f32.mrb[166].mxu1 }
 0x353   : > { %v10415_v59 = vpop.f32.mrb[167].mxu1 }
 0x354   : > { %v10416_v15 = vadd.f32 %v10415_v59, %v10414_v35  ;;  %v7704_v35 = vunpack.c.0.s8 %v7703_v44 }
 0x358   : > { %v10417_v42 = vpop.f32.mrb[168].mxu1 }
 0x359   : > { %v10418_v20 = vpop.f32.mrb[169].mxu1 }
 0x35a   : > { %v10419_v30 = vadd.f32 %v10418_v20, %v10417_v42  ;;  %v10420_v31 = vpop.f32.mrb[170].mxu1 }
 0x35b   : > { %v10421_v49 = vpop.f32.mrb[171].mxu1 }
 0x35c   : > { %v10422_v56 = vadd.f32 %v10421_v49, %v10420_v31 }
 0x360   : > { %v10423_v46 = vpop.f32.mrb[172].mxu1 }
 0x361   : > { %v10424_v54 = vpop.f32.mrb[173].mxu1 }
 0x362   : > { %v10425_v3 = vadd.f32 %v10424_v54, %v10423_v46  ;;  %v10426_v2 = vpop.f32.mrb[174].mxu1 }
 0x363   : > { %v10427_v58 = vpop.f32.mrb[175].mxu1 }
 0x364   : > { %v10428_v43 = vadd.f32 %v10427_v58, %v10426_v2 }
 0x36a   : > { %v10445_v22 = vpop.f32.mrb[176].mxu1 }
 0x36b   : > { %v10446_v47 = vpop.f32.mrb[177].mxu1 }
 0x36c   : > { %v10447_v6 = vadd.f32 %v10446_v47, %v10445_v22  ;;  %v10448_v38 = vpop.f32.mrb[178].mxu1 }
 0x36d   : > { %v10449_v0 = vpop.f32.mrb[179].mxu1 }
 0x36e   : > { %v7321_v52 = vadd.f32 %v10447_v6, %v10407_v8  ;;  %v10450_v24 = vadd.f32 %v10449_v0, %v10448_v38 }
 0x370   : > { %v7324_v5 = vadd.f32 %v10450_v24, %v10410_v40 }
 0x372   : > { %v10451_v28 = vpop.f32.mrb[180].mxu1 }
 0x373   : > { %v10452_v51 = vpop.f32.mrb[181].mxu1 }
 0x374   : > { %v10453_v26 = vadd.f32 %v10452_v51, %v10451_v28  ;;  %v10454_v33 = vpop.f32.mrb[182].mxu1 }
 0x375   : > { %v10455_v14 = vpop.f32.mrb[183].mxu1 }
 0x376   : > { %v14532_v53 = vadd.f32 %v10453_v26, %v10413_v57  ;;  %v10456_v11 = vadd.f32 %v10455_v14, %v10454_v33 }
 0x378   : > { %v14534_v27 = vadd.f32 %v10456_v11, %v10416_v15 }
 0x37a   : > { %v10457_v29 = vpop.f32.mrb[184].mxu1 }
 0x37b   : > { %v10458_v32 = vpop.f32.mrb[185].mxu1 }
 0x37c   : > { %v10459_v48 = vadd.f32 %v10458_v32, %v10457_v29  ;;  %v10460_v45 = vpop.f32.mrb[186].mxu1 }
 0x37d   : > { %v10461_v23 = vpop.f32.mrb[187].mxu1 }
 0x37e   : > { %v14536_v63 = vadd.f32 %v10459_v48, %v10419_v30  ;;  %v10462_v61 = vadd.f32 %v10461_v23, %v10460_v45 }
 0x380   : > { %v14538_v62 = vadd.f32 %v10462_v61, %v10422_v56 }
 0x382   : > { %v10463_v50 = vpop.f32.mrb[188].mxu1 }
 0x383   : > { %v10464_v19 = vpop.f32.mrb[189].mxu1 }
 0x384   : > { %v10465_v18 = vadd.f32 %v10464_v19, %v10463_v50  ;;  %v10466_v8 = vpop.f32.mrb[190].mxu1 }
 0x385   : > { %v10467_v40 = vpop.f32.mrb[191].mxu1 }
 0x386   : > { %v14540_v12 = vadd.f32 %v10465_v18, %v10425_v3  ;;  %v10468_v7 = vadd.f32 %v10467_v40, %v10466_v8  ;;  %v15060_v3 = vld [vmem:[#allocation4_spill] sm:$0xff] }
 0x387   : > { %v14548_v58 = vsub.s32 %v7704_v35, %v15060_v3 }
 0x388   : > { %15058 = vst [vmem:[#allocation16_spill] sm:$0xff] %v14540_v12  ;;  %v14542_v57 = vadd.f32 %v10468_v7, %v10428_v43 }
 0x389   : > { %v7182_v59 = vpop.f32.mrb[0].mxu0 }
 0x38a   : > { %15059 = vst [vmem:[#allocation17_spill] sm:$0xff] %v14542_v57  ;;  %v10509_v15 = vadd.f32 %v7182_v59, %v13742_v25  ;;  %v10485_v42 = vpop.f32.mrb[192].mxu1  ;;  %v7184_v20 = vpop.f32.mrb[1].mxu0 }
 0x38b   : > { %v10510_v30 = vadd.f32 %v7184_v20, %v13747_v60  ;;  %v10486_v31 = vpop.f32.mrb[193].mxu1  ;;  %v7186_v49 = vpop.f32.mrb[2].mxu0 }
 0x38c   : > { %v10487_v56 = vadd.f32 %v10486_v31, %v10485_v42  ;;  %v10511_v46 = vadd.f32 %v7186_v49, %v13758_v13  ;;  %v10488_v54 = vpop.f32.mrb[194].mxu1  ;;  %v7188_v2 = vpop.f32.mrb[3].mxu0  ;;  %v7583_v43 = vmul.f32 %v10509_v15, %v10509_v15 }
 0x38d   : > { %v7584_v22 = vmul.f32 %v10510_v30, %v10510_v30  ;;  %v10512_v47 = vadd.f32 %v7188_v2, %v13763_v21  ;;  %v10489_v6 = vpop.f32.mrb[195].mxu1 }
 0x38e   : > { %v7386_v25 = vadd.f32 %v10487_v56, %v7321_v52  ;;  %v7512_v38 = vadd.f32 %v10511_v46, %v10509_v15  ;;  %v7586_v0 = vmul.f32 %v10511_v46, %v10511_v46  ;;  %v7675_v24 = vmax.f32 %v10509_v15, %v10511_v46 }
 0x38f   : > { %v7525_v60 = vadd.f32 %v10512_v47, %v10510_v30  ;;  %v7587_v28 = vmul.f32 %v10512_v47, %v10512_v47  ;;  %v7676_v51 = vmax.f32 %v10510_v30, %v10512_v47  ;;  %v10490_v26 = vadd.f32 %v10489_v6, %v10488_v54 }
 0x390   : > { %v7442_v13 = vadd.f32 %v7386_v25, %v14509_v41  ;;  %v7607_v33 = vadd.f32 %v7586_v0, %v7583_v43 }
 0x391   : > { %v7620_v14 = vadd.f32 %v7587_v28, %v7584_v22  ;;  %v7699_v11 = vcombine.low %v7675_v24, %v7676_v51  ;;  %v7700_v29 = vcombine.high %v7675_v24, %v7676_v51  ;;  %v7389_v32 = vadd.f32 %v10490_v26, %v7324_v5  ;;  %v7192_v48 = vpop.f32.mrb[4].mxu0  ;;  %v15061_v22 = vld [vmem:[#allocation7_spill] sm:$0xff] }
 0x392   : > { %v7585_v45 = vmul.f32 %v7442_v13, %v7442_v13  ;;  %v10513_v21 = vadd.f32 %v7192_v48, %v13785_v10  ;;  %v10491_v23 = vpop.f32.mrb[196].mxu1  ;;  %v7194_v52 = vpop.f32.mrb[5].mxu0 }
 0x393   : > { %v7708_v61 = vrot.slane %v7699_v11, %v14548_v58  ;;  %v7715_v50 = vrot.slane %v7700_v29, %v14548_v58  ;;  %v7445_v19 = vadd.f32 %v7389_v32, %v14512_v4  ;;  %v14557_v18 = vadd.f32 %v7194_v52, %v13790_v17  ;;  %v10492_v41 = vpop.f32.mrb[197].mxu1  ;;  %v7196_v8 = vpop.f32.mrb[6].mxu0 }
 0x394   : > { %v7513_v37 = vadd.f32 %v10513_v21, %v7512_v38  ;;  %v7589_v44 = vmul.f32 %v10513_v21, %v10513_v21  ;;  %v10493_v5 = vadd.f32 %v10492_v41, %v10491_v23  ;;  %v10515_v40 = vadd.f32 %v7196_v8, %v13798_v1  ;;  %v14560_v7 = vpop.f32.mrb[198].mxu1  ;;  %v7198_v10 = vpop.f32.mrb[7].mxu0 }
 0x395   : > { %v7538_v35 = vadd.f32 %v7445_v19, %v7442_v13  ;;  %v7588_v59 = vmul.f32 %v7445_v19, %v7445_v19  ;;  %v7677_v15 = vmax.f32 %v7442_v13, %v7445_v19  ;;  %v14563_v42 = vadd.f32 %v14557_v18, %v7525_v60  ;;  %v14565_v4 = vpop.f32.mrb[199].mxu1 }
 0x396   : > { %v7608_v17 = vadd.f32 %v7607_v33, %v7589_v44  ;;  %v7590_v20 = vmul.f32 %v14557_v18, %v14557_v18  ;;  %v7394_v30 = vadd.f32 %v10493_v5, %v14532_v53  ;;  %v14570_v31 = vadd.f32 %v10515_v40, %v7513_v37 }
 0x397   : > { %v14572_v1 = vadd.f32 %v7588_v59, %v7585_v45  ;;  %v7701_v49 = vcombine.high %v7677_v15, %v7677_v15  ;;  %v7722_v56 = vrot.slane %v7677_v15, %v14548_v58  ;;  %v7592_v46 = vmul.f32 %v10515_v40, %v10515_v40 }
 0x398   : > { %v14575_v54 = vadd.f32 %v7620_v14, %v7590_v20  ;;  %v14578_v2 = vadd.f32 %v7394_v30, %v14515_v39  ;;  %v14580_v43 = vmax.f32 %v10513_v21, %v10515_v40  ;;  %v14583_v47 = vadd.f32 %v7198_v10, %v15061_v22 }
 0x399   : > { %v7729_v53 = vrot.slane %v7701_v49, %v14548_v58  ;;  %v7730_v6 = vcombine.low %v7708_v61, %v7722_v56  ;;  %v7731_v25 = vcombine.high %v7708_v61, %v7722_v56  ;;  %v9993_v38 = vcombine.low %v7722_v56, %v7722_v56  ;;  %v14586_v0 = vpop.f32.mrb[8].mxu0 }
 0x39a   : > { %v9994_v24 = vcombine.high %v7722_v56, %v7722_v56  ;;  %v14589_v60 = vadd.f32 %v7538_v35, %v14578_v2  ;;  %v14593_v39 = vmul.f32 %v14578_v2, %v14578_v2  ;;  %v14595_v28 = vadd.f32 %v7608_v17, %v7592_v46  ;;  %v14597_v51 = vpop.f32.mrb[200].mxu1  ;;  %v14599_v26 = vpop.f32.mrb[9].mxu0 }
 0x39b   : > { %v7732_v13 = vcombine.low %v7715_v50, %v7729_v53  ;;  %v7733_v33 = vcombine.high %v7715_v50, %v7729_v53  ;;  %v7846_v14 = vrot.slane %v7730_v6, %v14548_v58  ;;  %v7853_v11 = vrot.slane %v9993_v38, %v14548_v58  ;;  %v14603_v29 = vpop.f32.mrb[201].mxu1  ;;  %v14605_v32 = vpop.f32.mrb[10].mxu0 }
 0x39c   : > { %v7862_v48 = vrot.slane %v7731_v25, %v14548_v58  ;;  %v7869_v45 = vrot.slane %v9994_v24, %v14548_v58  ;;  %v9995_v21 = vcombine.low %v7729_v53, %v7729_v53  ;;  %v9996_v23 = vcombine.high %v7729_v53, %v7729_v53  ;;  %v14609_v52 = vpop.f32.mrb[202].mxu1  ;;  %v14611_v61 = vpop.f32.mrb[11].mxu0 }
 0x39d   : > { %v7854_v19 = vcombine.high %v7846_v14, %v7846_v14  ;;  %v7878_v50 = vrot.slane %v7732_v13, %v14548_v58  ;;  %v14615_v41 = vrot.slane %v7733_v33, %v14548_v58  ;;  %v8144_v8 = vsel %vm429_vm2, %v7846_v14, -inf  ;;  %v14618_v37 = vpop.f32.mrb[203].mxu1 }
 0x39e   : > { %v7870_v44 = vcombine.high %v7862_v48, %v7862_v48  ;;  %v7885_v5 = vrot.slane %v9995_v21, %v14548_v58  ;;  %v14622_v40 = vrot.slane %v9996_v23, %v14548_v58  ;;  %v8145_v10 = vrot.slane %v8144_v8, 4 }
 0x39f   : > { %v7886_v35 = vcombine.high %v7878_v50, %v7878_v50  ;;  %v8151_v15 = vsel %vm429_vm2, %v7854_v19, -inf  ;;  %v8158_v17 = vsel %vm429_vm2, %v7853_v11, -inf  ;;  %v8165_v56 = vsel %vm429_vm2, %v7862_v48, -inf }
 0x3a0   : > { %v8146_v20 = vmax.f32 %v8144_v8, %v8145_v10  ;;  %v8152_v30 = vrot.slane %v8151_v15, 4  ;;  %v8159_v49 = vrot.slane %v8158_v17, 4  ;;  %v8166_v46 = vrot.slane %v8165_v56, 4 }
 0x3a1   : > { %v8172_v22 = vsel %vm429_vm2, %v7870_v44, -inf  ;;  %v8179_v53 = vsel %vm429_vm2, %v7869_v45, -inf  ;;  %v8186_v6 = vsel %vm429_vm2, %v7878_v50, -inf  ;;  %v14632_v25 = vpop.f32.mrb[12].mxu0  ;;  %v8193_v19 = vsel %vm429_vm2, %v7886_v35, -inf }
 0x3a2   : > { %v8147_v38 = vrot.slane %v8146_v20, 2  ;;  %v8153_v24 = vmax.f32 %v8151_v15, %v8152_v30  ;;  %v8160_v13 = vmax.f32 %v8158_v17, %v8159_v49  ;;  %v8173_v33 = vrot.slane %v8172_v22, 4  ;;  %v14634_v14 = vpop.f32.mrb[204].mxu1  ;;  %v14636_v11 = vpop.f32.mrb[13].mxu0 }
 0x3a3   : > { %15062 = vst [vmem:[#allocation7_spill] sm:$0xff] %v14634_v14  ;;  %15063 = vst [vmem:[#allocation18_spill] sm:$0xff] %v14636_v11  ;;  %v8167_v21 = vmax.f32 %v8165_v56, %v8166_v46  ;;  %v8180_v23 = vrot.slane %v8179_v53, 4  ;;  %v8187_v48 = vrot.slane %v8186_v6, 4  ;;  %v14639_v8 = vpop.f32.mrb[205].mxu1  ;;  %v14641_v45 = vpop.f32.mrb[14].mxu0 }
 0x3a4   : > { %15064 = vst [vmem:[#allocation19_spill] sm:$0xff] %v14639_v8  ;;  %15065 = vst [vmem:[#allocation20_spill] sm:$0xff] %v14641_v45  ;;  %v8148_v50 = vmax.f32 %v8146_v20, %v8147_v38  ;;  %v8154_v44 = vrot.slane %v8153_v24, 2  ;;  %v8161_v10 = vrot.slane %v8160_v13, 2  ;;  %v8174_v59 = vmax.f32 %v8172_v22, %v8173_v33  ;;  %v14643_v15 = vpop.f32.mrb[206].mxu1  ;;  %v14645_v17 = vpop.f32.mrb[15].mxu0 }
 0x3a5   : > { %15066 = vst [vmem:[#allocation21_spill] sm:$0xff] %v14643_v15  ;;  %15067 = vst [vmem:[#allocation22_spill] sm:$0xff] %v14645_v17  ;;  %v8168_v30 = vrot.slane %v8167_v21, 2  ;;  %v8181_v49 = vmax.f32 %v8179_v53, %v8180_v23  ;;  %v8188_v56 = vmax.f32 %v8186_v6, %v8187_v48  ;;  %v8194_v46 = vrot.slane %v8193_v19, 4  ;;  %v14647_v3 = vpop.f32.mrb[207].mxu1 }
 0x3a6   : > { %15068 = vst [vmem:[#allocation23_spill] sm:$0xff] %v14647_v3  ;;  %v8149_v35 = vrot.slane %v8148_v50, 1  ;;  %v8155_v55 = vmax.f32 %v8153_v24, %v8154_v44  ;;  %v8162_v57 = vmax.f32 %v8160_v13, %v8161_v10  ;;  %v8175_v34 = vrot.slane %v8174_v59, 2 }
 0x3a7   : > { %v8169_v12 = vmax.f32 %v8167_v21, %v8168_v30  ;;  %v8182_v20 = vrot.slane %v8181_v49, 2  ;;  %v8189_v38 = vrot.slane %v8188_v56, 2  ;;  %v8195_v45 = vmax.f32 %v8193_v19, %v8194_v46 }
 0x3a8   : > { %v8150_v22 = vmax.f32 %v8148_v50, %v8149_v35  ;;  %v8156_v33 = vrot.slane %v8155_v55, 1  ;;  %v8163_v8 = vrot.slane %v8162_v57, 1  ;;  %v8176_v15 = vmax.f32 %v8174_v59, %v8175_v34 }
 0x3a9   : > { %v8170_v14 = vrot.slane %v8169_v12, 1  ;;  %v8183_v17 = vmax.f32 %v8181_v49, %v8182_v20  ;;  %v8190_v11 = vmax.f32 %v8188_v56, %v8189_v38  ;;  %v8196_v53 = vrot.slane %v8195_v45, 2 }
 0x3aa   : > { %v8157_v6 = vmax.f32 %v8155_v55, %v8156_v33  ;;  %v8164_v23 = vmax.f32 %v8162_v57, %v8163_v8  ;;  %v8177_v48 = vrot.slane %v8176_v15, 1  ;;  %v8200_v3 = vsel %vm429_vm2, %v7885_v5, -inf }
 0x3ab   : > { %v8171_v24 = vmax.f32 %v8169_v12, %v8170_v14  ;;  %v8184_v13 = vrot.slane %v8183_v17, 1  ;;  %v8191_v44 = vrot.slane %v8190_v11, 1  ;;  %v8197_v21 = vmax.f32 %v8195_v45, %v8196_v53 }
 0x3ac   : > { %v8178_v10 = vmax.f32 %v8176_v15, %v8177_v48  ;;  %v8201_v30 = vrot.slane %v8200_v3, 4  ;;  %v8207_v19 = vsel %vm429_vm2, %v14615_v41, -inf  ;;  %v15069_v34 = vcombine.high %v14615_v41, %v14615_v41 }
 0x3ad   : > { %v8185_v50 = vmax.f32 %v8183_v17, %v8184_v13  ;;  %v8192_v55 = vmax.f32 %v8190_v11, %v8191_v44  ;;  %v8198_v57 = vrot.slane %v8197_v21, 1  ;;  %v8208_v8 = vrot.slane %v8207_v19, 4 }
 0x3ae   : > { %v8214_v59 = vsel %vm429_vm2, %v15069_v34, -inf  ;;  %v8202_v49 = vmax.f32 %v8200_v3, %v8201_v30  ;;  %v8221_v12 = vsel %vm429_vm2, %v14622_v40, -inf  ;;  %v8529_v14 = vsel %vm484_vm14, %v8171_v24, %v8150_v22 }
 0x3af   : > { %v8215_v5 = vrot.slane %v8214_v59, 4  ;;  %v8199_v45 = vmax.f32 %v8197_v21, %v8198_v57  ;;  %v8209_v15 = vmax.f32 %v8207_v19, %v8208_v8  ;;  %v8222_v56 = vrot.slane %v8221_v12, 4 }
 0x3b0   : > { %v8531_v46 = vsel %vm8530_vm9, %v8192_v55, %v8529_v14  ;;  %v8203_v41 = vrot.slane %v8202_v49, 2  ;;  %v8542_v17 = vsel %vm484_vm14, %v8178_v10, %v8157_v6  ;;  %v8549_v11 = vsel %vm484_vm14, %v8185_v50, %v8164_v23 }
 0x3b1   : > { %v8216_v35 = vmax.f32 %v8214_v59, %v8215_v5  ;;  %v8210_v20 = vrot.slane %v8209_v15, 2  ;;  %v8223_v3 = vmax.f32 %v8221_v12, %v8222_v56  ;;  %v8543_v38 = vsel %vm8530_vm9, %v8199_v45, %v8542_v17  ;;  %v15071_v5 = vld [vmem:[#allocation8_spill] sm:$0xff]  ;;  %v15072_v17 = vld [vmem:[#allocation6_spill] sm:$0xff] }
 0x3b2   : > { %v7634_v40 = vadd.f32 %v14572_v1, %v14593_v39  ;;  %v8204_v22 = vmax.f32 %v8202_v49, %v8203_v41  ;;  %v7527_v53 = vadd.f32 %v14583_v47, %v14563_v42  ;;  %v7593_v48 = vmul.f32 %v14583_v47, %v14583_v47  ;;  %v15070_v39 = vld [vmem:[#allocation5_spill] sm:$0xff] }
 0x3b3   : > { %v8217_v33 = vrot.slane %v8216_v35, 2  ;;  %v8211_v24 = vmax.f32 %v8209_v15, %v8210_v20  ;;  %v8224_v13 = vrot.slane %v8223_v3, 2  ;;  %v7679_v6 = vmax.f32 %v14557_v18, %v14583_v47 }
 0x3b4   : > { %v10496_v23 = vadd.f32 %v14565_v4, %v14560_v7  ;;  %v8205_v44 = vrot.slane %v8204_v22, 1  ;;  %v7622_v1 = vadd.f32 %v14575_v54, %v7593_v48  ;;  %v14676_v10 = vadd.f32 %v14586_v0, %v15070_v39 }
 0x3b5   : > { %v8218_v21 = vmax.f32 %v8216_v35, %v8217_v33  ;;  %v8212_v42 = vrot.slane %v8211_v24, 1  ;;  %v8225_v30 = vmax.f32 %v8223_v3, %v8224_v13  ;;  %v7734_v19 = vcombine.low %v14580_v43, %v7679_v6 }
 0x3b6   : > { %v7735_v34 = vcombine.high %v14580_v43, %v7679_v6  ;;  %v8206_v59 = vmax.f32 %v8204_v22, %v8205_v44  ;;  %v7397_v18 = vadd.f32 %v10496_v23, %v14534_v27  ;;  %v7515_v7 = vadd.f32 %v14676_v10, %v14570_v31 }
 0x3b7   : > { %v8219_v50 = vrot.slane %v8218_v21, 1  ;;  %v8213_v4 = vmax.f32 %v8211_v24, %v8212_v42  ;;  %v8226_v47 = vrot.slane %v8225_v30, 1  ;;  %v7743_v54 = vrot.slane %v7734_v19, %v14548_v58 }
 0x3b8   : > { %v7750_v0 = vrot.slane %v7735_v34, %v14548_v58  ;;  %v8550_v57 = vsel %vm8530_vm9, %v8206_v59, %v8549_v11  ;;  %v7451_v8 = vadd.f32 %v7397_v18, %v14518_v9  ;;  %v7595_v43 = vmul.f32 %v14676_v10, %v14676_v10 }
 0x3b9   : > { %v8220_v55 = vmax.f32 %v8218_v21, %v8219_v50  ;;  %v8227_v49 = vmax.f32 %v8225_v30, %v8226_v47  ;;  %v14690_v27 = vsel %vm8532_vm11, %v8213_v4, %v8531_v46  ;;  %v14694_v31 = vadd.f32 %v14599_v26, %v15071_v5 }
 0x3ba   : > { %v10499_v12 = vadd.f32 %v14603_v29, %v14597_v51  ;;  %v14702_v45 = vadd.f32 %v14589_v60, %v7451_v8  ;;  %v7594_v9 = vmul.f32 %v7451_v8, %v7451_v8  ;;  %v7680_v15 = vmax.f32 %v14578_v2, %v7451_v8 }
 0x3bb   : > { %v14699_v14 = vsel %vm8532_vm11, %v8220_v55, %v8543_v38  ;;  %v14706_v56 = vsel %vm8532_vm11, %v8227_v49, %v8550_v57  ;;  %v14709_v46 = vadd.f32 %v14595_v28, %v7595_v43  ;;  %v14712_v26 = vadd.f32 %v14694_v31, %v7527_v53  ;;  %v15073_v28 = vld [vmem:[#allocation9_spill] sm:$0xff] }
 0x3bc   : > { %v7596_v51 = vmul.f32 %v14694_v31, %v14694_v31  ;;  %v14716_v29 = vadd.f32 %v7634_v40, %v7594_v9  ;;  %v7736_v41 = vcombine.high %v7680_v15, %v7680_v15  ;;  %v7757_v60 = vrot.slane %v7680_v15, %v14548_v58 }
 0x3bd   : > { %v7402_v35 = vadd.f32 %v10499_v12, %v14536_v63  ;;  %v14724_v11 = vadd.f32 %v14605_v32, %v15072_v17  ;;  %v14728_v20 = vadd.f32 %v14611_v61, %v15073_v28  ;;  %v14732_v3 = vadd.f32 %v14618_v37, %v14609_v52 }
 0x3be   : > { %v14720_v2 = vadd.f32 %v7622_v1, %v7596_v51  ;;  %v7764_v38 = vrot.slane %v7736_v41, %v14548_v58  ;;  %v7765_v40 = vcombine.low %v7743_v54, %v7757_v60  ;;  %v7766_v22 = vcombine.high %v7743_v54, %v7757_v60 }
 0x3bf   : > { %v9997_v33 = vcombine.low %v7757_v60, %v7757_v60  ;;  %v9998_v63 = vcombine.high %v7757_v60, %v7757_v60  ;;  %v14736_v53 = vadd.f32 %v7402_v35, %v14521_v16  ;;  %v14739_v32 = vadd.f32 %v14724_v11, %v7515_v7 }
 0x3c0   : > { %v14743_v61 = vmul.f32 %v14724_v11, %v14724_v11  ;;  %v7767_v48 = vcombine.low %v7750_v0, %v7764_v38  ;;  %v7768_v24 = vcombine.high %v7750_v0, %v7764_v38  ;;  %v7910_v52 = vrot.slane %v7765_v40, %v14548_v58 }
 0x3c1   : > { %v7917_v37 = vrot.slane %v9997_v33, %v14548_v58  ;;  %v7926_v13 = vrot.slane %v7766_v22, %v14548_v58  ;;  %v7933_v6 = vrot.slane %v9998_v63, %v14548_v58  ;;  %v9999_v23 = vcombine.low %v7764_v38, %v7764_v38 }
 0x3c2   : > { %v10000_v16 = vcombine.high %v7764_v38, %v7764_v38  ;;  %v7918_v44 = vcombine.high %v7910_v52, %v7910_v52  ;;  %v7942_v21 = vrot.slane %v7767_v48, %v14548_v58  ;;  %v14751_v1 = vrot.slane %v7768_v24, %v14548_v58 }
 0x3c3   : > { %v8228_v39 = vsel %vm429_vm2, %v7910_v52, -inf  ;;  %v7934_v42 = vcombine.high %v7926_v13, %v7926_v13  ;;  %v7949_v30 = vrot.slane %v9999_v23, %v14548_v58  ;;  %v8242_v7 = vsel %vm429_vm2, %v7917_v37, -inf }
 0x3c4   : > { %v14756_v19 = vrot.slane %v10000_v16, %v14548_v58  ;;  %v8229_v34 = vrot.slane %v8228_v39, 4  ;;  %v7950_v59 = vcombine.high %v7942_v21, %v7942_v21  ;;  %v7966_v50 = vcombine.high %v14751_v1, %v14751_v1 }
 0x3c5   : > { %v8235_v18 = vsel %vm429_vm2, %v7918_v44, -inf  ;;  %v8243_v54 = vrot.slane %v8242_v7, 4  ;;  %v8249_v0 = vsel %vm429_vm2, %v7926_v13, -inf  ;;  %v8256_v57 = vsel %vm429_vm2, %v7934_v42, -inf }
 0x3c6   : > { %v8230_v4 = vmax.f32 %v8228_v39, %v8229_v34  ;;  %v8236_v47 = vrot.slane %v8235_v18, 4  ;;  %v8250_v55 = vrot.slane %v8249_v0, 4  ;;  %v8263_v8 = vsel %vm429_vm2, %v7933_v6, -inf }
 0x3c7   : > { %v8270_v43 = vsel %vm429_vm2, %v7942_v21, -inf  ;;  %v8244_v12 = vmax.f32 %v8242_v7, %v8243_v54  ;;  %v8257_v9 = vrot.slane %v8256_v57, 4  ;;  %v8264_v51 = vrot.slane %v8263_v8, 4 }
 0x3c8   : > { %v8231_v49 = vrot.slane %v8230_v4, 2  ;;  %v8237_v5 = vmax.f32 %v8235_v18, %v8236_v47  ;;  %v8251_v15 = vmax.f32 %v8249_v0, %v8250_v55  ;;  %v8271_v41 = vrot.slane %v8270_v43, 4 }
 0x3c9   : > { %v8277_v60 = vsel %vm429_vm2, %v7950_v59, -inf  ;;  %v8245_v28 = vrot.slane %v8244_v12, 2  ;;  %v8258_v38 = vmax.f32 %v8256_v57, %v8257_v9  ;;  %v8265_v22 = vmax.f32 %v8263_v8, %v8264_v51 }
 0x3ca   : > { %v8232_v35 = vmax.f32 %v8230_v4, %v8231_v49  ;;  %v8238_v17 = vrot.slane %v8237_v5, 2  ;;  %v8252_v40 = vrot.slane %v8251_v15, 2  ;;  %v8272_v33 = vmax.f32 %v8270_v43, %v8271_v41 }
 0x3cb   : > { %v8278_v63 = vrot.slane %v8277_v60, 4  ;;  %v8246_v52 = vmax.f32 %v8244_v12, %v8245_v28  ;;  %v8259_v37 = vrot.slane %v8258_v38, 2  ;;  %v8266_v6 = vrot.slane %v8265_v22, 2 }
 0x3cc   : > { %v8233_v48 = vrot.slane %v8232_v35, 1  ;;  %v8239_v24 = vmax.f32 %v8237_v5, %v8238_v17  ;;  %v8253_v13 = vmax.f32 %v8251_v15, %v8252_v40  ;;  %v8273_v23 = vrot.slane %v8272_v33, 2 }
 0x3cd   : > { %v8279_v16 = vmax.f32 %v8277_v60, %v8278_v63  ;;  %v8247_v39 = vrot.slane %v8246_v52, 1  ;;  %v8260_v42 = vmax.f32 %v8258_v38, %v8259_v37  ;;  %v8267_v59 = vmax.f32 %v8265_v22, %v8266_v6 }
 0x3ce   : > { %v8234_v44 = vmax.f32 %v8232_v35, %v8233_v48  ;;  %v8240_v21 = vrot.slane %v8239_v24, 1  ;;  %v8254_v34 = vrot.slane %v8253_v13, 1  ;;  %v8274_v18 = vmax.f32 %v8272_v33, %v8273_v23 }
 0x3cf   : > { %v8280_v7 = vrot.slane %v8279_v16, 2  ;;  %v8248_v47 = vmax.f32 %v8246_v52, %v8247_v39  ;;  %v8261_v54 = vrot.slane %v8260_v42, 1  ;;  %v8284_v0 = vsel %vm429_vm2, %v7949_v30, -inf }
 0x3d0   : > { %v8241_v4 = vmax.f32 %v8239_v24, %v8240_v21  ;;  %v8255_v55 = vmax.f32 %v8253_v13, %v8254_v34  ;;  %v8268_v57 = vrot.slane %v8267_v59, 1  ;;  %v8275_v8 = vrot.slane %v8274_v18, 1 }
 0x3d1   : > { %v8281_v43 = vmax.f32 %v8279_v16, %v8280_v7  ;;  %v8262_v49 = vmax.f32 %v8260_v42, %v8261_v54  ;;  %v8285_v5 = vrot.slane %v8284_v0, 4  ;;  %v8291_v12 = vsel %vm429_vm2, %v14751_v1, -inf }
 0x3d2   : > { %v8298_v9 = vsel %vm429_vm2, %v7966_v50, -inf  ;;  %v8269_v15 = vmax.f32 %v8267_v59, %v8268_v57  ;;  %v8276_v51 = vmax.f32 %v8274_v18, %v8275_v8  ;;  %v8292_v60 = vrot.slane %v8291_v12, 4 }
 0x3d3   : > { %v8282_v41 = vrot.slane %v8281_v43, 1  ;;  %v8286_v35 = vmax.f32 %v8284_v0, %v8285_v5  ;;  %v8299_v17 = vrot.slane %v8298_v9, 4  ;;  %v8305_v30 = vsel %vm429_vm2, %v14756_v19, -inf }
 0x3d4   : > { %v8535_v28 = vsel %vm8534_vm7, %v8234_v44, %v14690_v27  ;;  %v8293_v40 = vmax.f32 %v8291_v12, %v8292_v60  ;;  %v8306_v22 = vrot.slane %v8305_v30, 4  ;;  %v8545_v48 = vsel %vm8534_vm7, %v8241_v4, %v14699_v14 }
 0x3d5   : > { %v8283_v38 = vmax.f32 %v8281_v43, %v8282_v41  ;;  %v8537_v1 = vsel %vm8536_vm12, %v8255_v55, %v8535_v28  ;;  %v8287_v50 = vrot.slane %v8286_v35, 2  ;;  %v8300_v33 = vmax.f32 %v8298_v9, %v8299_v17  ;;  %v15076_v41 = vld [vmem:[#allocation18_spill] sm:$0xff]  ;;  %v15079_v28 = vld [vmem:[#allocation12_spill] sm:$0xff] }
 0x3d6   : > { %v8539_v63 = vsel %vm8538_vm4, %v8276_v51, %v8537_v1  ;;  %v8294_v24 = vrot.slane %v8293_v40, 2  ;;  %v8307_v52 = vmax.f32 %v8305_v30, %v8306_v22  ;;  %v8546_v19 = vsel %vm8536_vm12, %v8262_v49, %v8545_v48  ;;  %v15081_v22 = vld [vmem:[#allocation13_spill] sm:$0xff]  ;;  %v15082_v1 = vld [vmem:[#allocation22_spill] sm:$0xff] }
 0x3d7   : > { %v8552_v27 = vsel %vm8534_vm7, %v8248_v47, %v14706_v56  ;;  %v8288_v37 = vmax.f32 %v8286_v35, %v8287_v50  ;;  %v8301_v13 = vrot.slane %v8300_v33, 2  ;;  %v8547_v6 = vsel %vm8538_vm4, %v8283_v38, %v8546_v19  ;;  %v15077_v35 = vld [vmem:[#allocation7_spill] sm:$0xff]  ;;  %v15080_v38 = vld [vmem:[#allocation20_spill] sm:$0xff] }
 0x3d8   : > { %v8553_v23 = vsel %vm8536_vm12, %v8269_v15, %v8552_v27  ;;  %v8295_v16 = vmax.f32 %v8293_v40, %v8294_v24  ;;  %v8308_v44 = vrot.slane %v8307_v52, 2  ;;  %v7541_v21 = vadd.f32 %v14702_v45, %v14736_v53 }
 0x3d9   : > { %v7597_v14 = vmul.f32 %v14736_v53, %v14736_v53  ;;  %v8289_v39 = vrot.slane %v8288_v37, 1  ;;  %v8302_v42 = vmax.f32 %v8300_v33, %v8301_v13  ;;  %v7611_v56 = vadd.f32 %v14709_v46, %v14743_v61  ;;  %v15083_v33 = vld [vmem:[#allocation21_spill] sm:$0xff] }
 0x3da   : > { %v7681_v34 = vmax.f32 %v14676_v10, %v14724_v11  ;;  %v8296_v59 = vrot.slane %v8295_v16, 1  ;;  %v8309_v18 = vmax.f32 %v8307_v52, %v8308_v44  ;;  %v7529_v4 = vadd.f32 %v14728_v20, %v14712_v26 }
 0x3db   : > { %v7636_v7 = vadd.f32 %v14716_v29, %v7597_v14  ;;  %v8290_v47 = vmax.f32 %v8288_v37, %v8289_v39  ;;  %v8303_v45 = vrot.slane %v8302_v42, 1  ;;  %v7599_v54 = vmul.f32 %v14728_v20, %v14728_v20  ;;  %v15074_v29 = vld [vmem:[#allocation10_spill] sm:$0xff]  ;;  %v15085_v37 = vld [vmem:[#allocation16_spill] sm:$0xff] }
 0x3dc   : > { %v7682_v0 = vmax.f32 %v14694_v31, %v14728_v20  ;;  %v8297_v10 = vmax.f32 %v8295_v16, %v8296_v59  ;;  %v8310_v46 = vrot.slane %v8309_v18, 1  ;;  %v7405_v26 = vadd.f32 %v14732_v3, %v14538_v62 }
 0x3dd   : > { %v10521_v11 = vadd.f32 %v14632_v25, %v15074_v29  ;;  %v8304_v61 = vmax.f32 %v8302_v42, %v8303_v45  ;;  %v8554_v55 = vsel %vm8538_vm4, %v8290_v47, %v8553_v23  ;;  %v7624_v31 = vadd.f32 %v14720_v2, %v7599_v54 }
 0x3de   : > { %v7769_v20 = vcombine.low %v7681_v34, %v7682_v0  ;;  %v8311_v57 = vmax.f32 %v8309_v18, %v8310_v46  ;;  %v8541_v8 = vsel %vm8540_vm6, %v8297_v10, %v8539_v63  ;;  %v7770_v43 = vcombine.high %v7681_v34, %v7682_v0 }
 0x3df   : > { %v7457_v49 = vadd.f32 %v7405_v26, %v14524_v36  ;;  %v8548_v5 = vsel %vm8540_vm6, %v8304_v61, %v8547_v6  ;;  %8583 = vst [vmem:[%s14803_s12] sm:$0xff] %v8541_v8  ;;  %v7517_v62 = vadd.f32 %v10521_v11, %v14739_v32  ;;  %v7601_v3 = vmul.f32 %v10521_v11, %v10521_v11  ;;  %v15075_v36 = vld [vmem:[#allocation11_spill] sm:$0xff] }
 0x3e0   : > { %v8555_v25 = vsel %vm8540_vm6, %v8311_v57, %v8554_v55  ;;  %8584 = vst [vmem:[%s14803_s12 + $0x8] sm:$0xff] %v8548_v5  ;;  %v7778_v12 = vrot.slane %v7769_v20, %v14548_v58  ;;  %v14827_v60 = vadd.f32 %v15076_v41, %v15075_v36  ;;  %v15078_v32 = vld [vmem:[#allocation19_spill] sm:$0xff]  ;;  %v10523_v40 = vadd.f32 %v15080_v38, %v15079_v28 }
 0x3e1   : > { %v14819_v9 = vadd.f32 %v7541_v21, %v7457_v49  ;;  %v7600_v2 = vmul.f32 %v7457_v49, %v7457_v49  ;;  %8585 = vst [vmem:[%s14803_s12 + $0x10] sm:$0xff] %v8555_v25  ;;  %v7683_v15 = vmax.f32 %v14736_v53, %v7457_v49  ;;  %v14823_v51 = vadd.f32 %v7611_v56, %v7601_v3  ;;  %v15084_v53 = vld [vmem:[#allocation23_spill] sm:$0xff]  ;;  %v15086_v56 = vld [vmem:[#allocation14_spill] sm:$0xff] }
 0x3e2   : > { %v10505_v17 = vadd.f32 %v15078_v32, %v15077_v35  ;;  %v14837_v50 = vadd.f32 %v15082_v1, %v15081_v22  ;;  %v14841_v63 = vadd.f32 %v15084_v53, %v15083_v33  ;;  %v14845_v52 = vadd.f32 %v14827_v60, %v7529_v4 }
 0x3e3   : > { %v14831_v30 = vadd.f32 %v7636_v7, %v7600_v2  ;;  %v7771_v48 = vcombine.high %v7683_v15, %v7683_v15  ;;  %v7792_v24 = vrot.slane %v7683_v15, %v14548_v58  ;;  %v7602_v19 = vmul.f32 %v14827_v60, %v14827_v60 }
 0x3e4   : > { %v7785_v27 = vrot.slane %v7770_v43, %v14548_v58  ;;  %v7410_v13 = vadd.f32 %v10505_v17, %v15085_v37  ;;  %v14851_v6 = vadd.f32 %v10523_v40, %v7517_v62  ;;  %v14853_v23 = vmax.f32 %v10521_v11, %v10523_v40 }
 0x3e5   : > { %v7799_v16 = vrot.slane %v7771_v48, %v14548_v58  ;;  %v7800_v44 = vcombine.low %v7778_v12, %v7792_v24  ;;  %v7801_v21 = vcombine.high %v7778_v12, %v7792_v24  ;;  %v10001_v14 = vcombine.low %v7792_v24, %v7792_v24 }
 0x3e6   : > { %v10002_v39 = vcombine.high %v7792_v24, %v7792_v24  ;;  %v14856_v42 = vadd.f32 %v7624_v31, %v7602_v19  ;;  %v14859_v34 = vadd.f32 %v7410_v13, %v15086_v56  ;;  %v7519_v54 = vrot.slane %v14851_v6, 4 }
 0x3e7   : > { %v7802_v59 = vcombine.low %v7785_v27, %v7799_v16  ;;  %v7803_v18 = vcombine.high %v7785_v27, %v7799_v16  ;;  %v7974_v7 = vrot.slane %v7800_v44, %v14548_v58  ;;  %v7981_v4 = vrot.slane %v10001_v14, %v14548_v58 }
 0x3e8   : > { %v7990_v47 = vrot.slane %v7801_v21, %v14548_v58  ;;  %v10003_v45 = vcombine.low %v7799_v16, %v7799_v16  ;;  %v14865_v0 = vmul.f32 %v10523_v40, %v10523_v40  ;;  %v7997_v46 = vrot.slane %v10002_v39, %v14548_v58 }
 0x3e9   : > { %v7982_v10 = vcombine.high %v7974_v7, %v7974_v7  ;;  %v8006_v26 = vrot.slane %v7802_v59, %v14548_v58  ;;  %v8312_v29 = vsel %vm429_vm2, %v7974_v7, -inf  ;;  %v10004_v61 = vcombine.high %v7799_v16, %v7799_v16 }
 0x3ea   : > { %v7998_v11 = vcombine.high %v7990_v47, %v7990_v47  ;;  %v8022_v55 = vrot.slane %v7803_v18, %v14548_v58  ;;  %v8313_v31 = vrot.slane %v8312_v29, 4  ;;  %v8013_v20 = vrot.slane %v10003_v45, %v14548_v58 }
 0x3eb   : > { %v8014_v57 = vcombine.high %v8006_v26, %v8006_v26  ;;  %v8319_v8 = vsel %vm429_vm2, %v7982_v10, -inf  ;;  %v8326_v43 = vsel %vm429_vm2, %v7981_v4, -inf  ;;  %v8333_v3 = vsel %vm429_vm2, %v7990_v47, -inf }
 0x3ec   : > { %v8314_v49 = vmax.f32 %v8312_v29, %v8313_v31  ;;  %v8320_v5 = vrot.slane %v8319_v8, 4  ;;  %v8327_v62 = vrot.slane %v8326_v43, 4  ;;  %v8334_v25 = vrot.slane %v8333_v3, 4 }
 0x3ed   : > { %v8340_v12 = vsel %vm429_vm2, %v7998_v11, -inf  ;;  %v8347_v2 = vsel %vm429_vm2, %v7997_v46, -inf  ;;  %v8354_v15 = vsel %vm429_vm2, %v8006_v26, -inf  ;;  %v8361_v40 = vsel %vm429_vm2, %v8014_v57, -inf }
 0x3ee   : > { %v8315_v36 = vrot.slane %v8314_v49, 2  ;;  %v8321_v41 = vmax.f32 %v8319_v8, %v8320_v5  ;;  %v8328_v35 = vmax.f32 %v8326_v43, %v8327_v62  ;;  %v8341_v32 = vrot.slane %v8340_v12, 4 }
 0x3ef   : > { %v8335_v17 = vmax.f32 %v8333_v3, %v8334_v25  ;;  %v8348_v28 = vrot.slane %v8347_v2, 4  ;;  %v8355_v38 = vrot.slane %v8354_v15, 4  ;;  %v8362_v27 = vrot.slane %v8361_v40, 4 }
 0x3f0   : > { %v8316_v22 = vmax.f32 %v8314_v49, %v8315_v36  ;;  %v8322_v1 = vrot.slane %v8321_v41, 2  ;;  %v8329_v33 = vrot.slane %v8328_v35, 2  ;;  %v8342_v53 = vmax.f32 %v8340_v12, %v8341_v32 }
 0x3f1   : > { %v8336_v48 = vrot.slane %v8335_v17, 2  ;;  %v8349_v24 = vmax.f32 %v8347_v2, %v8348_v28  ;;  %v8356_v19 = vmax.f32 %v8354_v15, %v8355_v38  ;;  %v8363_v56 = vmax.f32 %v8361_v40, %v8362_v27 }
 0x3f2   : > { %v8317_v37 = vrot.slane %v8316_v22, 1  ;;  %v8323_v13 = vmax.f32 %v8321_v41, %v8322_v1  ;;  %v8330_v16 = vmax.f32 %v8328_v35, %v8329_v33  ;;  %v8343_v44 = vrot.slane %v8342_v53, 2 }
 0x3f3   : > { %v8337_v21 = vmax.f32 %v8335_v17, %v8336_v48  ;;  %v8350_v14 = vrot.slane %v8349_v24, 2  ;;  %v8357_v39 = vrot.slane %v8356_v19, 2  ;;  %v8029_v59 = vrot.slane %v10004_v61, %v14548_v58 }
 0x3f4   : > { %v8030_v18 = vcombine.high %v8022_v55, %v8022_v55  ;;  %v8324_v7 = vrot.slane %v8323_v13, 1  ;;  %v8344_v4 = vmax.f32 %v8342_v53, %v8343_v44  ;;  %v8331_v47 = vrot.slane %v8330_v16, 1 }
 0x3f5   : > { %v8338_v45 = vrot.slane %v8337_v21, 1  ;;  %v8358_v10 = vmax.f32 %v8356_v19, %v8357_v39  ;;  %v8364_v46 = vrot.slane %v8363_v56, 2  ;;  %v8318_v26 = vmax.f32 %v8316_v22, %v8317_v37 }
 0x3f6   : > { %v8345_v29 = vrot.slane %v8344_v4, 1  ;;  %v8351_v11 = vmax.f32 %v8349_v24, %v8350_v14  ;;  %v8368_v31 = vsel %vm429_vm2, %v8013_v20, -inf  ;;  %v8325_v57 = vmax.f32 %v8323_v13, %v8324_v7 }
 0x3f7   : > { %v8339_v8 = vmax.f32 %v8337_v21, %v8338_v45  ;;  %v8359_v43 = vrot.slane %v8358_v10, 1  ;;  %v8365_v49 = vmax.f32 %v8363_v56, %v8364_v46  ;;  %v8369_v62 = vrot.slane %v8368_v31, 4 }
 0x3f8   : > { %v8346_v5 = vmax.f32 %v8344_v4, %v8345_v29  ;;  %v8375_v61 = vsel %vm429_vm2, %v8022_v55, -inf  ;;  %v8382_v3 = vsel %vm429_vm2, %v8030_v18, -inf  ;;  %v8332_v25 = vmax.f32 %v8330_v16, %v8331_v47 }
 0x3f9   : > { %v8360_v12 = vmax.f32 %v8358_v10, %v8359_v43  ;;  %v8366_v2 = vrot.slane %v8365_v49, 1  ;;  %v8376_v15 = vrot.slane %v8375_v61, 4  ;;  %v8370_v36 = vmax.f32 %v8368_v31, %v8369_v62 }
 0x3fa   : > { %v8383_v41 = vrot.slane %v8382_v3, 4  ;;  %v8389_v35 = vsel %vm429_vm2, %v8029_v59, -inf  ;;  %v8556_v20 = vsel %vm484_vm14, %v8339_v8, %v8318_v26  ;;  %v8352_v40 = vrot.slane %v8351_v11, 1 }
 0x3fb   : > { %v8367_v32 = vmax.f32 %v8365_v49, %v8366_v2  ;;  %v8377_v17 = vmax.f32 %v8375_v61, %v8376_v15  ;;  %v8390_v28 = vrot.slane %v8389_v35, 4  ;;  %v8557_v38 = vsel %vm8530_vm9, %v8360_v12, %v8556_v20 }
 0x3fc   : > { %v8371_v22 = vrot.slane %v8370_v36, 2  ;;  %v8384_v55 = vmax.f32 %v8382_v3, %v8383_v41  ;;  %v8563_v1 = vsel %vm484_vm14, %v8346_v5, %v8325_v57  ;;  %v7543_v24 = vadd.f32 %v14819_v9, %v14859_v34 }
 0x3fd   : > { %v8378_v33 = vrot.slane %v8377_v17, 2  ;;  %v8391_v53 = vmax.f32 %v8389_v35, %v8390_v28  ;;  %v8564_v48 = vsel %vm8530_vm9, %v8367_v32, %v8563_v1  ;;  %v7603_v37 = vmul.f32 %v14859_v34, %v14859_v34 }
 0x3fe   : > { %v8372_v19 = vmax.f32 %v8370_v36, %v8371_v22  ;;  %v8385_v27 = vrot.slane %v8384_v55, 2  ;;  %v7520_v13 = vadd.f32 %v7519_v54, %v14851_v6  ;;  %v7613_v21 = vadd.f32 %v14823_v51, %v14865_v0  ;;  %v15087_v36 = vld [vmem:[#allocation17_spill] sm:$0xff] }
 0x3ff   : > { %v8379_v16 = vmax.f32 %v8377_v17, %v8378_v33  ;;  %v8392_v44 = vrot.slane %v8391_v53, 2  ;;  %v7531_v14 = vadd.f32 %v14837_v50, %v14845_v52  ;;  %v7638_v9 = vadd.f32 %v14831_v30, %v7603_v37 }
 0x400   : > { %v8373_v39 = vrot.slane %v8372_v19, 1  ;;  %v8386_v56 = vmax.f32 %v8384_v55, %v8385_v27  ;;  %v7521_v59 = vrot.slane %v7520_v13, 2  ;;  %v7614_v4 = vrot.slane %v7613_v21, 4  ;;  %v15089_v55 = vld [vmem:[#allocation4_spill] sm:$0xff] }
 0x401   : > { %v8380_v18 = vrot.slane %v8379_v16, 1  ;;  %v8393_v7 = vmax.f32 %v8391_v53, %v8392_v44  ;;  %v7532_v47 = vrot.slane %v7531_v14, 4  ;;  %v8353_v45 = vmax.f32 %v8351_v11, %v8352_v40 }
 0x402   : > { %v8387_v10 = vrot.slane %v8386_v56, 1  ;;  %v7522_v6 = vadd.f32 %v7521_v59, %v7520_v13  ;;  %v7605_v54 = vmul.f32 %v14837_v50, %v14837_v50  ;;  %v7615_v51 = vadd.f32 %v7614_v4, %v7613_v21 }
 0x403   : > { %v8381_v46 = vmax.f32 %v8379_v16, %v8380_v18  ;;  %v7533_v0 = vadd.f32 %v7532_v47, %v7531_v14  ;;  %v11536_v26 = vmov 1966171168   ;;  %v8374_v29 = vmax.f32 %v8372_v19, %v8373_v39 }
 0x404   : > { %v7556_v52 = vunpack.c.l.s4 %v11536_v26  ;;  %v8388_v31 = vmax.f32 %v8386_v56, %v8387_v10  ;;  %v8394_v57 = vrot.slane %v8393_v7, 1  ;;  %v7626_v30 = vadd.f32 %v14856_v42, %v7605_v54 }
 0x405   : > { %v14904_v8 = vsel %vm8532_vm11, %v8381_v46, %v8557_v38  ;;  %v7523_v43 = vrot.slane %v7522_v6, 1  ;;  %v7616_v11 = vrot.slane %v7615_v51, 2  ;;  %v7534_v49 = vrot.slane %v7533_v0, 2  ;;  %v15088_v38 = vld [vmem:[#allocation15_spill] sm:$0xff] }
 0x406   : > { %v14907_v5 = vsel %vm8532_vm11, %v8388_v31, %v8564_v48  ;;  %v8570_v62 = vsel %vm484_vm14, %v8353_v45, %v8332_v25  ;;  %v7627_v61 = vrot.slane %v7626_v30, 4  ;;  %v7685_v3 = vmax.f32 %v14827_v60, %v14837_v50 }
 0x407   : > { %v7617_v12 = vadd.f32 %v7616_v11, %v7615_v51  ;;  %v7535_v2 = vadd.f32 %v7534_v49, %v7533_v0  ;;  %v7557_v15 = vunpack.c.0.s8 %v7556_v52  ;;  %v7413_v42 = vadd.f32 %v14841_v63, %v15087_v36 }
 0x408   : > { %v8395_v41 = vmax.f32 %v8393_v7, %v8394_v57  ;;  %v7628_v35 = vadd.f32 %v7627_v61, %v7626_v30  ;;  %v7804_v20 = vcombine.low %v14853_v23, %v7685_v3  ;;  %v7805_v32 = vcombine.high %v14853_v23, %v7685_v3 }
 0x409   : > { %v8571_v17 = vsel %vm8530_vm9, %v8374_v29, %v8570_v62  ;;  %v7524_v28 = vadd.f32 %v7523_v43, %v7522_v6  ;;  %v7536_v25 = vrot.slane %v7535_v2, 1  ;;  %v7463_v40 = vadd.f32 %v7413_v42, %v15088_v38 }
 0x40a   : > { %v7618_v22 = vrot.slane %v7617_v12, 1  ;;  %v7629_v60 = vrot.slane %v7628_v35, 2  ;;  %v14919_v1 = vsub.s32 %v7557_v15, %v15089_v55  ;;  %v14922_v53 = vsel %vm8532_vm11, %v8395_v41, %v8571_v17 }
 0x40b   : > { %v7537_v50 = vadd.f32 %v7536_v25, %v7535_v2  ;;  %v7544_v33 = vadd.f32 %v7543_v24, %v7463_v40  ;;  %v7606_v63 = vmul.f32 %v7463_v40, %v7463_v40  ;;  %v7686_v23 = vmax.f32 %v14859_v34, %v7463_v40 }
 0x40c   : > { %v7630_v48 = vadd.f32 %v7629_v60, %v7628_v35  ;;  %v7813_v27 = vrot.slane %v7804_v20, %v14548_v58  ;;  %v7619_v16 = vadd.f32 %v7618_v22, %v7617_v12  ;;  %v7820_v24 = vrot.slane %v7805_v32, %v14548_v58 }
 0x40d   : > { %v7554_v19 = vcombine.low %v7524_v28, %v7537_v50  ;;  %v7545_v37 = vrot.slane %v7544_v33, 4  ;;  %v7639_v13 = vadd.f32 %v7638_v9, %v7606_v63  ;;  %v7806_v21 = vcombine.high %v7686_v23, %v7686_v23 }
 0x40e   : > { %v7631_v44 = vrot.slane %v7630_v48, 1  ;;  %v7827_v14 = vrot.slane %v7686_v23, %v14548_v58  ;;  %v15090_v57 = vlaneseq }
 0x40f   : > { %v7561_v39 = vrot.slane %v7554_v19, %v14919_v1  ;;  %v7546_v56 = vadd.f32 %v7545_v37, %v7544_v33  ;;  %v7640_v59 = vrot.slane %v7639_v13, 4  ;;  %v7834_v7 = vrot.slane %v7806_v21, %v14548_v58 }
 0x410   : > { %v7632_v18 = vadd.f32 %v7631_v44, %v7630_v48  ;;  %v7835_v34 = vcombine.low %v7813_v27, %v7827_v14  ;;  %v7836_v4 = vcombine.high %v7813_v27, %v7827_v14  ;;  %v10005_v10 = vcombine.low %v7827_v14, %v7827_v14 }
 0x411   : > { %v7547_v47 = vrot.slane %v7546_v56, 2  ;;  %v7641_v45 = vadd.f32 %v7640_v59, %v7639_v13  ;;  %v10006_v9 = vcombine.high %v7827_v14, %v7827_v14  ;;  %v7837_v54 = vcombine.low %v7820_v24, %v7834_v7 }
 0x412   : > { %v7649_v6 = vcombine.low %v7619_v16, %v7632_v18  ;;  %v7838_v46 = vcombine.high %v7820_v24, %v7834_v7  ;;  %v8038_v51 = vrot.slane %v7835_v34, %v14548_v58  ;;  %v8045_v52 = vrot.slane %v10005_v10, %v14548_v58 }
 0x413   : > { %v7548_v0 = vadd.f32 %v7547_v47, %v7546_v56  ;;  %v7642_v26 = vrot.slane %v7641_v45, 2  ;;  %v8054_v29 = vrot.slane %v7836_v4, %v14548_v58  ;;  %vm14935_vm14 = vcmp.lt.s32.totalorder %v15090_v57, 384 }
 0x414   : > { %v7656_v31 = vrot.slane %v7649_v6, %v14919_v1  ;;  %v8046_v43 = vcombine.high %v8038_v51, %v8038_v51  ;;  %v8061_v11 = vrot.slane %v10006_v9, %v14548_v58  ;;  %v10007_v49 = vcombine.low %v7834_v7, %v7834_v7 }
 0x415   : > { %v7549_v62 = vrot.slane %v7548_v0, 1  ;;  %v7643_v61 = vadd.f32 %v7642_v26, %v7641_v45  ;;  %v8062_v3 = vcombine.high %v8054_v29, %v8054_v29  ;;  %v8070_v12 = vrot.slane %v7837_v54, %v14548_v58 }
 0x416   : > { %v8077_v2 = vrot.slane %v10007_v49, %v14548_v58  ;;  %v10008_v15 = vcombine.high %v7834_v7, %v7834_v7  ;;  %v14943_v36 = vrot.slane %v7838_v46, %v14548_v58  ;;  %v8396_v42 = vsel %vm429_vm2, %v8038_v51, -inf }
 0x417   : > { %v7550_v41 = vadd.f32 %v7549_v62, %v7548_v0  ;;  %v7644_v35 = vrot.slane %v7643_v61, 1  ;;  %v8078_v20 = vcombine.high %v8070_v12, %v8070_v12  ;;  %v8397_v32 = vrot.slane %v8396_v42, 4 }
 0x418   : > { %v14948_v17 = vrot.slane %v10008_v15, %v14548_v58  ;;  %v8094_v28 = vcombine.high %v14943_v36, %v14943_v36  ;;  %v8403_v25 = vsel %vm429_vm2, %v8046_v43, -inf  ;;  %v8410_v38 = vsel %vm429_vm2, %v8045_v52, -inf }
 0x419   : > { %v7568_v40 = vrot.slane %v7550_v41, %v14919_v1  ;;  %v7645_v22 = vadd.f32 %v7644_v35, %v7643_v61  ;;  %v8398_v60 = vmax.f32 %v8396_v42, %v8397_v32  ;;  %v8404_v50 = vrot.slane %v8403_v25, 4 }
 0x41a   : > { %v8411_v55 = vrot.slane %v8410_v38, 4  ;;  %v8417_v33 = vsel %vm429_vm2, %v8054_v29, -inf  ;;  %v8424_v63 = vsel %vm429_vm2, %v8062_v3, -inf  ;;  %v8431_v58 = vsel %vm429_vm2, %v8061_v11, -inf }
 0x41b   : > { %v7569_v48 = vcombine.low %v7561_v39, %v7568_v40  ;;  %v7663_v23 = vrot.slane %v7645_v22, %v14919_v1  ;;  %v8399_v19 = vrot.slane %v8398_v60, 2  ;;  %v8405_v27 = vmax.f32 %v8403_v25, %v8404_v50 }
 0x41c   : > { %v8412_v37 = vmax.f32 %v8410_v38, %v8411_v55  ;;  %v8418_v13 = vrot.slane %v8417_v33, 4  ;;  %v8425_v16 = vrot.slane %v8424_v63, 4  ;;  %v8432_v44 = vrot.slane %v8431_v58, 4 }
 0x41d   : > { %v7576_v21 = vrot.slane %v7569_v48, %v14919_v1  ;;  %v7664_v14 = vcombine.low %v7656_v31, %v7663_v23  ;;  %v8400_v24 = vmax.f32 %v8398_v60, %v8399_v19  ;;  %v8406_v56 = vrot.slane %v8405_v27, 2 }
 0x41e   : > { %v8413_v59 = vrot.slane %v8412_v37, 2  ;;  %v8419_v18 = vmax.f32 %v8417_v33, %v8418_v13  ;;  %v8426_v39 = vmax.f32 %v8424_v63, %v8425_v16  ;;  %v8433_v7 = vmax.f32 %v8431_v58, %v8432_v44 }
 0x41f   : > { %7582 = vst.msk [vmem:[%s237_s15] ss:$2 sm:$0x7] %vm14935_vm14, %v7576_v21  ;;  %v7671_v34 = vrot.slane %v7664_v14, %v14919_v1  ;;  %v8401_v4 = vrot.slane %v8400_v24, 1  ;;  %v8407_v47 = vmax.f32 %v8405_v27, %v8406_v56  ;;  %v8438_v45 = vsel %vm429_vm2, %v8070_v12, -inf }
 0x420   : > { %v8414_v10 = vmax.f32 %v8412_v37, %v8413_v59  ;;  %v8420_v9 = vrot.slane %v8419_v18, 2  ;;  %v8427_v6 = vrot.slane %v8426_v39, 2  ;;  %v8434_v54 = vrot.slane %v8433_v7, 2 }
 0x421   : > { %9992 = vst.msk [vmem:[%s237_s15 + $0x1] ss:$2 sm:$0x7] %vm14935_vm14, %v7671_v34  ;;  %v8402_v46 = vmax.f32 %v8400_v24, %v8401_v4  ;;  %v8408_v51 = vrot.slane %v8407_v47, 1  ;;  %v8439_v0 = vrot.slane %v8438_v45, 4  ;;  %v8445_v26 = vsel %vm429_vm2, %v8078_v20, -inf }
 0x422   : > { %v8415_v52 = vrot.slane %v8414_v10, 1  ;;  %v8421_v29 = vmax.f32 %v8419_v18, %v8420_v9  ;;  %v8428_v31 = vmax.f32 %v8426_v39, %v8427_v6  ;;  %v8435_v1 = vmax.f32 %v8433_v7, %v8434_v54 }
 0x423   : > { %v8409_v57 = vmax.f32 %v8407_v47, %v8408_v51  ;;  %v8440_v43 = vmax.f32 %v8438_v45, %v8439_v0  ;;  %v8446_v11 = vrot.slane %v8445_v26, 4  ;;  %v8452_v49 = vsel %vm429_vm2, %v8077_v2, -inf }
 0x424   : > { %v8416_v62 = vmax.f32 %v8414_v10, %v8415_v52  ;;  %v8422_v61 = vrot.slane %v8421_v29, 1  ;;  %v8429_v3 = vrot.slane %v8428_v31, 1  ;;  %v8436_v12 = vrot.slane %v8435_v1, 1 }
 0x425   : > { %v8441_v30 = vrot.slane %v8440_v43, 2  ;;  %v8447_v15 = vmax.f32 %v8445_v26, %v8446_v11  ;;  %v8453_v42 = vrot.slane %v8452_v49, 4  ;;  %v8459_v41 = vsel %vm429_vm2, %v14943_v36, -inf }
 0x426   : > { %v8423_v35 = vmax.f32 %v8421_v29, %v8422_v61  ;;  %v8430_v20 = vmax.f32 %v8428_v31, %v8429_v3  ;;  %v8437_v32 = vmax.f32 %v8435_v1, %v8436_v12  ;;  %v8460_v25 = vrot.slane %v8459_v41, 4 }
 0x427   : > { %v8442_v38 = vmax.f32 %v8440_v43, %v8441_v30  ;;  %v8448_v40 = vrot.slane %v8447_v15, 2  ;;  %v8454_v22 = vmax.f32 %v8452_v49, %v8453_v42  ;;  %v8466_v2 = vsel %vm429_vm2, %v8094_v28, -inf }
 0x428   : > { %v8461_v60 = vmax.f32 %v8459_v41, %v8460_v25  ;;  %v8467_v50 = vrot.slane %v8466_v2, 4  ;;  %v8473_v55 = vsel %vm429_vm2, %v14948_v17, -inf  ;;  %v8559_v33 = vsel %vm8534_vm7, %v8402_v46, %v14904_v8 }
 0x429   : > { %v8443_v63 = vrot.slane %v8442_v38, 1  ;;  %v8449_v58 = vmax.f32 %v8447_v15, %v8448_v40  ;;  %v8455_v48 = vrot.slane %v8454_v22, 2  ;;  %v8474_v23 = vrot.slane %v8473_v55, 4 }
 0x42a   : > { %v8462_v19 = vrot.slane %v8461_v60, 2  ;;  %v8468_v27 = vmax.f32 %v8466_v2, %v8467_v50  ;;  %v8560_v37 = vsel %vm8536_vm12, %v8423_v35, %v8559_v33  ;;  %v8566_v36 = vsel %vm8534_vm7, %v8409_v57, %v14907_v5 }
 0x42b   : > { %v8444_v28 = vmax.f32 %v8442_v38, %v8443_v63  ;;  %v8450_v13 = vrot.slane %v8449_v58, 1  ;;  %v8456_v16 = vmax.f32 %v8454_v22, %v8455_v48  ;;  %v8475_v44 = vmax.f32 %v8473_v55, %v8474_v23 }
 0x42c   : > { %v8463_v21 = vmax.f32 %v8461_v60, %v8462_v19  ;;  %v8469_v17 = vrot.slane %v8468_v27, 2  ;;  %v8567_v14 = vsel %vm8536_vm12, %v8430_v20, %v8566_v36  ;;  %v8573_v8 = vsel %vm8534_vm7, %v8416_v62, %v14922_v53 }
 0x42d   : > { %v8451_v24 = vmax.f32 %v8449_v58, %v8450_v13  ;;  %v8457_v56 = vrot.slane %v8456_v16, 1  ;;  %v8476_v59 = vrot.slane %v8475_v44, 2  ;;  %v8561_v18 = vsel %vm8538_vm4, %v8444_v28, %v8560_v37 }
 0x42e   : > { %v8464_v39 = vrot.slane %v8463_v21, 1  ;;  %v8470_v5 = vmax.f32 %v8468_v27, %v8469_v17  ;;  %v8574_v7 = vsel %vm8536_vm12, %v8437_v32, %v8573_v8 }
 0x42f   : > { %v8458_v34 = vmax.f32 %v8456_v16, %v8457_v56  ;;  %v8477_v4 = vmax.f32 %v8475_v44, %v8476_v59  ;;  %v8568_v47 = vsel %vm8538_vm4, %v8451_v24, %v8567_v14 }
 0x430   : > { %v8465_v45 = vmax.f32 %v8463_v21, %v8464_v39  ;;  %v8471_v10 = vrot.slane %v8470_v5, 1 }
 0x431   : > { %v8478_v9 = vrot.slane %v8477_v4, 1  ;;  %v8575_v53 = vsel %vm8538_vm4, %v8458_v34, %v8574_v7 }
 0x432   : > { %v8472_v6 = vmax.f32 %v8470_v5, %v8471_v10  ;;  %v8562_v54 = vsel %vm8540_vm6, %v8465_v45, %v8561_v18 }
 0x433   : > { %v8479_v46 = vmax.f32 %v8477_v4, %v8478_v9  ;;  %8586 = vst [vmem:[%s14803_s12 + $0x18] sm:$0xff] %v8562_v54 }
 0x434   : > { %v8569_v51 = vsel %vm8540_vm6, %v8472_v6, %v8568_v47 }
 0x435   : > { %v8576_v0 = vsel %vm8540_vm6, %v8479_v46, %v8575_v53  ;;  %8587 = vst [vmem:[%s14803_s12 + $0x20] sm:$0xff] %v8569_v51 }
 0x436   : > { %8588 = vst [vmem:[%s14803_s12 + $0x28] sm:$0xff] %v8576_v0 }
 0x437 PF: > { %s16_s18 = sadd.s32 1, %s11531_s18  }
 0x438   : > { %p13_p4 = scmp.ge.s32.totalorder %s16_s18, 4  }
 0x43a   :  { %15 = sbr.rel (!%p13_p4) target bundleno = 1 (0x1), region = 84 }

</bundles_post_ra>
